<compile_context>
chip_gen: v5e
topology: v5e:2x2
jax: 0.10.0
libtpu: 0.0.40
codegen_flags: <defaults>
</compile_context>

<pallas_src>
import functools

import jax
import jax.numpy as jnp
from jax.experimental import pallas as pl
from jax.experimental.pallas import tpu as pltpu


# ------------------------------ Pallas kernels -------------------------------

def _apply_act(x, act):
    if act == "relu":
        return jnp.maximum(x, 0.0)
    if act == "leaky_relu":
        return jnp.where(x > 0, x, 0.01 * x)
    return x


def _conv_kernel(w_ref, col_ref, bias_ref, o_ref, *, act):
    # (Cout,K)bf16 @ (K,M)bf16 -> f32, + bias(Cout,1), activation. Lane dim = M.
    acc = jnp.dot(w_ref[...], col_ref[...], preferred_element_type=jnp.float32)
    acc = acc + bias_ref[...]
    o_ref[...] = _apply_act(acc, act)


def _conv_bn_act_kernel(w_ref, col_ref, bias_ref, gamma_ref, beta_ref, o_ref,
                        *, act, eps=1e-5):
    # conv + bias + BatchNorm2d (batch stats over the lane axis = B*OH*OW) + act.
    acc = jnp.dot(w_ref[...], col_ref[...], preferred_element_type=jnp.float32)
    acc = acc + bias_ref[...]
    mean = jnp.mean(acc, axis=1, keepdims=True)
    var = jnp.mean(jnp.square(acc - mean), axis=1, keepdims=True)
    acc = gamma_ref[...] * (acc - mean) * jax.lax.rsqrt(var + eps) + beta_ref[...]
    o_ref[...] = _apply_act(acc, act)


def _residual_kernel(w1_ref, w2_ref, col_ref, x_ref, o_ref, *, final_relu):
    # y = x + W2 @ relu(W1 @ colT)   (colT is built from relu(x) outside).
    h = jnp.dot(w1_ref[...], col_ref[...], preferred_element_type=jnp.float32)
    h = jnp.maximum(h, 0.0)
    y = jnp.dot(w2_ref[...], h.astype(jnp.bfloat16),
                preferred_element_type=jnp.float32)
    y = y + x_ref[...]
    if final_relu:
        y = jnp.maximum(y, 0.0)
    o_ref[...] = y


def _classifier_kernel(x_ref,
                       w1_ref, b1_ref, g1_ref, be1_ref,
                       w2_ref, b2_ref, g2_ref, be2_ref,
                       w3_ref, b3_ref, o_ref, *, eps=1e-5):
    # Whole classifier: fc -> BN1d -> ReLU -> fc -> BN1d -> ReLU -> fc -> softmax.
    def bn_relu(h, g, be):
        mean = jnp.mean(h, axis=0, keepdims=True)
        var = jnp.mean(jnp.square(h - mean), axis=0, keepdims=True)
        return jnp.maximum(g * (h - mean) * jax.lax.rsqrt(var + eps) + be, 0.0)

    h = jnp.dot(x_ref[...], w1_ref[...], preferred_element_type=jnp.float32)
    h = bn_relu(h + b1_ref[...], g1_ref[...], be1_ref[...])
    h = jnp.dot(h.astype(jnp.bfloat16), w2_ref[...],
                preferred_element_type=jnp.float32)
    h = bn_relu(h + b2_ref[...], g2_ref[...], be2_ref[...])
    h = jnp.dot(h.astype(jnp.bfloat16), w3_ref[...],
                preferred_element_type=jnp.float32) + b3_ref[...]
    m = jnp.max(h, axis=1, keepdims=True)
    e = jnp.exp(h - m)
    o_ref[...] = e / jnp.sum(e, axis=1, keepdims=True)


# ---------------------------- pallas_call wrappers ----------------------------

def _lane_split(M):
    # 2 "parallel" lane tiles for large M (lets v7x split work over its 2 TCs);
    # otherwise a single full block (per-step overhead dominates at these sizes).
    if M >= 2048 and M % 256 == 0:
        return 2, M // 2
    return 1, M


def conv_mm(w, col, bias, act):
    # w: (Cout,K) bf16, col: (K,M), bias: (Cout,1) f32 -> (Cout,M) f32.
    Cout, K = w.shape
    M = col.shape[1]
    nsteps, tm = _lane_split(M)
    return pl.pallas_call(
        functools.partial(_conv_kernel, act=act),
        out_shape=jax.ShapeDtypeStruct((Cout, M), jnp.float32),
        grid=(nsteps,),
        in_specs=[
            pl.BlockSpec((Cout, K), lambda i: (0, 0)),
            pl.BlockSpec((K, tm), lambda i: (0, i)),
            pl.BlockSpec((Cout, 1), lambda i: (0, 0)),
        ],
        out_specs=pl.BlockSpec((Cout, tm), lambda i: (0, i)),
        compiler_params=pltpu.CompilerParams(dimension_semantics=("parallel",)),
    )(w, col.astype(jnp.bfloat16), bias)


def conv_bn_mm(w, col, bias, gamma, beta, act="leaky_relu"):
    # Single block (BatchNorm needs full-lane statistics); M is small here.
    Cout = w.shape[0]
    M = col.shape[1]
    return pl.pallas_call(
        functools.partial(_conv_bn_act_kernel, act=act),
        out_shape=jax.ShapeDtypeStruct((Cout, M), jnp.float32),
    )(w, col.astype(jnp.bfloat16), bias, gamma, beta)


def residual_mm(w1, w2, col, x_flat, final_relu):
    C, M = x_flat.shape
    K = col.shape[0]
    R = w1.shape[0]
    nsteps, tm = _lane_split(M)
    return pl.pallas_call(
        functools.partial(_residual_kernel, final_relu=final_relu),
        out_shape=jax.ShapeDtypeStruct((C, M), jnp.float32),
        grid=(nsteps,),
        in_specs=[
            pl.BlockSpec((R, K), lambda i: (0, 0)),
            pl.BlockSpec((C, R), lambda i: (0, 0)),
            pl.BlockSpec((K, tm), lambda i: (0, i)),
            pl.BlockSpec((C, tm), lambda i: (0, i)),
        ],
        out_specs=pl.BlockSpec((C, tm), lambda i: (0, i)),
        compiler_params=pltpu.CompilerParams(dimension_semantics=("parallel",)),
    )(w1, w2, col.astype(jnp.bfloat16), x_flat)


# --------------------------- conv / misc helpers ------------------------------
# TODO(synk): im2col / zero-dilation are done in XLA glue (transpose-free,
# lane-contiguous), not inside the kernel; in-kernel patch extraction would
# further cut HBM traffic but is omitted here.

def _im2col_T(x, k, stride, padding):
    # x: (C, B, H, W) -> colT: (C*k*k, B*OH*OW), columns ordered (C, kh, kw)
    # to match PyTorch's weight.reshape(Cout, -1). No lane-axis transposes.
    C, B, H, W = x.shape
    xp = jnp.pad(x, ((0, 0), (0, 0), (padding, padding), (padding, padding)))
    OH = (H + 2 * padding - k) // stride + 1
    OW = (W + 2 * padding - k) // stride + 1
    M = B * OH * OW
    slices = []
    for i in range(k):
        for j in range(k):
            sl = xp[:, :, i:i + (OH - 1) * stride + 1:stride,
                          j:j + (OW - 1) * stride + 1:stride]
            slices.append(sl.reshape(C, M))
    col = jnp.stack(slices, axis=1).reshape(C * k * k, M)
    return col, OH, OW


def _dilate(x, s):
    if s == 1:
        return x
    C, B, H, W = x.shape
    y = jnp.zeros((C, B, (H - 1) * s + 1, (W - 1) * s + 1), x.dtype)
    return y.at[:, :, ::s, ::s].set(x)


def conv2d(x, w, b, k, stride, padding, act="none"):
    # x: CBHW, w: packed (Cout, Cin*k*k) bf16, b: (Cout,1) f32.
    B = x.shape[1]
    col, OH, OW = _im2col_T(x, k, stride, padding)
    out = conv_mm(w, col, b, act)
    return out.reshape(w.shape[0], B, OH, OW)


def conv_transpose2d(x, w, b, k, stride, padding, act="none"):
    # w is already packed as the equivalent direct-conv weight (flipped/swapped).
    return conv2d(_dilate(x, stride), w, b, k, 1, k - 1 - padding, act)


def conv_transpose2d_bn_leaky(x, w, b, gamma, beta, k, stride, padding):
    xd = _dilate(x, stride)
    col, OH, OW = _im2col_T(xd, k, 1, k - 1 - padding)
    out = conv_bn_mm(w, col, b, gamma, beta, act="leaky_relu")
    return out.reshape(w.shape[0], x.shape[1], OH, OW)


# ------------------------------ sub-modules -----------------------------------

def residual_stack(x, w1, w2, n_layers=2):
    # ResidualLayer (shared weights): x = x + Conv1x1(ReLU(Conv3x3(ReLU(x)))),
    # no biases; final ReLU after the stack fused into the last layer's kernel.
    C, B, H, W = x.shape
    M = B * H * W
    for li in range(n_layers):
        col, _, _ = _im2col_T(jnp.maximum(x, 0.0), 3, 1, 1)
        y = residual_mm(w1, w2, col, x.reshape(C, M),
                        final_relu=(li == n_layers - 1))
        x = y.reshape(C, B, H, W)
    return x


def encoder_fwd(p, x):
    x = conv2d(x, p["enc_conv1_w"], p["enc_conv1_b"], 4, 2, 1, "relu")
    x = conv2d(x, p["enc_conv2_w"], p["enc_conv2_b"], 4, 2, 1, "relu")
    x = conv2d(x, p["enc_conv3_w"], p["enc_conv3_b"], 3, 1, 1, "none")
    return residual_stack(x, p["enc_res_w1"], p["enc_res_w2"])


def decoder_fwd(p, x):
    x = conv_transpose2d(x, p["dec_ct1_w"], p["dec_ct1_b"], 3, 1, 1, "none")
    x = residual_stack(x, p["dec_res_w1"], p["dec_res_w2"])
    x = conv_transpose2d(x, p["dec_ct2_w"], p["dec_ct2_b"], 4, 2, 1, "relu")
    x = conv_transpose2d(x, p["dec_ct3_w"], p["dec_ct3_b"], 4, 2, 1, "none")
    return x


def ci_latent_fwd(p, ci):
    B, D = ci.shape
    x = ci.T.reshape(D, B, 1, 1)                        # ci.unsqueeze(2,3) -> CBHW
    x = conv_transpose2d_bn_leaky(x, p["ci_ct1_w"], p["ci_ct1_b"],
                                  p["ci_bn1_g"], p["ci_bn1_b"], 4, 1, 0)
    x = conv_transpose2d_bn_leaky(x, p["ci_ct2_w"], p["ci_ct2_b"],
                                  p["ci_bn2_g"], p["ci_bn2_b"], 4, 2, 1)
    x = conv_transpose2d(x, p["ci_ct3_w"], p["ci_ct3_b"], 4, 2, 1, "none")
    return x


def classifier_fwd(p, x):
    B = x.shape[0]
    n_cls = p["cls_fc3_b"].shape[-1]
    return pl.pallas_call(
        _classifier_kernel,
        out_shape=jax.ShapeDtypeStruct((B, n_cls), jnp.float32),
    )(x.astype(jnp.bfloat16),
      p["cls_fc1_w"], p["cls_fc1_b"], p["cls_bn1_g"], p["cls_bn1_b"],
      p["cls_fc2_w"], p["cls_fc2_b"], p["cls_bn2_g"], p["cls_bn2_b"],
      p["cls_fc3_w"], p["cls_fc3_b"])


def vae_fd_forward(p, imgs, ci):
    swap = lambda t: jnp.transpose(t, (1, 0, 2, 3))     # NCHW <-> CBHW
    x = swap(imgs)
    features_vae = encoder_fwd(p, x)                                    # (4,B,16,16)
    features_q = conv2d(features_vae, p["pre_quant_w"], p["pre_quant_b"],
                        1, 1, 0, "none")                                # (2,B,16,16)
    recon_img = decoder_fwd(p, features_q)
    features_ci = ci_latent_fwd(p, ci)                                  # (2,B,16,16)
    pred_img = decoder_fwd(p, features_ci)   # self.predict(ci): reuse features_ci
    fq_nchw = swap(features_q)
    features_cls = fq_nchw.reshape(fq_nchw.shape[0], -1)
    pred_class = classifier_fwd(p, features_cls)
    return (swap(features_vae), fq_nchw, swap(features_ci),
            swap(recon_img), swap(pred_img), pred_class)


# ------------------------------ parameters ------------------------------------

def init_raw_params(key, latent_size=4, k_classes=5, antenna=7):
    # PyTorch-layout weights: Conv2d (Cout,Cin,kh,kw), ConvT (Cin,Cout,kh,kw),
    # Linear (out,in).
    keys = iter(jax.random.split(key, 64))

    def nrm(shape, scale=0.05):
        return scale * jax.random.normal(next(keys), shape, jnp.float32)

    h = latent_size
    e = latent_size // 2
    res_h = 8
    ci_dim = (antenna - 1) * (antenna - 2) * 4
    p = {}
    p["enc_conv1_w"] = nrm((h // 2, 1, 4, 4)); p["enc_conv1_b"] = nrm((h // 2,))
    p["enc_conv2_w"] = nrm((h, h // 2, 4, 4)); p["enc_conv2_b"] = nrm((h,))
    p["enc_conv3_w"] = nrm((h, h, 3, 3));      p["enc_conv3_b"] = nrm((h,))
    p["enc_res_w1"]  = nrm((res_h, h, 3, 3));  p["enc_res_w2"]  = nrm((h, res_h, 1, 1))
    p["pre_quant_w"] = nrm((e, h, 1, 1));      p["pre_quant_b"] = nrm((e,))
    p["dec_ct1_w"] = nrm((e, h, 3, 3));        p["dec_ct1_b"] = nrm((h,))
    p["dec_res_w1"] = nrm((res_h, h, 3, 3));   p["dec_res_w2"] = nrm((h, res_h, 1, 1))
    p["dec_ct2_w"] = nrm((h, h // 2, 4, 4));   p["dec_ct2_b"] = nrm((h // 2,))
    p["dec_ct3_w"] = nrm((h // 2, 1, 4, 4));   p["dec_ct3_b"] = nrm((1,))
    p["ci_ct1_w"] = nrm((ci_dim, 64, 4, 4));   p["ci_ct1_b"] = nrm((64,))
    p["ci_bn1_g"] = jnp.ones((64,), jnp.float32); p["ci_bn1_b"] = jnp.zeros((64,), jnp.float32)
    p["ci_ct2_w"] = nrm((64, 32, 4, 4));       p["ci_ct2_b"] = nrm((32,))
    p["ci_bn2_g"] = jnp.ones((32,), jnp.float32); p["ci_bn2_b"] = jnp.zeros((32,), jnp.float32)
    p["ci_ct3_w"] = nrm((32, e, 4, 4));        p["ci_ct3_b"] = nrm((e,))
    p["cls_fc1_w"] = nrm((512, e * 16 * 16));  p["cls_fc1_b"] = nrm((512,))
    p["cls_bn1_g"] = jnp.ones((512,), jnp.float32); p["cls_bn1_b"] = jnp.zeros((512,), jnp.float32)
    p["cls_fc2_w"] = nrm((128, 512));          p["cls_fc2_b"] = nrm((128,))
    p["cls_bn2_g"] = jnp.ones((128,), jnp.float32); p["cls_bn2_b"] = jnp.zeros((128,), jnp.float32)
    p["cls_fc3_w"] = nrm((k_classes, 128));    p["cls_fc3_b"] = nrm((k_classes,))
    return p


def pack_params(r):
    # One-time packing (outside jit): conv weights -> (Cout, K) bf16, ConvT
    # weights flipped/channel-swapped to the equivalent direct conv, biases /
    # BN params as f32 column vectors, Linear weights pre-transposed to bf16.
    p = {}
    w2d = lambda w: w.reshape(w.shape[0], -1).astype(jnp.bfloat16)
    wT2d = lambda w: jnp.transpose(w[:, :, ::-1, ::-1],
                                   (1, 0, 2, 3)).reshape(w.shape[1], -1).astype(jnp.bfloat16)
    col = lambda v: v.reshape(-1, 1).astype(jnp.float32)
    row = lambda v: v.reshape(1, -1).astype(jnp.float32)

    for name in ("enc_conv1", "enc_conv2", "enc_conv3", "pre_quant"):
        p[name + "_w"] = w2d(r[name + "_w"]); p[name + "_b"] = col(r[name + "_b"])
    for name in ("enc_res_w1", "enc_res_w2", "dec_res_w1", "dec_res_w2"):
        p[name] = w2d(r[name])
    for name in ("dec_ct1", "dec_ct2", "dec_ct3", "ci_ct1", "ci_ct2", "ci_ct3"):
        p[name + "_w"] = wT2d(r[name + "_w"]); p[name + "_b"] = col(r[name + "_b"])
    for name in ("ci_bn1", "ci_bn2"):
        p[name + "_g"] = col(r[name + "_g"]); p[name + "_b"] = col(r[name + "_b"])
    for name in ("cls_fc1", "cls_fc2", "cls_fc3"):
        p[name + "_w"] = r[name + "_w"].T.astype(jnp.bfloat16)
        p[name + "_b"] = row(r[name + "_b"])
    for name in ("cls_bn1", "cls_bn2"):
        p[name + "_g"] = row(r[name + "_g"]); p[name + "_b"] = row(r[name + "_b"])
    return p


# --------------------------------- main ----------------------------------------

if __name__ == "__main__":
    B = 2
    antenna = 7
    imgdim = 64                                   # classifier needs 64x64 -> 16x16 latent
    ci_dim = (antenna - 1) * (antenna - 2) * 4    # 120

    kp, ki, kc = jax.random.split(jax.random.PRNGKey(0), 3)
    params = pack_params(init_raw_params(kp))

    imgs = jax.random.normal(ki, (B, 1, imgdim, imgdim), jnp.float32)
    ci = jax.random.normal(kc, (B, ci_dim), jnp.float32)

    fwd = jax.jit(vae_fd_forward)
    outs = jax.block_until_ready(fwd(params, imgs, ci))
    fv, fq, fc, rimg, pimg, pcls = outs

    assert fv.shape == (B, 4, 16, 16)
    assert fq.shape == (B, 2, 16, 16)
    assert fc.shape == (B, 2, 16, 16)
    assert rimg.shape == (B, 1, 64, 64)
    assert pimg.shape == (B, 1, 64, 64)
    assert pcls.shape == (B, 5)
    assert bool(jnp.all(jnp.isfinite(pcls)))
    print("KERNEL_OK")
</pallas_src>

<mosaic_0001>
module attributes {stable_mosaic.version = 11 : i64} {
  func.func @_conv_bn_act_kernel(%arg0: memref<64x1920xbf16, #tpu.memory_space<vmem>>, %arg1: memref<1920x32xbf16, #tpu.memory_space<vmem>>, %arg2: memref<64x1xf32, #tpu.memory_space<vmem>>, %arg3: memref<64x1xf32, #tpu.memory_space<vmem>>, %arg4: memref<64x1xf32, #tpu.memory_space<vmem>>, %arg5: memref<64x32xf32, #tpu.memory_space<vmem>>) attributes {dimension_semantics = [], scalar_prefetch = 0 : i64, scratch_operands = 0 : i64, tpu.core_type = #tpu.core_type<tc>} {
    %c0 = arith.constant 0 : index
    %c0_0 = arith.constant 0 : index
    %0 = vector.load %arg0[%c0, %c0_0] : memref<64x1920xbf16, #tpu.memory_space<vmem>>, vector<64x1920xbf16>
    %c0_1 = arith.constant 0 : index
    %c0_2 = arith.constant 0 : index
    %1 = vector.load %arg1[%c0_1, %c0_2] : memref<1920x32xbf16, #tpu.memory_space<vmem>>, vector<1920x32xbf16>
    %cst = arith.constant dense<0.000000e+00> : vector<64x32xf32>
    %2 = tpu.matmul %0, %1, %cst {dimension_numbers = #tpu.dot_dimension_numbers<[1], [0], [0], [1], [0, 0, 1, 1], [], []>} : vector<64x1920xbf16>, vector<1920x32xbf16>, vector<64x32xf32> -> vector<64x32xf32>
    %c0_3 = arith.constant 0 : index
    %c0_4 = arith.constant 0 : index
    %3 = vector.load %arg2[%c0_3, %c0_4] : memref<64x1xf32, #tpu.memory_space<vmem>>, vector<64x1xf32>
    %4 = vector.broadcast %3 : vector<64x1xf32> to vector<64x32xf32>
    %5 = arith.addf %2, %4 : vector<64x32xf32>
    %cst_5 = arith.constant dense<0.000000e+00> : vector<64xf32>
    %6 = vector.multi_reduction <add>, %5, %cst_5 [1] : vector<64x32xf32> to vector<64xf32>
    %7 = vector.shape_cast %6 : vector<64xf32> to vector<64x1xf32>
    %cst_6 = arith.constant 3.200000e+01 : f32
    %8 = vector.broadcast %cst_6 : f32 to vector<64x1xf32>
    %9 = arith.divf %7, %8 : vector<64x1xf32>
    %10 = vector.broadcast %9 : vector<64x1xf32> to vector<64x32xf32>
    %11 = arith.subf %5, %10 : vector<64x32xf32>
    %12 = arith.mulf %11, %11 : vector<64x32xf32>
    %cst_7 = arith.constant dense<0.000000e+00> : vector<64xf32>
    %13 = vector.multi_reduction <add>, %12, %cst_7 [1] : vector<64x32xf32> to vector<64xf32>
    %14 = vector.shape_cast %13 : vector<64xf32> to vector<64x1xf32>
    %cst_8 = arith.constant 3.200000e+01 : f32
    %15 = vector.broadcast %cst_8 : f32 to vector<64x1xf32>
    %16 = arith.divf %14, %15 : vector<64x1xf32>
    %c0_9 = arith.constant 0 : index
    %c0_10 = arith.constant 0 : index
    %17 = vector.load %arg3[%c0_9, %c0_10] : memref<64x1xf32, #tpu.memory_space<vmem>>, vector<64x1xf32>
    %18 = vector.broadcast %9 : vector<64x1xf32> to vector<64x32xf32>
    %19 = arith.subf %5, %18 : vector<64x32xf32>
    %20 = vector.broadcast %17 : vector<64x1xf32> to vector<64x32xf32>
    %21 = arith.mulf %20, %19 : vector<64x32xf32>
    %cst_11 = arith.constant 9.99999974E-6 : f32
    %22 = vector.broadcast %cst_11 : f32 to vector<64x1xf32>
    %23 = arith.addf %16, %22 : vector<64x1xf32>
    %24 = math.rsqrt %23 : vector<64x1xf32>
    %25 = vector.broadcast %24 : vector<64x1xf32> to vector<64x32xf32>
    %26 = arith.mulf %21, %25 : vector<64x32xf32>
    %c0_12 = arith.constant 0 : index
    %c0_13 = arith.constant 0 : index
    %27 = vector.load %arg4[%c0_12, %c0_13] : memref<64x1xf32, #tpu.memory_space<vmem>>, vector<64x1xf32>
    %28 = vector.broadcast %27 : vector<64x1xf32> to vector<64x32xf32>
    %29 = arith.addf %26, %28 : vector<64x32xf32>
    %cst_14 = arith.constant 0.000000e+00 : f32
    %30 = vector.broadcast %cst_14 : f32 to vector<64x32xf32>
    %31 = arith.cmpf ogt, %29, %30 : vector<64x32xf32>
    %cst_15 = arith.constant 0.00999999977 : f32
    %32 = vector.broadcast %cst_15 : f32 to vector<64x32xf32>
    %33 = arith.mulf %32, %29 : vector<64x32xf32>
    %34 = arith.select %31, %29, %33 : vector<64x32xi1>, vector<64x32xf32>
    %c0_16 = arith.constant 0 : index
    %c0_17 = arith.constant 0 : index
    %35 = vector.load %arg5[%c0_16, %c0_17] : memref<64x32xf32, #tpu.memory_space<vmem>>, vector<64x32xf32>
    tpu.vector_store %arg5[%c0_16, %c0_17], %34 {strides = array<i32>} : memref<64x32xf32, #tpu.memory_space<vmem>>, vector<64x32xf32>,
    return
  }
}

module attributes {stable_mosaic.version = 11 : i64} {
  func.func @_conv_bn_act_kernel(%arg0: memref<32x1024xbf16, #tpu.memory_space<vmem>>, %arg1: memref<1024x128xbf16, #tpu.memory_space<vmem>>, %arg2: memref<32x1xf32, #tpu.memory_space<vmem>>, %arg3: memref<32x1xf32, #tpu.memory_space<vmem>>, %arg4: memref<32x1xf32, #tpu.memory_space<vmem>>, %arg5: memref<32x128xf32, #tpu.memory_space<vmem>>) attributes {dimension_semantics = [], scalar_prefetch = 0 : i64, scratch_operands = 0 : i64, tpu.core_type = #tpu.core_type<tc>} {
    %c0 = arith.constant 0 : index
    %c0_0 = arith.constant 0 : index
    %0 = vector.load %arg0[%c0, %c0_0] : memref<32x1024xbf16, #tpu.memory_space<vmem>>, vector<32x1024xbf16>
    %c0_1 = arith.constant 0 : index
    %c0_2 = arith.constant 0 : index
    %1 = vector.load %arg1[%c0_1, %c0_2] : memref<1024x128xbf16, #tpu.memory_space<vmem>>, vector<1024x128xbf16>
    %cst = arith.constant dense<0.000000e+00> : vector<32x128xf32>
    %2 = tpu.matmul %0, %1, %cst {dimension_numbers = #tpu.dot_dimension_numbers<[1], [0], [0], [1], [0, 0, 1, 1], [], []>} : vector<32x1024xbf16>, vector<1024x128xbf16>, vector<32x128xf32> -> vector<32x128xf32>
    %c0_3 = arith.constant 0 : index
    %c0_4 = arith.constant 0 : index
    %3 = vector.load %arg2[%c0_3, %c0_4] : memref<32x1xf32, #tpu.memory_space<vmem>>, vector<32x1xf32>
    %4 = vector.broadcast %3 : vector<32x1xf32> to vector<32x128xf32>
    %5 = arith.addf %2, %4 : vector<32x128xf32>
    %cst_5 = arith.constant dense<0.000000e+00> : vector<32xf32>
    %6 = vector.multi_reduction <add>, %5, %cst_5 [1] : vector<32x128xf32> to vector<32xf32>
    %7 = vector.shape_cast %6 : vector<32xf32> to vector<32x1xf32>
    %cst_6 = arith.constant 1.280000e+02 : f32
    %8 = vector.broadcast %cst_6 : f32 to vector<32x1xf32>
    %9 = arith.divf %7, %8 : vector<32x1xf32>
    %10 = vector.broadcast %9 : vector<32x1xf32> to vector<32x128xf32>
    %11 = arith.subf %5, %10 : vector<32x128xf32>
    %12 = arith.mulf %11, %11 : vector<32x128xf32>
    %cst_7 = arith.constant dense<0.000000e+00> : vector<32xf32>
    %13 = vector.multi_reduction <add>, %12, %cst_7 [1] : vector<32x128xf32> to vector<32xf32>
    %14 = vector.shape_cast %13 : vector<32xf32> to vector<32x1xf32>
    %cst_8 = arith.constant 1.280000e+02 : f32
    %15 = vector.broadcast %cst_8 : f32 to vector<32x1xf32>
    %16 = arith.divf %14, %15 : vector<32x1xf32>
    %c0_9 = arith.constant 0 : index
    %c0_10 = arith.constant 0 : index
    %17 = vector.load %arg3[%c0_9, %c0_10] : memref<32x1xf32, #tpu.memory_space<vmem>>, vector<32x1xf32>
    %18 = vector.broadcast %9 : vector<32x1xf32> to vector<32x128xf32>
    %19 = arith.subf %5, %18 : vector<32x128xf32>
    %20 = vector.broadcast %17 : vector<32x1xf32> to vector<32x128xf32>
    %21 = arith.mulf %20, %19 : vector<32x128xf32>
    %cst_11 = arith.constant 9.99999974E-6 : f32
    %22 = vector.broadcast %cst_11 : f32 to vector<32x1xf32>
    %23 = arith.addf %16, %22 : vector<32x1xf32>
    %24 = math.rsqrt %23 : vector<32x1xf32>
    %25 = vector.broadcast %24 : vector<32x1xf32> to vector<32x128xf32>
    %26 = arith.mulf %21, %25 : vector<32x128xf32>
    %c0_12 = arith.constant 0 : index
    %c0_13 = arith.constant 0 : index
    %27 = vector.load %arg4[%c0_12, %c0_13] : memref<32x1xf32, #tpu.memory_space<vmem>>, vector<32x1xf32>
    %28 = vector.broadcast %27 : vector<32x1xf32> to vector<32x128xf32>
    %29 = arith.addf %26, %28 : vector<32x128xf32>
    %cst_14 = arith.constant 0.000000e+00 : f32
    %30 = vector.broadcast %cst_14 : f32 to vector<32x128xf32>
    %31 = arith.cmpf ogt, %29, %30 : vector<32x128xf32>
    %cst_15 = arith.constant 0.00999999977 : f32
    %32 = vector.broadcast %cst_15 : f32 to vector<32x128xf32>
    %33 = arith.mulf %32, %29 : vector<32x128xf32>
    %34 = arith.select %31, %29, %33 : vector<32x128xi1>, vector<32x128xf32>
    %c0_16 = arith.constant 0 : index
    %c0_17 = arith.constant 0 : index
    %35 = vector.load %arg5[%c0_16, %c0_17] : memref<32x128xf32, #tpu.memory_space<vmem>>, vector<32x128xf32>
    tpu.vector_store %arg5[%c0_16, %c0_17], %34 {strides = array<i32>} : memref<32x128xf32, #tpu.memory_space<vmem>>, vector<32x128xf32>,
    return
  }
}

module attributes {stable_mosaic.version = 11 : i64} {
  func.func @_conv_kernel(%arg0: i32, %arg1: memref<2x512xbf16, #tpu.memory_space<vmem>>, %arg2: memref<512x512xbf16, #tpu.memory_space<vmem>>, %arg3: memref<2x1xf32, #tpu.memory_space<vmem>>, %arg4: memref<2x512xf32, #tpu.memory_space<vmem>>) attributes {dimension_semantics = [#tpu.dimension_semantics<parallel>], iteration_bounds = array<i64: 1>, scalar_prefetch = 0 : i64, scratch_operands = 0 : i64, tpu.core_type = #tpu.core_type<tc>, window_params = [{pipeline_mode = #tpu.pipeline_mode<synchronous>, transform_indices = @transform_0, window_bounds = array<i64: 2, 512>}, {transform_indices = @transform_1, window_bounds = array<i64: 512, 512>}, {pipeline_mode = #tpu.pipeline_mode<synchronous>, transform_indices = @transform_2, window_bounds = array<i64: 2, 1>}, {transform_indices = @transform_3, window_bounds = array<i64: 2, 512>}]} {
    %c0 = arith.constant 0 : index
    %c0_0 = arith.constant 0 : index
    %0 = vector.load %arg1[%c0, %c0_0] : memref<2x512xbf16, #tpu.memory_space<vmem>>, vector<2x512xbf16>
    %c0_1 = arith.constant 0 : index
    %c0_2 = arith.constant 0 : index
    %1 = vector.load %arg2[%c0_1, %c0_2] : memref<512x512xbf16, #tpu.memory_space<vmem>>, vector<512x512xbf16>
    %cst = arith.constant dense<0.000000e+00> : vector<2x512xf32>
    %2 = tpu.matmul %0, %1, %cst {dimension_numbers = #tpu.dot_dimension_numbers<[1], [0], [0], [1], [0, 0, 1, 1], [], []>} : vector<2x512xbf16>, vector<512x512xbf16>, vector<2x512xf32> -> vector<2x512xf32>
    %c0_3 = arith.constant 0 : index
    %c0_4 = arith.constant 0 : index
    %3 = vector.load %arg3[%c0_3, %c0_4] : memref<2x1xf32, #tpu.memory_space<vmem>>, vector<2x1xf32>
    %4 = vector.broadcast %3 : vector<2x1xf32> to vector<2x512xf32>
    %5 = arith.addf %2, %4 : vector<2x512xf32>
    %c0_5 = arith.constant 0 : index
    %c0_6 = arith.constant 0 : index
    %6 = vector.load %arg4[%c0_5, %c0_6] : memref<2x512xf32, #tpu.memory_space<vmem>>, vector<2x512xf32>
    tpu.vector_store %arg4[%c0_5, %c0_6], %5 {strides = array<i32>} : memref<2x512xf32, #tpu.memory_space<vmem>>, vector<2x512xf32>,
    return
  }
  func.func @transform_0(%arg0: i32) -> (i32, i32) {
    %c0_i32 = arith.constant 0 : i32
    %c0_i32_0 = arith.constant 0 : i32
    %c0_i32_1 = arith.constant 0 : i32
    return %c0_i32, %c0_i32_0 : i32, i32
  }
  func.func @transform_1(%arg0: i32) -> (i32, i32) {
    %c0_i32 = arith.constant 0 : i32
    %c0_i32_0 = arith.constant 0 : i32
    return %c0_i32, %arg0 : i32, i32
  }
  func.func @transform_2(%arg0: i32) -> (i32, i32) {
    %c0_i32 = arith.constant 0 : i32
    %c0_i32_0 = arith.constant 0 : i32
    %c0_i32_1 = arith.constant 0 : i32
    return %c0_i32, %c0_i32_0 : i32, i32
  }
  func.func @transform_3(%arg0: i32) -> (i32, i32) {
    %c0_i32 = arith.constant 0 : i32
    %c0_i32_0 = arith.constant 0 : i32
    return %c0_i32, %arg0 : i32, i32
  }
}

module attributes {stable_mosaic.version = 11 : i64} {
  func.func @_conv_kernel(%arg0: i32, %arg1: memref<4x18xbf16, #tpu.memory_space<vmem>>, %arg2: memref<18x512xbf16, #tpu.memory_space<vmem>>, %arg3: memref<4x1xf32, #tpu.memory_space<vmem>>, %arg4: memref<4x512xf32, #tpu.memory_space<vmem>>) attributes {dimension_semantics = [#tpu.dimension_semantics<parallel>], iteration_bounds = array<i64: 1>, scalar_prefetch = 0 : i64, scratch_operands = 0 : i64, tpu.core_type = #tpu.core_type<tc>, window_params = [{pipeline_mode = #tpu.pipeline_mode<synchronous>, transform_indices = @transform_0, window_bounds = array<i64: 4, 18>}, {transform_indices = @transform_1, window_bounds = array<i64: 18, 512>}, {pipeline_mode = #tpu.pipeline_mode<synchronous>, transform_indices = @transform_2, window_bounds = array<i64: 4, 1>}, {transform_indices = @transform_3, window_bounds = array<i64: 4, 512>}]} {
    %c0 = arith.constant 0 : index
    %c0_0 = arith.constant 0 : index
    %0 = vector.load %arg1[%c0, %c0_0] : memref<4x18xbf16, #tpu.memory_space<vmem>>, vector<4x18xbf16>
    %c0_1 = arith.constant 0 : index
    %c0_2 = arith.constant 0 : index
    %1 = vector.load %arg2[%c0_1, %c0_2] : memref<18x512xbf16, #tpu.memory_space<vmem>>, vector<18x512xbf16>
    %cst = arith.constant dense<0.000000e+00> : vector<4x512xf32>
    %2 = tpu.matmul %0, %1, %cst {dimension_numbers = #tpu.dot_dimension_numbers<[1], [0], [0], [1], [0, 0, 1, 1], [], []>} : vector<4x18xbf16>, vector<18x512xbf16>, vector<4x512xf32> -> vector<4x512xf32>
    %c0_3 = arith.constant 0 : index
    %c0_4 = arith.constant 0 : index
    %3 = vector.load %arg3[%c0_3, %c0_4] : memref<4x1xf32, #tpu.memory_space<vmem>>, vector<4x1xf32>
    %4 = vector.broadcast %3 : vector<4x1xf32> to vector<4x512xf32>
    %5 = arith.addf %2, %4 : vector<4x512xf32>
    %c0_5 = arith.constant 0 : index
    %c0_6 = arith.constant 0 : index
    %6 = vector.load %arg4[%c0_5, %c0_6] : memref<4x512xf32, #tpu.memory_space<vmem>>, vector<4x512xf32>
    tpu.vector_store %arg4[%c0_5, %c0_6], %5 {strides = array<i32>} : memref<4x512xf32, #tpu.memory_space<vmem>>, vector<4x512xf32>,
    return
  }
  func.func @transform_0(%arg0: i32) -> (i32, i32) {
    %c0_i32 = arith.constant 0 : i32
    %c0_i32_0 = arith.constant 0 : i32
    %c0_i32_1 = arith.constant 0 : i32
    return %c0_i32, %c0_i32_0 : i32, i32
  }
  func.func @transform_1(%arg0: i32) -> (i32, i32) {
    %c0_i32 = arith.constant 0 : i32
    %c0_i32_0 = arith.constant 0 : i32
    return %c0_i32, %arg0 : i32, i32
  }
  func.func @transform_2(%arg0: i32) -> (i32, i32) {
    %c0_i32 = arith.constant 0 : i32
    %c0_i32_0 = arith.constant 0 : i32
    %c0_i32_1 = arith.constant 0 : i32
    return %c0_i32, %c0_i32_0 : i32, i32
  }
  func.func @transform_3(%arg0: i32) -> (i32, i32) {
    %c0_i32 = arith.constant 0 : i32
    %c0_i32_0 = arith.constant 0 : i32
    return %c0_i32, %arg0 : i32, i32
  }
}

module attributes {stable_mosaic.version = 11 : i64} {
  func.func @_residual_kernel(%arg0: i32, %arg1: memref<8x36xbf16, #tpu.memory_space<vmem>>, %arg2: memref<4x8xbf16, #tpu.memory_space<vmem>>, %arg3: memref<36x512xbf16, #tpu.memory_space<vmem>>, %arg4: memref<4x512xf32, #tpu.memory_space<vmem>>, %arg5: memref<4x512xf32, #tpu.memory_space<vmem>>) attributes {dimension_semantics = [#tpu.dimension_semantics<parallel>], iteration_bounds = array<i64: 1>, scalar_prefetch = 0 : i64, scratch_operands = 0 : i64, tpu.core_type = #tpu.core_type<tc>, window_params = [{pipeline_mode = #tpu.pipeline_mode<synchronous>, transform_indices = @transform_0, window_bounds = array<i64: 8, 36>}, {pipeline_mode = #tpu.pipeline_mode<synchronous>, transform_indices = @transform_1, window_bounds = array<i64: 4, 8>}, {transform_indices = @transform_2, window_bounds = array<i64: 36, 512>}, {transform_indices = @transform_3, window_bounds = array<i64: 4, 512>}, {transform_indices = @transform_4, window_bounds = array<i64: 4, 512>}]} {
    %c0 = arith.constant 0 : index
    %c0_0 = arith.constant 0 : index
    %0 = vector.load %arg1[%c0, %c0_0] : memref<8x36xbf16, #tpu.memory_space<vmem>>, vector<8x36xbf16>
    %c0_1 = arith.constant 0 : index
    %c0_2 = arith.constant 0 : index
    %1 = vector.load %arg3[%c0_1, %c0_2] : memref<36x512xbf16, #tpu.memory_space<vmem>>, vector<36x512xbf16>
    %cst = arith.constant dense<0.000000e+00> : vector<8x512xf32>
    %2 = tpu.matmul %0, %1, %cst {dimension_numbers = #tpu.dot_dimension_numbers<[1], [0], [0], [1], [0, 0, 1, 1], [], []>} : vector<8x36xbf16>, vector<36x512xbf16>, vector<8x512xf32> -> vector<8x512xf32>
    %cst_3 = arith.constant 0.000000e+00 : f32
    %3 = vector.broadcast %cst_3 : f32 to vector<8x512xf32>
    %4 = arith.maximumf %2, %3 : vector<8x512xf32>
    %c0_4 = arith.constant 0 : index
    %c0_5 = arith.constant 0 : index
    %5 = vector.load %arg2[%c0_4, %c0_5] : memref<4x8xbf16, #tpu.memory_space<vmem>>, vector<4x8xbf16>
    %6 = arith.truncf %4 : vector<8x512xf32> to vector<8x512xbf16>
    %cst_6 = arith.constant dense<0.000000e+00> : vector<4x512xf32>
    %7 = tpu.matmul %5, %6, %cst_6 {dimension_numbers = #tpu.dot_dimension_numbers<[1], [0], [0], [1], [0, 0, 1, 1], [], []>} : vector<4x8xbf16>, vector<8x512xbf16>, vector<4x512xf32> -> vector<4x512xf32>
    %c0_7 = arith.constant 0 : index
    %c0_8 = arith.constant 0 : index
    %8 = vector.load %arg4[%c0_7, %c0_8] : memref<4x512xf32, #tpu.memory_space<vmem>>, vector<4x512xf32>
    %9 = arith.addf %7, %8 : vector<4x512xf32>
    %c0_9 = arith.constant 0 : index
    %c0_10 = arith.constant 0 : index
    %10 = vector.load %arg5[%c0_9, %c0_10] : memref<4x512xf32, #tpu.memory_space<vmem>>, vector<4x512xf32>
    tpu.vector_store %arg5[%c0_9, %c0_10], %9 {strides = array<i32>} : memref<4x512xf32, #tpu.memory_space<vmem>>, vector<4x512xf32>,
    return
  }
  func.func @transform_0(%arg0: i32) -> (i32, i32) {
    %c0_i32 = arith.constant 0 : i32
    %c0_i32_0 = arith.constant 0 : i32
    %c0_i32_1 = arith.constant 0 : i32
    return %c0_i32, %c0_i32_0 : i32, i32
  }
  func.func @transform_1(%arg0: i32) -> (i32, i32) {
    %c0_i32 = arith.constant 0 : i32
    %c0_i32_0 = arith.constant 0 : i32
    %c0_i32_1 = arith.constant 0 : i32
    return %c0_i32, %c0_i32_0 : i32, i32
  }
  func.func @transform_2(%arg0: i32) -> (i32, i32) {
    %c0_i32 = arith.constant 0 : i32
    %c0_i32_0 = arith.constant 0 : i32
    return %c0_i32, %arg0 : i32, i32
  }
  func.func @transform_3(%arg0: i32) -> (i32, i32) {
    %c0_i32 = arith.constant 0 : i32
    %c0_i32_0 = arith.constant 0 : i32
    return %c0_i32, %arg0 : i32, i32
  }
  func.func @transform_4(%arg0: i32) -> (i32, i32) {
    %c0_i32 = arith.constant 0 : i32
    %c0_i32_0 = arith.constant 0 : i32
    return %c0_i32, %arg0 : i32, i32
  }
}

module attributes {stable_mosaic.version = 11 : i64} {
  func.func @_residual_kernel(%arg0: i32, %arg1: memref<8x36xbf16, #tpu.memory_space<vmem>>, %arg2: memref<4x8xbf16, #tpu.memory_space<vmem>>, %arg3: memref<36x512xbf16, #tpu.memory_space<vmem>>, %arg4: memref<4x512xf32, #tpu.memory_space<vmem>>, %arg5: memref<4x512xf32, #tpu.memory_space<vmem>>) attributes {dimension_semantics = [#tpu.dimension_semantics<parallel>], iteration_bounds = array<i64: 1>, scalar_prefetch = 0 : i64, scratch_operands = 0 : i64, tpu.core_type = #tpu.core_type<tc>, window_params = [{pipeline_mode = #tpu.pipeline_mode<synchronous>, transform_indices = @transform_0, window_bounds = array<i64: 8, 36>}, {pipeline_mode = #tpu.pipeline_mode<synchronous>, transform_indices = @transform_1, window_bounds = array<i64: 4, 8>}, {transform_indices = @transform_2, window_bounds = array<i64: 36, 512>}, {transform_indices = @transform_3, window_bounds = array<i64: 4, 512>}, {transform_indices = @transform_4, window_bounds = array<i64: 4, 512>}]} {
    %c0 = arith.constant 0 : index
    %c0_0 = arith.constant 0 : index
    %0 = vector.load %arg1[%c0, %c0_0] : memref<8x36xbf16, #tpu.memory_space<vmem>>, vector<8x36xbf16>
    %c0_1 = arith.constant 0 : index
    %c0_2 = arith.constant 0 : index
    %1 = vector.load %arg3[%c0_1, %c0_2] : memref<36x512xbf16, #tpu.memory_space<vmem>>, vector<36x512xbf16>
    %cst = arith.constant dense<0.000000e+00> : vector<8x512xf32>
    %2 = tpu.matmul %0, %1, %cst {dimension_numbers = #tpu.dot_dimension_numbers<[1], [0], [0], [1], [0, 0, 1, 1], [], []>} : vector<8x36xbf16>, vector<36x512xbf16>, vector<8x512xf32> -> vector<8x512xf32>
    %cst_3 = arith.constant 0.000000e+00 : f32
    %3 = vector.broadcast %cst_3 : f32 to vector<8x512xf32>
    %4 = arith.maximumf %2, %3 : vector<8x512xf32>
    %c0_4 = arith.constant 0 : index
    %c0_5 = arith.constant 0 : index
    %5 = vector.load %arg2[%c0_4, %c0_5] : memref<4x8xbf16, #tpu.memory_space<vmem>>, vector<4x8xbf16>
    %6 = arith.truncf %4 : vector<8x512xf32> to vector<8x512xbf16>
    %cst_6 = arith.constant dense<0.000000e+00> : vector<4x512xf32>
    %7 = tpu.matmul %5, %6, %cst_6 {dimension_numbers = #tpu.dot_dimension_numbers<[1], [0], [0], [1], [0, 0, 1, 1], [], []>} : vector<4x8xbf16>, vector<8x512xbf16>, vector<4x512xf32> -> vector<4x512xf32>
    %c0_7 = arith.constant 0 : index
    %c0_8 = arith.constant 0 : index
    %8 = vector.load %arg4[%c0_7, %c0_8] : memref<4x512xf32, #tpu.memory_space<vmem>>, vector<4x512xf32>
    %9 = arith.addf %7, %8 : vector<4x512xf32>
    %cst_9 = arith.constant 0.000000e+00 : f32
    %10 = vector.broadcast %cst_9 : f32 to vector<4x512xf32>
    %11 = arith.maximumf %9, %10 : vector<4x512xf32>
    %c0_10 = arith.constant 0 : index
    %c0_11 = arith.constant 0 : index
    %12 = vector.load %arg5[%c0_10, %c0_11] : memref<4x512xf32, #tpu.memory_space<vmem>>, vector<4x512xf32>
    tpu.vector_store %arg5[%c0_10, %c0_11], %11 {strides = array<i32>} : memref<4x512xf32, #tpu.memory_space<vmem>>, vector<4x512xf32>,
    return
  }
  func.func @transform_0(%arg0: i32) -> (i32, i32) {
    %c0_i32 = arith.constant 0 : i32
    %c0_i32_0 = arith.constant 0 : i32
    %c0_i32_1 = arith.constant 0 : i32
    return %c0_i32, %c0_i32_0 : i32, i32
  }
  func.func @transform_1(%arg0: i32) -> (i32, i32) {
    %c0_i32 = arith.constant 0 : i32
    %c0_i32_0 = arith.constant 0 : i32
    %c0_i32_1 = arith.constant 0 : i32
    return %c0_i32, %c0_i32_0 : i32, i32
  }
  func.func @transform_2(%arg0: i32) -> (i32, i32) {
    %c0_i32 = arith.constant 0 : i32
    %c0_i32_0 = arith.constant 0 : i32
    return %c0_i32, %arg0 : i32, i32
  }
  func.func @transform_3(%arg0: i32) -> (i32, i32) {
    %c0_i32 = arith.constant 0 : i32
    %c0_i32_0 = arith.constant 0 : i32
    return %c0_i32, %arg0 : i32, i32
  }
  func.func @transform_4(%arg0: i32) -> (i32, i32) {
    %c0_i32 = arith.constant 0 : i32
    %c0_i32_0 = arith.constant 0 : i32
    return %c0_i32, %arg0 : i32, i32
  }
}

module attributes {stable_mosaic.version = 11 : i64} {
  func.func @_conv_kernel(%arg0: i32, %arg1: memref<2x64xbf16, #tpu.memory_space<vmem>>, %arg2: memref<64x1024xbf16, #tpu.memory_space<vmem>>, %arg3: memref<2x1xf32, #tpu.memory_space<vmem>>, %arg4: memref<2x1024xf32, #tpu.memory_space<vmem>>) attributes {dimension_semantics = [#tpu.dimension_semantics<parallel>], iteration_bounds = array<i64: 2>, scalar_prefetch = 0 : i64, scratch_operands = 0 : i64, tpu.core_type = #tpu.core_type<tc>, window_params = [{pipeline_mode = #tpu.pipeline_mode<synchronous>, transform_indices = @transform_0, window_bounds = array<i64: 2, 64>}, {transform_indices = @transform_1, window_bounds = array<i64: 64, 1024>}, {pipeline_mode = #tpu.pipeline_mode<synchronous>, transform_indices = @transform_2, window_bounds = array<i64: 2, 1>}, {transform_indices = @transform_3, window_bounds = array<i64: 2, 1024>}]} {
    %c0 = arith.constant 0 : index
    %c0_0 = arith.constant 0 : index
    %0 = vector.load %arg1[%c0, %c0_0] : memref<2x64xbf16, #tpu.memory_space<vmem>>, vector<2x64xbf16>
    %c0_1 = arith.constant 0 : index
    %c0_2 = arith.constant 0 : index
    %1 = vector.load %arg2[%c0_1, %c0_2] : memref<64x1024xbf16, #tpu.memory_space<vmem>>, vector<64x1024xbf16>
    %cst = arith.constant dense<0.000000e+00> : vector<2x1024xf32>
    %2 = tpu.matmul %0, %1, %cst {dimension_numbers = #tpu.dot_dimension_numbers<[1], [0], [0], [1], [0, 0, 1, 1], [], []>} : vector<2x64xbf16>, vector<64x1024xbf16>, vector<2x1024xf32> -> vector<2x1024xf32>
    %c0_3 = arith.constant 0 : index
    %c0_4 = arith.constant 0 : index
    %3 = vector.load %arg3[%c0_3, %c0_4] : memref<2x1xf32, #tpu.memory_space<vmem>>, vector<2x1xf32>
    %4 = vector.broadcast %3 : vector<2x1xf32> to vector<2x1024xf32>
    %5 = arith.addf %2, %4 : vector<2x1024xf32>
    %cst_5 = arith.constant 0.000000e+00 : f32
    %6 = vector.broadcast %cst_5 : f32 to vector<2x1024xf32>
    %7 = arith.maximumf %5, %6 : vector<2x1024xf32>
    %c0_6 = arith.constant 0 : index
    %c0_7 = arith.constant 0 : index
    %8 = vector.load %arg4[%c0_6, %c0_7] : memref<2x1024xf32, #tpu.memory_space<vmem>>, vector<2x1024xf32>
    tpu.vector_store %arg4[%c0_6, %c0_7], %7 {strides = array<i32>} : memref<2x1024xf32, #tpu.memory_space<vmem>>, vector<2x1024xf32>,
    return
  }
  func.func @transform_0(%arg0: i32) -> (i32, i32) {
    %c0_i32 = arith.constant 0 : i32
    %c0_i32_0 = arith.constant 0 : i32
    %c0_i32_1 = arith.constant 0 : i32
    return %c0_i32, %c0_i32_0 : i32, i32
  }
  func.func @transform_1(%arg0: i32) -> (i32, i32) {
    %c0_i32 = arith.constant 0 : i32
    %c0_i32_0 = arith.constant 0 : i32
    return %c0_i32, %arg0 : i32, i32
  }
  func.func @transform_2(%arg0: i32) -> (i32, i32) {
    %c0_i32 = arith.constant 0 : i32
    %c0_i32_0 = arith.constant 0 : i32
    %c0_i32_1 = arith.constant 0 : i32
    return %c0_i32, %c0_i32_0 : i32, i32
  }
  func.func @transform_3(%arg0: i32) -> (i32, i32) {
    %c0_i32 = arith.constant 0 : i32
    %c0_i32_0 = arith.constant 0 : i32
    return %c0_i32, %arg0 : i32, i32
  }
}

module attributes {stable_mosaic.version = 11 : i64} {
  func.func @_conv_kernel(%arg0: i32, %arg1: memref<1x32xbf16, #tpu.memory_space<vmem>>, %arg2: memref<32x4096xbf16, #tpu.memory_space<vmem>>, %arg3: memref<1x1xf32, #tpu.memory_space<vmem>>, %arg4: memref<1x4096xf32, #tpu.memory_space<vmem>>) attributes {dimension_semantics = [#tpu.dimension_semantics<parallel>], iteration_bounds = array<i64: 2>, scalar_prefetch = 0 : i64, scratch_operands = 0 : i64, tpu.core_type = #tpu.core_type<tc>, window_params = [{pipeline_mode = #tpu.pipeline_mode<synchronous>, transform_indices = @transform_0, window_bounds = array<i64: 1, 32>}, {transform_indices = @transform_1, window_bounds = array<i64: 32, 4096>}, {pipeline_mode = #tpu.pipeline_mode<synchronous>, transform_indices = @transform_2, window_bounds = array<i64: 1, 1>}, {transform_indices = @transform_3, window_bounds = array<i64: 1, 4096>}]} {
    %c0 = arith.constant 0 : index
    %c0_0 = arith.constant 0 : index
    %0 = vector.load %arg1[%c0, %c0_0] : memref<1x32xbf16, #tpu.memory_space<vmem>>, vector<1x32xbf16>
    %c0_1 = arith.constant 0 : index
    %c0_2 = arith.constant 0 : index
    %1 = vector.load %arg2[%c0_1, %c0_2] : memref<32x4096xbf16, #tpu.memory_space<vmem>>, vector<32x4096xbf16>
    %cst = arith.constant dense<0.000000e+00> : vector<1x4096xf32>
    %2 = tpu.matmul %0, %1, %cst {dimension_numbers = #tpu.dot_dimension_numbers<[1], [0], [0], [1], [0, 0, 1, 1], [], []>} : vector<1x32xbf16>, vector<32x4096xbf16>, vector<1x4096xf32> -> vector<1x4096xf32>
    %c0_3 = arith.constant 0 : index
    %c0_4 = arith.constant 0 : index
    %3 = vector.load %arg3[%c0_3, %c0_4] : memref<1x1xf32, #tpu.memory_space<vmem>>, vector<1x1xf32>
    %4 = vector.broadcast %3 : vector<1x1xf32> to vector<1x4096xf32>
    %5 = arith.addf %2, %4 : vector<1x4096xf32>
    %c0_5 = arith.constant 0 : index
    %c0_6 = arith.constant 0 : index
    %6 = vector.load %arg4[%c0_5, %c0_6] : memref<1x4096xf32, #tpu.memory_space<vmem>>, vector<1x4096xf32>
    tpu.vector_store %arg4[%c0_5, %c0_6], %5 {strides = array<i32>} : memref<1x4096xf32, #tpu.memory_space<vmem>>, vector<1x4096xf32>,
    return
  }
  func.func @transform_0(%arg0: i32) -> (i32, i32) {
    %c0_i32 = arith.constant 0 : i32
    %c0_i32_0 = arith.constant 0 : i32
    %c0_i32_1 = arith.constant 0 : i32
    return %c0_i32, %c0_i32_0 : i32, i32
  }
  func.func @transform_1(%arg0: i32) -> (i32, i32) {
    %c0_i32 = arith.constant 0 : i32
    %c0_i32_0 = arith.constant 0 : i32
    return %c0_i32, %arg0 : i32, i32
  }
  func.func @transform_2(%arg0: i32) -> (i32, i32) {
    %c0_i32 = arith.constant 0 : i32
    %c0_i32_0 = arith.constant 0 : i32
    %c0_i32_1 = arith.constant 0 : i32
    return %c0_i32, %c0_i32_0 : i32, i32
  }
  func.func @transform_3(%arg0: i32) -> (i32, i32) {
    %c0_i32 = arith.constant 0 : i32
    %c0_i32_0 = arith.constant 0 : i32
    return %c0_i32, %arg0 : i32, i32
  }
}

module attributes {stable_mosaic.version = 11 : i64} {
  func.func @_conv_kernel(%arg0: i32, %arg1: memref<2x16xbf16, #tpu.memory_space<vmem>>, %arg2: memref<16x1024xbf16, #tpu.memory_space<vmem>>, %arg3: memref<2x1xf32, #tpu.memory_space<vmem>>, %arg4: memref<2x1024xf32, #tpu.memory_space<vmem>>) attributes {dimension_semantics = [#tpu.dimension_semantics<parallel>], iteration_bounds = array<i64: 2>, scalar_prefetch = 0 : i64, scratch_operands = 0 : i64, tpu.core_type = #tpu.core_type<tc>, window_params = [{pipeline_mode = #tpu.pipeline_mode<synchronous>, transform_indices = @transform_0, window_bounds = array<i64: 2, 16>}, {transform_indices = @transform_1, window_bounds = array<i64: 16, 1024>}, {pipeline_mode = #tpu.pipeline_mode<synchronous>, transform_indices = @transform_2, window_bounds = array<i64: 2, 1>}, {transform_indices = @transform_3, window_bounds = array<i64: 2, 1024>}]} {
    %c0 = arith.constant 0 : index
    %c0_0 = arith.constant 0 : index
    %0 = vector.load %arg1[%c0, %c0_0] : memref<2x16xbf16, #tpu.memory_space<vmem>>, vector<2x16xbf16>
    %c0_1 = arith.constant 0 : index
    %c0_2 = arith.constant 0 : index
    %1 = vector.load %arg2[%c0_1, %c0_2] : memref<16x1024xbf16, #tpu.memory_space<vmem>>, vector<16x1024xbf16>
    %cst = arith.constant dense<0.000000e+00> : vector<2x1024xf32>
    %2 = tpu.matmul %0, %1, %cst {dimension_numbers = #tpu.dot_dimension_numbers<[1], [0], [0], [1], [0, 0, 1, 1], [], []>} : vector<2x16xbf16>, vector<16x1024xbf16>, vector<2x1024xf32> -> vector<2x1024xf32>
    %c0_3 = arith.constant 0 : index
    %c0_4 = arith.constant 0 : index
    %3 = vector.load %arg3[%c0_3, %c0_4] : memref<2x1xf32, #tpu.memory_space<vmem>>, vector<2x1xf32>
    %4 = vector.broadcast %3 : vector<2x1xf32> to vector<2x1024xf32>
    %5 = arith.addf %2, %4 : vector<2x1024xf32>
    %cst_5 = arith.constant 0.000000e+00 : f32
    %6 = vector.broadcast %cst_5 : f32 to vector<2x1024xf32>
    %7 = arith.maximumf %5, %6 : vector<2x1024xf32>
    %c0_6 = arith.constant 0 : index
    %c0_7 = arith.constant 0 : index
    %8 = vector.load %arg4[%c0_6, %c0_7] : memref<2x1024xf32, #tpu.memory_space<vmem>>, vector<2x1024xf32>
    tpu.vector_store %arg4[%c0_6, %c0_7], %7 {strides = array<i32>} : memref<2x1024xf32, #tpu.memory_space<vmem>>, vector<2x1024xf32>,
    return
  }
  func.func @transform_0(%arg0: i32) -> (i32, i32) {
    %c0_i32 = arith.constant 0 : i32
    %c0_i32_0 = arith.constant 0 : i32
    %c0_i32_1 = arith.constant 0 : i32
    return %c0_i32, %c0_i32_0 : i32, i32
  }
  func.func @transform_1(%arg0: i32) -> (i32, i32) {
    %c0_i32 = arith.constant 0 : i32
    %c0_i32_0 = arith.constant 0 : i32
    return %c0_i32, %arg0 : i32, i32
  }
  func.func @transform_2(%arg0: i32) -> (i32, i32) {
    %c0_i32 = arith.constant 0 : i32
    %c0_i32_0 = arith.constant 0 : i32
    %c0_i32_1 = arith.constant 0 : i32
    return %c0_i32, %c0_i32_0 : i32, i32
  }
  func.func @transform_3(%arg0: i32) -> (i32, i32) {
    %c0_i32 = arith.constant 0 : i32
    %c0_i32_0 = arith.constant 0 : i32
    return %c0_i32, %arg0 : i32, i32
  }
}

module attributes {stable_mosaic.version = 11 : i64} {
  func.func @_conv_kernel(%arg0: i32, %arg1: memref<4x32xbf16, #tpu.memory_space<vmem>>, %arg2: memref<32x512xbf16, #tpu.memory_space<vmem>>, %arg3: memref<4x1xf32, #tpu.memory_space<vmem>>, %arg4: memref<4x512xf32, #tpu.memory_space<vmem>>) attributes {dimension_semantics = [#tpu.dimension_semantics<parallel>], iteration_bounds = array<i64: 1>, scalar_prefetch = 0 : i64, scratch_operands = 0 : i64, tpu.core_type = #tpu.core_type<tc>, window_params = [{pipeline_mode = #tpu.pipeline_mode<synchronous>, transform_indices = @transform_0, window_bounds = array<i64: 4, 32>}, {transform_indices = @transform_1, window_bounds = array<i64: 32, 512>}, {pipeline_mode = #tpu.pipeline_mode<synchronous>, transform_indices = @transform_2, window_bounds = array<i64: 4, 1>}, {transform_indices = @transform_3, window_bounds = array<i64: 4, 512>}]} {
    %c0 = arith.constant 0 : index
    %c0_0 = arith.constant 0 : index
    %0 = vector.load %arg1[%c0, %c0_0] : memref<4x32xbf16, #tpu.memory_space<vmem>>, vector<4x32xbf16>
    %c0_1 = arith.constant 0 : index
    %c0_2 = arith.constant 0 : index
    %1 = vector.load %arg2[%c0_1, %c0_2] : memref<32x512xbf16, #tpu.memory_space<vmem>>, vector<32x512xbf16>
    %cst = arith.constant dense<0.000000e+00> : vector<4x512xf32>
    %2 = tpu.matmul %0, %1, %cst {dimension_numbers = #tpu.dot_dimension_numbers<[1], [0], [0], [1], [0, 0, 1, 1], [], []>} : vector<4x32xbf16>, vector<32x512xbf16>, vector<4x512xf32> -> vector<4x512xf32>
    %c0_3 = arith.constant 0 : index
    %c0_4 = arith.constant 0 : index
    %3 = vector.load %arg3[%c0_3, %c0_4] : memref<4x1xf32, #tpu.memory_space<vmem>>, vector<4x1xf32>
    %4 = vector.broadcast %3 : vector<4x1xf32> to vector<4x512xf32>
    %5 = arith.addf %2, %4 : vector<4x512xf32>
    %cst_5 = arith.constant 0.000000e+00 : f32
    %6 = vector.broadcast %cst_5 : f32 to vector<4x512xf32>
    %7 = arith.maximumf %5, %6 : vector<4x512xf32>
    %c0_6 = arith.constant 0 : index
    %c0_7 = arith.constant 0 : index
    %8 = vector.load %arg4[%c0_6, %c0_7] : memref<4x512xf32, #tpu.memory_space<vmem>>, vector<4x512xf32>
    tpu.vector_store %arg4[%c0_6, %c0_7], %7 {strides = array<i32>} : memref<4x512xf32, #tpu.memory_space<vmem>>, vector<4x512xf32>,
    return
  }
  func.func @transform_0(%arg0: i32) -> (i32, i32) {
    %c0_i32 = arith.constant 0 : i32
    %c0_i32_0 = arith.constant 0 : i32
    %c0_i32_1 = arith.constant 0 : i32
    return %c0_i32, %c0_i32_0 : i32, i32
  }
  func.func @transform_1(%arg0: i32) -> (i32, i32) {
    %c0_i32 = arith.constant 0 : i32
    %c0_i32_0 = arith.constant 0 : i32
    return %c0_i32, %arg0 : i32, i32
  }
  func.func @transform_2(%arg0: i32) -> (i32, i32) {
    %c0_i32 = arith.constant 0 : i32
    %c0_i32_0 = arith.constant 0 : i32
    %c0_i32_1 = arith.constant 0 : i32
    return %c0_i32, %c0_i32_0 : i32, i32
  }
  func.func @transform_3(%arg0: i32) -> (i32, i32) {
    %c0_i32 = arith.constant 0 : i32
    %c0_i32_0 = arith.constant 0 : i32
    return %c0_i32, %arg0 : i32, i32
  }
}

module attributes {stable_mosaic.version = 11 : i64} {
  func.func @_conv_kernel(%arg0: i32, %arg1: memref<4x36xbf16, #tpu.memory_space<vmem>>, %arg2: memref<36x512xbf16, #tpu.memory_space<vmem>>, %arg3: memref<4x1xf32, #tpu.memory_space<vmem>>, %arg4: memref<4x512xf32, #tpu.memory_space<vmem>>) attributes {dimension_semantics = [#tpu.dimension_semantics<parallel>], iteration_bounds = array<i64: 1>, scalar_prefetch = 0 : i64, scratch_operands = 0 : i64, tpu.core_type = #tpu.core_type<tc>, window_params = [{pipeline_mode = #tpu.pipeline_mode<synchronous>, transform_indices = @transform_0, window_bounds = array<i64: 4, 36>}, {transform_indices = @transform_1, window_bounds = array<i64: 36, 512>}, {pipeline_mode = #tpu.pipeline_mode<synchronous>, transform_indices = @transform_2, window_bounds = array<i64: 4, 1>}, {transform_indices = @transform_3, window_bounds = array<i64: 4, 512>}]} {
    %c0 = arith.constant 0 : index
    %c0_0 = arith.constant 0 : index
    %0 = vector.load %arg1[%c0, %c0_0] : memref<4x36xbf16, #tpu.memory_space<vmem>>, vector<4x36xbf16>
    %c0_1 = arith.constant 0 : index
    %c0_2 = arith.constant 0 : index
    %1 = vector.load %arg2[%c0_1, %c0_2] : memref<36x512xbf16, #tpu.memory_space<vmem>>, vector<36x512xbf16>
    %cst = arith.constant dense<0.000000e+00> : vector<4x512xf32>
    %2 = tpu.matmul %0, %1, %cst {dimension_numbers = #tpu.dot_dimension_numbers<[1], [0], [0], [1], [0, 0, 1, 1], [], []>} : vector<4x36xbf16>, vector<36x512xbf16>, vector<4x512xf32> -> vector<4x512xf32>
    %c0_3 = arith.constant 0 : index
    %c0_4 = arith.constant 0 : index
    %3 = vector.load %arg3[%c0_3, %c0_4] : memref<4x1xf32, #tpu.memory_space<vmem>>, vector<4x1xf32>
    %4 = vector.broadcast %3 : vector<4x1xf32> to vector<4x512xf32>
    %5 = arith.addf %2, %4 : vector<4x512xf32>
    %c0_5 = arith.constant 0 : index
    %c0_6 = arith.constant 0 : index
    %6 = vector.load %arg4[%c0_5, %c0_6] : memref<4x512xf32, #tpu.memory_space<vmem>>, vector<4x512xf32>
    tpu.vector_store %arg4[%c0_5, %c0_6], %5 {strides = array<i32>} : memref<4x512xf32, #tpu.memory_space<vmem>>, vector<4x512xf32>,
    return
  }
  func.func @transform_0(%arg0: i32) -> (i32, i32) {
    %c0_i32 = arith.constant 0 : i32
    %c0_i32_0 = arith.constant 0 : i32
    %c0_i32_1 = arith.constant 0 : i32
    return %c0_i32, %c0_i32_0 : i32, i32
  }
  func.func @transform_1(%arg0: i32) -> (i32, i32) {
    %c0_i32 = arith.constant 0 : i32
    %c0_i32_0 = arith.constant 0 : i32
    return %c0_i32, %arg0 : i32, i32
  }
  func.func @transform_2(%arg0: i32) -> (i32, i32) {
    %c0_i32 = arith.constant 0 : i32
    %c0_i32_0 = arith.constant 0 : i32
    %c0_i32_1 = arith.constant 0 : i32
    return %c0_i32, %c0_i32_0 : i32, i32
  }
  func.func @transform_3(%arg0: i32) -> (i32, i32) {
    %c0_i32 = arith.constant 0 : i32
    %c0_i32_0 = arith.constant 0 : i32
    return %c0_i32, %arg0 : i32, i32
  }
}

module attributes {stable_mosaic.version = 11 : i64} {
  func.func @_conv_kernel(%arg0: i32, %arg1: memref<2x4xbf16, #tpu.memory_space<vmem>>, %arg2: memref<4x512xbf16, #tpu.memory_space<vmem>>, %arg3: memref<2x1xf32, #tpu.memory_space<vmem>>, %arg4: memref<2x512xf32, #tpu.memory_space<vmem>>) attributes {dimension_semantics = [#tpu.dimension_semantics<parallel>], iteration_bounds = array<i64: 1>, scalar_prefetch = 0 : i64, scratch_operands = 0 : i64, tpu.core_type = #tpu.core_type<tc>, window_params = [{pipeline_mode = #tpu.pipeline_mode<synchronous>, transform_indices = @transform_0, window_bounds = array<i64: 2, 4>}, {transform_indices = @transform_1, window_bounds = array<i64: 4, 512>}, {pipeline_mode = #tpu.pipeline_mode<synchronous>, transform_indices = @transform_2, window_bounds = array<i64: 2, 1>}, {transform_indices = @transform_3, window_bounds = array<i64: 2, 512>}]} {
    %c0 = arith.constant 0 : index
    %c0_0 = arith.constant 0 : index
    %0 = vector.load %arg1[%c0, %c0_0] : memref<2x4xbf16, #tpu.memory_space<vmem>>, vector<2x4xbf16>
    %c0_1 = arith.constant 0 : index
    %c0_2 = arith.constant 0 : index
    %1 = vector.load %arg2[%c0_1, %c0_2] : memref<4x512xbf16, #tpu.memory_space<vmem>>, vector<4x512xbf16>
    %cst = arith.constant dense<0.000000e+00> : vector<2x512xf32>
    %2 = tpu.matmul %0, %1, %cst {dimension_numbers = #tpu.dot_dimension_numbers<[1], [0], [0], [1], [0, 0, 1, 1], [], []>} : vector<2x4xbf16>, vector<4x512xbf16>, vector<2x512xf32> -> vector<2x512xf32>
    %c0_3 = arith.constant 0 : index
    %c0_4 = arith.constant 0 : index
    %3 = vector.load %arg3[%c0_3, %c0_4] : memref<2x1xf32, #tpu.memory_space<vmem>>, vector<2x1xf32>
    %4 = vector.broadcast %3 : vector<2x1xf32> to vector<2x512xf32>
    %5 = arith.addf %2, %4 : vector<2x512xf32>
    %c0_5 = arith.constant 0 : index
    %c0_6 = arith.constant 0 : index
    %6 = vector.load %arg4[%c0_5, %c0_6] : memref<2x512xf32, #tpu.memory_space<vmem>>, vector<2x512xf32>
    tpu.vector_store %arg4[%c0_5, %c0_6], %5 {strides = array<i32>} : memref<2x512xf32, #tpu.memory_space<vmem>>, vector<2x512xf32>,
    return
  }
  func.func @transform_0(%arg0: i32) -> (i32, i32) {
    %c0_i32 = arith.constant 0 : i32
    %c0_i32_0 = arith.constant 0 : i32
    %c0_i32_1 = arith.constant 0 : i32
    return %c0_i32, %c0_i32_0 : i32, i32
  }
  func.func @transform_1(%arg0: i32) -> (i32, i32) {
    %c0_i32 = arith.constant 0 : i32
    %c0_i32_0 = arith.constant 0 : i32
    return %c0_i32, %arg0 : i32, i32
  }
  func.func @transform_2(%arg0: i32) -> (i32, i32) {
    %c0_i32 = arith.constant 0 : i32
    %c0_i32_0 = arith.constant 0 : i32
    %c0_i32_1 = arith.constant 0 : i32
    return %c0_i32, %c0_i32_0 : i32, i32
  }
  func.func @transform_3(%arg0: i32) -> (i32, i32) {
    %c0_i32 = arith.constant 0 : i32
    %c0_i32_0 = arith.constant 0 : i32
    return %c0_i32, %arg0 : i32, i32
  }
}

module attributes {stable_mosaic.version = 11 : i64} {
  func.func @_classifier_kernel(%arg0: memref<2x512xbf16, #tpu.memory_space<vmem>>, %arg1: memref<512x512xbf16, #tpu.memory_space<vmem>>, %arg2: memref<1x512xf32, #tpu.memory_space<vmem>>, %arg3: memref<1x512xf32, #tpu.memory_space<vmem>>, %arg4: memref<1x512xf32, #tpu.memory_space<vmem>>, %arg5: memref<512x128xbf16, #tpu.memory_space<vmem>>, %arg6: memref<1x128xf32, #tpu.memory_space<vmem>>, %arg7: memref<1x128xf32, #tpu.memory_space<vmem>>, %arg8: memref<1x128xf32, #tpu.memory_space<vmem>>, %arg9: memref<128x5xbf16, #tpu.memory_space<vmem>>, %arg10: memref<1x5xf32, #tpu.memory_space<vmem>>, %arg11: memref<2x5xf32, #tpu.memory_space<vmem>>) attributes {dimension_semantics = [], scalar_prefetch = 0 : i64, scratch_operands = 0 : i64, tpu.core_type = #tpu.core_type<tc>} {
    %c0 = arith.constant 0 : index
    %c0_0 = arith.constant 0 : index
    %0 = vector.load %arg0[%c0, %c0_0] : memref<2x512xbf16, #tpu.memory_space<vmem>>, vector<2x512xbf16>
    %c0_1 = arith.constant 0 : index
    %c0_2 = arith.constant 0 : index
    %1 = vector.load %arg1[%c0_1, %c0_2] : memref<512x512xbf16, #tpu.memory_space<vmem>>, vector<512x512xbf16>
    %cst = arith.constant dense<0.000000e+00> : vector<2x512xf32>
    %2 = tpu.matmul %0, %1, %cst {dimension_numbers = #tpu.dot_dimension_numbers<[1], [0], [0], [1], [0, 0, 1, 1], [], []>} : vector<2x512xbf16>, vector<512x512xbf16>, vector<2x512xf32> -> vector<2x512xf32>
    %c0_3 = arith.constant 0 : index
    %c0_4 = arith.constant 0 : index
    %3 = vector.load %arg2[%c0_3, %c0_4] : memref<1x512xf32, #tpu.memory_space<vmem>>, vector<1x512xf32>
    %4 = vector.broadcast %3 : vector<1x512xf32> to vector<2x512xf32>
    %5 = arith.addf %2, %4 : vector<2x512xf32>
    %c0_5 = arith.constant 0 : index
    %c0_6 = arith.constant 0 : index
    %6 = vector.load %arg3[%c0_5, %c0_6] : memref<1x512xf32, #tpu.memory_space<vmem>>, vector<1x512xf32>
    %c0_7 = arith.constant 0 : index
    %c0_8 = arith.constant 0 : index
    %7 = vector.load %arg4[%c0_7, %c0_8] : memref<1x512xf32, #tpu.memory_space<vmem>>, vector<1x512xf32>
    %cst_9 = arith.constant dense<0.000000e+00> : vector<512xf32>
    %8 = vector.multi_reduction <add>, %5, %cst_9 [0] : vector<2x512xf32> to vector<512xf32>
    %9 = vector.shape_cast %8 : vector<512xf32> to vector<1x512xf32>
    %cst_10 = arith.constant 2.000000e+00 : f32
    %10 = vector.broadcast %cst_10 : f32 to vector<1x512xf32>
    %11 = arith.divf %9, %10 : vector<1x512xf32>
    %12 = vector.broadcast %11 : vector<1x512xf32> to vector<2x512xf32>
    %13 = arith.subf %5, %12 : vector<2x512xf32>
    %14 = arith.mulf %13, %13 : vector<2x512xf32>
    %cst_11 = arith.constant dense<0.000000e+00> : vector<512xf32>
    %15 = vector.multi_reduction <add>, %14, %cst_11 [0] : vector<2x512xf32> to vector<512xf32>
    %16 = vector.shape_cast %15 : vector<512xf32> to vector<1x512xf32>
    %cst_12 = arith.constant 2.000000e+00 : f32
    %17 = vector.broadcast %cst_12 : f32 to vector<1x512xf32>
    %18 = arith.divf %16, %17 : vector<1x512xf32>
    %19 = vector.broadcast %11 : vector<1x512xf32> to vector<2x512xf32>
    %20 = arith.subf %5, %19 : vector<2x512xf32>
    %21 = vector.broadcast %6 : vector<1x512xf32> to vector<2x512xf32>
    %22 = arith.mulf %21, %20 : vector<2x512xf32>
    %cst_13 = arith.constant 9.99999974E-6 : f32
    %23 = vector.broadcast %cst_13 : f32 to vector<1x512xf32>
    %24 = arith.addf %18, %23 : vector<1x512xf32>
    %25 = math.rsqrt %24 : vector<1x512xf32>
    %26 = vector.broadcast %25 : vector<1x512xf32> to vector<2x512xf32>
    %27 = arith.mulf %22, %26 : vector<2x512xf32>
    %28 = vector.broadcast %7 : vector<1x512xf32> to vector<2x512xf32>
    %29 = arith.addf %27, %28 : vector<2x512xf32>
    %cst_14 = arith.constant 0.000000e+00 : f32
    %30 = vector.broadcast %cst_14 : f32 to vector<2x512xf32>
    %31 = arith.maximumf %29, %30 : vector<2x512xf32>
    %32 = arith.truncf %31 : vector<2x512xf32> to vector<2x512xbf16>
    %c0_15 = arith.constant 0 : index
    %c0_16 = arith.constant 0 : index
    %33 = vector.load %arg5[%c0_15, %c0_16] : memref<512x128xbf16, #tpu.memory_space<vmem>>, vector<512x128xbf16>
    %cst_17 = arith.constant dense<0.000000e+00> : vector<2x128xf32>
    %34 = tpu.matmul %32, %33, %cst_17 {dimension_numbers = #tpu.dot_dimension_numbers<[1], [0], [0], [1], [0, 0, 1, 1], [], []>} : vector<2x512xbf16>, vector<512x128xbf16>, vector<2x128xf32> -> vector<2x128xf32>
    %c0_18 = arith.constant 0 : index
    %c0_19 = arith.constant 0 : index
    %35 = vector.load %arg6[%c0_18, %c0_19] : memref<1x128xf32, #tpu.memory_space<vmem>>, vector<1x128xf32>
    %36 = vector.broadcast %35 : vector<1x128xf32> to vector<2x128xf32>
    %37 = arith.addf %34, %36 : vector<2x128xf32>
    %c0_20 = arith.constant 0 : index
    %c0_21 = arith.constant 0 : index
    %38 = vector.load %arg7[%c0_20, %c0_21] : memref<1x128xf32, #tpu.memory_space<vmem>>, vector<1x128xf32>
    %c0_22 = arith.constant 0 : index
    %c0_23 = arith.constant 0 : index
    %39 = vector.load %arg8[%c0_22, %c0_23] : memref<1x128xf32, #tpu.memory_space<vmem>>, vector<1x128xf32>
    %cst_24 = arith.constant dense<0.000000e+00> : vector<128xf32>
    %40 = vector.multi_reduction <add>, %37, %cst_24 [0] : vector<2x128xf32> to vector<128xf32>
    %41 = vector.shape_cast %40 : vector<128xf32> to vector<1x128xf32>
    %cst_25 = arith.constant 2.000000e+00 : f32
    %42 = vector.broadcast %cst_25 : f32 to vector<1x128xf32>
    %43 = arith.divf %41, %42 : vector<1x128xf32>
    %44 = vector.broadcast %43 : vector<1x128xf32> to vector<2x128xf32>
    %45 = arith.subf %37, %44 : vector<2x128xf32>
    %46 = arith.mulf %45, %45 : vector<2x128xf32>
    %cst_26 = arith.constant dense<0.000000e+00> : vector<128xf32>
    %47 = vector.multi_reduction <add>, %46, %cst_26 [0] : vector<2x128xf32> to vector<128xf32>
    %48 = vector.shape_cast %47 : vector<128xf32> to vector<1x128xf32>
    %cst_27 = arith.constant 2.000000e+00 : f32
    %49 = vector.broadcast %cst_27 : f32 to vector<1x128xf32>
    %50 = arith.divf %48, %49 : vector<1x128xf32>
    %51 = vector.broadcast %43 : vector<1x128xf32> to vector<2x128xf32>
    %52 = arith.subf %37, %51 : vector<2x128xf32>
    %53 = vector.broadcast %38 : vector<1x128xf32> to vector<2x128xf32>
    %54 = arith.mulf %53, %52 : vector<2x128xf32>
    %cst_28 = arith.constant 9.99999974E-6 : f32
    %55 = vector.broadcast %cst_28 : f32 to vector<1x128xf32>
    %56 = arith.addf %50, %55 : vector<1x128xf32>
    %57 = math.rsqrt %56 : vector<1x128xf32>
    %58 = vector.broadcast %57 : vector<1x128xf32> to vector<2x128xf32>
    %59 = arith.mulf %54, %58 : vector<2x128xf32>
    %60 = vector.broadcast %39 : vector<1x128xf32> to vector<2x128xf32>
    %61 = arith.addf %59, %60 : vector<2x128xf32>
    %cst_29 = arith.constant 0.000000e+00 : f32
    %62 = vector.broadcast %cst_29 : f32 to vector<2x128xf32>
    %63 = arith.maximumf %61, %62 : vector<2x128xf32>
    %64 = arith.truncf %63 : vector<2x128xf32> to vector<2x128xbf16>
    %c0_30 = arith.constant 0 : index
    %c0_31 = arith.constant 0 : index
    %65 = vector.load %arg9[%c0_30, %c0_31] : memref<128x5xbf16, #tpu.memory_space<vmem>>, vector<128x5xbf16>
    %cst_32 = arith.constant dense<0.000000e+00> : vector<2x5xf32>
    %66 = tpu.matmul %64, %65, %cst_32 {dimension_numbers = #tpu.dot_dimension_numbers<[1], [0], [0], [1], [0, 0, 1, 1], [], []>} : vector<2x128xbf16>, vector<128x5xbf16>, vector<2x5xf32> -> vector<2x5xf32>
    %c0_33 = arith.constant 0 : index
    %c0_34 = arith.constant 0 : index
    %67 = vector.load %arg10[%c0_33, %c0_34] : memref<1x5xf32, #tpu.memory_space<vmem>>, vector<1x5xf32>
    %68 = vector.broadcast %67 : vector<1x5xf32> to vector<2x5xf32>
    %69 = arith.addf %66, %68 : vector<2x5xf32>
    %cst_35 = arith.constant dense<0xFF800000> : vector<2xf32>
    %70 = vector.multi_reduction <maximumf>, %69, %cst_35 [1] : vector<2x5xf32> to vector<2xf32>
    %71 = vector.shape_cast %70 : vector<2xf32> to vector<2x1xf32>
    %72 = vector.broadcast %71 : vector<2x1xf32> to vector<2x5xf32>
    %73 = arith.subf %69, %72 : vector<2x5xf32>
    %74 = math.exp %73 : vector<2x5xf32>
    %cst_36 = arith.constant dense<0.000000e+00> : vector<2xf32>
    %75 = vector.multi_reduction <add>, %74, %cst_36 [1] : vector<2x5xf32> to vector<2xf32>
    %76 = vector.shape_cast %75 : vector<2xf32> to vector<2x1xf32>
    %77 = vector.broadcast %76 : vector<2x1xf32> to vector<2x5xf32>
    %78 = arith.divf %74, %77 : vector<2x5xf32>
    %c0_37 = arith.constant 0 : index
    %c0_38 = arith.constant 0 : index
    %79 = vector.load %arg11[%c0_37, %c0_38] : memref<2x5xf32, #tpu.memory_space<vmem>>, vector<2x5xf32>
    tpu.vector_store %arg11[%c0_37, %c0_38], %78 {strides = array<i32>} : memref<2x5xf32, #tpu.memory_space<vmem>>, vector<2x5xf32>,
    return
  }
}

</mosaic_0001>

<bundles_post_ra>
// kernel: vae_fd_forward.31
= control target key start
LH: loop header
LB: loop body
LE: loop exit
PB: predicated region body
PF: predicated region fallthrough
CT: control target
= control target key end

     0   :  { %10 = vsyncpa [#allocation3], 0  ;;  %s3156_s21 = smov [#allocation2]   ;;  %s3157_s23 = smov 960   ;;  %s3877_s0 = inlined_call_operand.hbm [shape: bf16[64,1920], index: 0, kind: input, shape index: {}]   ;;  %s3878_s1 = inlined_call_operand.vmem [shape: bf16[1920,32], index: 1, kind: input, shape index: {}]   ;;  %s3879_s2 = inlined_call_operand.vmem [shape: f32[64,1], index: 2, kind: input, shape index: {}]   ;;  %s3880_s3 = inlined_call_operand.vmem [shape: f32[64,1], index: 3, kind: input, shape index: {}]   ;;  %s3881_s4 = inlined_call_operand.vmem [shape: f32[64,1], index: 4, kind: input, shape index: {}]   ;;  %s3882_s5 = inlined_call_operand.vmem [shape: f32[64,32], index: 5, kind: output, shape index: {}]  }
   0x1   :  { %s15_s20 = sshll.u32 %s3877_s0, 4  ;;  %s17_s22 = sshll.u32 %s3156_s21, 4  ;;  %s16_s20 = int_to_ptr.hbm [resolvable:$true] %s15_s20  ;;  %s18_s22 = int_to_ptr.vmem [resolvable:$true] %s17_s22 }
   0x2   :  { %s3158_s24 = smov 60  }
   0x3   :  { %23 = dma.hbm_to_vmem [thread:$0]  %s16_s20, 7680, %s18_s22, [#allocation3], %s3157_s23, %s3157_s23, %s3158_s24  }
   0x4   :  { %3154 = dma.done.wait [#allocation3], 7680  }
   0x5   :  { %3155 = vsyncadd [#allocation3], 4294959616  ;;  %v2967_v0 = vld [vmem:[%s3878_s1 + $0x38] sm:$0xff]  ;;  %v2966_v3 = vld [vmem:[%s3878_s1 + $0x30] sm:$0xff]  ;;  %v3159_v12 = vmov 0   ;;  %vm1847_vm0 = vcmask 261120  }
   0x6   :  { %v2975_v1 = vld [vmem:[%s3878_s1 + $0x78] sm:$0xff]  ;;  %1412 = vmatpush.bf16.msra.mxu0 %v2967_v0  ;;  %3080 = vmatpush.bf16.msra.mxu3 %v2967_v0  ;;  %v2974_v4 = vld [vmem:[%s3878_s1 + $0x70] sm:$0xff]  ;;  %v2965_v6 = vld [vmem:[%s3878_s1 + $0x28] sm:$0xff] }
   0x7   :  { %v2983_v2 = vld [vmem:[%s3878_s1 + $0xb8] sm:$0xff]  ;;  %1441 = vmatpush.bf16.msra.mxu1 %v2975_v1  ;;  %v2982_v5 = vld [vmem:[%s3878_s1 + $0xb0] sm:$0xff]  ;;  %v2973_v7 = vld [vmem:[%s3878_s1 + $0x68] sm:$0xff]  ;;  %3109 = vset.pattern.permute.xlu0 %v3159_v12 }
   0x8   :  { %1470 = vmatpush.bf16.msra.mxu2 %v2983_v2  ;;  %v2981_v8 = vld [vmem:[%s3878_s1 + $0xa8] sm:$0xff]  ;;  %v2964_v9 = vld [vmem:[%s3878_s1 + $0x20] sm:$0xff]  ;;  %3110 = vset.pattern.permute.xlu1 %v3159_v12  ;;  %v2963_v14 = vld [vmem:[%s3878_s1 + $0x18] sm:$0xff] }
   0x9   :  { %v2972_v10 = vld [vmem:[%s3878_s1 + $0x60] sm:$0xff]  ;;  %3111 = vset.pattern.permute.xlu2 %v3159_v12  ;;  %v2971_v15 = vld [vmem:[%s3878_s1 + $0x58] sm:$0xff]  ;;  %v2962_v17 = vld [vmem:[%s3878_s1 + $0x10] sm:$0xff] }
   0xa   :  { %1413 = vmatpush.bf16.msra.mxu0 %v2966_v3  ;;  %3081 = vmatpush.bf16.msra.mxu3 %v2966_v3  ;;  %v2980_v11 = vld [vmem:[%s3878_s1 + $0xa0] sm:$0xff]  ;;  %v2979_v16 = vld [vmem:[%s3878_s1 + $0x98] sm:$0xff]  ;;  %v2970_v18 = vld [vmem:[%s3878_s1 + $0x50] sm:$0xff] }
   0xb   :  { %1442 = vmatpush.bf16.msra.mxu1 %v2974_v4  ;;  %v340_v13 = vld [vmem:[%s3879_s2] sm:$0xff]  ;;  %v2978_v19 = vld [vmem:[%s3878_s1 + $0x90] sm:$0xff]  ;;  %v341_v20 = vld [vmem:[%s3879_s2 + $0x8] sm:$0xff] }
   0xc   :  { %1471 = vmatpush.bf16.msra.mxu2 %v2982_v5  ;;  %350 = vperm.xlu0 %3109, %v340_v13   ;;  %v2961_v21 = vld [vmem:[%s3878_s1 + $0x8] sm:$0xff]  ;;  %v2960_v24 = vld [vmem:[%s3878_s1] sm:$0xff]  ;;  %v2907_v28 = vld [vmem:[#allocation2 + $0x38] sm:$0xf0] }
   0xd   :  { %v2969_v22 = vld [vmem:[%s3878_s1 + $0x48] sm:$0xff]  ;;  %v2968_v25 = vld [vmem:[%s3878_s1 + $0x40] sm:$0xff]  ;;  %v2302_v29 = vld [vmem:[#allocation2 + $0xf0] sm:$0xf] }
   0xe   :  { %1414 = vmatpush.bf16.msra.mxu0 %v2965_v6  ;;  %3082 = vmatpush.bf16.msra.mxu3 %v2965_v6  ;;  %v2977_v23 = vld [vmem:[%s3878_s1 + $0x88] sm:$0xff]  ;;  %v2976_v26 = vld [vmem:[%s3878_s1 + $0x80] sm:$0xff]  ;;  %v342_v35 = vld [vmem:[%s3879_s2 + $0x10] sm:$0xff] }
   0xf   :  { %1443 = vmatpush.bf16.msra.mxu1 %v2973_v7  ;;  %v2182_v27 = vld [vmem:[#allocation2] sm:$0xf]  ;;  %v2937_v30 = vld [vmem:[#allocation2 + $0x128] sm:$0xf0]  ;;  %v2900_v31 = vld [vmem:[#allocation2 + $0x4] sm:$0xf]  ;;  %360 = vperm.xlu1 %3110, %v342_v35  }
  0x10   :  { %1472 = vmatpush.bf16.msra.mxu2 %v2981_v8  ;;  %v2184_v32 = vld [vmem:[#allocation2 + $0x3c] sm:$0xf0]  ;;  %v2190_v33 = vld [vmem:[#allocation2 + $0x8] sm:$0xf]  ;;  %v2908_v34 = vld [vmem:[#allocation2 + $0x40] sm:$0xf0]  ;;  %v2183_v38 = vor.u32 %v2907_v28, %v2182_v27  ;;  %v2303_v39 = vor.u32 %v2937_v30, %v2302_v29 }
  0x11   :  { %v3015_v36 = vld [vmem:[%s3878_s1 + $0x1b8] sm:$0xff]  ;;  %v2187_v40 = vor.u32 %v2900_v31, %v2184_v32  ;;  %v2191_v41 = vor.u32 %v2908_v34, %v2190_v33  ;;  %v2990_v44 = vld [vmem:[%s3878_s1 + $0xf0] sm:$0xff]  ;;  %v2989_v49 = vld [vmem:[%s3878_s1 + $0xe8] sm:$0xff] }
  0x12   :  { %1415 = vmatpush.bf16.msra.mxu0 %v2964_v9  ;;  %3083 = vmatpush.bf16.msra.mxu3 %v2964_v9  ;;  %v2991_v37 = vld [vmem:[%s3878_s1 + $0xf8] sm:$0xff]  ;;  %v3014_v45 = vld [vmem:[%s3878_s1 + $0x1b0] sm:$0xff]  ;;  %v3013_v50 = vld [vmem:[%s3878_s1 + $0x1a8] sm:$0xff] }
  0x13   :  { %1444 = vmatpush.bf16.msra.mxu1 %v2972_v10  ;;  %v2999_v42 = vld [vmem:[%s3878_s1 + $0x138] sm:$0xff]  ;;  %v2998_v46 = vld [vmem:[%s3878_s1 + $0x130] sm:$0xff]  ;;  %v2997_v51 = vld [vmem:[%s3878_s1 + $0x128] sm:$0xff] }
  0x14   :  { %1473 = vmatpush.bf16.msra.mxu2 %v2980_v11  ;;  %355 = vperm.xlu0 %3109, %v341_v20   ;;  %v3007_v43 = vld [vmem:[%s3878_s1 + $0x178] sm:$0xff]  ;;  %v3006_v47 = vld [vmem:[%s3878_s1 + $0x170] sm:$0xff]  ;;  %v3005_v52 = vld [vmem:[%s3878_s1 + $0x168] sm:$0xff] }
  0x15   :  { %v343_v48 = vld [vmem:[%s3879_s2 + $0x18] sm:$0xff]  ;;  %v2988_v53 = vld [vmem:[%s3878_s1 + $0xe0] sm:$0xff]  ;;  %v2922_v57 = vld [vmem:[#allocation2 + $0xb0] sm:$0xf0] }
  0x16   :  { %1416 = vmatpush.bf16.msra.mxu0 %v2963_v14  ;;  %3084 = vmatpush.bf16.msra.mxu3 %v2963_v14  ;;  %v3012_v54 = vld [vmem:[%s3878_s1 + $0x1a0] sm:$0xff]  ;;  %v2242_v56 = vld [vmem:[#allocation2 + $0x78] sm:$0xf]  ;;  %v2362_v58 = vld [vmem:[#allocation2 + $0x168] sm:$0xf] }
  0x17   :  { %1445 = vmatpush.bf16.msra.mxu1 %v2971_v15  ;;  %365 = vperm.xlu1 %3110, %v343_v48   ;;  %v2996_v55 = vld [vmem:[%s3878_s1 + $0x120] sm:$0xff]  ;;  %v2915_v60 = vld [vmem:[#allocation2 + $0x7c] sm:$0xf]  ;;  %v2244_v61 = vld [vmem:[#allocation2 + $0xb4] sm:$0xf0]  ;;  %v2243_v3 = vor.u32 %v2922_v57, %v2242_v56 }
  0x18   :  { %1474 = vmatpush.bf16.msra.mxu2 %v2979_v16  ;;  %v2952_v59 = vld [vmem:[#allocation2 + $0x1a0] sm:$0xf0]  ;;  %v2250_v62 = vld [vmem:[#allocation2 + $0x80] sm:$0xf]  ;;  %v2923_v63 = vld [vmem:[#allocation2 + $0xb8] sm:$0xf0]  ;;  %v2247_v5 = vor.u32 %v2915_v60, %v2244_v61 }
  0x19   :  { %v3004_v0 = vld [vmem:[%s3878_s1 + $0x160] sm:$0xff]  ;;  %v2987_v1 = vld [vmem:[%s3878_s1 + $0xd8] sm:$0xff]  ;;  %v2363_v4 = vor.u32 %v2952_v59, %v2362_v58  ;;  %v2251_v6 = vor.u32 %v2923_v63, %v2250_v62  ;;  %v2986_v8 = vld [vmem:[%s3878_s1 + $0xd0] sm:$0xff] }
  0x1a   :  { %1417 = vmatpush.bf16.msra.mxu0 %v2962_v17  ;;  %3085 = vmatpush.bf16.msra.mxu3 %v2962_v17  ;;  %v3011_v2 = vld [vmem:[%s3878_s1 + $0x198] sm:$0xff]  ;;  %v3010_v9 = vld [vmem:[%s3878_s1 + $0x190] sm:$0xff]  ;;  %v2985_v12 = vld [vmem:[%s3878_s1 + $0xc8] sm:$0xff] }
  0x1b   :  { %1446 = vmatpush.bf16.msra.mxu1 %v2970_v18  ;;  %v2995_v7 = vld [vmem:[%s3878_s1 + $0x118] sm:$0xff]  ;;  %v2994_v11 = vld [vmem:[%s3878_s1 + $0x110] sm:$0xff]  ;;  %v344_v13 = vld [vmem:[%s3879_s2 + $0x20] sm:$0xff] }
  0x1c   :  { %1475 = vmatpush.bf16.msra.mxu2 %v2978_v19  ;;  %v3003_v10 = vld [vmem:[%s3878_s1 + $0x158] sm:$0xff]  ;;  %v3009_v14 = vld [vmem:[%s3878_s1 + $0x188] sm:$0xff]  ;;  %v346_v16 = vld [vmem:[%s3879_s2 + $0x30] sm:$0xff]  ;;  %370 = vperm.xlu2 %3111, %v344_v13  }
  0x1d   :  { %v347_v15 = vld [vmem:[%s3879_s2 + $0x38] sm:$0xff]  ;;  %380 = vperm.xlu0 %3109, %v346_v16   ;;  %v3002_v17 = vld [vmem:[%s3878_s1 + $0x150] sm:$0xff]  ;;  %v2993_v18 = vld [vmem:[%s3878_s1 + $0x108] sm:$0xff] }
  0x1e   :  { %1418 = vmatpush.bf16.msra.mxu0 %v2961_v21  ;;  %3086 = vmatpush.bf16.msra.mxu3 %v2961_v21  ;;  %v2984_v19 = vld [vmem:[%s3878_s1 + $0xc0] sm:$0xff]  ;;  %v3001_v27 = vld [vmem:[%s3878_s1 + $0x148] sm:$0xff]  ;;  %v2304_v28 = vld [vmem:[#allocation2 + $0x12c] sm:$0xf0] }
  0x1f   :  { %1447 = vmatpush.bf16.msra.mxu1 %v2969_v22  ;;  %385 = vperm.xlu1 %3110, %v347_v15   ;;  %v3008_v20 = vld [vmem:[%s3878_s1 + $0x180] sm:$0xff]  ;;  %v2930_v22 = vld [vmem:[#allocation2 + $0xf4] sm:$0xf]  ;;  %v2310_v29 = vld [vmem:[#allocation2 + $0xf8] sm:$0xf] }
  0x20   :  { %1476 = vmatpush.bf16.msra.mxu2 %v2977_v23  ;;  %v2992_v21 = vld [vmem:[%s3878_s1 + $0x100] sm:$0xff]  ;;  %v2901_v23 = vld [vmem:[#allocation2 + $0xc] sm:$0xf]  ;;  %v2938_v30 = vld [vmem:[#allocation2 + $0x130] sm:$0xf0]  ;;  %v2307_v35 = vor.u32 %v2930_v22, %v2304_v28 }
  0x21   :  { %v2198_v31 = vld [vmem:[#allocation2 + $0x10] sm:$0xf]  ;;  %v2909_v32 = vld [vmem:[#allocation2 + $0x48] sm:$0xf0]  ;;  %v3031_v33 = vld [vmem:[%s3878_s1 + $0x238] sm:$0xff] }
  0x22   :  { %1419 = vmatpush.bf16.msra.mxu0 %v2960_v24  ;;  %3087 = vmatpush.bf16.msra.mxu3 %v2960_v24  ;;  %v3023_v24 = vld [vmem:[%s3878_s1 + $0x1f8] sm:$0xff]  ;;  %v2916_v48 = vld [vmem:[#allocation2 + $0x84] sm:$0xf]  ;;  %v3026_v60 = vld [vmem:[%s3878_s1 + $0x210] sm:$0xff] }
  0x23   :  { %1448 = vmatpush.bf16.msra.mxu1 %v2968_v25  ;;  %v2192_v25 = vld [vmem:[#allocation2 + $0x44] sm:$0xf0]  ;;  %v3019_v61 = vld [vmem:[%s3878_s1 + $0x1d8] sm:$0xff]  ;;  %v3042_v22 = vld [vmem:[%s3878_s1 + $0x290] sm:$0xff] }
  0x24   :  { %1477 = vmatpush.bf16.msra.mxu2 %v2976_v26  ;;  %v345_v26 = vld [vmem:[%s3879_s2 + $0x28] sm:$0xff]  ;;  %v2195_v34 = vor.u32 %v2901_v23, %v2192_v25  ;;  %v3039_v63 = vld [vmem:[%s3878_s1 + $0x278] sm:$0xff]  ;;  %v3036_v23 = vld [vmem:[%s3878_s1 + $0x260] sm:$0xff] }
  0x25   :  { %1420 = vmatmul.bf16.vlgmr.msra.gmra.mxu0 %v2183_v38  ;;  %1430 = vmatmul.bf16.vlgmr.msra.gmra.mxu3 %v2303_v39  ;;  %v3022_v38 = vld [vmem:[%s3878_s1 + $0x1f0] sm:$0xff]  ;;  %v3045_v62 = vld [vmem:[%s3878_s1 + $0x2a8] sm:$0xff]  ;;  %v2939_v13 = vld [vmem:[#allocation2 + $0x138] sm:$0xf0] }
  0x26   :  { %1499 = vmatpush.bf16.msrb.mxu3 %v2991_v37  ;;  %1449 = vmatmul.bf16.vlgmr.msra.gmra.mxu1 %v2187_v40  ;;  %v2199_v37 = vor.u32 %v2909_v32, %v2198_v31  ;;  %v3030_v39 = vld [vmem:[%s3878_s1 + $0x230] sm:$0xff]  ;;  %v3000_v40 = vld [vmem:[%s3878_s1 + $0x140] sm:$0xff]  ;;  %v2260_v28 = vld [vmem:[#allocation2 + $0xc4] sm:$0xf0] }
  0x27   :  { %1478 = vmatmul.bf16.vlgmr.msra.gmra.mxu2 %v2191_v41  ;;  %1528 = vmatpush.bf16.msrb.mxu0 %v2999_v42  ;;  %v3021_v41 = vld [vmem:[%s3878_s1 + $0x1e8] sm:$0xff]  ;;  %v3047_v42 = vld [vmem:[%s3878_s1 + $0x2b8] sm:$0xff]  ;;  %v2946_v25 = vld [vmem:[#allocation2 + $0x174] sm:$0xf] }
  0x28   :  { %1586 = vmatpush.bf16.msrb.mxu2 %v3015_v36  ;;  %1557 = vmatpush.bf16.msrb.mxu1 %v3007_v43  ;;  %v2311_v36 = vor.u32 %v2938_v30, %v2310_v29  ;;  %v3029_v43 = vld [vmem:[%s3878_s1 + $0x228] sm:$0xff]  ;;  %v2266_v29 = vld [vmem:[#allocation2 + $0x90] sm:$0xf]  ;;  %v2378_v31 = vld [vmem:[#allocation2 + $0x178] sm:$0xf] }
  0x29   :  { %375 = vperm.xlu2 %3111, %v345_v26   ;;  %v2372_v26 = vld [vmem:[#allocation2 + $0x1ac] sm:$0xf0]  ;;  %v2925_v30 = vld [vmem:[#allocation2 + $0xc8] sm:$0xf0]  ;;  %v2954_v32 = vld [vmem:[#allocation2 + $0x1b0] sm:$0xf0] }
  0x2a   :  { %1500 = vmatpush.bf16.msrb.mxu3 %v2990_v44  ;;  %v3046_v44 = vld [vmem:[%s3878_s1 + $0x2b0] sm:$0xff] }
  0x2b   :  { %1529 = vmatpush.bf16.msrb.mxu0 %v2998_v46  ;;  %v3028_v46 = vld [vmem:[%s3878_s1 + $0x220] sm:$0xff] }
  0x2c   :  { %1587 = vmatpush.bf16.msrb.mxu2 %v3014_v45  ;;  %1558 = vmatpush.bf16.msrb.mxu1 %v3006_v47  ;;  %v3020_v45 = vld [vmem:[%s3878_s1 + $0x1e0] sm:$0xff]  ;;  %v2945_v47 = vld [vmem:[#allocation2 + $0x16c] sm:$0xf] }
  0x2e   :  { %1501 = vmatpush.bf16.msrb.mxu3 %v2989_v49  ;;  %v2252_v49 = vld [vmem:[#allocation2 + $0xbc] sm:$0xf0] }
  0x2f   :  { %1530 = vmatpush.bf16.msrb.mxu0 %v2997_v51  ;;  %v2370_v51 = vld [vmem:[#allocation2 + $0x170] sm:$0xf]  ;;  %v2255_v56 = vor.u32 %v2916_v48, %v2252_v49  ;;  %v2208_v48 = vld [vmem:[#allocation2 + $0x54] sm:$0xf0]  ;;  %v2320_v49 = vld [vmem:[#allocation2 + $0x13c] sm:$0xf0] }
  0x30   :  { %1588 = vmatpush.bf16.msrb.mxu2 %v3013_v50  ;;  %1559 = vmatpush.bf16.msrb.mxu1 %v3005_v52  ;;  %v2364_v50 = vld [vmem:[#allocation2 + $0x1a4] sm:$0xf0]  ;;  %v2953_v52 = vld [vmem:[#allocation2 + $0x1a8] sm:$0xf0] }
  0x31   :  { %v2367_v57 = vor.u32 %v2945_v47, %v2364_v50  ;;  %v2371_v58 = vor.u32 %v2953_v52, %v2370_v51  ;;  %v2903_v47 = vld [vmem:[#allocation2 + $0x1c] sm:$0xf]  ;;  %v2326_v50 = vld [vmem:[#allocation2 + $0x108] sm:$0xf]  ;;  %v2940_v51 = vld [vmem:[#allocation2 + $0x140] sm:$0xf0] }
  0x32   :  { %1502 = vmatpush.bf16.msrb.mxu3 %v2988_v53  ;;  %v2258_v53 = vld [vmem:[#allocation2 + $0x88] sm:$0xf]  ;;  %v2214_v52 = vld [vmem:[#allocation2 + $0x20] sm:$0xf] }
  0x33   :  { %1531 = vmatpush.bf16.msrb.mxu0 %v2996_v55  ;;  %v3027_v55 = vld [vmem:[%s3878_s1 + $0x218] sm:$0xff] }
  0x34   :  { %1589 = vmatpush.bf16.msrb.mxu2 %v3012_v54  ;;  %1560 = vmatpush.bf16.msrb.mxu1 %v3004_v0  ;;  %v2924_v54 = vld [vmem:[#allocation2 + $0xc0] sm:$0xf0]  ;;  %v3025_v0 = vld [vmem:[%s3878_s1 + $0x208] sm:$0xff] }
  0x35   :  { %1425 = vmatmul.bf16.gmra.mxu0 %v2243_v3  ;;  %1435 = vmatmul.bf16.gmra.mxu3 %v2363_v4  ;;  %v2259_v59 = vor.u32 %v2924_v54, %v2258_v53  ;;  %v3038_v3 = vld [vmem:[%s3878_s1 + $0x270] sm:$0xff]  ;;  %v3017_v4 = vld [vmem:[%s3878_s1 + $0x1c8] sm:$0xff]  ;;  %v2911_v53 = vld [vmem:[#allocation2 + $0x58] sm:$0xf0]  ;;  %v2211_v54 = vor.u32 %v2903_v47, %v2208_v48 }
  0x36   :  { %1503 = vmatpush.bf16.msrb.mxu3 %v2987_v1  ;;  %1454 = vmatmul.bf16.gmra.mxu1 %v2247_v5  ;;  %v3018_v1 = vld [vmem:[%s3878_s1 + $0x1d0] sm:$0xff]  ;;  %v3024_v5 = vld [vmem:[%s3878_s1 + $0x200] sm:$0xff] }
  0x37   :  { %1483 = vmatmul.bf16.gmra.mxu2 %v2251_v6  ;;  %1532 = vmatpush.bf16.msrb.mxu0 %v2995_v7  ;;  %v2931_v6 = vld [vmem:[#allocation2 + $0xfc] sm:$0xf]  ;;  %v2312_v7 = vld [vmem:[#allocation2 + $0x134] sm:$0xf0] }
  0x38   :  { %1590 = vmatpush.bf16.msrb.mxu2 %v3011_v2  ;;  %1561 = vmatpush.bf16.msrb.mxu1 %v3003_v10  ;;  %v3044_v2 = vld [vmem:[%s3878_s1 + $0x2a0] sm:$0xff]  ;;  %v2206_v10 = vld [vmem:[#allocation2 + $0x18] sm:$0xf]  ;;  %v2315_v15 = vor.u32 %v2931_v6, %v2312_v7  ;;  %v2926_v7 = vld [vmem:[#allocation2 + $0xd0] sm:$0xf0] }
  0x39   :  { %v2274_v6 = vld [vmem:[#allocation2 + $0x98] sm:$0xf] }
  0x3a   :  { %1504 = vmatpush.bf16.msrb.mxu3 %v2986_v8  ;;  %v2902_v8 = vld [vmem:[#allocation2 + $0x14] sm:$0xf] }
  0x3b   :  { %1533 = vmatpush.bf16.msrb.mxu0 %v2994_v11  ;;  %v2910_v11 = vld [vmem:[#allocation2 + $0x50] sm:$0xf0] }
  0x3c   :  { %1591 = vmatpush.bf16.msrb.mxu2 %v3010_v9  ;;  %1562 = vmatpush.bf16.msrb.mxu1 %v3002_v17  ;;  %v2200_v9 = vld [vmem:[#allocation2 + $0x4c] sm:$0xf0]  ;;  %v2207_v17 = vor.u32 %v2910_v11, %v2206_v10 }
  0x3d   :  { %v2203_v16 = vor.u32 %v2902_v8, %v2200_v9  ;;  %v3058_v11 = vld [vmem:[%s3878_s1 + $0x310] sm:$0xff] }
  0x3e   :  { %1505 = vmatpush.bf16.msrb.mxu3 %v2985_v12  ;;  %v2318_v12 = vld [vmem:[#allocation2 + $0x100] sm:$0xf] }
  0x3f   :  { %1534 = vmatpush.bf16.msrb.mxu0 %v2993_v18  ;;  %v2319_v18 = vor.u32 %v2939_v13, %v2318_v12  ;;  %v2275_v12 = vor.u32 %v2926_v7, %v2274_v6  ;;  %v3051_v13 = vld [vmem:[%s3878_s1 + $0x2d8] sm:$0xff] }
  0x40   :  { %1592 = vmatpush.bf16.msrb.mxu2 %v3009_v14  ;;  %1563 = vmatpush.bf16.msrb.mxu1 %v3001_v27  ;;  %v3016_v14 = vld [vmem:[%s3878_s1 + $0x1c0] sm:$0xff]  ;;  %v2917_v27 = vld [vmem:[#allocation2 + $0x8c] sm:$0xf] }
  0x42   :  { %1506 = vmatpush.bf16.msrb.mxu3 %v2984_v19  ;;  %v3043_v19 = vld [vmem:[%s3878_s1 + $0x298] sm:$0xff] }
  0x43   :  { %1535 = vmatpush.bf16.msrb.mxu0 %v2992_v21  ;;  %v3063_v21 = vld [vmem:[%s3878_s1 + $0x338] sm:$0xff] }
  0x44   :  { %1593 = vmatpush.bf16.msrb.mxu2 %v3008_v20  ;;  %1564 = vmatpush.bf16.msrb.mxu1 %v3000_v40  ;;  %v3037_v20 = vld [vmem:[%s3878_s1 + $0x268] sm:$0xff] }
  0x45   :  { %1507 = vmatmul.bf16.vlgmr.msrb.gmra.mxu3 %v2195_v34  ;;  %v2263_v34 = vor.u32 %v2917_v27, %v2260_v28  ;;  %v3061_v40 = vld [vmem:[%s3878_s1 + $0x328] sm:$0xff]  ;;  %v2334_v27 = vld [vmem:[#allocation2 + $0x110] sm:$0xf] }
  0x46   :  { %1615 = vmatpush.bf16.msra.mxu3 %v3023_v24  ;;  %1459 = vmatmul.bf16.gmra.mxu1 %v2307_v35  ;;  %v3062_v24 = vld [vmem:[%s3878_s1 + $0x330] sm:$0xff]  ;;  %v2267_v35 = vor.u32 %v2925_v30, %v2266_v29  ;;  %v2941_v28 = vld [vmem:[#allocation2 + $0x148] sm:$0xf0] }
  0x47   :  { %1644 = vmatpush.bf16.msra.mxu0 %v3031_v33  ;;  %1488 = vmatmul.bf16.gmra.mxu2 %v2311_v36  ;;  %v2375_v33 = vor.u32 %v2946_v25, %v2372_v26  ;;  %v2379_v36 = vor.u32 %v2954_v32, %v2378_v31  ;;  %v2222_v25 = vld [vmem:[#allocation2 + $0x28] sm:$0xf]  ;;  %v2912_v26 = vld [vmem:[#allocation2 + $0x60] sm:$0xf0] }
  0x48   :  { %1536 = vmatmul.bf16.vlgmr.msrb.gmra.mxu0 %v2199_v37  ;;  %1702 = vmatpush.bf16.msra.mxu2 %v3047_v42  ;;  %v3035_v37 = vld [vmem:[%s3878_s1 + $0x258] sm:$0xff]  ;;  %v3040_v42 = vld [vmem:[%s3878_s1 + $0x280] sm:$0xff]  ;;  %v2223_v32 = vor.u32 %v2912_v26, %v2222_v25  ;;  %v2224_v25 = vld [vmem:[#allocation2 + $0x64] sm:$0xf0] }
  0x49   :  { %1673 = vmatpush.bf16.msra.mxu1 %v3039_v63  ;;  %v3518_v63 = vld [vmem:[%s3878_s1 + $0x3b0] sm:$0xff] }
  0x4a   :  { %1616 = vmatpush.bf16.msra.mxu3 %v3022_v38  ;;  %v3041_v38 = vld [vmem:[%s3878_s1 + $0x288] sm:$0xff]  ;;  %v2336_v26 = vld [vmem:[#allocation2 + $0x14c] sm:$0xf0] }
  0x4b   :  { %1645 = vmatpush.bf16.msra.mxu0 %v3030_v39  ;;  %v3055_v39 = vld [vmem:[%s3878_s1 + $0x2f8] sm:$0xff] }
  0x4c   :  { %1703 = vmatpush.bf16.msra.mxu2 %v3046_v44  ;;  %v3060_v44 = vld [vmem:[%s3878_s1 + $0x320] sm:$0xff] }
  0x4d   :  { %1674 = vmatpush.bf16.msra.mxu1 %v3038_v3  ;;  %v2380_v3 = vld [vmem:[#allocation2 + $0x1b4] sm:$0xf0] }
  0x4e   :  { %1617 = vmatpush.bf16.msra.mxu3 %v3021_v41  ;;  %v3034_v41 = vld [vmem:[%s3878_s1 + $0x250] sm:$0xff] }
  0x4f   :  { %1646 = vmatpush.bf16.msra.mxu0 %v3029_v43  ;;  %v3054_v43 = vld [vmem:[%s3878_s1 + $0x2f0] sm:$0xff] }
  0x50   :  { %1704 = vmatpush.bf16.msra.mxu2 %v3045_v62  ;;  %v3052_v62 = vld [vmem:[%s3878_s1 + $0x2e0] sm:$0xff] }
  0x51   :  { %1675 = vmatpush.bf16.msra.mxu1 %v3037_v20 }
  0x52   :  { %1618 = vmatpush.bf16.msra.mxu3 %v3020_v45  ;;  %v3033_v45 = vld [vmem:[%s3878_s1 + $0x248] sm:$0xff] }
  0x53   :  { %1647 = vmatpush.bf16.msra.mxu0 %v3028_v46  ;;  %v2932_v46 = vld [vmem:[#allocation2 + $0x104] sm:$0xf] }
  0x54   :  { %1705 = vmatpush.bf16.msra.mxu2 %v3044_v2  ;;  %v2268_v2 = vld [vmem:[#allocation2 + $0xcc] sm:$0xf0] }
  0x55   :  { %1512 = vmatmul.bf16.gmra.mxu3 %v2255_v56  ;;  %1676 = vmatpush.bf16.msra.mxu1 %v3036_v23  ;;  %v2327_v56 = vor.u32 %v2940_v51, %v2326_v50  ;;  %v2904_v23 = vld [vmem:[#allocation2 + $0x24] sm:$0xf] }
  0x56   :  { %1464 = vmatmul.bf16.gmra.mxu1 %v2367_v57  ;;  %1619 = vmatpush.bf16.msra.mxu3 %v3019_v61  ;;  %v3032_v57 = vld [vmem:[%s3878_s1 + $0x240] sm:$0xff]  ;;  %v3059_v61 = vld [vmem:[%s3878_s1 + $0x318] sm:$0xff] }
  0x57   :  { %1648 = vmatpush.bf16.msra.mxu0 %v3027_v55  ;;  %1493 = vmatmul.bf16.gmra.mxu2 %v2371_v58  ;;  %v2323_v55 = vor.u32 %v2932_v46, %v2320_v49  ;;  %v2215_v58 = vor.u32 %v2911_v53, %v2214_v52  ;;  %v3069_v46 = vld [vmem:[%s3878_s1 + $0x368] sm:$0xff]  ;;  %v3074_v49 = vld [vmem:[%s3878_s1 + $0x390] sm:$0xff]  ;;  %v2948_v52 = vld [vmem:[#allocation2 + $0x184] sm:$0xf] }
  0x58   :  { %1541 = vmatmul.bf16.gmra.mxu0 %v2259_v59  ;;  %1706 = vmatpush.bf16.msra.mxu2 %v3043_v19  ;;  %v3053_v59 = vld [vmem:[%s3878_s1 + $0x2e8] sm:$0xff]  ;;  %v2388_v53 = vld [vmem:[#allocation2 + $0x1bc] sm:$0xf0] }
  0x59   :  { %1677 = vmatpush.bf16.msra.mxu1 %v3035_v37  ;;  %v3049_v19 = vld [vmem:[%s3878_s1 + $0x2c8] sm:$0xff]  ;;  %v2335_v37 = vor.u32 %v2941_v28, %v2334_v27  ;;  %v2342_v27 = vld [vmem:[#allocation2 + $0x118] sm:$0xf]  ;;  %v2942_v28 = vld [vmem:[#allocation2 + $0x150] sm:$0xf0] }
  0x5a   :  { %1620 = vmatpush.bf16.msra.mxu3 %v3018_v1  ;;  %v2918_v1 = vld [vmem:[#allocation2 + $0x94] sm:$0xf] }
  0x5b   :  { %1649 = vmatpush.bf16.msra.mxu0 %v3026_v60  ;;  %v3506_v60 = vld [vmem:[%s3878_s1 + $0x3b8] sm:$0xff]  ;;  %v2271_v8 = vor.u32 %v2918_v1, %v2268_v2 }
  0x5c   :  { %1707 = vmatpush.bf16.msra.mxu2 %v3042_v22  ;;  %v2328_v22 = vld [vmem:[#allocation2 + $0x144] sm:$0xf0] }
  0x5d   :  { %1678 = vmatpush.bf16.msra.mxu1 %v3034_v41 }
  0x5e   :  { %1621 = vmatpush.bf16.msra.mxu3 %v3017_v4  ;;  %v2386_v4 = vld [vmem:[#allocation2 + $0x180] sm:$0xf] }
  0x5f   :  { %1650 = vmatpush.bf16.msra.mxu0 %v3025_v0  ;;  %v2947_v0 = vld [vmem:[#allocation2 + $0x17c] sm:$0xf] }
  0x60   :  { %1708 = vmatpush.bf16.msra.mxu2 %v3041_v38  ;;  %v2383_v9 = vor.u32 %v2947_v0, %v2380_v3  ;;  %v3048_v38 = vld [vmem:[%s3878_s1 + $0x2c0] sm:$0xff] }
  0x61   :  { %1679 = vmatpush.bf16.msra.mxu1 %v3033_v45  ;;  %v3068_v3 = vld [vmem:[%s3878_s1 + $0x360] sm:$0xff] }
  0x62   :  { %1622 = vmatpush.bf16.msra.mxu3 %v3016_v14  ;;  %v3530_v14 = vld [vmem:[%s3878_s1 + $0x3a8] sm:$0xff] }
  0x63   :  { %1651 = vmatpush.bf16.msra.mxu0 %v3024_v5  ;;  %v2955_v5 = vld [vmem:[#allocation2 + $0x1b8] sm:$0xf0] }
  0x64   :  { %1709 = vmatpush.bf16.msra.mxu2 %v3040_v42  ;;  %v2387_v10 = vor.u32 %v2955_v5, %v2386_v4 }
  0x65   :  { %1517 = vmatmul.bf16.gmra.mxu3 %v2315_v15  ;;  %1680 = vmatpush.bf16.msra.mxu1 %v3032_v57  ;;  %v3057_v15 = vld [vmem:[%s3878_s1 + $0x308] sm:$0xff]  ;;  %v2927_v57 = vld [vmem:[#allocation2 + $0xd8] sm:$0xf0] }
  0x66   :  { %1565 = vmatmul.bf16.vlgmr.msrb.gmra.mxu1 %v2203_v16  ;;  %1731 = vmatpush.bf16.msrb.mxu3 %v3055_v39  ;;  %v3071_v16 = vld [vmem:[%s3878_s1 + $0x378] sm:$0xff] }
  0x67   :  { %1594 = vmatmul.bf16.vlgmr.msrb.gmra.mxu2 %v2207_v17  ;;  %1760 = vmatpush.bf16.msrb.mxu0 %v3063_v21  ;;  %v3050_v17 = vld [vmem:[%s3878_s1 + $0x2d0] sm:$0xff]  ;;  %v2933_v21 = vld [vmem:[#allocation2 + $0x10c] sm:$0xf] }
  0x68   :  { %1546 = vmatmul.bf16.gmra.mxu0 %v2319_v18  ;;  %1818 = vmatpush.bf16.msrb.mxu2 %v3506_v60  ;;  %v3545_v18 = vld [vmem:[%s3878_s1 + $0x3a0] sm:$0xff]  ;;  %v2331_v29 = vor.u32 %v2933_v21, %v2328_v22 }
  0x69   :  { %3088 = vmatpush.bf16.msrb.mxu1 %v3071_v16 }
  0x6a   :  { %1732 = vmatpush.bf16.msrb.mxu3 %v3054_v43 }
  0x6b   :  { %1761 = vmatpush.bf16.msrb.mxu0 %v3062_v24  ;;  %v2216_v24 = vld [vmem:[#allocation2 + $0x5c] sm:$0xf0] }
  0x6c   :  { %1819 = vmatpush.bf16.msrb.mxu2 %v3518_v63  ;;  %v2219_v31 = vor.u32 %v2904_v23, %v2216_v24  ;;  %v2934_v23 = vld [vmem:[#allocation2 + $0x114] sm:$0xf]  ;;  %v2905_v24 = vld [vmem:[#allocation2 + $0x2c] sm:$0xf] }
  0x6e   :  { %1733 = vmatpush.bf16.msrb.mxu3 %v3053_v59  ;;  %v2394_v59 = vld [vmem:[#allocation2 + $0x188] sm:$0xf] }
  0x6f   :  { %1762 = vmatpush.bf16.msrb.mxu0 %v3061_v40  ;;  %v3075_v40 = vld [vmem:[%s3878_s1 + $0x398] sm:$0xff] }
  0x70   :  { %1820 = vmatpush.bf16.msrb.mxu2 %v3530_v14 }
  0x72   :  { %1734 = vmatpush.bf16.msrb.mxu3 %v3052_v62  ;;  %v2391_v62 = vor.u32 %v2948_v52, %v2388_v53  ;;  %v2087_v52 = vld [vmem:[%s3881_s4] sm:$0xff]  ;;  %v1938_v53 = vld [vmem:[%s3880_s3 + $0x18] sm:$0xff] }
  0x73   :  { %1763 = vmatpush.bf16.msrb.mxu0 %v3060_v44 }
  0x74   :  { %1821 = vmatpush.bf16.msrb.mxu2 %v3545_v18 }
  0x75   :  { %1522 = vmatmul.bf16.gmra.mxu3 %v2375_v33  ;;  %v3056_v33 = vld [vmem:[%s3878_s1 + $0x300] sm:$0xff] }
  0x76   :  { %1570 = vmatmul.bf16.gmra.mxu1 %v2263_v34  ;;  %1735 = vmatpush.bf16.msrb.mxu3 %v3051_v13  ;;  %v3070_v34 = vld [vmem:[%s3878_s1 + $0x370] sm:$0xff]  ;;  %v371_v21 = vpop.permute.xlu2 %370 }
  0x77   :  { %1599 = vmatmul.bf16.gmra.mxu2 %v2267_v35  ;;  %1764 = vmatpush.bf16.msrb.mxu0 %v3059_v61 }
  0x78   :  { %1551 = vmatmul.bf16.gmra.mxu0 %v2379_v36  ;;  %3089 = vmatpush.bf16.msrb.mxu1 %v3070_v34 }
  0x79   :  { %1822 = vmatpush.bf16.msrb.mxu2 %v3075_v40 }
  0x7a   :  { %1736 = vmatpush.bf16.msrb.mxu3 %v3050_v17 }
  0x7b   :  { %1765 = vmatpush.bf16.msrb.mxu0 %v3058_v11 }
  0x7c   :  { %3090 = vmatpush.bf16.msrb.mxu1 %v3069_v46 }
  0x7d   :  { %1823 = vmatpush.bf16.msrb.mxu2 %v3074_v49 }
  0x7e   :  { %v351_v20 = vpop.permute.xlu0 %350  ;;  %1737 = vmatpush.bf16.msrb.mxu3 %v3049_v19  ;;  %v3072_v19 = vld [vmem:[%s3878_s1 + $0x380] sm:$0xff] }
  0x7f   :  { %1766 = vmatpush.bf16.msrb.mxu0 %v3057_v15  ;;  %v1937_v15 = vld [vmem:[%s3880_s3 + $0x10] sm:$0xff] }
  0x80   :  { %3091 = vmatpush.bf16.msrb.mxu1 %v3068_v3  ;;  %1955 = vperm.xlu1 %3110, %v1937_v15  }
  0x81   :  { %v361_v51 = vpop.permute.xlu1 %360 }
  0x82   :  { %1738 = vmatpush.bf16.msrb.mxu3 %v3048_v38  ;;  %v1940_v38 = vld [vmem:[%s3880_s3 + $0x28] sm:$0xff] }
  0x83   :  { %1767 = vmatpush.bf16.msrb.mxu0 %v3056_v33  ;;  %v2227_v33 = vor.u32 %v2905_v24, %v2224_v25 }
  0x85   :  { %1623 = vmatmul.bf16.vlgmr.msra.gmra.mxu3 %v2211_v54  ;;  %v2919_v54 = vld [vmem:[#allocation2 + $0x9c] sm:$0xf] }
  0x86   :  { %1575 = vmatmul.bf16.gmra.mxu1 %v2323_v55  ;;  %v356_v42 = vpop.permute.xlu0 %355  ;;  %3096 = vmatpush.bf16.msra.mxu3 %v3506_v60  ;;  %v2276_v55 = vld [vmem:[#allocation2 + $0xd4] sm:$0xf0]  ;;  %v2956_v60 = vld [vmem:[#allocation2 + $0x1c0] sm:$0xf0] }
  0x87   :  { %1604 = vmatmul.bf16.gmra.mxu2 %v2327_v56  ;;  %v2282_v56 = vld [vmem:[#allocation2 + $0xa0] sm:$0xf]  ;;  %v2279_v1 = vor.u32 %v2919_v54, %v2276_v55  ;;  %v2395_v6 = vor.u32 %v2956_v60, %v2394_v59  ;;  %v2920_v59 = vld [vmem:[#allocation2 + $0xa4] sm:$0xf] }
  0x88   :  { %1652 = vmatmul.bf16.vlgmr.msra.gmra.mxu0 %v2215_v58  ;;  %v2283_v2 = vor.u32 %v2927_v57, %v2282_v56  ;;  %1970 = vperm.xlu1 %3110, %v1940_v38  }
  0x89   :  { %1789 = vmatpush.bf16.msra.mxu0 %v3071_v16  ;;  %v366_v11 = vpop.permute.xlu1 %365  ;;  %v3066_v16 = vld [vmem:[%s3878_s1 + $0x350] sm:$0xff] }
  0x8a   :  { %3097 = vmatpush.bf16.msra.mxu3 %v3518_v63 }
  0x8d   :  { %1790 = vmatpush.bf16.msra.mxu0 %v3070_v34 }
  0x8e   :  { %3098 = vmatpush.bf16.msra.mxu3 %v3530_v14 }
  0x8f   :  { %v381_v60 = vpop.permute.xlu0 %380 }
  0x90   :  { %2097 = vperm.xlu1 %3110, %v2087_v52  }
  0x91   :  { %1791 = vmatpush.bf16.msra.mxu0 %v3069_v46  ;;  %v376_v46 = vpop.permute.xlu2 %375 }
  0x92   :  { %3099 = vmatpush.bf16.msra.mxu3 %v3545_v18 }
  0x95   :  { %1628 = vmatmul.bf16.gmra.mxu3 %v2271_v8  ;;  %1792 = vmatpush.bf16.msra.mxu0 %v3068_v3  ;;  %v3067_v8 = vld [vmem:[%s3878_s1 + $0x358] sm:$0xff]  ;;  %v2928_v3 = vld [vmem:[#allocation2 + $0xe0] sm:$0xf0] }
  0x96   :  { %1580 = vmatmul.bf16.gmra.mxu1 %v2383_v9  ;;  %v3073_v9 = vld [vmem:[%s3878_s1 + $0x388] sm:$0xff]  ;;  %3100 = vmatpush.bf16.msra.mxu3 %v3075_v40  ;;  %v3064_v40 = vld [vmem:[%s3878_s1 + $0x340] sm:$0xff] }
  0x97   :  { %1609 = vmatmul.bf16.gmra.mxu2 %v2387_v10  ;;  %3092 = vmatpush.bf16.msrb.mxu1 %v3067_v8 }
  0x98   :  { %1657 = vmatmul.bf16.gmra.mxu0 %v2275_v12  ;;  %1824 = vmatpush.bf16.msrb.mxu2 %v3073_v9 }
  0x99   :  { %1793 = vmatpush.bf16.msra.mxu0 %v3067_v8 }
  0x9a   :  { %3101 = vmatpush.bf16.msra.mxu3 %v3074_v49 }
  0x9b   :  { %3093 = vmatpush.bf16.msrb.mxu1 %v3066_v16 }
  0x9c   :  { %1825 = vmatpush.bf16.msrb.mxu2 %v3072_v19 }
  0x9d   :  { %1794 = vmatpush.bf16.msra.mxu0 %v3066_v16 }
  0x9e   :  { %3102 = vmatpush.bf16.msra.mxu3 %v3073_v9 }
  0xa2   :  { %v1421_v30 = vpop.f32.mrf.mxu0  ;;  %3103 = vmatpush.bf16.msra.mxu3 %v3072_v19 }
  0xa3   :  { %v1422_v35 = vadd.f32 %v1421_v30, %v351_v20  ;;  %v1450_v36 = vpop.f32.mrf.mxu1  ;;  %v3065_v20 = vld [vmem:[%s3878_s1 + $0x348] sm:$0xff]  ;;  %v2230_v30 = vld [vmem:[#allocation2 + $0x30] sm:$0xf] }
  0xa4   :  { %3094 = vmatpush.bf16.msrb.mxu1 %v3065_v20  ;;  %1795 = vmatpush.bf16.msra.mxu0 %v3065_v20 }
  0xa5   :  { %v1451_v39 = vadd.f32 %v1450_v36, %v1422_v35  ;;  %1633 = vmatmul.bf16.gmra.mxu3 %v2331_v29  ;;  %v2339_v36 = vor.u32 %v2934_v23, %v2336_v26  ;;  %v2088_v23 = vld [vmem:[%s3881_s4 + $0x8] sm:$0xff] }
  0xa6   :  { %1681 = vmatmul.bf16.vlgmr.msra.gmra.mxu1 %v2219_v31  ;;  %v2913_v31 = vld [vmem:[#allocation2 + $0x68] sm:$0xf0] }
  0xa7   :  { %1710 = vmatmul.bf16.vlgmr.msra.gmra.mxu2 %v2223_v32 }
  0xa8   :  { %1662 = vmatmul.bf16.gmra.mxu0 %v2335_v37  ;;  %v3563_v41 = vpop.f32.mrf.mxu3  ;;  %v2343_v37 = vor.u32 %v2942_v28, %v2342_v27  ;;  %3095 = vmatpush.bf16.msrb.mxu1 %v3064_v40  ;;  %v2935_v28 = vld [vmem:[#allocation2 + $0x11c] sm:$0xf] }
  0xa9   :  { %v1432_v34 = vadd.f32 %v3563_v41, %v371_v21  ;;  %1796 = vmatpush.bf16.msra.mxu0 %v3064_v40 }
  0xaa   :  { %v1479_v43 = vpop.f32.mrf.mxu2  ;;  %v1423_v45 = vpop.f32.mrf.mxu0 }
  0xab   :  { %v3566_v44 = vadd.f32 %v1479_v43, %v1451_v39  ;;  %v1424_v47 = vadd.f32 %v1423_v45, %v356_v42  ;;  %v1452_v48 = vpop.f32.mrf.mxu1  ;;  %v1936_v39 = vld [vmem:[%s3880_s3 + $0x8] sm:$0xff]  ;;  %v2231_v43 = vor.u32 %v2913_v31, %v2230_v30  ;;  %v2344_v30 = vld [vmem:[#allocation2 + $0x154] sm:$0xf0] }
  0xac   :  { %1950 = vperm.xlu0 %3109, %v1936_v39   ;;  %v2921_v31 = vld [vmem:[#allocation2 + $0xac] sm:$0xf]  ;;  %v2347_v39 = vor.u32 %v2935_v28, %v2344_v30  ;;  %v2358_v28 = vld [vmem:[#allocation2 + $0x128] sm:$0xf]  ;;  %v2944_v30 = vld [vmem:[#allocation2 + $0x160] sm:$0xf0] }
  0xad   :  { %v1453_v50 = vadd.f32 %v1452_v48, %v1424_v47 }
  0xb0   :  { %v3575_v58 = vpop.f32.mrf.mxu3 }
  0xb2   :  { %v1481_v61 = vpop.f32.mrf.mxu2  ;;  %v1426_v63 = vpop.f32.mrf.mxu0 }
  0xb3   :  { %v3578_v0 = vadd.f32 %v1481_v61, %v1453_v50  ;;  %v1427_v4 = vadd.f32 %v1426_v63, %v361_v51  ;;  %v1455_v5 = vpop.f32.mrf.mxu1  ;;  %v1434_v50 = vadd.f32 %v3575_v58, %v376_v46  ;;  %v2284_v58 = vld [vmem:[#allocation2 + $0xdc] sm:$0xf0]  ;;  %v2396_v61 = vld [vmem:[#allocation2 + $0x1c4] sm:$0xf0]  ;;  %v2957_v63 = vld [vmem:[#allocation2 + $0x1c8] sm:$0xf0] }
  0xb4   :  { %1960 = vperm.xlu0 %3109, %v1938_v53   ;;  %v1935_v53 = vld [vmem:[%s3880_s3] sm:$0xff] }
  0xb5   :  { %v1456_v7 = vadd.f32 %v1455_v5, %v1427_v4  ;;  %1638 = vmatmul.bf16.gmra.mxu3 %v2391_v62  ;;  %v2402_v62 = vld [vmem:[#allocation2 + $0x190] sm:$0xf]  ;;  %1945 = vperm.xlu2 %3111, %v1935_v53  }
  0xb6   :  { %1686 = vmatmul.bf16.gmra.mxu1 %v2279_v1 }
  0xb7   :  { %1715 = vmatmul.bf16.gmra.mxu2 %v2283_v2  ;;  %v2290_v2 = vld [vmem:[#allocation2 + $0xa8] sm:$0xf] }
  0xb8   :  { %1667 = vmatmul.bf16.gmra.mxu0 %v2395_v6  ;;  %v3590_v10 = vpop.f32.mrf.mxu3  ;;  %v2287_v6 = vor.u32 %v2920_v59, %v2284_v58  ;;  %v2291_v15 = vor.u32 %v2928_v3, %v2290_v2  ;;  %v2404_v59 = vld [vmem:[#allocation2 + $0x1cc] sm:$0xf0]  ;;  %v2936_v58 = vld [vmem:[#allocation2 + $0x124] sm:$0xf] }
  0xba   :  { %v1484_v12 = vpop.f32.mrf.mxu2  ;;  %v1428_v14 = vpop.f32.mrf.mxu0 }
  0xbb   :  { %v3592_v13 = vadd.f32 %v1484_v12, %v1456_v7  ;;  %v1429_v17 = vadd.f32 %v1428_v14, %v366_v11  ;;  %v1457_v18 = vpop.f32.mrf.mxu1  ;;  %v1437_v7 = vadd.f32 %v3590_v10, %v381_v60  ;;  %v2403_v11 = vor.u32 %v2957_v63, %v2402_v62  ;;  %v1941_v12 = vld [vmem:[%s3880_s3 + $0x30] sm:$0xff]  ;;  %v2352_v60 = vld [vmem:[#allocation2 + $0x15c] sm:$0xf0]  ;;  %v2929_v62 = vld [vmem:[#allocation2 + $0xe8] sm:$0xf0] }
  0xbc   :  { %1975 = vperm.xlu0 %3109, %v1941_v12  }
  0xbd   :  { %v1458_v22 = vadd.f32 %v1457_v18, %v1429_v17 }
  0xc0   :  { %v3606_v29 = vpop.f32.mrf.mxu3 }
  0xc2   :  { %v1486_v32 = vpop.f32.mrf.mxu2 }
  0xc3   :  { %v3609_v35 = vadd.f32 %v1486_v32, %v1458_v22  ;;  %v1460_v42 = vpop.f32.mrf.mxu1  ;;  %v2292_v32 = vld [vmem:[#allocation2 + $0xe4] sm:$0xf0] }
  0xc4   :  { %v1461_v41 = vadd.f32 %v1460_v42, %v1432_v34  ;;  %2102 = vperm.xlu0 %3109, %v2088_v23   ;;  %v2914_v34 = vld [vmem:[#allocation2 + $0x70] sm:$0xf0]  ;;  %v2295_v42 = vor.u32 %v2921_v31, %v2292_v32 }
  0xc5   :  { %v1537_v45 = vpop.f32.mrf.mxu0  ;;  %1739 = vmatmul.bf16.vlgmr.msrb.gmra.mxu3 %v2227_v33  ;;  %v2238_v33 = vld [vmem:[#allocation2 + $0x38] sm:$0xf]  ;;  %v2906_v32 = vld [vmem:[#allocation2 + $0x34] sm:$0xf] }
  0xc6   :  { %1691 = vmatmul.bf16.gmra.mxu1 %v2339_v36  ;;  %v2350_v36 = vld [vmem:[#allocation2 + $0x120] sm:$0xf] }
  0xc7   :  { %1720 = vmatmul.bf16.gmra.mxu2 %v2343_v37 }
  0xc8   :  { %1768 = vmatmul.bf16.vlgmr.msrb.gmra.mxu0 %v2231_v43  ;;  %v1508_v47 = vpop.f32.mrf.mxu3  ;;  %v2239_v43 = vor.u32 %v2914_v34, %v2238_v33 }
  0xc9   :  { %v1509_v49 = vadd.f32 %v1508_v47, %v3566_v44  ;;  %v2949_v44 = vld [vmem:[#allocation2 + $0x18c] sm:$0xf] }
  0xca   :  { %v1489_v48 = vpop.f32.mrf.mxu2  ;;  %v2399_v9 = vor.u32 %v2949_v44, %v2396_v61  ;;  %v2298_v61 = vld [vmem:[#allocation2 + $0xb0] sm:$0xf] }
  0xcb   :  { %v3622_v51 = vadd.f32 %v1489_v48, %v1461_v41  ;;  %v1462_v54 = vpop.f32.mrf.mxu1  ;;  %v3630_v55 = vadd.f32 %v1537_v45, %v1509_v49 }
  0xcc   :  { %v1463_v56 = vadd.f32 %v1462_v54, %v1434_v50 }
  0xcd   :  { %v1539_v57 = vpop.f32.mrf.mxu0 }
  0xd0   :  { %v1510_v1 = vpop.f32.mrf.mxu3 }
  0xd1   :  { %v1511_v5 = vadd.f32 %v1510_v1, %v3578_v0  ;;  %v386_v0 = vpop.permute.xlu1 %385  ;;  %v2958_v1 = vld [vmem:[#allocation2 + $0x1d0] sm:$0xf0] }
  0xd2   :  { %v1491_v4 = vpop.f32.mrf.mxu2  ;;  %v1439_v21 = vadd.f32 %v3606_v29, %v386_v0  ;;  %v2943_v29 = vld [vmem:[#allocation2 + $0x158] sm:$0xf0] }
  0xd3   :  { %v3634_v8 = vadd.f32 %v1491_v4, %v1463_v56  ;;  %v1465_v14 = vpop.f32.mrf.mxu1  ;;  %v1540_v16 = vadd.f32 %v1539_v57, %v1511_v5  ;;  %v2351_v45 = vor.u32 %v2943_v29, %v2350_v36 }
  0xd4   :  { %v1466_v17 = vadd.f32 %v1465_v14, %v1437_v7  ;;  %v2299_v7 = vor.u32 %v2929_v62, %v2298_v61 }
  0xd5   :  { %v1542_v18 = vpop.f32.mrf.mxu0  ;;  %1744 = vmatmul.bf16.gmra.mxu3 %v2287_v6  ;;  %v2355_v6 = vor.u32 %v2936_v58, %v2352_v60 }
  0xd6   :  { %1696 = vmatmul.bf16.gmra.mxu1 %v2399_v9  ;;  %v1939_v9 = vld [vmem:[%s3880_s3 + $0x20] sm:$0xff] }
  0xd7   :  { %1725 = vmatmul.bf16.gmra.mxu2 %v2403_v11  ;;  %1965 = vperm.xlu2 %3111, %v1939_v9  }
  0xd8   :  { %1773 = vmatmul.bf16.gmra.mxu0 %v2291_v15  ;;  %v1513_v10 = vpop.f32.mrf.mxu3 }
  0xd9   :  { %v1514_v20 = vadd.f32 %v1513_v10, %v3592_v13  ;;  %v1942_v10 = vld [vmem:[%s3880_s3 + $0x38] sm:$0xff] }
  0xda   :  { %v1494_v19 = vpop.f32.mrf.mxu2 }
  0xdb   :  { %v3641_v22 = vadd.f32 %v1494_v19, %v1466_v17  ;;  %v1467_v24 = vpop.f32.mrf.mxu1  ;;  %v1543_v25 = vadd.f32 %v1542_v18, %v1514_v20 }
  0xdc   :  { %v1468_v26 = vadd.f32 %v1467_v24, %v1439_v21  ;;  %v2951_v24 = vld [vmem:[#allocation2 + $0x19c] sm:$0xf] }
  0xdd   :  { %v1544_v27 = vpop.f32.mrf.mxu0 }
  0xdf   :  { %1980 = vperm.xlu2 %3111, %v1942_v10  }
  0xe0   :  { %v1515_v13 = vpop.f32.mrf.mxu3 }
  0xe1   :  { %v1516_v38 = vadd.f32 %v1515_v13, %v3609_v35 }
  0xe2   :  { %v1496_v37 = vpop.f32.mrf.mxu2 }
  0xe3   :  { %v3647_v40 = vadd.f32 %v1496_v37, %v1468_v26  ;;  %v1566_v41 = vpop.f32.mrf.mxu1  ;;  %v1545_v46 = vadd.f32 %v1544_v27, %v1516_v38  ;;  %v2959_v26 = vld [vmem:[#allocation2 + $0x1d8] sm:$0xf0]  ;;  %v2412_v27 = vld [vmem:[#allocation2 + $0x1d4] sm:$0xf0]  ;;  %v2359_v37 = vor.u32 %v2944_v30, %v2358_v28 }
  0xe4   :  { %v1567_v48 = vadd.f32 %v1566_v41, %v3630_v55  ;;  %v2950_v55 = vld [vmem:[#allocation2 + $0x194] sm:$0xf]  ;;  %v2415_v29 = vor.u32 %v2951_v24, %v2412_v27 }
  0xe5   :  { %v1547_v47 = vpop.f32.mrf.mxu0  ;;  %1749 = vmatmul.bf16.gmra.mxu3 %v2347_v39  ;;  %v2407_v4 = vor.u32 %v2950_v55, %v2404_v59 }
  0xe6   :  { %1802 = vmatmul.bf16.vlgmr.msrb.gmra.mxu1 %v2295_v42 }
  0xe7   :  { %1826 = vmatmul.bf16.vlgmr.msrb.gmra.mxu2 %v2239_v43 }
  0xe8   :  { %1778 = vmatmul.bf16.gmra.mxu0 %v2351_v45  ;;  %v1518_v49 = vpop.f32.mrf.mxu3 }
  0xe9   :  { %v1519_v50 = vadd.f32 %v1518_v49, %v3622_v51  ;;  %v2410_v51 = vld [vmem:[#allocation2 + $0x198] sm:$0xf] }
  0xea   :  { %v1595_v52 = vpop.f32.mrf.mxu2  ;;  %v2411_v12 = vor.u32 %v2958_v1, %v2410_v51 }
  0xeb   :  { %v3651_v35 = vadd.f32 %v1595_v52, %v1567_v48  ;;  %v1568_v54 = vpop.f32.mrf.mxu1  ;;  %v1548_v56 = vadd.f32 %v1547_v47, %v1519_v50 }
  0xec   :  { %v1569_v44 = vadd.f32 %v1568_v54, %v1540_v16 }
  0xed   :  { %v1549_v57 = vpop.f32.mrf.mxu0 }
  0xf0   :  { %v1520_v63 = vpop.f32.mrf.mxu3 }
  0xf1   :  { %v1521_v2 = vadd.f32 %v1520_v63, %v3634_v8 }
  0xf2   :  { %v1597_v3 = vpop.f32.mrf.mxu2 }
  0xf3   :  { %v1598_v5 = vadd.f32 %v1597_v3, %v1569_v44  ;;  %v1571_v11 = vpop.f32.mrf.mxu1  ;;  %v1550_v14 = vadd.f32 %v1549_v57, %v1521_v2 }
  0xf4   :  { %v1572_v16 = vadd.f32 %v1571_v11, %v1543_v25  ;;  %v2418_v25 = vld [vmem:[#allocation2 + $0x1a0] sm:$0xf] }
  0xf5   :  { %v1552_v15 = vpop.f32.mrf.mxu0  ;;  %1754 = vmatmul.bf16.gmra.mxu3 %v2407_v4  ;;  %v2419_v13 = vor.u32 %v2959_v26, %v2418_v25 }
  0xf6   :  { %1807 = vmatmul.bf16.gmra.mxu1 %v2355_v6 }
  0xf7   :  { %1831 = vmatmul.bf16.gmra.mxu2 %v2299_v7 }
  0xf8   :  { %1783 = vmatmul.bf16.gmra.mxu0 %v2411_v12  ;;  %v1523_v8 = vpop.f32.mrf.mxu3 }
  0xf9   :  { %v1524_v17 = vadd.f32 %v1523_v8, %v3641_v22  ;;  %v2232_v22 = vld [vmem:[#allocation2 + $0x6c] sm:$0xf0] }
  0xfa   :  { %v1600_v18 = vpop.f32.mrf.mxu2  ;;  %v2235_v39 = vor.u32 %v2906_v32, %v2232_v22 }
  0xfb   :  { %v1601_v0 = vadd.f32 %v1600_v18, %v1572_v16  ;;  %v1573_v19 = vpop.f32.mrf.mxu1  ;;  %v1553_v20 = vadd.f32 %v1552_v15, %v1524_v17 }
  0xfc   :  { %v1574_v23 = vadd.f32 %v1573_v19, %v1545_v46 }
  0xfd   :  { %v1554_v21 = vpop.f32.mrf.mxu0 }
 0x100   :  { %v1525_v31 = vpop.f32.mrf.mxu3 }
 0x101   :  { %v1526_v33 = vadd.f32 %v1525_v31, %v3647_v40 }
 0x102   :  { %v1602_v34 = vpop.f32.mrf.mxu2 }
 0x103   :  { %v1603_v36 = vadd.f32 %v1602_v34, %v1574_v23  ;;  %v1576_v38 = vpop.f32.mrf.mxu1  ;;  %v1555_v42 = vadd.f32 %v1554_v21, %v1526_v33 }
 0x104   :  { %v1577_v43 = vadd.f32 %v1576_v38, %v1548_v56 }
 0x105   :  { %v1653_v41 = vpop.f32.mrf.mxu0  ;;  %1841 = vmatmul.bf16.vlgmr.msra.gmra.mxu3 %v2419_v13 }
 0x106   :  { %1812 = vmatmul.bf16.gmra.mxu1 %v2415_v29 }
 0x107   :  { %1836 = vmatmul.bf16.gmra.mxu2 %v2359_v37 }
 0x108   :  { %1797 = vmatmul.bf16.vlgmr.msra.gmra.mxu0 %v2235_v39  ;;  %v1624_v45 = vpop.f32.mrf.mxu3 }
 0x109   :  { %v1625_v47 = vadd.f32 %v1624_v45, %v3651_v35 }
 0x10a   :  { %v1605_v46 = vpop.f32.mrf.mxu2 }
 0x10b   :  { %v1606_v48 = vadd.f32 %v1605_v46, %v1577_v43  ;;  %v1578_v40 = vpop.f32.mrf.mxu1  ;;  %v1654_v49 = vadd.f32 %v1653_v41, %v1625_v47 }
 0x10c   :  { %v1579_v50 = vadd.f32 %v1578_v40, %v1550_v14 }
 0x10d   :  { %v1655_v52 = vpop.f32.mrf.mxu0 }
 0x110   :  { %v1626_v53 = vpop.f32.mrf.mxu3 }
 0x111   :  { %v1627_v57 = vadd.f32 %v1626_v53, %v1598_v5 }
 0x112   :  { %v1607_v54 = vpop.f32.mrf.mxu2 }
 0x113   :  { %v1608_v44 = vadd.f32 %v1607_v54, %v1579_v50  ;;  %v1581_v55 = vpop.f32.mrf.mxu1  ;;  %v1656_v56 = vadd.f32 %v1655_v52, %v1627_v57 }
 0x114   :  { %v1582_v59 = vadd.f32 %v1581_v55, %v1553_v20 }
 0x115   :  { %v1658_v58 = vpop.f32.mrf.mxu0 }
 0x118   :  { %v1629_v60 = vpop.f32.mrf.mxu3 }
 0x119   :  { %v1630_v62 = vadd.f32 %v1629_v60, %v1601_v0 }
 0x11a   :  { %v1610_v61 = vpop.f32.mrf.mxu2 }
 0x11b   :  { %v1611_v63 = vadd.f32 %v1610_v61, %v1582_v59  ;;  %v1583_v51 = vpop.f32.mrf.mxu1  ;;  %v1659_v1 = vadd.f32 %v1658_v58, %v1630_v62 }
 0x11c   :  { %v1584_v35 = vadd.f32 %v1583_v51, %v1555_v42 }
 0x11d   :  { %v1660_v2 = vpop.f32.mrf.mxu0 }
 0x120   :  { %v1631_v3 = vpop.f32.mrf.mxu3 }
 0x121   :  { %v1632_v6 = vadd.f32 %v1631_v3, %v1603_v36 }
 0x122   :  { %v1612_v4 = vpop.f32.mrf.mxu2 }
 0x123   :  { %v1613_v7 = vadd.f32 %v1612_v4, %v1584_v35  ;;  %v1682_v9 = vpop.f32.mrf.mxu1  ;;  %v1661_v11 = vadd.f32 %v1660_v2, %v1632_v6 }
 0x124   :  { %v1683_v12 = vadd.f32 %v1682_v9, %v1654_v49 }
 0x125   :  { %v1663_v5 = vpop.f32.mrf.mxu0 }
 0x128   :  { %v1634_v14 = vpop.f32.mrf.mxu3 }
 0x129   :  { %v1635_v15 = vadd.f32 %v1634_v14, %v1606_v48 }
 0x12a   :  { %v1711_v16 = vpop.f32.mrf.mxu2 }
 0x12b   :  { %v1712_v8 = vadd.f32 %v1711_v16, %v1683_v12  ;;  %v1684_v17 = vpop.f32.mrf.mxu1  ;;  %v1664_v18 = vadd.f32 %v1663_v5, %v1635_v15 }
 0x12c   :  { %v1685_v10 = vadd.f32 %v1684_v17, %v1656_v56 }
 0x12d   :  { %v1665_v0 = vpop.f32.mrf.mxu0 }
 0x130   :  { %v1636_v19 = vpop.f32.mrf.mxu3 }
 0x131   :  { %v1637_v20 = vadd.f32 %v1636_v19, %v1608_v44 }
 0x132   :  { %v1713_v21 = vpop.f32.mrf.mxu2 }
 0x133   :  { %v3666_v23 = vadd.f32 %v1713_v21, %v1685_v10  ;;  %v1687_v24 = vpop.f32.mrf.mxu1  ;;  %v3668_v25 = vadd.f32 %v1665_v0, %v1637_v20 }
 0x135   :  { %v1668_v26 = vpop.f32.mrf.mxu0 }
 0x138   :  { %v1639_v27 = vpop.f32.mrf.mxu3 }
 0x139   :  { %v1640_v28 = vadd.f32 %v1639_v27, %v1611_v63  ;;  %v1688_v63 = vadd.f32 %v1687_v24, %v1659_v1 }
 0x13a   :  { %v1716_v30 = vpop.f32.mrf.mxu2 }
 0x13b   :  { %v1689_v31 = vpop.f32.mrf.mxu1  ;;  %v1669_v32 = vadd.f32 %v1668_v26, %v1640_v28  ;;  %v1717_v51 = vadd.f32 %v1716_v30, %v1688_v63 }
 0x13d   :  { %v1670_v22 = vpop.f32.mrf.mxu0 }
 0x140   :  { %v1641_v33 = vpop.f32.mrf.mxu3 }
 0x141   :  { %v1642_v34 = vadd.f32 %v1641_v33, %v1613_v7  ;;  %v1690_v7 = vadd.f32 %v1689_v31, %v1661_v11 }
 0x142   :  { %v1718_v13 = vpop.f32.mrf.mxu2 }
 0x143   :  { %v1692_v36 = vpop.f32.mrf.mxu1  ;;  %v3670_v29 = vadd.f32 %v1670_v22, %v1642_v34  ;;  %v1719_v5 = vadd.f32 %v1718_v13, %v1690_v7 }
 0x144   :  { %v1693_v37 = vadd.f32 %v1692_v36, %v1664_v18 }
 0x145   :  { %v1769_v38 = vpop.f32.mrf.mxu0 }
 0x148   :  { %v1740_v39 = vpop.f32.mrf.mxu3 }
 0x149   :  { %v1741_v43 = vadd.f32 %v1740_v39, %v1712_v8 }
 0x14a   :  { %v1721_v42 = vpop.f32.mrf.mxu2 }
 0x14b   :  { %v1722_v41 = vadd.f32 %v1721_v42, %v1693_v37  ;;  %v1694_v45 = vpop.f32.mrf.mxu1  ;;  %v1770_v46 = vadd.f32 %v1769_v38, %v1741_v43 }
 0x14c   :  { %v1695_v37 = vadd.f32 %v1694_v45, %v3668_v25 }
 0x14d   :  { %v1771_v47 = vpop.f32.mrf.mxu0 }
 0x150   :  { %v1742_v48 = vpop.f32.mrf.mxu3 }
 0x151   :  { %v1743_v33 = vadd.f32 %v1742_v48, %v3666_v23 }
 0x152   :  { %v1723_v40 = vpop.f32.mrf.mxu2 }
 0x153   :  { %v1697_v49 = vpop.f32.mrf.mxu1  ;;  %v1724_v42 = vadd.f32 %v1723_v40, %v1695_v37  ;;  %v1772_v43 = vadd.f32 %v1771_v47, %v1743_v33 }
 0x154   :  { %v1698_v0 = vadd.f32 %v1697_v49, %v1669_v32 }
 0x155   :  { %v1774_v50 = vpop.f32.mrf.mxu0 }
 0x158   :  { %v1745_v52 = vpop.f32.mrf.mxu3 }
 0x159   :  { %v1746_v3 = vadd.f32 %v1745_v52, %v1717_v51 }
 0x15a   :  { %v1726_v53 = vpop.f32.mrf.mxu2 }
 0x15b   :  { %v1699_v54 = vpop.f32.mrf.mxu1  ;;  %v1775_v9 = vadd.f32 %v1774_v50, %v1746_v3  ;;  %v1727_v19 = vadd.f32 %v1726_v53, %v1698_v0  ;;  %v2089_v3 = vld [vmem:[%s3881_s4 + $0x10] sm:$0xff] }
 0x15d   :  { %v1776_v57 = vpop.f32.mrf.mxu0 }
 0x160   :  { %v1747_v44 = vpop.f32.mrf.mxu3 }
 0x161   :  { %v1748_v16 = vadd.f32 %v1747_v44, %v1719_v5 }
 0x162   :  { %v1728_v55 = vpop.f32.mrf.mxu2 }
 0x163   :  { %v1803_v56 = vpop.f32.mrf.mxu1  ;;  %v1777_v10 = vadd.f32 %v1776_v57, %v1748_v16 }
 0x164   :  { %v1804_v12 = vadd.f32 %v1803_v56, %v1775_v9  ;;  %v3718_v9 = vpop.permute.xlu2 %1945 }
 0x165   :  { %v1779_v59 = vpop.f32.mrf.mxu0 }
 0x168   :  { %v1750_v58 = vpop.f32.mrf.mxu3 }
 0x169   :  { %v1751_v34 = vadd.f32 %v1750_v58, %v1722_v41 }
 0x16a   :  { %v1827_v60 = vpop.f32.mrf.mxu2 }
 0x16b   :  { %v1805_v61 = vpop.f32.mrf.mxu1  ;;  %v1780_v50 = vadd.f32 %v1779_v59, %v1751_v34 }
 0x16c   :  { %v1806_v20 = vadd.f32 %v1805_v61, %v1777_v10  ;;  %v3724_v16 = vpop.permute.xlu2 %1965 }
 0x16d   :  { %v1781_v62 = vpop.f32.mrf.mxu0 }
 0x170   :  { %v1752_v35 = vpop.f32.mrf.mxu3 }
 0x171   :  { %v1753_v41 = vadd.f32 %v1752_v35, %v1724_v42  ;;  %v2090_v35 = vld [vmem:[%s3881_s4 + $0x18] sm:$0xff] }
 0x172   :  { %v1829_v2 = vpop.f32.mrf.mxu2 }
 0x173   :  { %v1808_v4 = vpop.f32.mrf.mxu1  ;;  %v1782_v57 = vadd.f32 %v1781_v62, %v1753_v41 }
 0x174   :  { %v1809_v45 = vadd.f32 %v1808_v4, %v1780_v50  ;;  %v3716_v4 = vpop.permute.xlu1 %1955 }
 0x175   :  { %v1784_v6 = vpop.f32.mrf.mxu0 }
 0x178   :  { %v1755_v14 = vpop.f32.mrf.mxu3 }
 0x179   :  { %v1756_v21 = vadd.f32 %v1755_v14, %v1727_v19  ;;  %v3722_v14 = vpop.permute.xlu0 %1950  ;;  %v1981_v19 = vpop.permute.xlu2 %1980 }
 0x17a   :  { %v1832_v15 = vpop.f32.mrf.mxu2 }
 0x17b   :  { %v3672_v8 = vadd.f32 %v1832_v15, %v1804_v12  ;;  %v1810_v17 = vpop.f32.mrf.mxu1  ;;  %v1785_v22 = vadd.f32 %v1784_v6, %v1756_v21  ;;  %v3160_v6 = vmov 32.0  }
 0x17c   :  { %v1811_v44 = vadd.f32 %v1810_v17, %v1782_v57  ;;  %3112 = vrcp.f32 %v3160_v6  ;;  %v3720_v5 = vpop.permute.xlu1 %1970 }
 0x17d   :  { %v1786_v18 = vpop.f32.mrf.mxu0  ;;  %v1854_v1 = vsel %vm1847_vm0, %v3672_v8, 0.0 }
 0x17e   :  { %1855 = vadd.xlane.f32.xlu1 %v1854_v1 }
 0x180   :  { %v1757_v11 = vpop.f32.mrf.mxu3 }
 0x181   :  { %v3728_v1 = vpop.permute.xlu0 %1960 }
 0x182   :  { %v1834_v24 = vpop.f32.mrf.mxu2  ;;  %v3113_v7 = vpop.eup %3112 }
 0x183   :  { %v3676_v26 = vadd.f32 %v1834_v24, %v1806_v20  ;;  %v1813_v28 = vpop.f32.mrf.mxu1  ;;  %v1873_v12 = vmul.f32 32.0, %v3113_v7  ;;  %vm1877_vm1 = vweird.f32 %v3113_v7 }
 0x184   :  { %v1814_v32 = vadd.f32 %v1813_v28, %v1785_v22 }
 0x185   :  { %v1798_v27 = vpop.f32.mrf.mxu0  ;;  %v1857_v30 = vsel %vm1847_vm0, %v3676_v26, 0.0  ;;  %v1874_v15 = vsub.f32 1.0, %v1873_v12 }
 0x186   :  { %v1799_v31 = vadd.f32 %v1798_v27, %v1770_v46  ;;  %1858 = vadd.xlane.f32.xlu2 %v1857_v30  ;;  %v1700_v46 = vadd.f32 %v1699_v54, %v3670_v29 }
 0x187   :  { %v1875_v17 = vmul.f32 %v3113_v7, %v1874_v15 }
 0x188   :  { %v1842_v13 = vpop.f32.mrf.mxu3  ;;  %v3681_v36 = vadd.f32 %v1827_v60, %v1799_v31  ;;  %v1729_v25 = vadd.f32 %v1728_v55, %v1700_v46 }
 0x189   :  { %v3684_v39 = vadd.f32 %v1842_v13, %v1814_v32  ;;  %v1876_v0 = vadd.f32 %v3113_v7, %v1875_v17  ;;  %v3733_v21 = vpop.permute.xlu0 %1975 }
 0x18a   :  { %v1837_v38 = vpop.f32.mrf.mxu2  ;;  %v1848_v23 = vsel %vm1847_vm0, %v3681_v36, 0.0  ;;  %v1758_v40 = vadd.f32 %v1757_v11, %v1729_v25 }
 0x18b   :  { %v1866_v49 = vsel %vm1847_vm0, %v3684_v39, 0.0  ;;  %v3693_v47 = vadd.f32 %v1837_v38, %v1809_v45  ;;  %v1815_v56 = vpop.f32.mrf.mxu1  ;;  %v3730_v10 = vsel %vm1877_vm1, %v3113_v7, %v1876_v0 }
 0x18c   :  { %1867 = vadd.xlane.f32.xlu1 %v1866_v49  ;;  %v1787_v59 = vadd.f32 %v1786_v18, %v1758_v40  ;;  %v3726_v18 = vpop.permute.xlu1 %2097 }
 0x18d   :  { %v1800_v52 = vpop.f32.mrf.mxu0  ;;  %v1860_v58 = vsel %vm1847_vm0, %v3693_v47, 0.0 }
 0x18e   :  { %v1801_v48 = vadd.f32 %v1800_v52, %v1772_v43  ;;  %1849 = vadd.xlane.f32.xlu2 %v1848_v23  ;;  %v1816_v61 = vadd.f32 %v1815_v56, %v1787_v59 }
 0x190   :  { %v3691_v53 = vadd.f32 %v1829_v2, %v1801_v48  ;;  %v1844_v55 = vpop.f32.mrf.mxu3  ;;  %v2091_v2 = vld [vmem:[%s3881_s4 + $0x20] sm:$0xff] }
 0x191   :  { %v3701_v63 = vadd.f32 %v1844_v55, %v1816_v61  ;;  %v3745_v33 = vpop.permute.xlu0 %2102 }
 0x192   :  { %v1851_v29 = vsel %vm1847_vm0, %v3691_v53, 0.0  ;;  %v1839_v54 = vpop.f32.mrf.mxu2 }
 0x193   :  { %1852 = vadd.xlane.f32.xlu0 %v1851_v29  ;;  %v3699_v60 = vadd.f32 %v1839_v54, %v1811_v44  ;;  %v1869_v51 = vsel %vm1847_vm0, %v3701_v63, 0.0 }
 0x195   :  { %v1863_v62 = vsel %vm1847_vm0, %v3699_v60, 0.0 }
 0x196   :  { %1861 = vadd.xlane.f32.xlu2 %v1860_v58 }
 0x19b   :  { %1864 = vadd.xlane.f32.xlu0 %v1863_v62  ;;  %v2094_v62 = vld [vmem:[%s3881_s4 + $0x38] sm:$0xff] }
 0x19e   :  { %1870 = vadd.xlane.f32.xlu2 %v1869_v51  ;;  %v2093_v51 = vld [vmem:[%s3881_s4 + $0x30] sm:$0xff] }
 0x1a5   :  { %2112 = vperm.xlu1 %3110, %v2090_v35  }
 0x1af   :  { %2117 = vperm.xlu0 %3109, %v2091_v2  }
 0x1b6   :  { %2107 = vperm.xlu2 %3111, %v2089_v3  }
 0x1f1   :  { %v1856_v20 = vpop.xlane.xlu1 %1855 }
 0x1f2   :  { %v1881_v11 = vmul.f32 %v3730_v10, %v1856_v20 }
 0x1f4   :  { %v3736_v24 = vsub.f32 %v3672_v8, %v1881_v11 }
 0x1f6   :  { %v1897_v27 = vmul.f32 %v3736_v24, %v3736_v24 }
 0x1f8   :  { %v1909_v28 = vsel %vm1847_vm0, %v1897_v27, 0.0 }
 0x1f9   :  { %v1859_v30 = vpop.xlane.xlu2 %1858  ;;  %1910 = vadd.xlane.f32.xlu2 %v1909_v28 }
 0x1fa   :  { %v1882_v31 = vmul.f32 %v3730_v10, %v1859_v30 }
 0x1fc   :  { %v3743_v22 = vsub.f32 %v3676_v26, %v1882_v31 }
 0x1fe   :  { %v1898_v32 = vmul.f32 %v3743_v22, %v3743_v22 }
 0x1ff   :  { %v1868_v34 = vpop.xlane.xlu1 %1867 }
 0x200   :  { %v1912_v8 = vsel %vm1847_vm0, %v1898_v32, 0.0  ;;  %v1885_v38 = vmul.f32 %v3730_v10, %v1868_v34 }
 0x201   :  { %1913 = vadd.xlane.f32.xlu0 %v1912_v8  ;;  %v1850_v13 = vpop.xlane.xlu2 %1849 }
 0x202   :  { %v1879_v37 = vmul.f32 %v3730_v10, %v1850_v13  ;;  %v3758_v49 = vsub.f32 %v3684_v39, %v1885_v38 }
 0x204   :  { %v3753_v42 = vsub.f32 %v3681_v36, %v1879_v37  ;;  %v1901_v36 = vmul.f32 %v3758_v49, %v3758_v49  ;;  %v1985_v37 = vmul.f32 %v3716_v4, %v3736_v24 }
 0x206   :  { %v1853_v43 = vpop.xlane.xlu0 %1852  ;;  %v1895_v26 = vmul.f32 %v3753_v42, %v3753_v42  ;;  %v1921_v40 = vsel %vm1847_vm0, %v1901_v36, 0.0 }
 0x207   :  { %v1880_v23 = vmul.f32 %v3730_v10, %v1853_v43 }
 0x208   :  { %v1903_v46 = vsel %vm1847_vm0, %v1895_v26, 0.0 }
 0x209   :  { %1904 = vadd.xlane.f32.xlu0 %v1903_v46  ;;  %v1862_v50 = vpop.xlane.xlu2 %1861  ;;  %v3772_v45 = vsub.f32 %v3691_v53, %v1880_v23 }
 0x20a   :  { %v1883_v52 = vmul.f32 %v3730_v10, %v1862_v50 }
 0x20b   :  { %v1896_v53 = vmul.f32 %v3772_v45, %v3772_v45 }
 0x20c   :  { %v3764_v41 = vsub.f32 %v3693_v47, %v1883_v52 }
 0x20e   :  { %v1865_v48 = vpop.xlane.xlu0 %1864  ;;  %v1899_v25 = vmul.f32 %v3764_v41, %v3764_v41 }
 0x20f   :  { %v1884_v39 = vmul.f32 %v3730_v10, %v1865_v48 }
 0x210   :  { %v1915_v57 = vsel %vm1847_vm0, %v1899_v25, 0.0 }
 0x211   :  { %v3777_v29 = vsub.f32 %v3699_v60, %v1884_v39  ;;  %1922 = vadd.xlane.f32.xlu0 %v1921_v40  ;;  %1916 = vadd.xlane.f32.xlu1 %v1915_v57  ;;  %v1871_v47 = vpop.xlane.xlu2 %1870  ;;  %v1906_v60 = vsel %vm1847_vm0, %v1896_v53, 0.0 }
 0x212   :  { %v1886_v54 = vmul.f32 %v3730_v10, %v1871_v47 }
 0x213   :  { %v1900_v44 = vmul.f32 %v3777_v29, %v3777_v29 }
 0x214   :  { %v1894_v56 = vsub.f32 %v3701_v63, %v1886_v54  ;;  %v2092_v63 = vld [vmem:[%s3881_s4 + $0x28] sm:$0xff]  ;;  %v1986_v54 = vmul.f32 %v3728_v1, %v3743_v22 }
 0x215   :  { %v1918_v59 = vsel %vm1847_vm0, %v1900_v44, 0.0 }
 0x216   :  { %1919 = vadd.xlane.f32.xlu2 %v1918_v59  ;;  %v3786_v58 = vmul.f32 %v1981_v19, %v1894_v56  ;;  %v1902_v55 = vmul.f32 %v1894_v56, %v1894_v56 }
 0x217   :  { %v2113_v11 = vpop.permute.xlu1 %2112 }
 0x218   :  { %v1924_v61 = vsel %vm1847_vm0, %v1902_v55, 0.0 }
 0x219   :  { %1907 = vadd.xlane.f32.xlu1 %v1906_v60  ;;  %v2108_v35 = vpop.permute.xlu2 %2107 }
 0x221   :  { %1925 = vadd.xlane.f32.xlu1 %v1924_v61  ;;  %v3799_v2 = vpop.permute.xlu0 %2117 }
 0x225   :  { %2132 = vperm.xlu0 %3109, %v2094_v62  }
 0x22e   :  { %2122 = vperm.xlu2 %3111, %v2092_v63  }
 0x23a   :  { %2127 = vperm.xlu1 %3110, %v2093_v51  }
 0x26c   :  { %v1911_v3 = vpop.xlane.xlu2 %1910 }
 0x26d   :  { %v1929_v6 = vmul.f32 %v1911_v3, %v3730_v10 }
 0x26f   :  { %v1993_v7 = vadd.f32 1e-05, %v1929_v6 }
 0x271   :  { %3114 = vrsqrt.f32 %v1993_v7  ;;  %vm2025_vm3 = vweird.f32 %v1993_v7 }
 0x274   :  { %v1914_v12 = vpop.xlane.xlu0 %1913 }
 0x275   :  { %v1930_v15 = vmul.f32 %v1914_v12, %v3730_v10 }
 0x277   :  { %v3115_v17 = vpop.eup %3114  ;;  %v1994_v0 = vadd.f32 1e-05, %v1930_v15  ;;  %v1983_v15 = vmul.f32 %v3718_v9, %v3753_v42 }
 0x278   :  { %v2020_v19 = vmul.f32 %v3115_v17, %v1993_v7  ;;  %vm2026_vm2 = vweird.f32 %v3115_v17 }
 0x279   :  { %3116 = vrsqrt.f32 %v1994_v0  ;;  %vm2027_vm4 = vmor %vm2025_vm3, %vm2026_vm2  ;;  %vm2035_vm7 = vweird.f32 %v1994_v0 }
 0x27a   :  { %v2021_v20 = vmul.f32 %v3115_v17, %v2020_v19 }
 0x27c   :  { %v2022_v27 = vmul.f32 0.5, %v2021_v20  ;;  %v1905_v28 = vpop.xlane.xlu0 %1904 }
 0x27d   :  { %v1927_v30 = vmul.f32 %v1905_v28, %v3730_v10 }
 0x27e   :  { %v2023_v31 = vsub.f32 1.5, %v2022_v27 }
 0x27f   :  { %v3117_v32 = vpop.eup %3116  ;;  %v1991_v8 = vadd.f32 1e-05, %v1927_v30 }
 0x280   :  { %v2024_v34 = vmul.f32 %v3115_v17, %v2023_v31  ;;  %v2030_v13 = vmul.f32 %v3117_v32, %v1994_v0  ;;  %vm2036_vm5 = vweird.f32 %v3117_v32 }
 0x281   :  { %3118 = vrsqrt.f32 %v1991_v8  ;;  %vm2037_vm8 = vmor %vm2035_vm7, %vm2036_vm5  ;;  %vm2005_vm11 = vweird.f32 %v1991_v8 }
 0x282   :  { %v2028_v38 = vsel %vm2027_vm4, %v3115_v17, %v2024_v34  ;;  %v2031_v43 = vmul.f32 %v3117_v32, %v2030_v13 }
 0x283   :  { %v2081_v26 = vmul.f32 %v2028_v38, %v1985_v37 }
 0x284   :  { %v2032_v46 = vmul.f32 0.5, %v2031_v43  ;;  %v1923_v50 = vpop.xlane.xlu0 %1922  ;;  %v1917_v52 = vpop.xlane.xlu1 %1916 }
 0x285   :  { %v2137_v23 = vadd.f32 %v2108_v35, %v2081_v26  ;;  %v1933_v36 = vmul.f32 %v1923_v50, %v3730_v10  ;;  %v1931_v48 = vmul.f32 %v1917_v52, %v3730_v10 }
 0x286   :  { %v2033_v25 = vsub.f32 1.5, %v2032_v46 }
 0x287   :  { %v3119_v39 = vpop.eup %3118  ;;  %vm2145_vm6 = vcmp.gt.f32.partialorder %v2137_v23, 0.0  ;;  %v2153_v40 = vmul.f32 0.01, %v2137_v23  ;;  %v3808_v57 = vadd.f32 1e-05, %v1933_v36 }
 0x288   :  { %v2034_v4 = vmul.f32 %v3117_v32, %v2033_v25  ;;  %v2000_v24 = vmul.f32 %v3119_v39, %v1991_v8  ;;  %v1995_v47 = vadd.f32 1e-05, %v1931_v48  ;;  %vm2006_vm9 = vweird.f32 %v3119_v39 }
 0x289   :  { %v2161_v44 = vsel %vm2145_vm6, %v2137_v23, %v2153_v40  ;;  %v1920_v56 = vpop.xlane.xlu2 %1919  ;;  %vm2007_vm12 = vmor %vm2005_vm11, %vm2006_vm9  ;;  %vm2065_vm11 = vweird.f32 %v3808_v57 }
 0x28a   :  { %2169 = vst.msk [vmem:[%s3882_s5 + $0x10] sm:$0xff] %vm1847_vm0, %v2161_v44  ;;  %v2038_v53 = vsel %vm2037_vm8, %v3117_v32, %v2034_v4  ;;  %v2001_v59 = vmul.f32 %v3119_v39, %v2000_v24  ;;  %3120 = vrsqrt.f32 %v1995_v47  ;;  %v1932_v55 = vmul.f32 %v1920_v56, %v3730_v10 }
 0x28b   :  { %v2082_v60 = vmul.f32 %v2038_v53, %v1986_v54  ;;  %3122 = vrsqrt.f32 %v3808_v57  ;;  %vm2045_vm15 = vweird.f32 %v1995_v47  ;;  %v1988_v4 = vmul.f32 %v3720_v5, %v3777_v29 }
 0x28c   :  { %v2002_v61 = vmul.f32 0.5, %v2001_v59  ;;  %v1908_v62 = vpop.xlane.xlu1 %1907  ;;  %v1996_v1 = vadd.f32 1e-05, %v1932_v55 }
 0x28d   :  { %v2138_v63 = vadd.f32 %v2113_v11, %v2082_v60  ;;  %v1928_v22 = vmul.f32 %v1908_v62, %v3730_v10 }
 0x28e   :  { %v2003_v51 = vsub.f32 1.5, %v2002_v61  ;;  %3124 = vrsqrt.f32 %v1996_v1  ;;  %vm2055_vm3 = vweird.f32 %v1996_v1 }
 0x28f   :  { %vm2146_vm10 = vcmp.gt.f32.partialorder %v2138_v63, 0.0  ;;  %v2154_v35 = vmul.f32 0.01, %v2138_v63  ;;  %v1992_v7 = vadd.f32 1e-05, %v1928_v22 }
 0x290   :  { %v3121_v3 = vpop.eup %3120  ;;  %v2004_v6 = vmul.f32 %v3119_v39, %v2003_v51 }
 0x291   :  { %v3819_v12 = vpop.eup %3122  ;;  %v2162_v17 = vsel %vm2146_vm10, %v2138_v63, %v2154_v35  ;;  %v2040_v0 = vmul.f32 %v3121_v3, %v1995_v47  ;;  %3126 = vrsqrt.f32 %v1992_v7  ;;  %vm2046_vm13 = vweird.f32 %v3121_v3  ;;  %v2123_v55 = vpop.permute.xlu2 %2122 }
 0x292   :  { %2170 = vst.msk [vmem:[%s3882_s5 + $0x18] sm:$0xff] %vm1847_vm0, %v2162_v17  ;;  %v2008_v19 = vsel %vm2007_vm12, %v3119_v39, %v2004_v6  ;;  %v2060_v27 = vmul.f32 %v3819_v12, %v3808_v57  ;;  %vm2047_vm1 = vmor %vm2045_vm15, %vm2046_vm13  ;;  %vm2015_vm7 = vweird.f32 %v1992_v7  ;;  %vm2066_vm9 = vweird.f32 %v3819_v12 }
 0x293   :  { %v2079_v20 = vmul.f32 %v2008_v19, %v1983_v15  ;;  %v2041_v11 = vmul.f32 %v3121_v3, %v2040_v0  ;;  %vm2067_vm13 = vmor %vm2065_vm11, %vm2066_vm9  ;;  %v1989_v57 = vmul.f32 %v3733_v21, %v3758_v49 }
 0x294   :  { %v1926_v28 = vpop.xlane.xlu1 %1925  ;;  %v3125_v30 = vpop.eup %3124  ;;  %v2061_v38 = vmul.f32 %v3819_v12, %v2060_v27 }
 0x295   :  { %v2135_v31 = vadd.f32 %v3726_v18, %v2079_v20  ;;  %v2042_v9 = vmul.f32 0.5, %v2041_v11  ;;  %v1934_v42 = vmul.f32 %v1926_v28, %v3730_v10  ;;  %v2050_v32 = vmul.f32 %v3125_v30, %v1996_v1 }
 0x296   :  { %v1987_v18 = vmul.f32 %v3724_v16, %v3764_v41  ;;  %v2062_v36 = vmul.f32 0.5, %v2061_v38  ;;  %vm2056_vm2 = vweird.f32 %v3125_v30 }
 0x297   :  { %vm2143_vm14 = vcmp.gt.f32.partialorder %v2135_v31, 0.0  ;;  %v2151_v8 = vmul.f32 0.01, %v2135_v31  ;;  %v2043_v34 = vsub.f32 1.5, %v2042_v9  ;;  %v3831_v13 = vadd.f32 1e-05, %v1934_v42  ;;  %v3127_v37 = vpop.eup %3126  ;;  %vm2057_vm5 = vmor %vm2055_vm3, %vm2056_vm2  ;;  %v2133_v19 = vpop.permute.xlu0 %2132 }
 0x298   :  { %v2051_v43 = vmul.f32 %v3125_v30, %v2050_v32  ;;  %v2010_v50 = vmul.f32 %v3127_v37, %v1992_v7  ;;  %vm2016_vm4 = vweird.f32 %v3127_v37  ;;  %v2063_v47 = vsub.f32 1.5, %v2062_v36 }
 0x299   :  { %v2159_v26 = vsel %vm2143_vm14, %v2135_v31, %v2151_v8  ;;  %v2044_v46 = vmul.f32 %v3121_v3, %v2043_v34  ;;  %3128 = vrsqrt.f32 %v3831_v13  ;;  %vm2017_vm8 = vmor %vm2015_vm7, %vm2016_vm4  ;;  %vm2075_vm15 = vweird.f32 %v3831_v13 }
 0x29a   :  { %2167 = vst.msk [vmem:[%s3882_s5] sm:$0xff] %vm1847_vm0, %v2159_v26  ;;  %v2052_v10 = vmul.f32 0.5, %v2051_v43  ;;  %v2011_v23 = vmul.f32 %v3127_v37, %v2010_v50  ;;  %v2064_v63 = vmul.f32 %v3819_v12, %v2063_v47 }
 0x29b   :  { %v2048_v52 = vsel %vm2047_vm1, %v3121_v3, %v2044_v46 }
 0x29c   :  { %v2083_v48 = vmul.f32 %v2048_v52, %v1987_v18  ;;  %v2053_v25 = vsub.f32 1.5, %v2052_v10  ;;  %v2012_v39 = vmul.f32 0.5, %v2011_v23  ;;  %v2068_v3 = vsel %vm2067_vm13, %v3819_v12, %v2064_v63 }
 0x29d   :  { %v2085_v15 = vmul.f32 %v2068_v3, %v1989_v57 }
 0x29e   :  { %v2139_v40 = vadd.f32 %v3799_v2, %v2083_v48  ;;  %v2054_v16 = vmul.f32 %v3125_v30, %v2053_v25  ;;  %v2013_v41 = vsub.f32 1.5, %v2012_v39  ;;  %v1984_v2 = vmul.f32 %v3722_v14, %v3772_v45 }
 0x29f   :  { %v3129_v24 = vpop.eup %3128 }
 0x2a0   :  { %vm2147_vm6 = vcmp.gt.f32.partialorder %v2139_v40, 0.0  ;;  %v2155_v54 = vmul.f32 0.01, %v2139_v40  ;;  %v2058_v44 = vsel %vm2057_vm5, %v3125_v30, %v2054_v16  ;;  %v2014_v56 = vmul.f32 %v3127_v37, %v2013_v41 }
 0x2a1   :  { %v2084_v53 = vmul.f32 %v2058_v44, %v1988_v4  ;;  %v2070_v59 = vmul.f32 %v3129_v24, %v3831_v13  ;;  %vm2076_vm12 = vweird.f32 %v3129_v24 }
 0x2a2   :  { %v2163_v60 = vsel %vm2147_vm6, %v2139_v40, %v2155_v54  ;;  %v2018_v5 = vsel %vm2017_vm8, %v3127_v37, %v2014_v56  ;;  %vm2077_vm1 = vmor %vm2075_vm15, %vm2076_vm12 }
 0x2a3   :  { %2171 = vst.msk [vmem:[%s3882_s5 + $0x20] sm:$0xff] %vm1847_vm0, %v2163_v60  ;;  %v2140_v29 = vadd.f32 %v2123_v55, %v2084_v53  ;;  %v2071_v61 = vmul.f32 %v3129_v24, %v2070_v59  ;;  %v2080_v62 = vmul.f32 %v2018_v5, %v1984_v2 }
 0x2a5   :  { %vm2148_vm10 = vcmp.gt.f32.partialorder %v2140_v29, 0.0  ;;  %v2156_v1 = vmul.f32 0.01, %v2140_v29  ;;  %v2072_v22 = vmul.f32 0.5, %v2071_v61  ;;  %v2136_v14 = vadd.f32 %v3745_v33, %v2080_v62 }
 0x2a7   :  { %v2164_v45 = vsel %vm2148_vm10, %v2140_v29, %v2156_v1  ;;  %v2073_v51 = vsub.f32 1.5, %v2072_v22  ;;  %vm2144_vm14 = vcmp.gt.f32.partialorder %v2136_v14, 0.0  ;;  %v2152_v35 = vmul.f32 0.01, %v2136_v14 }
 0x2a8   :  { %2172 = vst.msk [vmem:[%s3882_s5 + $0x28] sm:$0xff] %vm1847_vm0, %v2164_v45 }
 0x2a9   :  { %v2074_v6 = vmul.f32 %v3129_v24, %v2073_v51  ;;  %v2160_v33 = vsel %vm2144_vm14, %v2136_v14, %v2152_v35 }
 0x2aa   :  { %2168 = vst.msk [vmem:[%s3882_s5 + $0x8] sm:$0xff] %vm1847_vm0, %v2160_v33 }
 0x2ab   :  { %v2078_v7 = vsel %vm2077_vm1, %v3129_v24, %v2074_v6 }
 0x2ac   :  { %v2086_v17 = vmul.f32 %v2078_v7, %v3786_v58  ;;  %v2128_v0 = vpop.permute.xlu1 %2127 }
 0x2ad   :  { %v2141_v12 = vadd.f32 %v2128_v0, %v2085_v15 }
 0x2ae   :  { %v2142_v20 = vadd.f32 %v2133_v19, %v2086_v17 }
 0x2af   :  { %vm2149_vm2 = vcmp.gt.f32.partialorder %v2141_v12, 0.0  ;;  %v2157_v11 = vmul.f32 0.01, %v2141_v12 }
 0x2b0   :  { %vm2150_vm3 = vcmp.gt.f32.partialorder %v2142_v20, 0.0  ;;  %v2158_v27 = vmul.f32 0.01, %v2142_v20 }
 0x2b1   :  { %v2165_v21 = vsel %vm2149_vm2, %v2141_v12, %v2157_v11 }
 0x2b2   :  { %v2166_v49 = vsel %vm2150_vm3, %v2142_v20, %v2158_v27  ;;  %2173 = vst.msk [vmem:[%s3882_s5 + $0x30] sm:$0xff] %vm1847_vm0, %v2165_v21 }
 0x2b3   :  { %2174 = vst.msk [vmem:[%s3882_s5 + $0x38] sm:$0xff] %vm1847_vm0, %v2166_v49 }
 0x2b4   :  { %2179 = vsyncpa [#allocation3], 1 }

// kernel: vae_fd_forward.32
= control target key start
LH: loop header
LB: loop body
LE: loop exit
PB: predicated region body
PF: predicated region fallthrough
CT: control target
= control target key end

     0   :  { %v1382_v20 = vmov 0   ;;  %s1763_s1 = inlined_call_operand.vmem [shape: bf16[1024,128], index: 1, kind: input, shape index: {}]   ;;  %s1764_s2 = inlined_call_operand.vmem [shape: f32[32,1], index: 2, kind: input, shape index: {}]   ;;  %s1765_s0 = inlined_call_operand.vmem [shape: bf16[32,1024], index: 0, kind: input, shape index: {}]   ;;  %s1766_s3 = inlined_call_operand.vmem [shape: f32[32,1], index: 3, kind: input, shape index: {}]   ;;  %s1767_s4 = inlined_call_operand.vmem [shape: f32[32,1], index: 4, kind: input, shape index: {}]   ;;  %s1768_s5 = inlined_call_operand.vmem [shape: f32[32,128], index: 5, kind: output, shape index: {}]  }
   0x1   :  { %v1310_v0 = vld [vmem:[%s1763_s1 + $0x38] sm:$0xff]  ;;  %v1309_v4 = vld [vmem:[%s1763_s1 + $0x30] sm:$0xff]  ;;  %v1308_v8 = vld [vmem:[%s1763_s1 + $0x28] sm:$0xff]  ;;  %1369 = vset.pattern.permute.xlu0 %v1382_v20  ;;  %1370 = vset.pattern.permute.xlu1 %v1382_v20 }
   0x2   :  { %v1318_v1 = vld [vmem:[%s1763_s1 + $0x78] sm:$0xff]  ;;  %652 = vmatpush.bf16.msra.mxu0 %v1310_v0  ;;  %v1317_v5 = vld [vmem:[%s1763_s1 + $0x70] sm:$0xff]  ;;  %v1316_v9 = vld [vmem:[%s1763_s1 + $0x68] sm:$0xff]  ;;  %1371 = vset.pattern.permute.xlu2 %v1382_v20 }
   0x3   :  { %v1326_v2 = vld [vmem:[%s1763_s1 + $0xb8] sm:$0xff]  ;;  %671 = vmatpush.bf16.msra.mxu1 %v1318_v1  ;;  %v1325_v6 = vld [vmem:[%s1763_s1 + $0xb0] sm:$0xff]  ;;  %v1324_v10 = vld [vmem:[%s1763_s1 + $0xa8] sm:$0xff] }
   0x4   :  { %v1334_v3 = vld [vmem:[%s1763_s1 + $0xf8] sm:$0xff]  ;;  %690 = vmatpush.bf16.msra.mxu2 %v1326_v2  ;;  %v1333_v7 = vld [vmem:[%s1763_s1 + $0xf0] sm:$0xff]  ;;  %v1332_v11 = vld [vmem:[%s1763_s1 + $0xe8] sm:$0xff] }
   0x5   :  { %709 = vmatpush.bf16.msra.mxu3 %v1334_v3  ;;  %v1307_v12 = vld [vmem:[%s1763_s1 + $0x20] sm:$0xff]  ;;  %v1306_v16 = vld [vmem:[%s1763_s1 + $0x18] sm:$0xff]  ;;  %v1305_v22 = vld [vmem:[%s1763_s1 + $0x10] sm:$0xff] }
   0x6   :  { %653 = vmatpush.bf16.msra.mxu0 %v1309_v4  ;;  %v1315_v13 = vld [vmem:[%s1763_s1 + $0x60] sm:$0xff]  ;;  %v1314_v17 = vld [vmem:[%s1763_s1 + $0x58] sm:$0xff]  ;;  %v1313_v23 = vld [vmem:[%s1763_s1 + $0x50] sm:$0xff] }
   0x7   :  { %672 = vmatpush.bf16.msra.mxu1 %v1317_v5  ;;  %v1323_v14 = vld [vmem:[%s1763_s1 + $0xa0] sm:$0xff]  ;;  %v1322_v18 = vld [vmem:[%s1763_s1 + $0x98] sm:$0xff]  ;;  %v1321_v24 = vld [vmem:[%s1763_s1 + $0x90] sm:$0xff] }
   0x8   :  { %691 = vmatpush.bf16.msra.mxu2 %v1325_v6  ;;  %v1331_v15 = vld [vmem:[%s1763_s1 + $0xe0] sm:$0xff]  ;;  %v1330_v19 = vld [vmem:[%s1763_s1 + $0xd8] sm:$0xff]  ;;  %v1329_v25 = vld [vmem:[%s1763_s1 + $0xd0] sm:$0xff] }
   0x9   :  { %710 = vmatpush.bf16.msra.mxu3 %v1333_v7  ;;  %v164_v21 = vld [vmem:[%s1764_s2] sm:$0xff]  ;;  %v1304_v26 = vld [vmem:[%s1763_s1 + $0x8] sm:$0xff]  ;;  %v166_v43 = vld [vmem:[%s1764_s2 + $0x10] sm:$0xff] }
   0xa   :  { %654 = vmatpush.bf16.msra.mxu0 %v1308_v8  ;;  %170 = vperm.xlu0 %1369, %v164_v21   ;;  %v1312_v27 = vld [vmem:[%s1763_s1 + $0x48] sm:$0xff]  ;;  %v1303_v30 = vld [vmem:[%s1763_s1] sm:$0xff]  ;;  %v1358_v44 = vld [vmem:[%s1763_s1 + $0x1b8] sm:$0xff] }
   0xb   :  { %673 = vmatpush.bf16.msra.mxu1 %v1316_v9  ;;  %v1320_v28 = vld [vmem:[%s1763_s1 + $0x88] sm:$0xff]  ;;  %v1311_v31 = vld [vmem:[%s1763_s1 + $0x40] sm:$0xff]  ;;  %v1342_v45 = vld [vmem:[%s1763_s1 + $0x138] sm:$0xff]  ;;  %180 = vperm.xlu1 %1370, %v166_v43  }
   0xc   :  { %692 = vmatpush.bf16.msra.mxu2 %v1324_v10  ;;  %v1328_v29 = vld [vmem:[%s1763_s1 + $0xc8] sm:$0xff]  ;;  %v969_v32 = vld [vmem:[%s1765_s0] sm:$0xf]  ;;  %v1287_v36 = vld [vmem:[%s1765_s0 + $0x4] sm:$0xf] }
   0xd   :  { %711 = vmatpush.bf16.msra.mxu3 %v1332_v11  ;;  %v1319_v33 = vld [vmem:[%s1763_s1 + $0x80] sm:$0xff]  ;;  %v165_v37 = vld [vmem:[%s1764_s2 + $0x8] sm:$0xff]  ;;  %v1350_v50 = vld [vmem:[%s1763_s1 + $0x178] sm:$0xff] }
   0xe   :  { %655 = vmatpush.bf16.msra.mxu0 %v1307_v12  ;;  %v1327_v34 = vld [vmem:[%s1763_s1 + $0xc0] sm:$0xff]  ;;  %v977_v39 = vld [vmem:[%s1765_s0 + $0x8] sm:$0xf]  ;;  %v1288_v41 = vld [vmem:[%s1765_s0 + $0xc] sm:$0xf] }
   0xf   :  { %674 = vmatpush.bf16.msra.mxu1 %v1315_v13  ;;  %v1291_v35 = vld [vmem:[%s1765_s0 + $0x1c] sm:$0xf0]  ;;  %v971_v38 = vld [vmem:[%s1765_s0 + $0x20] sm:$0xf0]  ;;  %v1292_v40 = vld [vmem:[%s1765_s0 + $0x24] sm:$0xf0] }
  0x10   :  { %693 = vmatpush.bf16.msra.mxu2 %v1323_v14  ;;  %v979_v42 = vld [vmem:[%s1765_s0 + $0x28] sm:$0xf0]  ;;  %v970_v46 = vor.u32 %v1291_v35, %v969_v32  ;;  %v974_v47 = vor.u32 %v1287_v36, %v971_v38  ;;  %v978_v48 = vor.u32 %v1292_v40, %v977_v39  ;;  %v1366_v51 = vld [vmem:[%s1763_s1 + $0x1f8] sm:$0xff]  ;;  %v1357_v52 = vld [vmem:[%s1763_s1 + $0x1b0] sm:$0xff] }
  0x11   :  { %712 = vmatpush.bf16.msra.mxu3 %v1331_v15  ;;  %v982_v49 = vor.u32 %v1288_v41, %v979_v42  ;;  %v1341_v53 = vld [vmem:[%s1763_s1 + $0x130] sm:$0xff]  ;;  %v167_v56 = vld [vmem:[%s1764_s2 + $0x18] sm:$0xff]  ;;  %v1356_v57 = vld [vmem:[%s1763_s1 + $0x1a8] sm:$0xff] }
  0x12   :  { %656 = vmatpush.bf16.msra.mxu0 %v1306_v16  ;;  %175 = vperm.xlu0 %1369, %v165_v37   ;;  %v1349_v54 = vld [vmem:[%s1763_s1 + $0x170] sm:$0xff]  ;;  %v1340_v58 = vld [vmem:[%s1763_s1 + $0x128] sm:$0xff]  ;;  %v1355_v61 = vld [vmem:[%s1763_s1 + $0x1a0] sm:$0xff] }
  0x13   :  { %675 = vmatpush.bf16.msra.mxu1 %v1314_v17  ;;  %v1365_v55 = vld [vmem:[%s1763_s1 + $0x1f0] sm:$0xff]  ;;  %185 = vperm.xlu1 %1370, %v167_v56   ;;  %v1348_v59 = vld [vmem:[%s1763_s1 + $0x168] sm:$0xff]  ;;  %v1339_v62 = vld [vmem:[%s1763_s1 + $0x120] sm:$0xff] }
  0x14   :  { %694 = vmatpush.bf16.msra.mxu2 %v1322_v18  ;;  %v1364_v60 = vld [vmem:[%s1763_s1 + $0x1e8] sm:$0xff]  ;;  %v1347_v63 = vld [vmem:[%s1763_s1 + $0x160] sm:$0xff]  ;;  %v1354_v9 = vld [vmem:[%s1763_s1 + $0x198] sm:$0xff] }
  0x15   :  { %713 = vmatpush.bf16.msra.mxu3 %v1330_v19  ;;  %v1363_v0 = vld [vmem:[%s1763_s1 + $0x1e0] sm:$0xff]  ;;  %v1009_v5 = vld [vmem:[%s1765_s0 + $0x48] sm:$0xf]  ;;  %v1296_v7 = vld [vmem:[%s1765_s0 + $0x4c] sm:$0xf] }
  0x16   :  { %657 = vmatpush.bf16.msra.mxu0 %v1305_v22  ;;  %v1001_v1 = vld [vmem:[%s1765_s0 + $0x40] sm:$0xf]  ;;  %v1295_v3 = vld [vmem:[%s1765_s0 + $0x44] sm:$0xf]  ;;  %v1300_v6 = vld [vmem:[%s1765_s0 + $0x64] sm:$0xf0] }
  0x17   :  { %676 = vmatpush.bf16.msra.mxu1 %v1313_v23  ;;  %v1299_v2 = vld [vmem:[%s1765_s0 + $0x5c] sm:$0xf0]  ;;  %v1003_v4 = vld [vmem:[%s1765_s0 + $0x60] sm:$0xf0]  ;;  %v1011_v8 = vld [vmem:[%s1765_s0 + $0x68] sm:$0xf0]  ;;  %v1010_v13 = vor.u32 %v1300_v6, %v1009_v5 }
  0x18   :  { %695 = vmatpush.bf16.msra.mxu2 %v1321_v24  ;;  %v1338_v10 = vld [vmem:[%s1763_s1 + $0x118] sm:$0xff]  ;;  %v1002_v11 = vor.u32 %v1299_v2, %v1001_v1  ;;  %v1006_v12 = vor.u32 %v1295_v3, %v1003_v4  ;;  %v1014_v14 = vor.u32 %v1296_v7, %v1011_v8  ;;  %v1353_v17 = vld [vmem:[%s1763_s1 + $0x190] sm:$0xff]  ;;  %v1352_v21 = vld [vmem:[%s1763_s1 + $0x188] sm:$0xff] }
  0x19   :  { %714 = vmatpush.bf16.msra.mxu3 %v1329_v25  ;;  %v1346_v15 = vld [vmem:[%s1763_s1 + $0x158] sm:$0xff]  ;;  %v1337_v18 = vld [vmem:[%s1763_s1 + $0x110] sm:$0xff]  ;;  %v1336_v22 = vld [vmem:[%s1763_s1 + $0x108] sm:$0xff] }
  0x1a   :  { %658 = vmatpush.bf16.msra.mxu0 %v1304_v26  ;;  %v1362_v16 = vld [vmem:[%s1763_s1 + $0x1d8] sm:$0xff]  ;;  %v1345_v19 = vld [vmem:[%s1763_s1 + $0x150] sm:$0xff]  ;;  %v1344_v23 = vld [vmem:[%s1763_s1 + $0x148] sm:$0xff] }
  0x1b   :  { %677 = vmatpush.bf16.msra.mxu1 %v1312_v27  ;;  %v1361_v20 = vld [vmem:[%s1763_s1 + $0x1d0] sm:$0xff]  ;;  %v1360_v24 = vld [vmem:[%s1763_s1 + $0x1c8] sm:$0xff]  ;;  %v1351_v25 = vld [vmem:[%s1763_s1 + $0x180] sm:$0xff] }
  0x1c   :  { %696 = vmatpush.bf16.msra.mxu2 %v1320_v28  ;;  %v1335_v26 = vld [vmem:[%s1763_s1 + $0x100] sm:$0xff]  ;;  %v987_v32 = vld [vmem:[%s1765_s0 + $0x30] sm:$0xf0]  ;;  %v1290_v35 = vld [vmem:[%s1765_s0 + $0x1c] sm:$0xf] }
  0x1d   :  { %715 = vmatpush.bf16.msra.mxu3 %v1328_v29  ;;  %v1343_v27 = vld [vmem:[%s1763_s1 + $0x140] sm:$0xff]  ;;  %v985_v29 = vld [vmem:[%s1765_s0 + $0x10] sm:$0xf]  ;;  %v995_v36 = vld [vmem:[%s1765_s0 + $0x38] sm:$0xf0] }
  0x1e   :  { %659 = vmatpush.bf16.msra.mxu0 %v1303_v30  ;;  %v1359_v28 = vld [vmem:[%s1763_s1 + $0x1c0] sm:$0xff]  ;;  %v1293_v30 = vld [vmem:[%s1765_s0 + $0x2c] sm:$0xf0]  ;;  %v998_v40 = vor.u32 %v1290_v35, %v995_v36  ;;  %v1297_v43 = vld [vmem:[%s1765_s0 + $0x54] sm:$0xf] }
  0x1f   :  { %678 = vmatpush.bf16.msra.mxu1 %v1311_v31  ;;  %v1289_v31 = vld [vmem:[%s1765_s0 + $0x14] sm:$0xf]  ;;  %v986_v37 = vor.u32 %v1293_v30, %v985_v29  ;;  %v1017_v41 = vld [vmem:[%s1765_s0 + $0x50] sm:$0xf] }
  0x20   :  { %697 = vmatpush.bf16.msra.mxu2 %v1319_v33  ;;  %v993_v33 = vld [vmem:[%s1765_s0 + $0x18] sm:$0xf]  ;;  %v990_v38 = vor.u32 %v1289_v31, %v987_v32  ;;  %v1301_v42 = vld [vmem:[%s1765_s0 + $0x6c] sm:$0xf0] }
  0x21   :  { %716 = vmatpush.bf16.msra.mxu3 %v1327_v34  ;;  %660 = vmatmul.bf16.vlgmr.msra.gmra.mxu0 %v970_v46  ;;  %v1294_v34 = vld [vmem:[%s1765_s0 + $0x34] sm:$0xf0] }
  0x22   :  { %728 = vmatpush.bf16.msrb.mxu0 %v1342_v45  ;;  %679 = vmatmul.bf16.vlgmr.msra.gmra.mxu1 %v974_v47  ;;  %v994_v39 = vor.u32 %v1294_v34, %v993_v33  ;;  %v1025_v45 = vld [vmem:[%s1765_s0 + $0x58] sm:$0xf]  ;;  %v1298_v47 = vld [vmem:[%s1765_s0 + $0x5c] sm:$0xf] }
  0x23   :  { %698 = vmatmul.bf16.vlgmr.msra.gmra.mxu2 %v978_v48  ;;  %747 = vmatpush.bf16.msrb.mxu1 %v1350_v50  ;;  %v1302_v46 = vld [vmem:[%s1765_s0 + $0x74] sm:$0xf0]  ;;  %v1027_v48 = vld [vmem:[%s1765_s0 + $0x78] sm:$0xf0] }
  0x24   :  { %766 = vmatpush.bf16.msrb.mxu2 %v1358_v44  ;;  %717 = vmatmul.bf16.vlgmr.msra.gmra.mxu3 %v982_v49  ;;  %v1019_v44 = vld [vmem:[%s1765_s0 + $0x70] sm:$0xf0]  ;;  %v1018_v49 = vor.u32 %v1301_v42, %v1017_v41 }
  0x25   :  { %785 = vmatpush.bf16.msrb.mxu3 %v1366_v51  ;;  %v1022_v50 = vor.u32 %v1297_v43, %v1019_v44  ;;  %v1026_v51 = vor.u32 %v1302_v46, %v1025_v45 }
  0x26   :  { %729 = vmatpush.bf16.msrb.mxu0 %v1341_v53 }
  0x27   :  { %748 = vmatpush.bf16.msrb.mxu1 %v1349_v54 }
  0x28   :  { %767 = vmatpush.bf16.msrb.mxu2 %v1357_v52  ;;  %v1030_v52 = vor.u32 %v1298_v47, %v1027_v48 }
  0x29   :  { %786 = vmatpush.bf16.msrb.mxu3 %v1365_v55 }
  0x2a   :  { %730 = vmatpush.bf16.msrb.mxu0 %v1340_v58 }
  0x2b   :  { %749 = vmatpush.bf16.msrb.mxu1 %v1348_v59 }
  0x2c   :  { %768 = vmatpush.bf16.msrb.mxu2 %v1356_v57 }
  0x2d   :  { %787 = vmatpush.bf16.msrb.mxu3 %v1364_v60 }
  0x2e   :  { %731 = vmatpush.bf16.msrb.mxu0 %v1339_v62 }
  0x2f   :  { %750 = vmatpush.bf16.msrb.mxu1 %v1347_v63 }
  0x30   :  { %769 = vmatpush.bf16.msrb.mxu2 %v1355_v61 }
  0x31   :  { %788 = vmatpush.bf16.msrb.mxu3 %v1363_v0  ;;  %665 = vmatmul.bf16.gmra.mxu0 %v1002_v11 }
  0x32   :  { %732 = vmatpush.bf16.msrb.mxu0 %v1338_v10  ;;  %684 = vmatmul.bf16.gmra.mxu1 %v1006_v12 }
  0x33   :  { %703 = vmatmul.bf16.gmra.mxu2 %v1010_v13  ;;  %751 = vmatpush.bf16.msrb.mxu1 %v1346_v15 }
  0x34   :  { %770 = vmatpush.bf16.msrb.mxu2 %v1354_v9  ;;  %722 = vmatmul.bf16.gmra.mxu3 %v1014_v14 }
  0x35   :  { %789 = vmatpush.bf16.msrb.mxu3 %v1362_v16 }
  0x36   :  { %733 = vmatpush.bf16.msrb.mxu0 %v1337_v18 }
  0x37   :  { %752 = vmatpush.bf16.msrb.mxu1 %v1345_v19 }
  0x38   :  { %771 = vmatpush.bf16.msrb.mxu2 %v1353_v17 }
  0x39   :  { %790 = vmatpush.bf16.msrb.mxu3 %v1361_v20 }
  0x3a   :  { %734 = vmatpush.bf16.msrb.mxu0 %v1336_v22 }
  0x3b   :  { %753 = vmatpush.bf16.msrb.mxu1 %v1344_v23 }
  0x3c   :  { %772 = vmatpush.bf16.msrb.mxu2 %v1352_v21 }
  0x3d   :  { %791 = vmatpush.bf16.msrb.mxu3 %v1360_v24 }
  0x3e   :  { %735 = vmatpush.bf16.msrb.mxu0 %v1335_v26 }
  0x3f   :  { %754 = vmatpush.bf16.msrb.mxu1 %v1343_v27 }
  0x40   :  { %773 = vmatpush.bf16.msrb.mxu2 %v1351_v25 }
  0x41   :  { %792 = vmatpush.bf16.msrb.mxu3 %v1359_v28  ;;  %736 = vmatmul.bf16.vlgmr.msrb.gmra.mxu0 %v986_v37 }
  0x42   :  { %755 = vmatmul.bf16.vlgmr.msrb.gmra.mxu1 %v990_v38 }
  0x43   :  { %774 = vmatmul.bf16.vlgmr.msrb.gmra.mxu2 %v994_v39 }
  0x44   :  { %793 = vmatmul.bf16.vlgmr.msrb.gmra.mxu3 %v998_v40 }
  0x51   :  { %741 = vmatmul.bf16.gmra.mxu0 %v1018_v49 }
  0x52   :  { %760 = vmatmul.bf16.gmra.mxu1 %v1022_v50 }
  0x53   :  { %779 = vmatmul.bf16.gmra.mxu2 %v1026_v51 }
  0x54   :  { %798 = vmatmul.bf16.gmra.mxu3 %v1030_v52 }
  0x7c   :  { %v171_v63 = vpop.permute.xlu0 %170 }
  0x7d   :  { %v181_v13 = vpop.permute.xlu1 %180 }
  0x84   :  { %v176_v6 = vpop.permute.xlu0 %175 }
  0x85   :  { %v186_v29 = vpop.permute.xlu1 %185 }
  0x9e   :  { %v661_v53 = vpop.f32.mrf.mxu0 }
  0x9f   :  { %v680_v54 = vpop.f32.mrf.mxu1  ;;  %v662_v0 = vadd.f32 %v661_v53, %v171_v63  ;;  %v921_v63 = vld [vmem:[%s1767_s4 + $0x10] sm:$0xff] }
  0xa1   :  { %v681_v3 = vadd.f32 %v680_v54, %v662_v0  ;;  %v1383_v0 = vmov 128.0  }
  0xa2   :  { %1372 = vrcp.f32 %v1383_v0 }
  0xa6   :  { %v699_v55 = vpop.f32.mrf.mxu2  ;;  %v663_v57 = vpop.f32.mrf.mxu0 }
  0xa7   :  { %v718_v56 = vpop.f32.mrf.mxu3  ;;  %v682_v58 = vpop.f32.mrf.mxu1  ;;  %v700_v7 = vadd.f32 %v699_v55, %v681_v3  ;;  %v664_v8 = vadd.f32 %v663_v57, %v176_v6  ;;  %v843_v57 = vld [vmem:[%s1766_s3] sm:$0xff] }
  0xa9   :  { %v719_v11 = vadd.f32 %v718_v56, %v700_v7  ;;  %v683_v15 = vadd.f32 %v682_v58, %v664_v8  ;;  %v844_v58 = vld [vmem:[%s1766_s3 + $0x8] sm:$0xff] }
  0xae   :  { %v701_v59 = vpop.f32.mrf.mxu2  ;;  %v666_v61 = vpop.f32.mrf.mxu0 }
  0xaf   :  { %v720_v60 = vpop.f32.mrf.mxu3  ;;  %v685_v62 = vpop.f32.mrf.mxu1  ;;  %v702_v17 = vadd.f32 %v701_v59, %v683_v15  ;;  %v667_v18 = vadd.f32 %v666_v61, %v181_v13  ;;  %v846_v59 = vld [vmem:[%s1766_s3 + $0x18] sm:$0xff]  ;;  %v845_v61 = vld [vmem:[%s1766_s3 + $0x10] sm:$0xff] }
  0xb1   :  { %v721_v21 = vadd.f32 %v720_v60, %v702_v17  ;;  %v686_v22 = vadd.f32 %v685_v62, %v667_v18  ;;  %v919_v60 = vld [vmem:[%s1767_s4] sm:$0xff]  ;;  %v922_v62 = vld [vmem:[%s1767_s4 + $0x18] sm:$0xff] }
  0xb6   :  { %v704_v1 = vpop.f32.mrf.mxu2  ;;  %v668_v4 = vpop.f32.mrf.mxu0 }
  0xb7   :  { %v723_v2 = vpop.f32.mrf.mxu3  ;;  %v687_v5 = vpop.f32.mrf.mxu1  ;;  %v705_v30 = vadd.f32 %v704_v1, %v686_v22  ;;  %v669_v31 = vadd.f32 %v668_v4, %v186_v29 }
  0xb8   :  { %v1373_v1 = vpop.eup %1372 }
  0xb9   :  { %v724_v34 = vadd.f32 %v723_v2, %v705_v30  ;;  %v688_v38 = vadd.f32 %v687_v5, %v669_v31  ;;  %v813_v2 = vmul.f32 128.0, %v1373_v1  ;;  %vm817_vm0 = vweird.f32 %v1373_v1 }
  0xbb   :  { %v814_v3 = vsub.f32 1.0, %v813_v2 }
  0xbd   :  { %v815_v4 = vmul.f32 %v1373_v1, %v814_v3 }
  0xbe   :  { %v706_v9 = vpop.f32.mrf.mxu2  ;;  %v737_v12 = vpop.f32.mrf.mxu0 }
  0xbf   :  { %v725_v10 = vpop.f32.mrf.mxu3  ;;  %v756_v14 = vpop.f32.mrf.mxu1  ;;  %v738_v16 = vadd.f32 %v737_v12, %v719_v11  ;;  %v707_v42 = vadd.f32 %v706_v9, %v688_v38  ;;  %v816_v5 = vadd.f32 %v1373_v1, %v815_v4 }
  0xc1   :  { %v757_v19 = vadd.f32 %v756_v14, %v738_v16  ;;  %v726_v45 = vadd.f32 %v725_v10, %v707_v42  ;;  %v818_v6 = vsel %vm817_vm0, %v1373_v1, %v816_v5 }
  0xc6   :  { %v775_v20 = vpop.f32.mrf.mxu2  ;;  %v739_v25 = vpop.f32.mrf.mxu0 }
  0xc7   :  { %v776_v23 = vadd.f32 %v775_v20, %v757_v19  ;;  %v794_v24 = vpop.f32.mrf.mxu3  ;;  %v758_v26 = vpop.f32.mrf.mxu1  ;;  %v740_v28 = vadd.f32 %v739_v25, %v721_v21 }
  0xc9   :  { %v795_v27 = vadd.f32 %v794_v24, %v776_v23  ;;  %v759_v32 = vadd.f32 %v758_v26, %v740_v28  ;;  %v920_v23 = vld [vmem:[%s1767_s4 + $0x8] sm:$0xff] }
  0xcb   :  { %804 = vadd.xlane.f32.xlu2 %v795_v27 }
  0xce   :  { %v777_v33 = vpop.f32.mrf.mxu2  ;;  %v742_v37 = vpop.f32.mrf.mxu0 }
  0xcf   :  { %v778_v35 = vadd.f32 %v777_v33, %v759_v32  ;;  %v796_v36 = vpop.f32.mrf.mxu3  ;;  %v743_v40 = vadd.f32 %v742_v37, %v724_v34  ;;  %v761_v41 = vpop.f32.mrf.mxu1 }
  0xd1   :  { %v797_v39 = vadd.f32 %v796_v36, %v778_v35  ;;  %v762_v43 = vadd.f32 %v761_v41, %v743_v40 }
  0xd3   :  { %806 = vadd.xlane.f32.xlu2 %v797_v39 }
  0xd6   :  { %v780_v44 = vpop.f32.mrf.mxu2  ;;  %v744_v48 = vpop.f32.mrf.mxu0 }
  0xd7   :  { %v781_v46 = vadd.f32 %v780_v44, %v762_v43  ;;  %v799_v47 = vpop.f32.mrf.mxu3  ;;  %v745_v50 = vadd.f32 %v744_v48, %v726_v45  ;;  %v763_v51 = vpop.f32.mrf.mxu1 }
  0xd9   :  { %v800_v49 = vadd.f32 %v799_v47, %v781_v46  ;;  %v764_v52 = vadd.f32 %v763_v51, %v745_v50 }
  0xdb   :  { %808 = vadd.xlane.f32.xlu0 %v800_v49 }
  0xde   :  { %v782_v53 = vpop.f32.mrf.mxu2 }
  0xdf   :  { %v783_v54 = vadd.f32 %v782_v53, %v764_v52  ;;  %v801_v55 = vpop.f32.mrf.mxu3 }
  0xe1   :  { %v802_v56 = vadd.f32 %v801_v55, %v783_v54 }
  0xe3   :  { %810 = vadd.xlane.f32.xlu1 %v802_v56 }
  0xeb   :  { %849 = vperm.xlu2 %1371, %v843_v57  }
  0xef   :  { %854 = vperm.xlu0 %1369, %v844_v58  }
  0xf3   :  { %864 = vperm.xlu2 %1371, %v846_v59  }
  0xf7   :  { %925 = vperm.xlu0 %1369, %v919_v60  }
  0xfc   :  { %859 = vperm.xlu1 %1370, %v845_v61  }
  0xff   :  { %940 = vperm.xlu0 %1369, %v922_v62  }
 0x104   :  { %935 = vperm.xlu1 %1370, %v921_v63  }
 0x13e   :  { %v805_v7 = vpop.xlane.xlu2 %804 }
 0x13f   :  { %v819_v8 = vmul.f32 %v818_v6, %v805_v7 }
 0x141   :  { %v823_v9 = vsub.f32 %v795_v27, %v819_v8 }
 0x143   :  { %v827_v10 = vmul.f32 %v823_v9, %v823_v9 }
 0x145   :  { %831 = vadd.xlane.f32.xlu2 %v827_v10 }
 0x146   :  { %v807_v11 = vpop.xlane.xlu2 %806 }
 0x147   :  { %v820_v12 = vmul.f32 %v818_v6, %v807_v11 }
 0x149   :  { %v824_v13 = vsub.f32 %v797_v39, %v820_v12 }
 0x14b   :  { %v828_v14 = vmul.f32 %v824_v13, %v824_v13 }
 0x14d   :  { %833 = vadd.xlane.f32.xlu2 %v828_v14 }
 0x14e   :  { %v809_v15 = vpop.xlane.xlu0 %808  ;;  %v850_v24 = vpop.permute.xlu2 %849 }
 0x14f   :  { %v821_v16 = vmul.f32 %v818_v6, %v809_v15  ;;  %v867_v44 = vmul.f32 %v850_v24, %v823_v9 }
 0x151   :  { %v1735_v17 = vsub.f32 %v800_v49, %v821_v16 }
 0x153   :  { %v829_v18 = vmul.f32 %v1735_v17, %v1735_v17 }
 0x155   :  { %835 = vadd.xlane.f32.xlu2 %v829_v18 }
 0x156   :  { %v811_v19 = vpop.xlane.xlu1 %810  ;;  %v1746_v25 = vpop.permute.xlu2 %864 }
 0x157   :  { %v822_v20 = vmul.f32 %v818_v6, %v811_v19 }
 0x159   :  { %v1739_v21 = vsub.f32 %v802_v56, %v822_v20 }
 0x15b   :  { %v830_v22 = vmul.f32 %v1739_v21, %v1739_v21 }
 0x15d   :  { %837 = vadd.xlane.f32.xlu2 %v830_v22 }
 0x161   :  { %v855_v34 = vpop.permute.xlu0 %854 }
 0x162   :  { %v868_v59 = vmul.f32 %v855_v34, %v824_v13 }
 0x169   :  { %v926_v48 = vpop.permute.xlu0 %925 }
 0x16e   :  { %v860_v61 = vpop.permute.xlu1 %859 }
 0x16f   :  { %v869_v9 = vmul.f32 %v860_v61, %v1735_v17  ;;  %v870_v17 = vmul.f32 %v1746_v25, %v1739_v21 }
 0x175   :  { %930 = vperm.xlu2 %1371, %v920_v23  }
 0x176   :  { %v936_v14 = vpop.permute.xlu1 %935 }
 0x1b8   :  { %v832_v26 = vpop.xlane.xlu2 %831 }
 0x1b9   :  { %v839_v27 = vmul.f32 %v832_v26, %v818_v6  ;;  %v941_v26 = vpop.permute.xlu0 %940 }
 0x1bb   :  { %v871_v28 = vadd.f32 1e-05, %v839_v27 }
 0x1bd   :  { %1374 = vrsqrt.f32 %v871_v28  ;;  %vm881_vm2 = vweird.f32 %v871_v28 }
 0x1c0   :  { %v834_v29 = vpop.xlane.xlu2 %833 }
 0x1c1   :  { %v840_v30 = vmul.f32 %v834_v29, %v818_v6 }
 0x1c3   :  { %v1375_v31 = vpop.eup %1374  ;;  %v872_v32 = vadd.f32 1e-05, %v840_v30 }
 0x1c4   :  { %v876_v33 = vmul.f32 %v1375_v31, %v871_v28  ;;  %vm882_vm1 = vweird.f32 %v1375_v31 }
 0x1c5   :  { %1376 = vrsqrt.f32 %v872_v32  ;;  %vm883_vm3 = vmor %vm881_vm2, %vm882_vm1  ;;  %vm891_vm6 = vweird.f32 %v872_v32 }
 0x1c6   :  { %v877_v35 = vmul.f32 %v1375_v31, %v876_v33 }
 0x1c8   :  { %v878_v36 = vmul.f32 0.5, %v877_v35  ;;  %v836_v37 = vpop.xlane.xlu2 %835 }
 0x1c9   :  { %v841_v38 = vmul.f32 %v836_v37, %v818_v6 }
 0x1ca   :  { %v879_v39 = vsub.f32 1.5, %v878_v36 }
 0x1cb   :  { %v1377_v40 = vpop.eup %1376  ;;  %v873_v41 = vadd.f32 1e-05, %v841_v38 }
 0x1cc   :  { %v880_v42 = vmul.f32 %v1375_v31, %v879_v39  ;;  %v886_v43 = vmul.f32 %v1377_v40, %v872_v32  ;;  %vm892_vm4 = vweird.f32 %v1377_v40 }
 0x1cd   :  { %1378 = vrsqrt.f32 %v873_v41  ;;  %vm893_vm7 = vmor %vm891_vm6, %vm892_vm4  ;;  %vm901_vm10 = vweird.f32 %v873_v41 }
 0x1ce   :  { %v884_v45 = vsel %vm883_vm3, %v1375_v31, %v880_v42  ;;  %v887_v46 = vmul.f32 %v1377_v40, %v886_v43 }
 0x1cf   :  { %v915_v47 = vmul.f32 %v884_v45, %v867_v44 }
 0x1d0   :  { %v888_v49 = vmul.f32 0.5, %v887_v46  ;;  %v838_v50 = vpop.xlane.xlu2 %837 }
 0x1d1   :  { %v943_v51 = vadd.f32 %v926_v48, %v915_v47  ;;  %v842_v52 = vmul.f32 %v838_v50, %v818_v6 }
 0x1d2   :  { %v889_v53 = vsub.f32 1.5, %v888_v49 }
 0x1d3   :  { %v1379_v54 = vpop.eup %1378  ;;  %vm947_vm5 = vcmp.gt.f32.partialorder %v943_v51, 0.0  ;;  %v951_v55 = vmul.f32 0.01, %v943_v51  ;;  %v874_v56 = vadd.f32 1e-05, %v842_v52 }
 0x1d4   :  { %v896_v57 = vmul.f32 %v1379_v54, %v873_v41  ;;  %v890_v58 = vmul.f32 %v1377_v40, %v889_v53  ;;  %vm902_vm8 = vweird.f32 %v1379_v54 }
 0x1d5   :  { %1380 = vrsqrt.f32 %v874_v56  ;;  %v955_v60 = vsel %vm947_vm5, %v943_v51, %v951_v55  ;;  %vm903_vm11 = vmor %vm901_vm10, %vm902_vm8  ;;  %vm911_vm14 = vweird.f32 %v874_v56 }
 0x1d6   :  { %v897_v62 = vmul.f32 %v1379_v54, %v896_v57  ;;  %v894_v63 = vsel %vm893_vm7, %v1377_v40, %v890_v58  ;;  %959 = vst [vmem:[%s1768_s5] sm:$0xff] %v955_v60 }
 0x1d7   :  { %v916_v0 = vmul.f32 %v894_v63, %v868_v59 }
 0x1d8   :  { %v898_v1 = vmul.f32 0.5, %v897_v62  ;;  %v931_v2 = vpop.permute.xlu2 %930 }
 0x1d9   :  { %v944_v3 = vadd.f32 %v931_v2, %v916_v0 }
 0x1da   :  { %v899_v4 = vsub.f32 1.5, %v898_v1 }
 0x1db   :  { %v1381_v5 = vpop.eup %1380  ;;  %vm948_vm9 = vcmp.gt.f32.partialorder %v944_v3, 0.0  ;;  %v952_v6 = vmul.f32 0.01, %v944_v3 }
 0x1dc   :  { %v900_v7 = vmul.f32 %v1379_v54, %v899_v4  ;;  %v906_v8 = vmul.f32 %v1381_v5, %v874_v56  ;;  %vm912_vm12 = vweird.f32 %v1381_v5 }
 0x1dd   :  { %v956_v10 = vsel %vm948_vm9, %v944_v3, %v952_v6  ;;  %vm913_vm15 = vmor %vm911_vm14, %vm912_vm12 }
 0x1de   :  { %v904_v11 = vsel %vm903_vm11, %v1379_v54, %v900_v7  ;;  %v907_v12 = vmul.f32 %v1381_v5, %v906_v8  ;;  %960 = vst [vmem:[%s1768_s5 + $0x8] sm:$0xff] %v956_v10 }
 0x1df   :  { %v917_v13 = vmul.f32 %v904_v11, %v869_v9 }
 0x1e0   :  { %v908_v15 = vmul.f32 0.5, %v907_v12 }
 0x1e1   :  { %v945_v16 = vadd.f32 %v936_v14, %v917_v13 }
 0x1e2   :  { %v909_v18 = vsub.f32 1.5, %v908_v15 }
 0x1e3   :  { %vm949_vm13 = vcmp.gt.f32.partialorder %v945_v16, 0.0  ;;  %v953_v19 = vmul.f32 0.01, %v945_v16 }
 0x1e4   :  { %v910_v20 = vmul.f32 %v1381_v5, %v909_v18 }
 0x1e5   :  { %v957_v22 = vsel %vm949_vm13, %v945_v16, %v953_v19 }
 0x1e6   :  { %v914_v23 = vsel %vm913_vm15, %v1381_v5, %v910_v20  ;;  %961 = vst [vmem:[%s1768_s5 + $0x10] sm:$0xff] %v957_v22 }
 0x1e7   :  { %v918_v24 = vmul.f32 %v914_v23, %v870_v17 }
 0x1e9   :  { %v946_v27 = vadd.f32 %v941_v26, %v918_v24 }
 0x1eb   :  { %vm950_vm0 = vcmp.gt.f32.partialorder %v946_v27, 0.0  ;;  %v954_v28 = vmul.f32 0.01, %v946_v27 }
 0x1ed   :  { %v958_v29 = vsel %vm950_vm0, %v946_v27, %v954_v28 }
 0x1ee   :  { %962 = vst [vmem:[%s1768_s5 + $0x18] sm:$0xff] %v958_v29 }

// kernel: vae_fd_forward.33
= control target key start
LH: loop header
LB: loop body
LE: loop exit
PB: predicated region body
PF: predicated region fallthrough
CT: control target
= control target key end

     0   :  { %vm1014_vm0 = vcmask 1041408   ;;  %vm1016_vm1 = vcmask 1045508   ;;  %vm1018_vm2 = vcmask 1043456   ;;  %s2490_s1 = inlined_call_operand.vmem [shape: bf16[512,512], index: 1, kind: input, shape index: {}]   ;;  %s2491_s0 = inlined_call_operand.vmem [shape: bf16[2,512], index: 0, kind: input, shape index: {}]   ;;  %s2492_s2 = inlined_call_operand.vmem [shape: f32[2,1], index: 2, kind: input, shape index: {}]   ;;  %s2493_s3 = inlined_call_operand.vmem [shape: f32[2,512], index: 3, kind: output, shape index: {}]  }
   0x1   :  { %v1140_v0 = vld [vmem:[%s2490_s1 + $0xe0] sm:$0xf]  ;;  %v1568_v1 = vld [vmem:[%s2490_s1 + $0xec] sm:$0xf0] }
   0x2   :  { %v1268_v2 = vld [vmem:[%s2490_s1 + $0x1e0] sm:$0xf]  ;;  %v1141_v3 = vor.u32 %v1568_v1, %v1140_v0  ;;  %v1600_v4 = vld [vmem:[%s2490_s1 + $0x1ec] sm:$0xf0] }
   0x3   :  { %v1396_v5 = vld [vmem:[%s2490_s1 + $0x2e0] sm:$0xf]  ;;  %v1632_v6 = vld [vmem:[%s2490_s1 + $0x2ec] sm:$0xf0]  ;;  %v1269_v7 = vor.u32 %v1600_v4, %v1268_v2 }
   0x4   :  { %v1397_v8 = vor.u32 %v1632_v6, %v1396_v5  ;;  %v1524_v9 = vld [vmem:[%s2490_s1 + $0x3e0] sm:$0xf]  ;;  %v1664_v10 = vld [vmem:[%s2490_s1 + $0x3ec] sm:$0xf0]  ;;  %799 = vmatpush.bf16.msra.mxu0 %v1141_v3 }
   0x5   :  { %v1124_v11 = vld [vmem:[%s2490_s1 + $0xc0] sm:$0xf]  ;;  %v1525_v12 = vor.u32 %v1664_v10, %v1524_v9  ;;  %v1564_v13 = vld [vmem:[%s2490_s1 + $0xcc] sm:$0xf0]  ;;  %812 = vmatpush.bf16.msra.mxu1 %v1269_v7 }
   0x6   :  { %v1252_v14 = vld [vmem:[%s2490_s1 + $0x1c0] sm:$0xf]  ;;  %v1596_v15 = vld [vmem:[%s2490_s1 + $0x1cc] sm:$0xf0]  ;;  %825 = vmatpush.bf16.msra.mxu2 %v1397_v8  ;;  %v1125_v16 = vor.u32 %v1564_v13, %v1124_v11 }
   0x7   :  { %v1253_v17 = vor.u32 %v1596_v15, %v1252_v14  ;;  %v1380_v18 = vld [vmem:[%s2490_s1 + $0x2c0] sm:$0xf]  ;;  %v1628_v19 = vld [vmem:[%s2490_s1 + $0x2cc] sm:$0xf0]  ;;  %838 = vmatpush.bf16.msra.mxu3 %v1525_v12 }
   0x8   :  { %v1508_v20 = vld [vmem:[%s2490_s1 + $0x3c0] sm:$0xf]  ;;  %v1381_v21 = vor.u32 %v1628_v19, %v1380_v18  ;;  %v1660_v22 = vld [vmem:[%s2490_s1 + $0x3cc] sm:$0xf0]  ;;  %800 = vmatpush.bf16.msra.mxu0 %v1125_v16 }
   0x9   :  { %v1108_v23 = vld [vmem:[%s2490_s1 + $0xa0] sm:$0xf]  ;;  %v1560_v24 = vld [vmem:[%s2490_s1 + $0xac] sm:$0xf0]  ;;  %v1509_v25 = vor.u32 %v1660_v22, %v1508_v20  ;;  %813 = vmatpush.bf16.msra.mxu1 %v1253_v17 }
   0xa   :  { %v1236_v26 = vld [vmem:[%s2490_s1 + $0x1a0] sm:$0xf]  ;;  %v1592_v27 = vld [vmem:[%s2490_s1 + $0x1ac] sm:$0xf0]  ;;  %v1109_v29 = vor.u32 %v1560_v24, %v1108_v23  ;;  %826 = vmatpush.bf16.msra.mxu2 %v1381_v21 }
   0xb   :  { %v1364_v28 = vld [vmem:[%s2490_s1 + $0x2a0] sm:$0xf]  ;;  %v1624_v30 = vld [vmem:[%s2490_s1 + $0x2ac] sm:$0xf0]  ;;  %v1237_v33 = vor.u32 %v1592_v27, %v1236_v26  ;;  %839 = vmatpush.bf16.msra.mxu3 %v1509_v25 }
   0xc   :  { %v1492_v31 = vld [vmem:[%s2490_s1 + $0x3a0] sm:$0xf]  ;;  %v1656_v32 = vld [vmem:[%s2490_s1 + $0x3ac] sm:$0xf0]  ;;  %v1365_v34 = vor.u32 %v1624_v30, %v1364_v28  ;;  %801 = vmatpush.bf16.msra.mxu0 %v1109_v29  ;;  %v1566_v28 = vld [vmem:[%s2490_s1 + $0xe4] sm:$0xf] }
   0xd   :  { %v1092_v35 = vld [vmem:[%s2490_s1 + $0x80] sm:$0xf]  ;;  %v1556_v36 = vld [vmem:[%s2490_s1 + $0x8c] sm:$0xf0]  ;;  %v1493_v38 = vor.u32 %v1656_v32, %v1492_v31  ;;  %814 = vmatpush.bf16.msra.mxu1 %v1237_v33  ;;  %v1142_v29 = vld [vmem:[%s2490_s1 + $0xf0] sm:$0xf0] }
   0xe   :  { %v1220_v37 = vld [vmem:[%s2490_s1 + $0x180] sm:$0xf]  ;;  %v1588_v39 = vld [vmem:[%s2490_s1 + $0x18c] sm:$0xf0]  ;;  %v1093_v44 = vor.u32 %v1556_v36, %v1092_v35  ;;  %827 = vmatpush.bf16.msra.mxu2 %v1365_v34  ;;  %v1598_v30 = vld [vmem:[%s2490_s1 + $0x1e4] sm:$0xf] }
   0xf   :  { %v1348_v40 = vld [vmem:[%s2490_s1 + $0x280] sm:$0xf]  ;;  %v1620_v41 = vld [vmem:[%s2490_s1 + $0x28c] sm:$0xf0]  ;;  %v1221_v45 = vor.u32 %v1588_v39, %v1220_v37  ;;  %840 = vmatpush.bf16.msra.mxu3 %v1493_v38  ;;  %v1270_v32 = vld [vmem:[%s2490_s1 + $0x1f0] sm:$0xf0] }
  0x10   :  { %v1476_v42 = vld [vmem:[%s2490_s1 + $0x380] sm:$0xf]  ;;  %v1652_v43 = vld [vmem:[%s2490_s1 + $0x38c] sm:$0xf0]  ;;  %v1349_v46 = vor.u32 %v1620_v41, %v1348_v40  ;;  %802 = vmatpush.bf16.msra.mxu0 %v1093_v44  ;;  %v1630_v33 = vld [vmem:[%s2490_s1 + $0x2e4] sm:$0xf]  ;;  %v1145_v40 = vor.u32 %v1566_v28, %v1142_v29  ;;  %v1273_v41 = vor.u32 %v1598_v30, %v1270_v32 }
  0x11   :  { %v1076_v47 = vld [vmem:[%s2490_s1 + $0x60] sm:$0xf]  ;;  %v1552_v48 = vld [vmem:[%s2490_s1 + $0x6c] sm:$0xf0]  ;;  %v1477_v50 = vor.u32 %v1652_v43, %v1476_v42  ;;  %815 = vmatpush.bf16.msra.mxu1 %v1221_v45  ;;  %v1398_v34 = vld [vmem:[%s2490_s1 + $0x2f0] sm:$0xf0] }
  0x12   :  { %v1204_v49 = vld [vmem:[%s2490_s1 + $0x160] sm:$0xf]  ;;  %v1584_v51 = vld [vmem:[%s2490_s1 + $0x16c] sm:$0xf0]  ;;  %v1077_v56 = vor.u32 %v1552_v48, %v1076_v47  ;;  %828 = vmatpush.bf16.msra.mxu2 %v1349_v46  ;;  %v1662_v37 = vld [vmem:[%s2490_s1 + $0x3e4] sm:$0xf]  ;;  %v1401_v42 = vor.u32 %v1630_v33, %v1398_v34 }
  0x13   :  { %v1332_v52 = vld [vmem:[%s2490_s1 + $0x260] sm:$0xf]  ;;  %v1616_v53 = vld [vmem:[%s2490_s1 + $0x26c] sm:$0xf0]  ;;  %v1205_v57 = vor.u32 %v1584_v51, %v1204_v49  ;;  %841 = vmatpush.bf16.msra.mxu3 %v1477_v50  ;;  %v1526_v38 = vld [vmem:[%s2490_s1 + $0x3f0] sm:$0xf0] }
  0x14   :  { %v1460_v54 = vld [vmem:[%s2490_s1 + $0x360] sm:$0xf]  ;;  %v1648_v55 = vld [vmem:[%s2490_s1 + $0x36c] sm:$0xf0]  ;;  %v1333_v58 = vor.u32 %v1616_v53, %v1332_v52  ;;  %803 = vmatpush.bf16.msra.mxu0 %v1077_v56  ;;  %v1562_v43 = vld [vmem:[%s2490_s1 + $0xc4] sm:$0xf]  ;;  %v1529_v46 = vor.u32 %v1662_v37, %v1526_v38 }
  0x15   :  { %v1060_v59 = vld [vmem:[%s2490_s1 + $0x40] sm:$0xf]  ;;  %v1548_v60 = vld [vmem:[%s2490_s1 + $0x4c] sm:$0xf0]  ;;  %v1461_v62 = vor.u32 %v1648_v55, %v1460_v54  ;;  %816 = vmatpush.bf16.msra.mxu1 %v1205_v57  ;;  %v1126_v44 = vld [vmem:[%s2490_s1 + $0xd0] sm:$0xf0] }
  0x16   :  { %v1188_v61 = vld [vmem:[%s2490_s1 + $0x140] sm:$0xf]  ;;  %v1580_v63 = vld [vmem:[%s2490_s1 + $0x14c] sm:$0xf0]  ;;  %v1061_v4 = vor.u32 %v1548_v60, %v1060_v59  ;;  %829 = vmatpush.bf16.msra.mxu2 %v1333_v58  ;;  %v1594_v45 = vld [vmem:[%s2490_s1 + $0x1c4] sm:$0xf]  ;;  %v1129_v53 = vor.u32 %v1562_v43, %v1126_v44 }
  0x17   :  { %v1316_v0 = vld [vmem:[%s2490_s1 + $0x240] sm:$0xf]  ;;  %v1612_v1 = vld [vmem:[%s2490_s1 + $0x24c] sm:$0xf0]  ;;  %v1189_v5 = vor.u32 %v1580_v63, %v1188_v61  ;;  %842 = vmatpush.bf16.msra.mxu3 %v1461_v62  ;;  %v1254_v47 = vld [vmem:[%s2490_s1 + $0x1d0] sm:$0xf0] }
  0x18   :  { %v1444_v2 = vld [vmem:[%s2490_s1 + $0x340] sm:$0xf]  ;;  %v1644_v3 = vld [vmem:[%s2490_s1 + $0x34c] sm:$0xf0]  ;;  %v1317_v6 = vor.u32 %v1612_v1, %v1316_v0  ;;  %804 = vmatpush.bf16.msra.mxu0 %v1061_v4  ;;  %v1626_v48 = vld [vmem:[%s2490_s1 + $0x2c4] sm:$0xf]  ;;  %v1257_v54 = vor.u32 %v1594_v45, %v1254_v47 }
  0x19   :  { %v1044_v7 = vld [vmem:[%s2490_s1 + $0x20] sm:$0xf]  ;;  %v1544_v8 = vld [vmem:[%s2490_s1 + $0x2c] sm:$0xf0]  ;;  %v1445_v10 = vor.u32 %v1644_v3, %v1444_v2  ;;  %817 = vmatpush.bf16.msra.mxu1 %v1189_v5  ;;  %v1382_v49 = vld [vmem:[%s2490_s1 + $0x2d0] sm:$0xf0] }
  0x1a   :  { %v1172_v9 = vld [vmem:[%s2490_s1 + $0x120] sm:$0xf]  ;;  %v1576_v11 = vld [vmem:[%s2490_s1 + $0x12c] sm:$0xf0]  ;;  %v1045_v16 = vor.u32 %v1544_v8, %v1044_v7  ;;  %830 = vmatpush.bf16.msra.mxu2 %v1317_v6  ;;  %v1658_v50 = vld [vmem:[%s2490_s1 + $0x3c4] sm:$0xf]  ;;  %v1385_v55 = vor.u32 %v1626_v48, %v1382_v49 }
  0x1b   :  { %v1300_v12 = vld [vmem:[%s2490_s1 + $0x220] sm:$0xf]  ;;  %v1608_v13 = vld [vmem:[%s2490_s1 + $0x22c] sm:$0xf0]  ;;  %v1173_v19 = vor.u32 %v1576_v11, %v1172_v9  ;;  %843 = vmatpush.bf16.msra.mxu3 %v1445_v10  ;;  %v1510_v51 = vld [vmem:[%s2490_s1 + $0x3d0] sm:$0xf0] }
  0x1c   :  { %v1428_v14 = vld [vmem:[%s2490_s1 + $0x320] sm:$0xf]  ;;  %v1640_v15 = vld [vmem:[%s2490_s1 + $0x32c] sm:$0xf0]  ;;  %v1301_v20 = vor.u32 %v1608_v13, %v1300_v12  ;;  %805 = vmatpush.bf16.msra.mxu0 %v1045_v16  ;;  %v1558_v56 = vld [vmem:[%s2490_s1 + $0xa4] sm:$0xf]  ;;  %v1513_v59 = vor.u32 %v1658_v50, %v1510_v51 }
  0x1d   :  { %v1028_v17 = vld [vmem:[%s2490_s1] sm:$0xf]  ;;  %v1540_v18 = vld [vmem:[%s2490_s1 + $0xc] sm:$0xf0]  ;;  %v1429_v24 = vor.u32 %v1640_v15, %v1428_v14  ;;  %818 = vmatpush.bf16.msra.mxu1 %v1173_v19  ;;  %v1110_v57 = vld [vmem:[%s2490_s1 + $0xb0] sm:$0xf0] }
  0x1e   :  { %v1156_v21 = vld [vmem:[%s2490_s1 + $0x100] sm:$0xf]  ;;  %v1572_v22 = vld [vmem:[%s2490_s1 + $0x10c] sm:$0xf0]  ;;  %v1029_v31 = vor.u32 %v1540_v18, %v1028_v17  ;;  %831 = vmatpush.bf16.msra.mxu2 %v1301_v20  ;;  %v1590_v58 = vld [vmem:[%s2490_s1 + $0x1a4] sm:$0xf]  ;;  %v1113_v1 = vor.u32 %v1558_v56, %v1110_v57 }
  0x1f   :  { %v1284_v23 = vld [vmem:[%s2490_s1 + $0x200] sm:$0xf]  ;;  %v1604_v25 = vld [vmem:[%s2490_s1 + $0x20c] sm:$0xf0]  ;;  %v1157_v35 = vor.u32 %v1572_v22, %v1156_v21  ;;  %844 = vmatpush.bf16.msra.mxu3 %v1429_v24  ;;  %v1238_v60 = vld [vmem:[%s2490_s1 + $0x1b0] sm:$0xf0] }
  0x20   :  { %v1412_v26 = vld [vmem:[%s2490_s1 + $0x300] sm:$0xf]  ;;  %v1636_v27 = vld [vmem:[%s2490_s1 + $0x30c] sm:$0xf0]  ;;  %v1285_v36 = vor.u32 %v1604_v25, %v1284_v23  ;;  %806 = vmatpush.bf16.msra.mxu0 %v1029_v31  ;;  %v1622_v61 = vld [vmem:[%s2490_s1 + $0x2a4] sm:$0xf]  ;;  %v1241_v3 = vor.u32 %v1590_v58, %v1238_v60 }
  0x21   :  { %v1413_v39 = vor.u32 %v1636_v27, %v1412_v26  ;;  %819 = vmatpush.bf16.msra.mxu1 %v1157_v35  ;;  %v14_v52 = vld [vmem:[%s2491_s0] sm:$0xf]  ;;  %v1366_v62 = vld [vmem:[%s2490_s1 + $0x2b0] sm:$0xf0]  ;;  %v1654_v63 = vld [vmem:[%s2490_s1 + $0x3a4] sm:$0xf] }
  0x22   :  { %832 = vmatpush.bf16.msra.mxu2 %v1285_v36  ;;  %150 = vst [vmem:[#allocation1] ss:$9 sm:$0xff] %v14_v52  ;;  %v1494_v0 = vld [vmem:[%s2490_s1 + $0x3b0] sm:$0xf0]  ;;  %v1554_v2 = vld [vmem:[%s2490_s1 + $0x84] sm:$0xf]  ;;  %v1369_v4 = vor.u32 %v1622_v61, %v1366_v62 }
  0x23   :  { %845 = vmatpush.bf16.msra.mxu3 %v1413_v39  ;;  %v1094_v5 = vld [vmem:[%s2490_s1 + $0x90] sm:$0xf0]  ;;  %v1586_v6 = vld [vmem:[%s2490_s1 + $0x184] sm:$0xf]  ;;  %v1497_v8 = vor.u32 %v1654_v63, %v1494_v0  ;;  %v1668_v30 = vmov 0  }
  0x24   :  { %851 = vmatpush.bf16.msrb.mxu0 %v1145_v40  ;;  %v1222_v7 = vld [vmem:[%s2490_s1 + $0x190] sm:$0xf0]  ;;  %v1618_v9 = vld [vmem:[%s2490_s1 + $0x284] sm:$0xf]  ;;  %v1097_v15 = vor.u32 %v1554_v2, %v1094_v5  ;;  %1667 = vset.pattern.permute.xlu0 %v1668_v30  ;;  %v1276_v5 = vld [vmem:[%s2490_s1 + $0x1e8] sm:$0xf] }
  0x25   :  { %864 = vmatpush.bf16.msrb.mxu1 %v1273_v41  ;;  %v1350_v10 = vld [vmem:[%s2490_s1 + $0x290] sm:$0xf0]  ;;  %v1650_v11 = vld [vmem:[%s2490_s1 + $0x384] sm:$0xf]  ;;  %v1225_v19 = vor.u32 %v1586_v6, %v1222_v7  ;;  %v1601_v7 = vld [vmem:[%s2490_s1 + $0x1f4] sm:$0xf0] }
  0x26   :  { %877 = vmatpush.bf16.msrb.mxu2 %v1401_v42  ;;  %v1478_v12 = vld [vmem:[%s2490_s1 + $0x390] sm:$0xf0]  ;;  %v1550_v16 = vld [vmem:[%s2490_s1 + $0x64] sm:$0xf]  ;;  %v1353_v20 = vor.u32 %v1618_v9, %v1350_v10  ;;  %v1633_v9 = vld [vmem:[%s2490_s1 + $0x2f4] sm:$0xf0] }
  0x27   :  { %890 = vmatpush.bf16.msrb.mxu3 %v1529_v46  ;;  %v1078_v21 = vld [vmem:[%s2490_s1 + $0x70] sm:$0xf0]  ;;  %v1582_v22 = vld [vmem:[%s2490_s1 + $0x164] sm:$0xf]  ;;  %v1481_v23 = vor.u32 %v1650_v11, %v1478_v12  ;;  %v1532_v12 = vld [vmem:[%s2490_s1 + $0x3e8] sm:$0xf] }
  0x28   :  { %852 = vmatpush.bf16.msrb.mxu0 %v1129_v53  ;;  %v1206_v24 = vld [vmem:[%s2490_s1 + $0x170] sm:$0xf0]  ;;  %v1614_v25 = vld [vmem:[%s2490_s1 + $0x264] sm:$0xf]  ;;  %v1081_v29 = vor.u32 %v1550_v16, %v1078_v21  ;;  %v1661_v30 = vld [vmem:[%s2490_s1 + $0x3d4] sm:$0xf0] }
  0x29   :  { %865 = vmatpush.bf16.msrb.mxu1 %v1257_v54  ;;  %v1980_v13 = vld [vmem:[#allocation1 + $0x12] sm:$0xff]  ;;  %v1982_v14 = vld [vmem:[#allocation1] sm:$0xff]  ;;  %v1990_v18 = vld [vmem:[#allocation1 + $0x9] sm:$0xff]  ;;  %v1209_v31 = vor.u32 %v1582_v22, %v1206_v24 }
  0x2a   :  { %878 = vmatpush.bf16.msrb.mxu2 %v1385_v55  ;;  %v1988_v17 = vld [vmem:[#allocation1 + $0x1b] sm:$0xff]  ;;  %v1334_v26 = vld [vmem:[%s2490_s1 + $0x270] sm:$0xf0]  ;;  %807 = vmatmul.bf16.vlgmr.msra.gmra.mxu0 %v1982_v14  ;;  %v1646_v27 = vld [vmem:[%s2490_s1 + $0x364] sm:$0xf] }
  0x2b   :  { %891 = vmatpush.bf16.msrb.mxu3 %v1513_v59  ;;  %833 = vmatmul.bf16.vlgmr.msra.gmra.mxu2 %v1980_v13  ;;  %v1462_v28 = vld [vmem:[%s2490_s1 + $0x370] sm:$0xf0]  ;;  %v1337_v32 = vor.u32 %v1614_v25, %v1334_v26  ;;  %v1546_v33 = vld [vmem:[%s2490_s1 + $0x44] sm:$0xf]  ;;  %v143_v54 = vld [vmem:[%s2492_s2] sm:$0x3] }
  0x2c   :  { %853 = vmatpush.bf16.msrb.mxu0 %v1113_v1  ;;  %846 = vmatmul.bf16.vlgmr.msra.gmra.mxu3 %v1988_v17  ;;  %v1062_v34 = vld [vmem:[%s2490_s1 + $0x50] sm:$0xf0]  ;;  %v1578_v35 = vld [vmem:[%s2490_s1 + $0x144] sm:$0xf]  ;;  %v1465_v36 = vor.u32 %v1646_v27, %v1462_v28  ;;  %v1132_v22 = vld [vmem:[%s2490_s1 + $0xc8] sm:$0xf] }
  0x2d   :  { %866 = vmatpush.bf16.msrb.mxu1 %v1241_v3  ;;  %v1190_v37 = vld [vmem:[%s2490_s1 + $0x150] sm:$0xf0]  ;;  %v1610_v38 = vld [vmem:[%s2490_s1 + $0x244] sm:$0xf]  ;;  %v1065_v42 = vor.u32 %v1546_v33, %v1062_v34  ;;  %146 = vperm.xlu0 %1667, %v143_v54   ;;  %v1148_v3 = vld [vmem:[%s2490_s1 + $0xe8] sm:$0xf] }
  0x2e   :  { %879 = vmatpush.bf16.msrb.mxu2 %v1369_v4  ;;  %820 = vmatmul.bf16.vlgmr.msra.gmra.mxu1 %v1990_v18  ;;  %v1318_v39 = vld [vmem:[%s2490_s1 + $0x250] sm:$0xf0]  ;;  %v1642_v40 = vld [vmem:[%s2490_s1 + $0x344] sm:$0xf]  ;;  %v1193_v43 = vor.u32 %v1578_v35, %v1190_v37  ;;  %v1569_v4 = vld [vmem:[%s2490_s1 + $0xf4] sm:$0xf0] }
  0x2f   :  { %892 = vmatpush.bf16.msrb.mxu3 %v1497_v8  ;;  %v1446_v41 = vld [vmem:[%s2490_s1 + $0x350] sm:$0xf0]  ;;  %v1321_v44 = vor.u32 %v1610_v38, %v1318_v39  ;;  %v1542_v45 = vld [vmem:[%s2490_s1 + $0x24] sm:$0xf]  ;;  %v1404_v8 = vld [vmem:[%s2490_s1 + $0x2e8] sm:$0xf] }
  0x30   :  { %854 = vmatpush.bf16.msrb.mxu0 %v1097_v15  ;;  %v1046_v46 = vld [vmem:[%s2490_s1 + $0x30] sm:$0xf0]  ;;  %v1574_v47 = vld [vmem:[%s2490_s1 + $0x124] sm:$0xf]  ;;  %v1449_v48 = vor.u32 %v1642_v40, %v1446_v41  ;;  %v1665_v15 = vld [vmem:[%s2490_s1 + $0x3f4] sm:$0xf0]  ;;  %v1405_v21 = vor.u32 %v1633_v9, %v1404_v8 }
  0x31   :  { %867 = vmatpush.bf16.msrb.mxu1 %v1225_v19  ;;  %v1174_v49 = vld [vmem:[%s2490_s1 + $0x130] sm:$0xf0]  ;;  %v1606_v50 = vld [vmem:[%s2490_s1 + $0x224] sm:$0xf]  ;;  %v1049_v55 = vor.u32 %v1542_v45, %v1046_v46  ;;  %v1149_v19 = vor.u32 %v1569_v4, %v1148_v3  ;;  %v1260_v24 = vld [vmem:[%s2490_s1 + $0x1c8] sm:$0xf]  ;;  %v1533_v25 = vor.u32 %v1665_v15, %v1532_v12 }
  0x32   :  { %880 = vmatpush.bf16.msrb.mxu2 %v1353_v20  ;;  %v1302_v51 = vld [vmem:[%s2490_s1 + $0x230] sm:$0xf0]  ;;  %v1638_v52 = vld [vmem:[%s2490_s1 + $0x324] sm:$0xf]  ;;  %v1177_v58 = vor.u32 %v1574_v47, %v1174_v49  ;;  %v1277_v20 = vor.u32 %v1601_v7, %v1276_v5  ;;  %v1597_v26 = vld [vmem:[%s2490_s1 + $0x1d4] sm:$0xf0] }
  0x33   :  { %893 = vmatpush.bf16.msrb.mxu3 %v1481_v23  ;;  %v1430_v53 = vld [vmem:[%s2490_s1 + $0x330] sm:$0xf0]  ;;  %v1538_v56 = vld [vmem:[%s2490_s1 + $0x4] sm:$0xf]  ;;  %v1305_v59 = vor.u32 %v1606_v50, %v1302_v51  ;;  %v1565_v23 = vld [vmem:[%s2490_s1 + $0xd4] sm:$0xf0] }
  0x34   :  { %855 = vmatpush.bf16.msrb.mxu0 %v1081_v29  ;;  %v1030_v57 = vld [vmem:[%s2490_s1 + $0x10] sm:$0xf0]  ;;  %v1570_v60 = vld [vmem:[%s2490_s1 + $0x104] sm:$0xf]  ;;  %v1433_v63 = vor.u32 %v1638_v52, %v1430_v53  ;;  %v1388_v27 = vld [vmem:[%s2490_s1 + $0x2c8] sm:$0xf] }
  0x35   :  { %868 = vmatpush.bf16.msrb.mxu1 %v1209_v31  ;;  %v1158_v61 = vld [vmem:[%s2490_s1 + $0x110] sm:$0xf0]  ;;  %v1602_v62 = vld [vmem:[%s2490_s1 + $0x204] sm:$0xf]  ;;  %v1033_v6 = vor.u32 %v1538_v56, %v1030_v57  ;;  %v1629_v28 = vld [vmem:[%s2490_s1 + $0x2d4] sm:$0xf0]  ;;  %v1133_v31 = vor.u32 %v1565_v23, %v1132_v22 }
  0x36   :  { %881 = vmatpush.bf16.msrb.mxu2 %v1337_v32  ;;  %v1286_v0 = vld [vmem:[%s2490_s1 + $0x210] sm:$0xf0]  ;;  %v1634_v1 = vld [vmem:[%s2490_s1 + $0x304] sm:$0xf]  ;;  %v1161_v10 = vor.u32 %v1570_v60, %v1158_v61  ;;  %v1516_v29 = vld [vmem:[%s2490_s1 + $0x3c8] sm:$0xf]  ;;  %v1261_v32 = vor.u32 %v1597_v26, %v1260_v24  ;;  %v1389_v33 = vor.u32 %v1629_v28, %v1388_v27 }
  0x37   :  { %894 = vmatpush.bf16.msrb.mxu3 %v1465_v36  ;;  %v1414_v2 = vld [vmem:[%s2490_s1 + $0x310] sm:$0xf0]  ;;  %v1289_v11 = vor.u32 %v1602_v62, %v1286_v0  ;;  %v1116_v34 = vld [vmem:[%s2490_s1 + $0xa8] sm:$0xf]  ;;  %v1561_v35 = vld [vmem:[%s2490_s1 + $0xb4] sm:$0xf0]  ;;  %v1517_v37 = vor.u32 %v1661_v30, %v1516_v29 }
  0x38   :  { %856 = vmatpush.bf16.msrb.mxu0 %v1065_v42  ;;  %v1417_v16 = vor.u32 %v1634_v1, %v1414_v2  ;;  %v1244_v36 = vld [vmem:[%s2490_s1 + $0x1a8] sm:$0xf]  ;;  %v1593_v38 = vld [vmem:[%s2490_s1 + $0x1b4] sm:$0xf0] }
  0x39   :  { %869 = vmatpush.bf16.msrb.mxu1 %v1193_v43  ;;  %v1372_v39 = vld [vmem:[%s2490_s1 + $0x2a8] sm:$0xf]  ;;  %v1625_v40 = vld [vmem:[%s2490_s1 + $0x2b4] sm:$0xf0]  ;;  %v1117_v43 = vor.u32 %v1561_v35, %v1116_v34 }
  0x3a   :  { %882 = vmatpush.bf16.msrb.mxu2 %v1321_v44  ;;  %v1500_v41 = vld [vmem:[%s2490_s1 + $0x3a8] sm:$0xf]  ;;  %v1657_v42 = vld [vmem:[%s2490_s1 + $0x3b4] sm:$0xf0]  ;;  %v1245_v44 = vor.u32 %v1593_v38, %v1244_v36  ;;  %v1373_v45 = vor.u32 %v1625_v40, %v1372_v39 }
  0x3b   :  { %895 = vmatpush.bf16.msrb.mxu3 %v1449_v48  ;;  %v1100_v46 = vld [vmem:[%s2490_s1 + $0x88] sm:$0xf]  ;;  %v1557_v47 = vld [vmem:[%s2490_s1 + $0x94] sm:$0xf0]  ;;  %v1501_v49 = vor.u32 %v1657_v42, %v1500_v41 }
  0x3c   :  { %857 = vmatpush.bf16.msrb.mxu0 %v1049_v55  ;;  %v1228_v48 = vld [vmem:[%s2490_s1 + $0x188] sm:$0xf]  ;;  %v1589_v50 = vld [vmem:[%s2490_s1 + $0x194] sm:$0xf0]  ;;  %v1101_v55 = vor.u32 %v1557_v47, %v1100_v46  ;;  %v1278_v47 = vld [vmem:[%s2490_s1 + $0x1f8] sm:$0xf0] }
  0x3d   :  { %870 = vmatpush.bf16.msrb.mxu1 %v1177_v58  ;;  %v1356_v51 = vld [vmem:[%s2490_s1 + $0x288] sm:$0xf]  ;;  %v1621_v52 = vld [vmem:[%s2490_s1 + $0x294] sm:$0xf0]  ;;  %v1229_v56 = vor.u32 %v1589_v50, %v1228_v48  ;;  %v1631_v48 = vld [vmem:[%s2490_s1 + $0x2ec] sm:$0xf] }
  0x3e   :  { %883 = vmatpush.bf16.msrb.mxu2 %v1305_v59  ;;  %v1484_v53 = vld [vmem:[%s2490_s1 + $0x388] sm:$0xf]  ;;  %v1653_v54 = vld [vmem:[%s2490_s1 + $0x394] sm:$0xf0]  ;;  %v1357_v57 = vor.u32 %v1621_v52, %v1356_v51  ;;  %v1663_v52 = vld [vmem:[%s2490_s1 + $0x3ec] sm:$0xf] }
  0x3f   :  { %896 = vmatpush.bf16.msrb.mxu3 %v1433_v63  ;;  %v1084_v58 = vld [vmem:[%s2490_s1 + $0x68] sm:$0xf]  ;;  %v1553_v59 = vld [vmem:[%s2490_s1 + $0x74] sm:$0xf0]  ;;  %v1485_v61 = vor.u32 %v1653_v54, %v1484_v53  ;;  %v1534_v53 = vld [vmem:[%s2490_s1 + $0x3f8] sm:$0xf0] }
  0x40   :  { %858 = vmatpush.bf16.msrb.mxu0 %v1033_v6  ;;  %v1212_v60 = vld [vmem:[%s2490_s1 + $0x168] sm:$0xf]  ;;  %v1585_v62 = vld [vmem:[%s2490_s1 + $0x174] sm:$0xf0]  ;;  %v1085_v3 = vor.u32 %v1553_v59, %v1084_v58  ;;  %v1563_v58 = vld [vmem:[%s2490_s1 + $0xcc] sm:$0xf] }
  0x41   :  { %871 = vmatpush.bf16.msrb.mxu1 %v1161_v10  ;;  %v1340_v63 = vld [vmem:[%s2490_s1 + $0x268] sm:$0xf]  ;;  %v1617_v0 = vld [vmem:[%s2490_s1 + $0x274] sm:$0xf0]  ;;  %v1213_v4 = vor.u32 %v1585_v62, %v1212_v60  ;;  %v1134_v59 = vld [vmem:[%s2490_s1 + $0xd8] sm:$0xf0] }
  0x42   :  { %884 = vmatpush.bf16.msrb.mxu2 %v1289_v11  ;;  %v1468_v1 = vld [vmem:[%s2490_s1 + $0x368] sm:$0xf]  ;;  %v1649_v2 = vld [vmem:[%s2490_s1 + $0x374] sm:$0xf0]  ;;  %v1341_v5 = vor.u32 %v1617_v0, %v1340_v63  ;;  %v1595_v60 = vld [vmem:[%s2490_s1 + $0x1cc] sm:$0xf] }
  0x43   :  { %897 = vmatpush.bf16.msrb.mxu3 %v1417_v16  ;;  %859 = vmatmul.bf16.vlgmr.msrb.gmra.mxu0 %v1982_v14  ;;  %v1068_v6 = vld [vmem:[%s2490_s1 + $0x48] sm:$0xf]  ;;  %v1549_v7 = vld [vmem:[%s2490_s1 + $0x54] sm:$0xf0]  ;;  %v1469_v9 = vor.u32 %v1649_v2, %v1468_v1  ;;  %v1262_v62 = vld [vmem:[%s2490_s1 + $0x1d8] sm:$0xf0] }
  0x44   :  { %903 = vmatpush.bf16.msra.mxu0 %v1149_v19  ;;  %872 = vmatmul.bf16.vlgmr.msrb.gmra.mxu1 %v1990_v18  ;;  %v1196_v8 = vld [vmem:[%s2490_s1 + $0x148] sm:$0xf]  ;;  %v1581_v10 = vld [vmem:[%s2490_s1 + $0x154] sm:$0xf0]  ;;  %v1069_v19 = vor.u32 %v1549_v7, %v1068_v6  ;;  %v1627_v63 = vld [vmem:[%s2490_s1 + $0x2cc] sm:$0xf] }
  0x45   :  { %916 = vmatpush.bf16.msra.mxu1 %v1277_v20  ;;  %885 = vmatmul.bf16.vlgmr.msrb.gmra.mxu2 %v1980_v13  ;;  %v1324_v11 = vld [vmem:[%s2490_s1 + $0x248] sm:$0xf]  ;;  %v1613_v12 = vld [vmem:[%s2490_s1 + $0x254] sm:$0xf0]  ;;  %v1197_v20 = vor.u32 %v1581_v10, %v1196_v8  ;;  %v1390_v0 = vld [vmem:[%s2490_s1 + $0x2d8] sm:$0xf0] }
  0x46   :  { %929 = vmatpush.bf16.msra.mxu2 %v1405_v21  ;;  %898 = vmatmul.bf16.vlgmr.msrb.gmra.mxu3 %v1988_v17  ;;  %v1452_v15 = vld [vmem:[%s2490_s1 + $0x348] sm:$0xf]  ;;  %v1645_v16 = vld [vmem:[%s2490_s1 + $0x354] sm:$0xf0]  ;;  %v1325_v21 = vor.u32 %v1613_v12, %v1324_v11  ;;  %v1659_v1 = vld [vmem:[%s2490_s1 + $0x3cc] sm:$0xf] }
  0x47   :  { %942 = vmatpush.bf16.msra.mxu3 %v1533_v25  ;;  %v1052_v22 = vld [vmem:[%s2490_s1 + $0x28] sm:$0xf]  ;;  %v1545_v23 = vld [vmem:[%s2490_s1 + $0x34] sm:$0xf0]  ;;  %v1453_v25 = vor.u32 %v1645_v16, %v1452_v15  ;;  %v1518_v2 = vld [vmem:[%s2490_s1 + $0x3d8] sm:$0xf0] }
  0x48   :  { %904 = vmatpush.bf16.msra.mxu0 %v1133_v31  ;;  %v1180_v24 = vld [vmem:[%s2490_s1 + $0x128] sm:$0xf]  ;;  %v1577_v26 = vld [vmem:[%s2490_s1 + $0x134] sm:$0xf0]  ;;  %v1053_v31 = vor.u32 %v1545_v23, %v1052_v22  ;;  %v1559_v6 = vld [vmem:[%s2490_s1 + $0xac] sm:$0xf] }
  0x49   :  { %917 = vmatpush.bf16.msra.mxu1 %v1261_v32  ;;  %v1308_v27 = vld [vmem:[%s2490_s1 + $0x228] sm:$0xf]  ;;  %v1609_v28 = vld [vmem:[%s2490_s1 + $0x234] sm:$0xf0]  ;;  %v1181_v34 = vor.u32 %v1577_v26, %v1180_v24  ;;  %v1118_v7 = vld [vmem:[%s2490_s1 + $0xb8] sm:$0xf0] }
  0x4a   :  { %930 = vmatpush.bf16.msra.mxu2 %v1389_v33  ;;  %v1436_v29 = vld [vmem:[%s2490_s1 + $0x328] sm:$0xf]  ;;  %v1641_v30 = vld [vmem:[%s2490_s1 + $0x334] sm:$0xf0]  ;;  %v1309_v35 = vor.u32 %v1609_v28, %v1308_v27  ;;  %v1591_v8 = vld [vmem:[%s2490_s1 + $0x1ac] sm:$0xf] }
  0x4b   :  { %943 = vmatpush.bf16.msra.mxu3 %v1517_v37  ;;  %v1036_v32 = vld [vmem:[%s2490_s1 + $0x8] sm:$0xf]  ;;  %v1541_v33 = vld [vmem:[%s2490_s1 + $0x14] sm:$0xf0]  ;;  %v1437_v39 = vor.u32 %v1641_v30, %v1436_v29  ;;  %v1246_v10 = vld [vmem:[%s2490_s1 + $0x1b8] sm:$0xf0] }
  0x4c   :  { %905 = vmatpush.bf16.msra.mxu0 %v1117_v43  ;;  %v1164_v36 = vld [vmem:[%s2490_s1 + $0x108] sm:$0xf]  ;;  %v1573_v37 = vld [vmem:[%s2490_s1 + $0x114] sm:$0xf0]  ;;  %v1567_v43 = vld [vmem:[%s2490_s1 + $0xec] sm:$0xf]  ;;  %v1037_v46 = vor.u32 %v1541_v33, %v1036_v32 }
  0x4d   :  { %918 = vmatpush.bf16.msra.mxu1 %v1245_v44  ;;  %v1292_v38 = vld [vmem:[%s2490_s1 + $0x208] sm:$0xf]  ;;  %v1605_v40 = vld [vmem:[%s2490_s1 + $0x214] sm:$0xf0]  ;;  %v1150_v44 = vld [vmem:[%s2490_s1 + $0xf8] sm:$0xf0]  ;;  %v1165_v50 = vor.u32 %v1573_v37, %v1164_v36 }
  0x4e   :  { %931 = vmatpush.bf16.msra.mxu2 %v1373_v45  ;;  %v1420_v41 = vld [vmem:[%s2490_s1 + $0x308] sm:$0xf]  ;;  %v1637_v42 = vld [vmem:[%s2490_s1 + $0x314] sm:$0xf0]  ;;  %v1599_v45 = vld [vmem:[%s2490_s1 + $0x1ec] sm:$0xf]  ;;  %v1293_v51 = vor.u32 %v1605_v40, %v1292_v38 }
  0x4f   :  { %944 = vmatpush.bf16.msra.mxu3 %v1501_v49  ;;  %v1406_v49 = vld [vmem:[%s2490_s1 + $0x2f8] sm:$0xf0]  ;;  %v1421_v54 = vor.u32 %v1637_v42, %v1420_v41  ;;  %v1623_v11 = vld [vmem:[%s2490_s1 + $0x2ac] sm:$0xf] }
  0x50   :  { %906 = vmatpush.bf16.msra.mxu0 %v1101_v55  ;;  %v1153_v55 = vor.u32 %v1567_v43, %v1150_v44  ;;  %v1374_v12 = vld [vmem:[%s2490_s1 + $0x2b8] sm:$0xf0]  ;;  %v1655_v15 = vld [vmem:[%s2490_s1 + $0x3ac] sm:$0xf] }
  0x51   :  { %919 = vmatpush.bf16.msra.mxu1 %v1229_v56  ;;  %v1281_v56 = vor.u32 %v1599_v45, %v1278_v47  ;;  %v1502_v16 = vld [vmem:[%s2490_s1 + $0x3b8] sm:$0xf0]  ;;  %v1555_v22 = vld [vmem:[%s2490_s1 + $0x8c] sm:$0xf] }
  0x52   :  { %932 = vmatpush.bf16.msra.mxu2 %v1357_v57  ;;  %v1409_v57 = vor.u32 %v1631_v48, %v1406_v49  ;;  %v1102_v23 = vld [vmem:[%s2490_s1 + $0x98] sm:$0xf0]  ;;  %v1587_v24 = vld [vmem:[%s2490_s1 + $0x18c] sm:$0xf] }
  0x53   :  { %945 = vmatpush.bf16.msra.mxu3 %v1485_v61  ;;  %v1537_v61 = vor.u32 %v1663_v52, %v1534_v53  ;;  %v1230_v26 = vld [vmem:[%s2490_s1 + $0x198] sm:$0xf0]  ;;  %v1619_v27 = vld [vmem:[%s2490_s1 + $0x28c] sm:$0xf] }
  0x54   :  { %907 = vmatpush.bf16.msra.mxu0 %v1085_v3  ;;  %v1137_v3 = vor.u32 %v1563_v58, %v1134_v59  ;;  %v1358_v28 = vld [vmem:[%s2490_s1 + $0x298] sm:$0xf0]  ;;  %v1651_v29 = vld [vmem:[%s2490_s1 + $0x38c] sm:$0xf]  ;;  %v1233_v32 = vor.u32 %v1587_v24, %v1230_v26 }
  0x55   :  { %920 = vmatpush.bf16.msra.mxu1 %v1213_v4  ;;  %v1265_v4 = vor.u32 %v1595_v60, %v1262_v62  ;;  %v1486_v30 = vld [vmem:[%s2490_s1 + $0x398] sm:$0xf0]  ;;  %v1361_v33 = vor.u32 %v1619_v27, %v1358_v28  ;;  %v1583_v36 = vld [vmem:[%s2490_s1 + $0x16c] sm:$0xf] }
  0x56   :  { %933 = vmatpush.bf16.msra.mxu2 %v1341_v5  ;;  %v1393_v5 = vor.u32 %v1627_v63, %v1390_v0  ;;  %v1489_v37 = vor.u32 %v1651_v29, %v1486_v30  ;;  %v1214_v38 = vld [vmem:[%s2490_s1 + $0x178] sm:$0xf0]  ;;  %v1647_v41 = vld [vmem:[%s2490_s1 + $0x36c] sm:$0xf] }
  0x57   :  { %946 = vmatpush.bf16.msra.mxu3 %v1469_v9  ;;  %v1521_v9 = vor.u32 %v1659_v1, %v1518_v2  ;;  %v1342_v40 = vld [vmem:[%s2490_s1 + $0x278] sm:$0xf0]  ;;  %v1217_v44 = vor.u32 %v1583_v36, %v1214_v38  ;;  %v1579_v48 = vld [vmem:[%s2490_s1 + $0x14c] sm:$0xf] }
  0x58   :  { %908 = vmatpush.bf16.msra.mxu0 %v1069_v19  ;;  %v1121_v19 = vor.u32 %v1559_v6, %v1118_v7  ;;  %v1470_v42 = vld [vmem:[%s2490_s1 + $0x378] sm:$0xf0]  ;;  %v1643_v53 = vld [vmem:[%s2490_s1 + $0x34c] sm:$0xf] }
  0x59   :  { %921 = vmatpush.bf16.msra.mxu1 %v1197_v20  ;;  %v1249_v20 = vor.u32 %v1591_v8, %v1246_v10  ;;  %v1070_v47 = vld [vmem:[%s2490_s1 + $0x58] sm:$0xf0]  ;;  %v1473_v49 = vor.u32 %v1647_v41, %v1470_v42  ;;  %v1543_v58 = vld [vmem:[%s2490_s1 + $0x2c] sm:$0xf] }
  0x5a   :  { %934 = vmatpush.bf16.msra.mxu2 %v1325_v21  ;;  %v1377_v21 = vor.u32 %v1623_v11, %v1374_v12  ;;  %v1326_v52 = vld [vmem:[%s2490_s1 + $0x258] sm:$0xf0]  ;;  %v1575_v60 = vld [vmem:[%s2490_s1 + $0x12c] sm:$0xf] }
  0x5b   :  { %947 = vmatpush.bf16.msra.mxu3 %v1453_v25  ;;  %v1505_v25 = vor.u32 %v1655_v15, %v1502_v16  ;;  %v1054_v59 = vld [vmem:[%s2490_s1 + $0x38] sm:$0xf0]  ;;  %v1607_v63 = vld [vmem:[%s2490_s1 + $0x22c] sm:$0xf] }
  0x5c   :  { %909 = vmatpush.bf16.msra.mxu0 %v1053_v31  ;;  %v1105_v31 = vor.u32 %v1555_v22, %v1102_v23  ;;  %v1182_v62 = vld [vmem:[%s2490_s1 + $0x138] sm:$0xf0]  ;;  %v1639_v1 = vld [vmem:[%s2490_s1 + $0x32c] sm:$0xf] }
  0x5d   :  { %922 = vmatpush.bf16.msra.mxu1 %v1181_v34  ;;  %v1551_v34 = vld [vmem:[%s2490_s1 + $0x6c] sm:$0xf]  ;;  %v1310_v0 = vld [vmem:[%s2490_s1 + $0x238] sm:$0xf0] }
  0x5e   :  { %935 = vmatpush.bf16.msra.mxu2 %v1309_v35  ;;  %v1086_v35 = vld [vmem:[%s2490_s1 + $0x78] sm:$0xf0]  ;;  %v1539_v6 = vld [vmem:[%s2490_s1 + $0xc] sm:$0xf] }
  0x5f   :  { %948 = vmatpush.bf16.msra.mxu3 %v1437_v39  ;;  %v1615_v39 = vld [vmem:[%s2490_s1 + $0x26c] sm:$0xf]  ;;  %v1089_v43 = vor.u32 %v1551_v34, %v1086_v35  ;;  %v1438_v2 = vld [vmem:[%s2490_s1 + $0x338] sm:$0xf0] }
  0x60   :  { %910 = vmatpush.bf16.msra.mxu0 %v1037_v46  ;;  %v1345_v45 = vor.u32 %v1615_v39, %v1342_v40  ;;  %v1547_v46 = vld [vmem:[%s2490_s1 + $0x4c] sm:$0xf]  ;;  %v1038_v7 = vld [vmem:[%s2490_s1 + $0x18] sm:$0xf0] }
  0x61   :  { %923 = vmatpush.bf16.msra.mxu1 %v1165_v50  ;;  %v1198_v50 = vld [vmem:[%s2490_s1 + $0x158] sm:$0xf0]  ;;  %v1571_v8 = vld [vmem:[%s2490_s1 + $0x10c] sm:$0xf] }
  0x62   :  { %936 = vmatpush.bf16.msra.mxu2 %v1293_v51  ;;  %v1611_v51 = vld [vmem:[%s2490_s1 + $0x24c] sm:$0xf]  ;;  %v1166_v10 = vld [vmem:[%s2490_s1 + $0x118] sm:$0xf0] }
  0x63   :  { %949 = vmatpush.bf16.msra.mxu3 %v1421_v54  ;;  %911 = vmatmul.bf16.vlgmr.msra.gmra.mxu0 %v1982_v14  ;;  %v1454_v54 = vld [vmem:[%s2490_s1 + $0x358] sm:$0xf0]  ;;  %v1603_v11 = vld [vmem:[%s2490_s1 + $0x20c] sm:$0xf] }
  0x64   :  { %955 = vmatpush.bf16.msrb.mxu0 %v1153_v55  ;;  %924 = vmatmul.bf16.vlgmr.msra.gmra.mxu1 %v1990_v18  ;;  %v1073_v55 = vor.u32 %v1547_v46, %v1070_v47  ;;  %v1294_v12 = vld [vmem:[%s2490_s1 + $0x218] sm:$0xf0]  ;;  %v1635_v15 = vld [vmem:[%s2490_s1 + $0x30c] sm:$0xf] }
  0x65   :  { %968 = vmatpush.bf16.msrb.mxu1 %v1281_v56  ;;  %937 = vmatmul.bf16.vlgmr.msra.gmra.mxu2 %v1980_v13  ;;  %v1201_v56 = vor.u32 %v1579_v48, %v1198_v50  ;;  %v1422_v16 = vld [vmem:[%s2490_s1 + $0x318] sm:$0xf0] }
  0x66   :  { %981 = vmatpush.bf16.msrb.mxu2 %v1409_v57  ;;  %950 = vmatmul.bf16.vlgmr.msra.gmra.mxu3 %v1988_v17  ;;  %v1329_v57 = vor.u32 %v1611_v51, %v1326_v52  ;;  %v1425_v22 = vor.u32 %v1635_v15, %v1422_v16 }
  0x67   :  { %994 = vmatpush.bf16.msrb.mxu3 %v1537_v61  ;;  %v1457_v61 = vor.u32 %v1643_v53, %v1454_v54 }
  0x68   :  { %956 = vmatpush.bf16.msrb.mxu0 %v1137_v3  ;;  %v1057_v3 = vor.u32 %v1543_v58, %v1054_v59 }
  0x69   :  { %969 = vmatpush.bf16.msrb.mxu1 %v1265_v4  ;;  %v1185_v4 = vor.u32 %v1575_v60, %v1182_v62 }
  0x6a   :  { %982 = vmatpush.bf16.msrb.mxu2 %v1393_v5  ;;  %v1313_v5 = vor.u32 %v1607_v63, %v1310_v0 }
  0x6b   :  { %995 = vmatpush.bf16.msrb.mxu3 %v1521_v9  ;;  %v1441_v9 = vor.u32 %v1639_v1, %v1438_v2 }
  0x6c   :  { %957 = vmatpush.bf16.msrb.mxu0 %v1121_v19  ;;  %v1041_v19 = vor.u32 %v1539_v6, %v1038_v7 }
  0x6d   :  { %970 = vmatpush.bf16.msrb.mxu1 %v1249_v20  ;;  %v1169_v20 = vor.u32 %v1571_v8, %v1166_v10 }
  0x6e   :  { %983 = vmatpush.bf16.msrb.mxu2 %v1377_v21  ;;  %v1297_v21 = vor.u32 %v1603_v11, %v1294_v12 }
  0x6f   :  { %996 = vmatpush.bf16.msrb.mxu3 %v1505_v25 }
  0x70   :  { %958 = vmatpush.bf16.msrb.mxu0 %v1105_v31 }
  0x71   :  { %971 = vmatpush.bf16.msrb.mxu1 %v1233_v32 }
  0x72   :  { %984 = vmatpush.bf16.msrb.mxu2 %v1361_v33 }
  0x73   :  { %997 = vmatpush.bf16.msrb.mxu3 %v1489_v37 }
  0x74   :  { %959 = vmatpush.bf16.msrb.mxu0 %v1089_v43 }
  0x75   :  { %972 = vmatpush.bf16.msrb.mxu1 %v1217_v44 }
  0x76   :  { %985 = vmatpush.bf16.msrb.mxu2 %v1345_v45 }
  0x77   :  { %998 = vmatpush.bf16.msrb.mxu3 %v1473_v49 }
  0x78   :  { %960 = vmatpush.bf16.msrb.mxu0 %v1073_v55 }
  0x79   :  { %973 = vmatpush.bf16.msrb.mxu1 %v1201_v56 }
  0x7a   :  { %986 = vmatpush.bf16.msrb.mxu2 %v1329_v57 }
  0x7b   :  { %999 = vmatpush.bf16.msrb.mxu3 %v1457_v61 }
  0x7c   :  { %961 = vmatpush.bf16.msrb.mxu0 %v1057_v3 }
  0x7d   :  { %974 = vmatpush.bf16.msrb.mxu1 %v1185_v4 }
  0x7e   :  { %987 = vmatpush.bf16.msrb.mxu2 %v1313_v5 }
  0x7f   :  { %1000 = vmatpush.bf16.msrb.mxu3 %v1441_v9 }
  0x80   :  { %962 = vmatpush.bf16.msrb.mxu0 %v1041_v19 }
  0x81   :  { %975 = vmatpush.bf16.msrb.mxu1 %v1169_v20 }
  0x82   :  { %988 = vmatpush.bf16.msrb.mxu2 %v1297_v21 }
  0x83   :  { %1001 = vmatpush.bf16.msrb.mxu3 %v1425_v22  ;;  %963 = vmatmul.bf16.vlgmr.msrb.gmra.mxu0 %v1982_v14 }
  0x84   :  { %976 = vmatmul.bf16.vlgmr.msrb.gmra.mxu1 %v1990_v18 }
  0x85   :  { %989 = vmatmul.bf16.vlgmr.msrb.gmra.mxu2 %v1980_v13 }
  0x86   :  { %1002 = vmatmul.bf16.vlgmr.msrb.gmra.mxu3 %v1988_v17 }
  0x9f   :  { %v147_v23 = vpop.permute.xlu0 %146 }
  0xa7   :  { %v808_v24 = vpop.f32.mrf.mxu0 }
  0xa8   :  { %v809_v26 = vadd.f32 %v808_v24, %v147_v23 }
  0xab   :  { %v821_v25 = vpop.f32.mrf.mxu1 }
  0xac   :  { %v822_v27 = vadd.f32 %v821_v25, %v809_v26 }
  0xae   :  { %v834_v28 = vpop.f32.mrf.mxu2 }
  0xaf   :  { %v835_v29 = vadd.f32 %v834_v28, %v822_v27  ;;  %v847_v30 = vpop.f32.mrf.mxu3  ;;  %v810_v31 = vpop.f32.mrf.mxu0 }
  0xb1   :  { %v848_v32 = vadd.f32 %v847_v30, %v835_v29 }
  0xb3   :  { %v823_v33 = vpop.f32.mrf.mxu1 }
  0xb6   :  { %v836_v34 = vpop.f32.mrf.mxu2 }
  0xb7   :  { %v849_v35 = vpop.f32.mrf.mxu3 }
  0xc0   :  { %v860_v14 = vpop.f32.mrf.mxu0 }
  0xc1   :  { %v873_v36 = vpop.f32.mrf.mxu1  ;;  %v861_v48 = vadd.f32 %v860_v14, %v147_v23 }
  0xc3   :  { %v874_v50 = vadd.f32 %v873_v36, %v861_v48 }
  0xc8   :  { %v886_v18 = vpop.f32.mrf.mxu2  ;;  %v862_v13 = vpop.f32.mrf.mxu0 }
  0xc9   :  { %v899_v37 = vpop.f32.mrf.mxu3  ;;  %v875_v38 = vpop.f32.mrf.mxu1  ;;  %v887_v55 = vadd.f32 %v886_v18, %v874_v50 }
  0xcb   :  { %v900_v58 = vadd.f32 %v899_v37, %v887_v55 }
  0xcd   :  { %v1011_v1 = vrot.slane %v900_v58, 6 }
  0xcf   :  { %v1015_v5 = vsel %vm1014_vm0, %v848_v32, %v1011_v1 }
  0xd0   :  { %v888_v17 = vpop.f32.mrf.mxu2 }
  0xd1   :  { %v901_v39 = vpop.f32.mrf.mxu3 }
  0xe0   :  { %v912_v40 = vpop.f32.mrf.mxu0 }
  0xe1   :  { %v925_v41 = vpop.f32.mrf.mxu1  ;;  %v913_v49 = vadd.f32 %v912_v40, %v147_v23 }
  0xe3   :  { %v926_v51 = vadd.f32 %v925_v41, %v913_v49 }
  0xe8   :  { %v938_v42 = vpop.f32.mrf.mxu2  ;;  %v914_v44 = vpop.f32.mrf.mxu0 }
  0xe9   :  { %v951_v43 = vpop.f32.mrf.mxu3  ;;  %v927_v45 = vpop.f32.mrf.mxu1  ;;  %v939_v56 = vadd.f32 %v938_v42, %v926_v51 }
  0xeb   :  { %v952_v60 = vadd.f32 %v951_v43, %v939_v56 }
  0xed   :  { %v1012_v3 = vrot.slane %v952_v60, 4 }
  0xf0   :  { %v940_v46 = vpop.f32.mrf.mxu2 }
  0xf1   :  { %v953_v47 = vpop.f32.mrf.mxu3 }
 0x100   :  { %v964_v52 = vpop.f32.mrf.mxu0 }
 0x101   :  { %v965_v53 = vadd.f32 %v964_v52, %v147_v23  ;;  %v977_v54 = vpop.f32.mrf.mxu1 }
 0x103   :  { %v978_v57 = vadd.f32 %v977_v54, %v965_v53 }
 0x108   :  { %v990_v59 = vpop.f32.mrf.mxu2  ;;  %v966_v63 = vpop.f32.mrf.mxu0 }
 0x109   :  { %v991_v61 = vadd.f32 %v990_v59, %v978_v57  ;;  %v1003_v62 = vpop.f32.mrf.mxu3  ;;  %v979_v0 = vpop.f32.mrf.mxu1 }
 0x10b   :  { %v1004_v2 = vadd.f32 %v1003_v62, %v991_v61 }
 0x10d   :  { %v1013_v4 = vrot.slane %v1004_v2, 2 }
 0x10f   :  { %v1017_v6 = vsel %vm1016_vm1, %v1012_v3, %v1013_v4 }
 0x110   :  { %v1019_v7 = vsel %vm1018_vm2, %v1015_v5, %v1017_v6  ;;  %v992_v8 = vpop.f32.mrf.mxu2 }
 0x111   :  { %1021 = vst [vmem:[%s2493_s3] sm:$0xff] %v1019_v7  ;;  %v1005_v9 = vpop.f32.mrf.mxu3 }

// kernel: vae_fd_forward.34
= control target key start
LH: loop header
LB: loop body
LE: loop exit
PB: predicated region body
PF: predicated region fallthrough
CT: control target
= control target key end

     0   :  { %vm62_vm0 = vcmask 1040384   ;;  %v170_v2 = vmov 0   ;;  %vm58_vm1 = vcmask 146432   ;;  %vm133_vm2 = vcmask 1043456   ;;  %s237_s1 = inlined_call_operand.vmem [shape: bf16[18,512], index: 1, kind: input, shape index: {}]   ;;  %s238_s2 = inlined_call_operand.vmem [shape: f32[4,1], index: 2, kind: input, shape index: {}]   ;;  %s239_s0 = inlined_call_operand.vmem [shape: bf16[4,18], index: 0, kind: input, shape index: {}]   ;;  %s240_s3 = inlined_call_operand.vmem [shape: f32[4,512], index: 3, kind: output, shape index: {}]  }
   0x1   :  { %v20_v0 = vld [vmem:[%s237_s1 + $0x20] sm:$0x11]  ;;  %v21_v1 = vld [vmem:[%s237_s1 + $0x28] sm:$0x11]  ;;  %169 = vset.pattern.permute.xlu0 %v170_v2  ;;  %v166_v8 = vld [vmem:[%s237_s1 + $0xc] sm:$0xf0] }
   0x2   :  { %v42_v3 = vunpack.c.l.b16 %v20_v0  ;;  %v43_v4 = vunpack.c.h.b16 %v20_v0  ;;  %v44_v5 = vunpack.c.l.b16 %v21_v1  ;;  %v45_v6 = vunpack.c.h.b16 %v21_v1  ;;  %v146_v7 = vld [vmem:[%s237_s1] sm:$0xf]  ;;  %v164_v9 = vld [vmem:[%s237_s1 + $0x4] sm:$0xf]  ;;  %v148_v14 = vld [vmem:[%s237_s1 + $0x10] sm:$0xf0] }
   0x3   :  { %v154_v15 = vld [vmem:[%s237_s1 + $0x8] sm:$0xf]  ;;  %v22_v16 = vld [vmem:[%s238_s2] sm:$0xf]  ;;  %v167_v17 = vld [vmem:[%s237_s1 + $0x14] sm:$0xf0]  ;;  %v147_v24 = vor.u32 %v166_v8, %v146_v7  ;;  %v151_v25 = vor.u32 %v164_v9, %v148_v14 }
   0x4   :  { %v50_v10 = vpack.c.b16 %v42_v3, %v42_v3  ;;  %v51_v11 = vpack.c.b16 %v43_v4, %v43_v4  ;;  %v52_v12 = vpack.c.b16 %v44_v5, %v44_v5  ;;  %v53_v13 = vpack.c.b16 %v45_v6, %v45_v6  ;;  %v165_v18 = vld [vmem:[%s237_s1 + $0xc] sm:$0xf]  ;;  %v156_v19 = vld [vmem:[%s237_s1 + $0x18] sm:$0xf0]  ;;  %25 = vperm.xlu0 %169, %v22_v16   ;;  %v15_v28 = vld [vmem:[%s239_s0] sm:$0x3] }
   0x5   :  { %v155_v26 = vor.u32 %v167_v17, %v154_v15  ;;  %v159_v27 = vor.u32 %v165_v18, %v156_v19 }
   0x6   :  { %v64_v20 = vsel %vm62_vm0, %v50_v10, 0  ;;  %v67_v21 = vsel %vm62_vm0, %v51_v11, 0  ;;  %v70_v22 = vsel %vm62_vm0, %v52_v12, 0  ;;  %v73_v23 = vsel %vm62_vm0, %v53_v13, 0 }
   0x7   :  { %81 = vmatpush.bf16.msra.mxu0 %v64_v20  ;;  %94 = vmatpush.bf16.msra.mxu1 %v67_v21 }
   0x8   :  { %107 = vmatpush.bf16.msra.mxu2 %v70_v22  ;;  %120 = vmatpush.bf16.msra.mxu3 %v73_v23 }
   0xb   :  { %82 = vmatpush.bf16.msra.mxu0 %v147_v24  ;;  %95 = vmatpush.bf16.msra.mxu1 %v151_v25 }
   0xc   :  { %108 = vmatpush.bf16.msra.mxu2 %v155_v26  ;;  %121 = vmatpush.bf16.msra.mxu3 %v159_v27 }
   0xe   :  { %160 = vmatmul.msk.bf16.vlgmr.msra.gmra.mxu0 %vm58_vm1, %v15_v28  ;;  %161 = vmatmul.msk.bf16.vlgmr.msra.gmra.mxu1 %vm58_vm1, %v15_v28 }
   0xf   :  { %162 = vmatmul.msk.bf16.vlgmr.msra.gmra.mxu2 %vm58_vm1, %v15_v28  ;;  %163 = vmatmul.msk.bf16.vlgmr.msra.gmra.mxu3 %vm58_vm1, %v15_v28 }
  0x76   :  { %v26_v29 = vpop.permute.xlu0 %25 }
  0x8b   :  { %v84_v30 = vpop.f32.mrf.mxu0  ;;  %v97_v31 = vpop.f32.mrf.mxu1 }
  0x8c   :  { %v85_v32 = vadd.f32 %v84_v30, %v26_v29  ;;  %v98_v33 = vadd.f32 %v97_v31, %v26_v29 }
  0x8e   :  { %v131_v34 = vrot.slane %v98_v33, 4 }
  0x90   :  { %v134_v35 = vsel %vm133_vm2, %v85_v32, %v131_v34 }
  0x91   :  { %138 = vst [vmem:[%s240_s3] sm:$0xff] %v134_v35 }
  0x92   :  { %v110_v36 = vpop.f32.mrf.mxu2  ;;  %v123_v37 = vpop.f32.mrf.mxu3 }
  0x93   :  { %v124_v38 = vadd.f32 %v123_v37, %v26_v29  ;;  %v86_v39 = vpop.f32.mrf.mxu0  ;;  %v99_v40 = vpop.f32.mrf.mxu1  ;;  %v111_v41 = vadd.f32 %v110_v36, %v26_v29 }
  0x95   :  { %v132_v42 = vrot.slane %v124_v38, 4 }
  0x97   :  { %v135_v43 = vsel %vm133_vm2, %v111_v41, %v132_v42 }
  0x98   :  { %139 = vst [vmem:[%s240_s3 + $0x8] sm:$0xff] %v135_v43 }
  0x9a   :  { %v112_v44 = vpop.f32.mrf.mxu2  ;;  %v125_v45 = vpop.f32.mrf.mxu3 }

// kernel: vae_fd_forward.35
= control target key start
LH: loop header
LB: loop body
LE: loop exit
PB: predicated region body
PF: predicated region fallthrough
CT: control target
= control target key end

     0   :  { %vm83_vm0 = vcmask 1041408   ;;  %vm79_vm1 = vcmask 293888   ;;  %vm176_vm2 = vcmask 1043456   ;;  %vm172_vm3 = vcmask 64512   ;;  %s412_s2 = inlined_call_operand.vmem [shape: bf16[36,512], index: 2, kind: input, shape index: {}]   ;;  %s413_s0 = inlined_call_operand.vmem [shape: bf16[8,36], index: 0, kind: input, shape index: {}]   ;;  %s414_s3 = inlined_call_operand.vmem [shape: f32[4,512], index: 3, kind: input, shape index: {}]   ;;  %s415_s1 = inlined_call_operand.vmem [shape: bf16[4,8], index: 1, kind: input, shape index: {}]   ;;  %s416_s4 = inlined_call_operand.vmem [shape: f32[4,512], index: 4, kind: output, shape index: {}]  }
   0x1   :  { %v28_v0 = vld [vmem:[%s412_s2 + $0x48] sm:$0x33]  ;;  %v27_v1 = vld [vmem:[%s412_s2 + $0x40] sm:$0x33]  ;;  %v304_v7 = vld [vmem:[%s412_s2 + $0x34] sm:$0xf0] }
   0x2   :  { %v57_v2 = vunpack.c.l.b16 %v28_v0  ;;  %v58_v3 = vunpack.c.h.b16 %v28_v0  ;;  %v55_v4 = vunpack.c.l.b16 %v27_v1  ;;  %v56_v5 = vunpack.c.h.b16 %v27_v1  ;;  %v283_v6 = vld [vmem:[%s412_s2 + $0x28] sm:$0xf]  ;;  %v302_v12 = vld [vmem:[%s412_s2 + $0x2c] sm:$0xf]  ;;  %v285_v13 = vld [vmem:[%s412_s2 + $0x38] sm:$0xf0] }
   0x3   :  { %v275_v14 = vld [vmem:[%s412_s2 + $0x20] sm:$0xf]  ;;  %v303_v15 = vld [vmem:[%s412_s2 + $0x2c] sm:$0xf0]  ;;  %v301_v16 = vld [vmem:[%s412_s2 + $0x24] sm:$0xf]  ;;  %v284_v22 = vor.u32 %v304_v7, %v283_v6  ;;  %v288_v23 = vor.u32 %v302_v12, %v285_v13 }
   0x4   :  { %v69_v8 = vpack.c.b16 %v57_v2, %v57_v2  ;;  %v70_v9 = vpack.c.b16 %v58_v3, %v58_v3  ;;  %v67_v10 = vpack.c.b16 %v55_v4, %v55_v4  ;;  %v68_v11 = vpack.c.b16 %v56_v5, %v56_v5  ;;  %v277_v17 = vld [vmem:[%s412_s2 + $0x30] sm:$0xf0]  ;;  %v267_v24 = vld [vmem:[%s412_s2 + $0x8] sm:$0xf]  ;;  %v300_v25 = vld [vmem:[%s412_s2 + $0x14] sm:$0xf0] }
   0x5   :  { %v276_v26 = vor.u32 %v303_v15, %v275_v14  ;;  %v280_v27 = vor.u32 %v301_v16, %v277_v17  ;;  %v298_v28 = vld [vmem:[%s412_s2 + $0xc] sm:$0xf]  ;;  %v269_v29 = vld [vmem:[%s412_s2 + $0x18] sm:$0xf0]  ;;  %v259_v30 = vld [vmem:[%s412_s2] sm:$0xf]  ;;  %v268_v34 = vor.u32 %v300_v25, %v267_v24 }
   0x6   :  { %v91_v18 = vsel %vm83_vm0, %v69_v8, 0  ;;  %v94_v19 = vsel %vm83_vm0, %v70_v9, 0  ;;  %v85_v20 = vsel %vm83_vm0, %v67_v10, 0  ;;  %v88_v21 = vsel %vm83_vm0, %v68_v11, 0  ;;  %v299_v31 = vld [vmem:[%s412_s2 + $0xc] sm:$0xf0] }
   0x7   :  { %127 = vmatpush.bf16.msra.mxu2 %v91_v18  ;;  %140 = vmatpush.bf16.msra.mxu3 %v94_v19  ;;  %v297_v32 = vld [vmem:[%s412_s2 + $0x4] sm:$0xf]  ;;  %v261_v33 = vld [vmem:[%s412_s2 + $0x10] sm:$0xf0]  ;;  %v272_v35 = vor.u32 %v298_v28, %v269_v29  ;;  %v260_v36 = vor.u32 %v299_v31, %v259_v30  ;;  %v18_v38 = vld [vmem:[%s413_s0] sm:$0xf] }
   0x8   :  { %101 = vmatpush.bf16.msra.mxu0 %v85_v20  ;;  %114 = vmatpush.bf16.msra.mxu1 %v88_v21  ;;  %v264_v37 = vor.u32 %v297_v32, %v261_v33  ;;  %v157_v39 = vld [vmem:[%s414_s3] sm:$0xff]  ;;  %v158_v61 = vld [vmem:[%s414_s3 + $0x8] sm:$0xff] }
   0x9   :  { %161 = vst [vmem:[#allocation1] ss:$2 sm:$0xff] %v157_v39  ;;  %v152_v52 = vld [vmem:[%s415_s1] sm:$0x3] }
   0xa   :  { %163 = vst [vmem:[#allocation1 + $0x10] ss:$2 sm:$0xff] %v158_v61 }
   0xb   :  { %128 = vmatpush.bf16.msra.mxu2 %v284_v22  ;;  %141 = vmatpush.bf16.msra.mxu3 %v288_v23 }
   0xc   :  { %102 = vmatpush.bf16.msra.mxu0 %v276_v26  ;;  %115 = vmatpush.bf16.msra.mxu1 %v280_v27 }
   0xf   :  { %129 = vmatpush.bf16.msra.mxu2 %v268_v34  ;;  %142 = vmatpush.bf16.msra.mxu3 %v272_v35 }
  0x10   :  { %103 = vmatpush.bf16.msra.mxu0 %v260_v36  ;;  %116 = vmatpush.bf16.msra.mxu1 %v264_v37  ;;  %v164_v62 = vld.sshfl [vmem:[#allocation1] sm:$0xff pattern:$0x75316420]  ;;  %v165_v63 = vld.sshfl [vmem:[#allocation1 + $0x8] sm:$0xff pattern:$0x75316420] }
  0x11   :  { %v167_v8 = vld.sshfl [vmem:[#allocation1 + $0x18] sm:$0xff pattern:$0x75316420]  ;;  %v166_v9 = vld.sshfl [vmem:[#allocation1 + $0x10] sm:$0xff pattern:$0x75316420] }
  0x12   :  { %291 = vmatmul.msk.bf16.vlgmr.msra.gmra.mxu2 %vm79_vm1, %v18_v38  ;;  %292 = vmatmul.msk.bf16.vlgmr.msra.gmra.mxu3 %vm79_vm1, %v18_v38 }
  0x13   :  { %289 = vmatmul.msk.bf16.vlgmr.msra.gmra.mxu0 %vm79_vm1, %v18_v38  ;;  %290 = vmatmul.msk.bf16.vlgmr.msra.gmra.mxu1 %vm79_vm1, %v18_v38 }
  0x90   :  { %v105_v40 = vpop.f32.mrf.mxu0  ;;  %v118_v41 = vpop.f32.mrf.mxu1 }
  0x91   :  { %v148_v42 = vmax.f32 %v105_v40, 0.0  ;;  %v149_v43 = vmax.f32 %v118_v41, 0.0 }
  0x93   :  { %v153_v44 = vpack.c.bf16 %v148_v42, %v148_v42  ;;  %v154_v45 = vpack.c.bf16 %v149_v43, %v149_v43 }
  0x95   :  { %v131_v46 = vpop.f32.mrf.mxu2  ;;  %v144_v47 = vpop.f32.mrf.mxu3  ;;  %v178_v48 = vsel %vm176_vm2, %v153_v44, 0  ;;  %v181_v49 = vsel %vm176_vm2, %v154_v45, 0 }
  0x96   :  { %v150_v50 = vmax.f32 %v131_v46, 0.0  ;;  %v151_v51 = vmax.f32 %v144_v47, 0.0  ;;  %196 = vmatpush.bf16.msrb.mxu0 %v178_v48  ;;  %209 = vmatpush.bf16.msrb.mxu1 %v181_v49 }
  0x98   :  { %v155_v53 = vpack.c.bf16 %v150_v50, %v150_v50  ;;  %v156_v54 = vpack.c.bf16 %v151_v51, %v151_v51  ;;  %v107_v55 = vpop.f32.mrf.mxu0  ;;  %v120_v56 = vpop.f32.mrf.mxu1 }
  0x99   :  { %293 = vmatmul.msk.bf16.vlgmr.msrb.gmra.mxu0 %vm172_vm3, %v152_v52  ;;  %294 = vmatmul.msk.bf16.vlgmr.msrb.gmra.mxu1 %vm172_vm3, %v152_v52 }
  0x9a   :  { %v184_v57 = vsel %vm176_vm2, %v155_v53, 0  ;;  %v187_v58 = vsel %vm176_vm2, %v156_v54, 0 }
  0x9b   :  { %222 = vmatpush.bf16.msrb.mxu2 %v184_v57  ;;  %235 = vmatpush.bf16.msrb.mxu3 %v187_v58 }
  0x9d   :  { %v133_v59 = vpop.f32.mrf.mxu2  ;;  %v146_v60 = vpop.f32.mrf.mxu3 }
  0x9e   :  { %295 = vmatmul.msk.bf16.vlgmr.msrb.gmra.mxu2 %vm172_vm3, %v152_v52  ;;  %296 = vmatmul.msk.bf16.vlgmr.msrb.gmra.mxu3 %vm172_vm3, %v152_v52 }
 0x116   :  { %v198_v0 = vpop.f32.mrf.mxu0  ;;  %v211_v1 = vpop.f32.mrf.mxu1 }
 0x117   :  { %v199_v2 = vadd.f32 %v198_v0, %v164_v62  ;;  %v212_v3 = vadd.f32 %v211_v1, %v165_v63 }
 0x119   :  { %v245_v4 = vrot.slane %v212_v3, 4 }
 0x11b   :  { %v247_v5 = vsel %vm176_vm2, %v199_v2, %v245_v4 }
 0x11c   :  { %251 = vst [vmem:[%s416_s4] sm:$0xff] %v247_v5 }
 0x11e   :  { %v200_v6 = vpop.f32.mrf.mxu0  ;;  %v213_v7 = vpop.f32.mrf.mxu1 }
 0x121   :  { %v224_v10 = vpop.f32.mrf.mxu2  ;;  %v237_v11 = vpop.f32.mrf.mxu3 }
 0x122   :  { %v238_v12 = vadd.f32 %v237_v11, %v167_v8  ;;  %v225_v13 = vadd.f32 %v224_v10, %v166_v9 }
 0x124   :  { %v246_v14 = vrot.slane %v238_v12, 4 }
 0x126   :  { %v248_v15 = vsel %vm176_vm2, %v225_v13, %v246_v14 }
 0x127   :  { %252 = vst [vmem:[%s416_s4 + $0x8] sm:$0xff] %v248_v15 }
 0x129   :  { %v226_v16 = vpop.f32.mrf.mxu2  ;;  %v239_v17 = vpop.f32.mrf.mxu3 }

// kernel: vae_fd_forward.36
= control target key start
LH: loop header
LB: loop body
LE: loop exit
PB: predicated region body
PF: predicated region fallthrough
CT: control target
= control target key end

     0   :  { %vm83_vm0 = vcmask 1041408   ;;  %vm79_vm1 = vcmask 293888   ;;  %vm176_vm2 = vcmask 1043456   ;;  %vm172_vm3 = vcmask 64512   ;;  %s416_s2 = inlined_call_operand.vmem [shape: bf16[36,512], index: 2, kind: input, shape index: {}]   ;;  %s417_s0 = inlined_call_operand.vmem [shape: bf16[8,36], index: 0, kind: input, shape index: {}]   ;;  %s418_s3 = inlined_call_operand.vmem [shape: f32[4,512], index: 3, kind: input, shape index: {}]   ;;  %s419_s1 = inlined_call_operand.vmem [shape: bf16[4,8], index: 1, kind: input, shape index: {}]   ;;  %s420_s4 = inlined_call_operand.vmem [shape: f32[4,512], index: 4, kind: output, shape index: {}]  }
   0x1   :  { %v28_v0 = vld [vmem:[%s416_s2 + $0x48] sm:$0x33]  ;;  %v27_v1 = vld [vmem:[%s416_s2 + $0x40] sm:$0x33]  ;;  %v308_v7 = vld [vmem:[%s416_s2 + $0x34] sm:$0xf0] }
   0x2   :  { %v57_v2 = vunpack.c.l.b16 %v28_v0  ;;  %v58_v3 = vunpack.c.h.b16 %v28_v0  ;;  %v55_v4 = vunpack.c.l.b16 %v27_v1  ;;  %v56_v5 = vunpack.c.h.b16 %v27_v1  ;;  %v287_v6 = vld [vmem:[%s416_s2 + $0x28] sm:$0xf]  ;;  %v306_v12 = vld [vmem:[%s416_s2 + $0x2c] sm:$0xf]  ;;  %v289_v13 = vld [vmem:[%s416_s2 + $0x38] sm:$0xf0] }
   0x3   :  { %v279_v14 = vld [vmem:[%s416_s2 + $0x20] sm:$0xf]  ;;  %v307_v15 = vld [vmem:[%s416_s2 + $0x2c] sm:$0xf0]  ;;  %v305_v16 = vld [vmem:[%s416_s2 + $0x24] sm:$0xf]  ;;  %v288_v22 = vor.u32 %v308_v7, %v287_v6  ;;  %v292_v23 = vor.u32 %v306_v12, %v289_v13 }
   0x4   :  { %v69_v8 = vpack.c.b16 %v57_v2, %v57_v2  ;;  %v70_v9 = vpack.c.b16 %v58_v3, %v58_v3  ;;  %v67_v10 = vpack.c.b16 %v55_v4, %v55_v4  ;;  %v68_v11 = vpack.c.b16 %v56_v5, %v56_v5  ;;  %v281_v17 = vld [vmem:[%s416_s2 + $0x30] sm:$0xf0]  ;;  %v271_v24 = vld [vmem:[%s416_s2 + $0x8] sm:$0xf]  ;;  %v304_v25 = vld [vmem:[%s416_s2 + $0x14] sm:$0xf0] }
   0x5   :  { %v280_v26 = vor.u32 %v307_v15, %v279_v14  ;;  %v284_v27 = vor.u32 %v305_v16, %v281_v17  ;;  %v302_v28 = vld [vmem:[%s416_s2 + $0xc] sm:$0xf]  ;;  %v273_v29 = vld [vmem:[%s416_s2 + $0x18] sm:$0xf0]  ;;  %v263_v30 = vld [vmem:[%s416_s2] sm:$0xf]  ;;  %v272_v34 = vor.u32 %v304_v25, %v271_v24 }
   0x6   :  { %v91_v18 = vsel %vm83_vm0, %v69_v8, 0  ;;  %v94_v19 = vsel %vm83_vm0, %v70_v9, 0  ;;  %v85_v20 = vsel %vm83_vm0, %v67_v10, 0  ;;  %v88_v21 = vsel %vm83_vm0, %v68_v11, 0  ;;  %v303_v31 = vld [vmem:[%s416_s2 + $0xc] sm:$0xf0] }
   0x7   :  { %127 = vmatpush.bf16.msra.mxu2 %v91_v18  ;;  %140 = vmatpush.bf16.msra.mxu3 %v94_v19  ;;  %v301_v32 = vld [vmem:[%s416_s2 + $0x4] sm:$0xf]  ;;  %v265_v33 = vld [vmem:[%s416_s2 + $0x10] sm:$0xf0]  ;;  %v276_v35 = vor.u32 %v302_v28, %v273_v29  ;;  %v264_v36 = vor.u32 %v303_v31, %v263_v30  ;;  %v18_v38 = vld [vmem:[%s417_s0] sm:$0xf] }
   0x8   :  { %101 = vmatpush.bf16.msra.mxu0 %v85_v20  ;;  %114 = vmatpush.bf16.msra.mxu1 %v88_v21  ;;  %v268_v37 = vor.u32 %v301_v32, %v265_v33  ;;  %v157_v39 = vld [vmem:[%s418_s3] sm:$0xff]  ;;  %v158_v61 = vld [vmem:[%s418_s3 + $0x8] sm:$0xff] }
   0x9   :  { %161 = vst [vmem:[#allocation1] ss:$2 sm:$0xff] %v157_v39  ;;  %v152_v52 = vld [vmem:[%s419_s1] sm:$0x3] }
   0xa   :  { %163 = vst [vmem:[#allocation1 + $0x10] ss:$2 sm:$0xff] %v158_v61 }
   0xb   :  { %128 = vmatpush.bf16.msra.mxu2 %v288_v22  ;;  %141 = vmatpush.bf16.msra.mxu3 %v292_v23 }
   0xc   :  { %102 = vmatpush.bf16.msra.mxu0 %v280_v26  ;;  %115 = vmatpush.bf16.msra.mxu1 %v284_v27 }
   0xf   :  { %129 = vmatpush.bf16.msra.mxu2 %v272_v34  ;;  %142 = vmatpush.bf16.msra.mxu3 %v276_v35 }
  0x10   :  { %103 = vmatpush.bf16.msra.mxu0 %v264_v36  ;;  %116 = vmatpush.bf16.msra.mxu1 %v268_v37  ;;  %v164_v62 = vld.sshfl [vmem:[#allocation1] sm:$0xff pattern:$0x75316420]  ;;  %v165_v63 = vld.sshfl [vmem:[#allocation1 + $0x8] sm:$0xff pattern:$0x75316420] }
  0x11   :  { %v166_v10 = vld.sshfl [vmem:[#allocation1 + $0x10] sm:$0xff pattern:$0x75316420]  ;;  %v167_v11 = vld.sshfl [vmem:[#allocation1 + $0x18] sm:$0xff pattern:$0x75316420] }
  0x12   :  { %295 = vmatmul.msk.bf16.vlgmr.msra.gmra.mxu2 %vm79_vm1, %v18_v38  ;;  %296 = vmatmul.msk.bf16.vlgmr.msra.gmra.mxu3 %vm79_vm1, %v18_v38 }
  0x13   :  { %293 = vmatmul.msk.bf16.vlgmr.msra.gmra.mxu0 %vm79_vm1, %v18_v38  ;;  %294 = vmatmul.msk.bf16.vlgmr.msra.gmra.mxu1 %vm79_vm1, %v18_v38 }
  0x90   :  { %v105_v40 = vpop.f32.mrf.mxu0  ;;  %v118_v41 = vpop.f32.mrf.mxu1 }
  0x91   :  { %v148_v42 = vmax.f32 %v105_v40, 0.0  ;;  %v149_v43 = vmax.f32 %v118_v41, 0.0 }
  0x93   :  { %v153_v44 = vpack.c.bf16 %v148_v42, %v148_v42  ;;  %v154_v45 = vpack.c.bf16 %v149_v43, %v149_v43 }
  0x95   :  { %v131_v46 = vpop.f32.mrf.mxu2  ;;  %v144_v47 = vpop.f32.mrf.mxu3  ;;  %v178_v48 = vsel %vm176_vm2, %v153_v44, 0  ;;  %v181_v49 = vsel %vm176_vm2, %v154_v45, 0 }
  0x96   :  { %v150_v50 = vmax.f32 %v131_v46, 0.0  ;;  %v151_v51 = vmax.f32 %v144_v47, 0.0  ;;  %196 = vmatpush.bf16.msrb.mxu0 %v178_v48  ;;  %209 = vmatpush.bf16.msrb.mxu1 %v181_v49 }
  0x98   :  { %v155_v53 = vpack.c.bf16 %v150_v50, %v150_v50  ;;  %v156_v54 = vpack.c.bf16 %v151_v51, %v151_v51  ;;  %v107_v55 = vpop.f32.mrf.mxu0  ;;  %v120_v56 = vpop.f32.mrf.mxu1 }
  0x99   :  { %297 = vmatmul.msk.bf16.vlgmr.msrb.gmra.mxu0 %vm172_vm3, %v152_v52  ;;  %298 = vmatmul.msk.bf16.vlgmr.msrb.gmra.mxu1 %vm172_vm3, %v152_v52 }
  0x9a   :  { %v184_v57 = vsel %vm176_vm2, %v155_v53, 0  ;;  %v187_v58 = vsel %vm176_vm2, %v156_v54, 0 }
  0x9b   :  { %222 = vmatpush.bf16.msrb.mxu2 %v184_v57  ;;  %235 = vmatpush.bf16.msrb.mxu3 %v187_v58 }
  0x9d   :  { %v133_v59 = vpop.f32.mrf.mxu2  ;;  %v146_v60 = vpop.f32.mrf.mxu3 }
  0x9e   :  { %299 = vmatmul.msk.bf16.vlgmr.msrb.gmra.mxu2 %vm172_vm3, %v152_v52  ;;  %300 = vmatmul.msk.bf16.vlgmr.msrb.gmra.mxu3 %vm172_vm3, %v152_v52 }
 0x116   :  { %v198_v0 = vpop.f32.mrf.mxu0  ;;  %v211_v1 = vpop.f32.mrf.mxu1 }
 0x117   :  { %v199_v2 = vadd.f32 %v198_v0, %v164_v62  ;;  %v212_v3 = vadd.f32 %v211_v1, %v165_v63 }
 0x119   :  { %v241_v4 = vmax.f32 %v199_v2, 0.0  ;;  %v242_v5 = vmax.f32 %v212_v3, 0.0 }
 0x11b   :  { %v249_v6 = vrot.slane %v242_v5, 4 }
 0x11d   :  { %v251_v7 = vsel %vm176_vm2, %v241_v4, %v249_v6 }
 0x11e   :  { %255 = vst [vmem:[%s420_s4] sm:$0xff] %v251_v7  ;;  %v200_v8 = vpop.f32.mrf.mxu0  ;;  %v213_v9 = vpop.f32.mrf.mxu1 }
 0x121   :  { %v224_v12 = vpop.f32.mrf.mxu2  ;;  %v237_v13 = vpop.f32.mrf.mxu3 }
 0x122   :  { %v225_v14 = vadd.f32 %v224_v12, %v166_v10  ;;  %v238_v15 = vadd.f32 %v237_v13, %v167_v11 }
 0x124   :  { %v244_v16 = vmax.f32 %v238_v15, 0.0  ;;  %v243_v17 = vmax.f32 %v225_v14, 0.0 }
 0x126   :  { %v250_v18 = vrot.slane %v244_v16, 4 }
 0x128   :  { %v252_v19 = vsel %vm176_vm2, %v243_v17, %v250_v18 }
 0x129   :  { %256 = vst [vmem:[%s420_s4 + $0x8] sm:$0xff] %v252_v19  ;;  %v226_v20 = vpop.f32.mrf.mxu2  ;;  %v239_v21 = vpop.f32.mrf.mxu3 }

// kernel: vae_fd_forward.37
= control target key start
LH: loop header
LB: loop body
LE: loop exit
PB: predicated region body
PF: predicated region fallthrough
CT: control target
= control target key end

     0   :  { %s913_s12 = smov 0   ;;  %s915_s13 = smov 0   ;;  %s1129_s0 = inlined_call_operand.vmem [shape: bf16[2,64], index: 0, kind: input, shape index: {}]   ;;  %s1130_s1 = inlined_call_operand.vmem [shape: bf16[64,2048], index: 1, kind: input, shape index: {}]   ;;  %s1131_s2 = inlined_call_operand.vmem [shape: f32[2,1], index: 2, kind: input, shape index: {}]   ;;  %s1132_s3 = inlined_call_operand.vmem [shape: f32[2,2048], index: 3, kind: output, shape index: {}]  }
   0x1   :  { %s917_s14 = smov 0  }
   0x2 LB: > { %s660_s15 = sadd.s32 4294967295, %s890_s14   ;;  %s930_s16 = sadd.s32 1, %s890_s14   ;;  %s890_s14 = sphi %s917_s14, %s1135_s14   ;;  %s886_s13 = sphi %s915_s13, %s1134_s13   ;;  %s882_s12 = sphi %s913_s12, %s1133_s12  }
   0x3   : > { %s38_s17 = ssub.s32 %s890_s14, %s930_s16  ;;  %s41_s18 = sadd.s32 1, %s886_s13 }
   0x4   : > { %p39_p0 = scmp.eq.s32.totalorder %s38_s17, 0  ;;  %p48_p1 = scmp.ne.s32.totalorder %s886_s13, %s882_s12 }
   0x5   : > { %p49_p2 = scmp.eq.s32.totalorder %s890_s14, 0  ;;  %p663_p4 = scmp.ge.s32.totalorder %s890_s14, 2 }
   0x6   : > { %s939_s19 = scalar_select %p39_p0, %s886_s13, %s41_s18  }
   0x7   : > { %p50_p3 = por %p49_p2, %p48_p1  ;;  %127 = sbr.rel (%p663_p4) target bundleno = 48 (0x30), region = 24 }
   0xc   : > { %130 = sbr.rel (!%p50_p3) target bundleno = 48 (0x30), region = 28  ;;  %s132_s20 = sand.u32 (%p50_p3), 1, %s886_s13  }
   0xd   : > { %s809_s21 = sshll.u32 (%p50_p3), %s890_s14, 5  ;;  %s664_s22 = sshll.u32 (%p50_p3), %s132_s20, 8 }
   0xe   : > { %s947_s25 = scalar_lea.vmem (%p50_p3), %s1130_s1, %s809_s21  ;;  %s952_s26 = scalar_lea.vmem (%p50_p3), [#allocation2], %s664_s22 }
   0xf   : > { %v150_v0 = vld [vmem:[%s947_s25] sm:$0xff] (%p50_p3)  ;;  %v152_v1 = vld [vmem:[%s947_s25 + $0x8] sm:$0xff] (%p50_p3)  ;;  %v154_v2 = vld [vmem:[%s947_s25 + $0x10] sm:$0xff] (%p50_p3) }
  0x10   : > { %151 = vst [vmem:[%s952_s26] sm:$0xff] (%p50_p3), %v150_v0  ;;  %v156_v3 = vld [vmem:[%s947_s25 + $0x18] sm:$0xff] (%p50_p3)  ;;  %v158_v4 = vld [vmem:[%s947_s25 + $0x40] sm:$0xff] (%p50_p3)  ;;  %v160_v5 = vld [vmem:[%s947_s25 + $0x48] sm:$0xff] (%p50_p3) }
  0x11   : > { %153 = vst [vmem:[%s952_s26 + $0x8] sm:$0xff] %v152_v1  ;;  %v162_v6 = vld [vmem:[%s947_s25 + $0x50] sm:$0xff]  ;;  %v164_v7 = vld [vmem:[%s947_s25 + $0x58] sm:$0xff]  ;;  %v166_v8 = vld [vmem:[%s947_s25 + $0x80] sm:$0xff] }
  0x12   : > { %155 = vst [vmem:[%s952_s26 + $0x10] sm:$0xff] %v154_v2  ;;  %v168_v9 = vld [vmem:[%s947_s25 + $0x88] sm:$0xff]  ;;  %v170_v10 = vld [vmem:[%s947_s25 + $0x90] sm:$0xff]  ;;  %v172_v11 = vld [vmem:[%s947_s25 + $0x98] sm:$0xff] }
  0x13   : > { %157 = vst [vmem:[%s952_s26 + $0x18] sm:$0xff] %v156_v3  ;;  %v174_v12 = vld [vmem:[%s947_s25 + $0xc0] sm:$0xff]  ;;  %v176_v13 = vld [vmem:[%s947_s25 + $0xc8] sm:$0xff]  ;;  %v178_v14 = vld [vmem:[%s947_s25 + $0xd0] sm:$0xff] }
  0x14   : > { %159 = vst [vmem:[%s952_s26 + $0x20] sm:$0xff] %v158_v4  ;;  %v180_v15 = vld [vmem:[%s947_s25 + $0xd8] sm:$0xff]  ;;  %v182_v16 = vld [vmem:[%s947_s25 + $0x100] sm:$0xff]  ;;  %v184_v17 = vld [vmem:[%s947_s25 + $0x108] sm:$0xff] }
  0x15   : > { %161 = vst [vmem:[%s952_s26 + $0x28] sm:$0xff] %v160_v5  ;;  %v186_v18 = vld [vmem:[%s947_s25 + $0x110] sm:$0xff]  ;;  %v188_v19 = vld [vmem:[%s947_s25 + $0x118] sm:$0xff]  ;;  %v190_v20 = vld [vmem:[%s947_s25 + $0x140] sm:$0xff] }
  0x16   : > { %163 = vst [vmem:[%s952_s26 + $0x30] sm:$0xff] %v162_v6  ;;  %v192_v21 = vld [vmem:[%s947_s25 + $0x148] sm:$0xff]  ;;  %v194_v22 = vld [vmem:[%s947_s25 + $0x150] sm:$0xff]  ;;  %v196_v23 = vld [vmem:[%s947_s25 + $0x158] sm:$0xff] }
  0x17   : > { %165 = vst [vmem:[%s952_s26 + $0x38] sm:$0xff] %v164_v7  ;;  %v198_v24 = vld [vmem:[%s947_s25 + $0x180] sm:$0xff]  ;;  %v200_v25 = vld [vmem:[%s947_s25 + $0x188] sm:$0xff]  ;;  %v202_v26 = vld [vmem:[%s947_s25 + $0x190] sm:$0xff] }
  0x18   : > { %167 = vst [vmem:[%s952_s26 + $0x40] sm:$0xff] %v166_v8  ;;  %v204_v27 = vld [vmem:[%s947_s25 + $0x198] sm:$0xff]  ;;  %v206_v28 = vld [vmem:[%s947_s25 + $0x1c0] sm:$0xff]  ;;  %v208_v29 = vld [vmem:[%s947_s25 + $0x1c8] sm:$0xff] }
  0x19   : > { %169 = vst [vmem:[%s952_s26 + $0x48] sm:$0xff] %v168_v9  ;;  %v210_v30 = vld [vmem:[%s947_s25 + $0x1d0] sm:$0xff]  ;;  %v212_v31 = vld [vmem:[%s947_s25 + $0x1d8] sm:$0xff] }
  0x1a   : > { %171 = vst [vmem:[%s952_s26 + $0x50] sm:$0xff] %v170_v10 }
  0x1b   : > { %173 = vst [vmem:[%s952_s26 + $0x58] sm:$0xff] %v172_v11 }
  0x1c   : > { %175 = vst [vmem:[%s952_s26 + $0x60] sm:$0xff] %v174_v12 }
  0x1d   : > { %177 = vst [vmem:[%s952_s26 + $0x68] sm:$0xff] %v176_v13 }
  0x1e   : > { %179 = vst [vmem:[%s952_s26 + $0x70] sm:$0xff] %v178_v14 }
  0x1f   : > { %181 = vst [vmem:[%s952_s26 + $0x78] sm:$0xff] %v180_v15 }
  0x20   : > { %183 = vst [vmem:[%s952_s26 + $0x80] sm:$0xff] %v182_v16 }
  0x21   : > { %185 = vst [vmem:[%s952_s26 + $0x88] sm:$0xff] %v184_v17 }
  0x22   : > { %187 = vst [vmem:[%s952_s26 + $0x90] sm:$0xff] %v186_v18 }
  0x23   : > { %189 = vst [vmem:[%s952_s26 + $0x98] sm:$0xff] %v188_v19 }
  0x24   : > { %191 = vst [vmem:[%s952_s26 + $0xa0] sm:$0xff] %v190_v20 }
  0x25   : > { %193 = vst [vmem:[%s952_s26 + $0xa8] sm:$0xff] %v192_v21 }
  0x26   : > { %195 = vst [vmem:[%s952_s26 + $0xb0] sm:$0xff] %v194_v22 }
  0x27   : > { %197 = vst [vmem:[%s952_s26 + $0xb8] sm:$0xff] %v196_v23 }
  0x28   : > { %199 = vst [vmem:[%s952_s26 + $0xc0] sm:$0xff] %v198_v24 }
  0x29   : > { %201 = vst [vmem:[%s952_s26 + $0xc8] sm:$0xff] %v200_v25 }
  0x2a   : > { %203 = vst [vmem:[%s952_s26 + $0xd0] sm:$0xff] %v202_v26 }
  0x2b   : > { %205 = vst [vmem:[%s952_s26 + $0xd8] sm:$0xff] %v204_v27 }
  0x2c   : > { %207 = vst [vmem:[%s952_s26 + $0xe0] sm:$0xff] %v206_v28 }
  0x2d   : > { %209 = vst [vmem:[%s952_s26 + $0xe8] sm:$0xff] %v208_v29 }
  0x2e   : > { %211 = vst [vmem:[%s952_s26 + $0xf0] sm:$0xff] %v210_v30 }
  0x2f   : > { %213 = vst [vmem:[%s952_s26 + $0xf8] sm:$0xff] %v212_v31 }
  0x30 PF: > { %p667_p5 = scmp.ge.s32.totalorder %s890_s14, 1  ;;  %p218_p6 = scmp.lt.s32.totalorder %s890_s14, 3 }
  0x32   : > { %p219_p7 = pnand %p667_p5, %p218_p6 }
  0x33   : > { %s225_s27 = sand.u32 (!%p219_p7), 1, %s882_s12   ;;  %s669_s7 = sshll.u32 (!%p219_p7), %s660_s15, 3 }
  0x34   : > { %222 = sbr.rel (%p219_p7) target bundleno = 235 (0xeb), region = 51  ;;  %s668_s28 = sshll.u32 (!%p219_p7), %s225_s27, 8 }
  0x35   : > { %s1018_s29 = scalar_lea.vmem (!%p219_p7), [#allocation2], %s668_s28  ;;  %p250_p8 = scmp.lt.s32.totalorder (!%p219_p7), %s669_s7, 15 }
  0x39   : > { %v769_v32 = vld [vmem:[%s1018_s29 + $0xc0] sm:$0xf]  ;;  %v834_v34 = vld [vmem:[%s1018_s29 + $0xc4] sm:$0xf]  ;;  %v777_v37 = vld [vmem:[%s1018_s29 + $0xc8] sm:$0xf] }
  0x3a   : > { %v838_v33 = vld [vmem:[%s1018_s29 + $0xdc] sm:$0xf0]  ;;  %v771_v36 = vld [vmem:[%s1018_s29 + $0xe0] sm:$0xf0]  ;;  %v839_v38 = vld [vmem:[%s1018_s29 + $0xe4] sm:$0xf0] }
  0x3b   : > { %v770_v35 = vor.u32 %v838_v33, %v769_v32  ;;  %v774_v39 = vor.u32 %v834_v34, %v771_v36  ;;  %v778_v40 = vor.u32 %v839_v38, %v777_v37  ;;  %v835_v41 = vld [vmem:[%s1018_s29 + $0xcc] sm:$0xf]  ;;  %v737_v43 = vld [vmem:[%s1018_s29 + $0x80] sm:$0xf]  ;;  %v826_v46 = vld [vmem:[%s1018_s29 + $0x84] sm:$0xf] }
  0x3c   : > { %v779_v42 = vld [vmem:[%s1018_s29 + $0xe8] sm:$0xf0]  ;;  %v830_v45 = vld [vmem:[%s1018_s29 + $0x9c] sm:$0xf0]  ;;  %v739_v47 = vld [vmem:[%s1018_s29 + $0xa0] sm:$0xf0] }
  0x3d   : > { %463 = vmatpush.bf16.msra.mxu0 %v770_v35  ;;  %v782_v44 = vor.u32 %v835_v41, %v779_v42  ;;  %476 = vmatpush.bf16.msra.mxu1 %v774_v39  ;;  %v738_v48 = vor.u32 %v830_v45, %v737_v43  ;;  %v742_v49 = vor.u32 %v826_v46, %v739_v47  ;;  %v745_v50 = vld [vmem:[%s1018_s29 + $0x88] sm:$0xf]  ;;  %v827_v52 = vld [vmem:[%s1018_s29 + $0x8c] sm:$0xf]  ;;  %v705_v55 = vld [vmem:[%s1018_s29 + $0x40] sm:$0xf] }
  0x3e   : > { %489 = vmatpush.bf16.msra.mxu2 %v778_v40  ;;  %v831_v51 = vld [vmem:[%s1018_s29 + $0xa4] sm:$0xf0]  ;;  %v747_v54 = vld [vmem:[%s1018_s29 + $0xa8] sm:$0xf0]  ;;  %v822_v56 = vld [vmem:[%s1018_s29 + $0x5c] sm:$0xf0] }
  0x3f   : > { %502 = vmatpush.bf16.msra.mxu3 %v782_v44  ;;  %v746_v53 = vor.u32 %v831_v51, %v745_v50  ;;  %v750_v57 = vor.u32 %v827_v52, %v747_v54  ;;  %v818_v58 = vld [vmem:[%s1018_s29 + $0x44] sm:$0xf]  ;;  %v713_v60 = vld [vmem:[%s1018_s29 + $0x48] sm:$0xf]  ;;  %v706_v61 = vor.u32 %v822_v56, %v705_v55  ;;  %v819_v63 = vld [vmem:[%s1018_s29 + $0x4c] sm:$0xf] }
  0x40   : > { %v707_v59 = vld [vmem:[%s1018_s29 + $0x60] sm:$0xf0]  ;;  %v823_v62 = vld [vmem:[%s1018_s29 + $0x64] sm:$0xf0]  ;;  %v715_v0 = vld [vmem:[%s1018_s29 + $0x68] sm:$0xf0] }
  0x41   : > { %464 = vmatpush.bf16.msra.mxu0 %v738_v48  ;;  %477 = vmatpush.bf16.msra.mxu1 %v742_v49  ;;  %v710_v1 = vor.u32 %v818_v58, %v707_v59  ;;  %v714_v2 = vor.u32 %v823_v62, %v713_v60  ;;  %v673_v3 = vld [vmem:[%s1018_s29] sm:$0xf]  ;;  %v810_v5 = vld [vmem:[%s1018_s29 + $0x4] sm:$0xf]  ;;  %v718_v6 = vor.u32 %v819_v63, %v715_v0  ;;  %v681_v8 = vld [vmem:[%s1018_s29 + $0x8] sm:$0xf] }
  0x42   : > { %490 = vmatpush.bf16.msra.mxu2 %v746_v53  ;;  %v814_v4 = vld [vmem:[%s1018_s29 + $0x1c] sm:$0xf0]  ;;  %v675_v7 = vld [vmem:[%s1018_s29 + $0x20] sm:$0xf0]  ;;  %v815_v9 = vld [vmem:[%s1018_s29 + $0x24] sm:$0xf0] }
  0x43   : > { %503 = vmatpush.bf16.msra.mxu3 %v750_v57  ;;  %v811_v10 = vld [vmem:[%s1018_s29 + $0xc] sm:$0xf]  ;;  %v793_v12 = vld [vmem:[%s1018_s29 + $0xd8] sm:$0xf]  ;;  %v674_v13 = vor.u32 %v814_v4, %v673_v3  ;;  %v837_v15 = vld [vmem:[%s1018_s29 + $0xdc] sm:$0xf]  ;;  %v678_v17 = vor.u32 %v810_v5, %v675_v7  ;;  %v682_v18 = vor.u32 %v815_v9, %v681_v8 }
  0x44   : > { %v683_v11 = vld [vmem:[%s1018_s29 + $0x28] sm:$0xf0]  ;;  %v841_v14 = vld [vmem:[%s1018_s29 + $0xf4] sm:$0xf0]  ;;  %v795_v16 = vld [vmem:[%s1018_s29 + $0xf8] sm:$0xf0] }
  0x45   : > { %465 = vmatpush.bf16.msra.mxu0 %v706_v61  ;;  %478 = vmatpush.bf16.msra.mxu1 %v710_v1  ;;  %v686_v19 = vor.u32 %v811_v10, %v683_v11  ;;  %v1059_v20 = vld [vmem:[%s1129_s0] sm:$0x1]  ;;  %v794_v21 = vor.u32 %v841_v14, %v793_v12  ;;  %v785_v22 = vld [vmem:[%s1018_s29 + $0xd0] sm:$0xf]  ;;  %v836_v24 = vld [vmem:[%s1018_s29 + $0xd4] sm:$0xf]  ;;  %v798_v25 = vor.u32 %v837_v15, %v795_v16 }
  0x46   : > { %491 = vmatpush.bf16.msra.mxu2 %v714_v2  ;;  %v840_v23 = vld [vmem:[%s1018_s29 + $0xec] sm:$0xf0]  ;;  %v787_v26 = vld [vmem:[%s1018_s29 + $0xf0] sm:$0xf0]  ;;  %v761_v27 = vld [vmem:[%s1018_s29 + $0x98] sm:$0xf] }
  0x47   : > { %504 = vmatpush.bf16.msra.mxu3 %v718_v6  ;;  %v833_v28 = vld [vmem:[%s1018_s29 + $0xb4] sm:$0xf0]  ;;  %vm455_vm0 = vcmask 523264   ;;  %v829_v29 = vld [vmem:[%s1018_s29 + $0x9c] sm:$0xf]  ;;  %v786_v31 = vor.u32 %v840_v23, %v785_v22  ;;  %v790_v32 = vor.u32 %v836_v24, %v787_v26  ;;  %v892_v54 = vmov 0  }
  0x48   : > { %v763_v30 = vld [vmem:[%s1018_s29 + $0xb8] sm:$0xf0]  ;;  %v762_v33 = vor.u32 %v833_v28, %v761_v27  ;;  %v753_v34 = vld [vmem:[%s1018_s29 + $0x90] sm:$0xf]  ;;  %v828_v36 = vld [vmem:[%s1018_s29 + $0x94] sm:$0xf]  ;;  %867 = vset.pattern.permute.xlu0 %v892_v54 }
  0x49   : > { %466 = vmatpush.bf16.msra.mxu0 %v674_v13  ;;  %479 = vmatpush.bf16.msra.mxu1 %v678_v17  ;;  %v832_v35 = vld [vmem:[%s1018_s29 + $0xac] sm:$0xf0]  ;;  %v766_v37 = vor.u32 %v829_v29, %v763_v30  ;;  %v755_v38 = vld [vmem:[%s1018_s29 + $0xb0] sm:$0xf0]  ;;  %v729_v39 = vld [vmem:[%s1018_s29 + $0x58] sm:$0xf] }
  0x4a   : > { %492 = vmatpush.bf16.msra.mxu2 %v682_v18  ;;  %v825_v40 = vld [vmem:[%s1018_s29 + $0x74] sm:$0xf0]  ;;  %v821_v41 = vld [vmem:[%s1018_s29 + $0x5c] sm:$0xf]  ;;  %v754_v43 = vor.u32 %v832_v35, %v753_v34  ;;  %v721_v44 = vld [vmem:[%s1018_s29 + $0x50] sm:$0xf]  ;;  %v758_v46 = vor.u32 %v828_v36, %v755_v38 }
  0x4b   : > { %505 = vmatpush.bf16.msra.mxu3 %v686_v19  ;;  %v731_v42 = vld [vmem:[%s1018_s29 + $0x78] sm:$0xf0]  ;;  %v824_v45 = vld [vmem:[%s1018_s29 + $0x6c] sm:$0xf0]  ;;  %v730_v47 = vor.u32 %v825_v40, %v729_v39  ;;  %v820_v48 = vld [vmem:[%s1018_s29 + $0x54] sm:$0xf] }
  0x4c   : > { %799 = vmatmul.msk.bf16.vlgmr.msra.gmra.mxu0 %vm455_vm0, %v1059_v20  ;;  %800 = vmatmul.msk.bf16.vlgmr.msra.gmra.mxu1 %vm455_vm0, %v1059_v20  ;;  %v289_v49 = vld [vmem:[%s1131_s2] sm:$0x3]  ;;  %v734_v50 = vor.u32 %v821_v41, %v731_v42  ;;  %v723_v51 = vld [vmem:[%s1018_s29 + $0x70] sm:$0xf0]  ;;  %v697_v52 = vld [vmem:[%s1018_s29 + $0x18] sm:$0xf]  ;;  %v722_v57 = vor.u32 %v824_v45, %v721_v44 }
  0x4d   : > { %801 = vmatmul.msk.bf16.vlgmr.msra.gmra.mxu2 %vm455_vm0, %v1059_v20  ;;  %515 = vmatpush.bf16.msrb.mxu0 %v786_v31  ;;  %v817_v53 = vld [vmem:[%s1018_s29 + $0x34] sm:$0xf0]  ;;  %v813_v55 = vld [vmem:[%s1018_s29 + $0x1c] sm:$0xf]  ;;  %v726_v58 = vor.u32 %v820_v48, %v723_v51  ;;  %v689_v60 = vld [vmem:[%s1018_s29 + $0x10] sm:$0xf] }
  0x4e   : > { %541 = vmatpush.bf16.msrb.mxu2 %v794_v21  ;;  %802 = vmatmul.msk.bf16.vlgmr.msra.gmra.mxu3 %vm455_vm0, %v1059_v20  ;;  %v699_v56 = vld [vmem:[%s1018_s29 + $0x38] sm:$0xf0]  ;;  %v698_v59 = vor.u32 %v817_v53, %v697_v52  ;;  %v816_v61 = vld [vmem:[%s1018_s29 + $0x2c] sm:$0xf0]  ;;  %v812_v63 = vld [vmem:[%s1018_s29 + $0x14] sm:$0xf] }
  0x4f   : > { %554 = vmatpush.bf16.msrb.mxu3 %v798_v25  ;;  %528 = vmatpush.bf16.msrb.mxu1 %v790_v32  ;;  %v702_v62 = vor.u32 %v813_v55, %v699_v56  ;;  %v691_v0 = vld [vmem:[%s1018_s29 + $0x30] sm:$0xf0]  ;;  %v690_v1 = vor.u32 %v816_v61, %v689_v60  ;;  %s1137_s7 = smov (!%p250_p8, %s669_s7), 15  ;;  %vm585_vm1 = vcmask 1041408   ;;  %vm587_vm2 = vcmask 1045508  }
  0x50   : > { %292 = vperm.xlu0 %867, %v289_v49   ;;  %v694_v2 = vor.u32 %v812_v63, %v691_v0  ;;  %s670_s8 = sshll.u32 %s1137_s7, 1  ;;  %vm589_vm3 = vcmask 1043456  }
  0x51   : > { %516 = vmatpush.bf16.msrb.mxu0 %v754_v43  ;;  %s253_s11 = scalar_lea.vmem %s1132_s3, %s670_s8 }
  0x52   : > { %542 = vmatpush.bf16.msrb.mxu2 %v762_v33 }
  0x53   : > { %555 = vmatpush.bf16.msrb.mxu3 %v766_v37  ;;  %529 = vmatpush.bf16.msrb.mxu1 %v758_v46 }
  0x55   : > { %517 = vmatpush.bf16.msrb.mxu0 %v722_v57 }
  0x56   : > { %543 = vmatpush.bf16.msrb.mxu2 %v730_v47 }
  0x57   : > { %556 = vmatpush.bf16.msrb.mxu3 %v734_v50  ;;  %530 = vmatpush.bf16.msrb.mxu1 %v726_v58 }
  0x59   : > { %518 = vmatpush.bf16.msrb.mxu0 %v690_v1 }
  0x5a   : > { %544 = vmatpush.bf16.msrb.mxu2 %v698_v59 }
  0x5b   : > { %557 = vmatpush.bf16.msrb.mxu3 %v702_v62  ;;  %531 = vmatpush.bf16.msrb.mxu1 %v694_v2 }
  0x5c   : > { %803 = vmatmul.msk.bf16.vlgmr.msrb.gmra.mxu0 %vm455_vm0, %v1059_v20 }
  0x5d   : > { %805 = vmatmul.msk.bf16.vlgmr.msrb.gmra.mxu2 %vm455_vm0, %v1059_v20 }
  0x5e   : > { %804 = vmatmul.msk.bf16.vlgmr.msrb.gmra.mxu1 %vm455_vm0, %v1059_v20  ;;  %806 = vmatmul.msk.bf16.vlgmr.msrb.gmra.mxu3 %vm455_vm0, %v1059_v20 }
  0xc2   : > { %v293_v3 = vpop.permute.xlu0 %292 }
  0xc9   : > { %v468_v4 = vpop.f32.mrf.mxu0  ;;  %v481_v5 = vpop.f32.mrf.mxu1 }
  0xca   : > { %v482_v6 = vadd.f32 %v481_v5, %v293_v3  ;;  %v469_v7 = vadd.f32 %v468_v4, %v293_v3 }
  0xcc   : > { %v564_v8 = vmax.f32 %v482_v6, 0.0  ;;  %v563_v14 = vmax.f32 %v469_v7, 0.0 }
  0xce   : > { %v579_v15 = vrot.slane %v564_v8, 6 }
  0xd0   : > { %v494_v9 = vpop.f32.mrf.mxu2  ;;  %v586_v21 = vsel %vm585_vm1, %v563_v14, %v579_v15 }
  0xd1   : > { %v495_v10 = vadd.f32 %v494_v9, %v293_v3  ;;  %v507_v11 = vpop.f32.mrf.mxu3  ;;  %v470_v12 = vpop.f32.mrf.mxu0 }
  0xd2   : > { %v508_v13 = vadd.f32 %v507_v11, %v293_v3  ;;  %v483_v16 = vpop.f32.mrf.mxu1 }
  0xd3   : > { %v565_v17 = vmax.f32 %v495_v10, 0.0 }
  0xd4   : > { %v566_v18 = vmax.f32 %v508_v13, 0.0 }
  0xd5   : > { %v580_v19 = vrot.slane %v565_v17, 4 }
  0xd6   : > { %v581_v20 = vrot.slane %v566_v18, 2 }
  0xd8   : > { %v588_v22 = vsel %vm587_vm2, %v580_v19, %v581_v20  ;;  %v496_v23 = vpop.f32.mrf.mxu2 }
  0xd9   : > { %v590_v24 = vsel %vm589_vm3, %v586_v21, %v588_v22  ;;  %v509_v25 = vpop.f32.mrf.mxu3  ;;  %v520_v26 = vpop.f32.mrf.mxu0 }
  0xda   : > { %596 = vst [vmem:[%s253_s11] sm:$0xff] %v590_v24  ;;  %v521_v29 = vadd.f32 %v520_v26, %v293_v3 }
  0xdb   : > { %v533_v27 = vpop.f32.mrf.mxu1 }
  0xdc   : > { %v534_v28 = vadd.f32 %v533_v27, %v293_v3  ;;  %v567_v38 = vmax.f32 %v521_v29, 0.0 }
  0xde   : > { %v568_v30 = vmax.f32 %v534_v28, 0.0 }
  0xe0   : > { %v546_v31 = vpop.f32.mrf.mxu2  ;;  %v582_v39 = vrot.slane %v568_v30, 6 }
  0xe1   : > { %v547_v32 = vadd.f32 %v546_v31, %v293_v3  ;;  %v559_v33 = vpop.f32.mrf.mxu3  ;;  %v522_v35 = vpop.f32.mrf.mxu0 }
  0xe2   : > { %v560_v34 = vadd.f32 %v559_v33, %v293_v3  ;;  %v591_v43 = vsel %vm585_vm1, %v567_v38, %v582_v39 }
  0xe3   : > { %v569_v36 = vmax.f32 %v547_v32, 0.0  ;;  %v535_v37 = vpop.f32.mrf.mxu1 }
  0xe4   : > { %v570_v40 = vmax.f32 %v560_v34, 0.0 }
  0xe5   : > { %v583_v41 = vrot.slane %v569_v36, 4 }
  0xe6   : > { %v584_v42 = vrot.slane %v570_v40, 2 }
  0xe8   : > { %v592_v44 = vsel %vm587_vm2, %v583_v41, %v584_v42  ;;  %v548_v45 = vpop.f32.mrf.mxu2 }
  0xe9   : > { %v593_v46 = vsel %vm589_vm3, %v591_v43, %v592_v44  ;;  %v561_v47 = vpop.f32.mrf.mxu3 }
  0xea   : > { %597 = vst [vmem:[%s253_s11 + $0x8] sm:$0xff] %v593_v46 }
  0xeb PF: > { %p10_p9 = scmp.ge.s32.totalorder %s930_s16, 4   ;;  %s1133_s12 = smov %s886_s13 }
  0xec   : > { %s1134_s13 = smov %s939_s19  ;;  %s1135_s14 = smov %s930_s16 }
  0xed   :  { %12 = sbr.rel (!%p10_p9) target bundleno = 2 (0x2), region = 90 }

// kernel: vae_fd_forward.38
= control target key start
LH: loop header
LB: loop body
LE: loop exit
PB: predicated region body
PF: predicated region fallthrough
CT: control target
= control target key end

     0   :  { %s2181_s0 = inlined_call_operand.vmem [shape: bf16[1,32], index: 0, kind: input, shape index: {}]   ;;  %s2182_s1 = inlined_call_operand.vmem [shape: bf16[32,8192], index: 1, kind: input, shape index: {}]   ;;  %s2183_s2 = inlined_call_operand.<no memory space> [shape: f32[1,1], index: 2, kind: input, shape index: {}]   ;;  %s2184_s3 = inlined_call_operand.vmem [shape: f32[1,8192], index: 3, kind: output, shape index: {}]  }
   0x1   :  { %v8_v0 = vstv %s2183_s2 }
   0x2   :  { %9 = vst [vmem:[#allocation2] sm:$0x1] %v8_v0 }
   0x3   :  { %s1730_s14 = smov 0   ;;  %s1732_s15 = smov 0  }
   0x4   :  { %s1734_s16 = smov 0  }
   0x5 LB: > { %s1291_s2 = sadd.s32 4294967295, %s1704_s16   ;;  %s1747_s17 = sadd.s32 1, %s1704_s16   ;;  %s1704_s16 = sphi %s1734_s16, %s2187_s16   ;;  %s1700_s15 = sphi %s1732_s15, %s2186_s15   ;;  %s1696_s14 = sphi %s1730_s14, %s2185_s14  }
   0x6   : > { %s40_s18 = ssub.s32 %s1704_s16, %s1747_s17  ;;  %s43_s19 = sadd.s32 1, %s1700_s15 }
   0x7   : > { %p41_p0 = scmp.eq.s32.totalorder %s40_s18, 0  ;;  %p50_p1 = scmp.ne.s32.totalorder %s1700_s15, %s1696_s14 }
   0x8   : > { %p51_p2 = scmp.eq.s32.totalorder %s1704_s16, 0  ;;  %p1294_p4 = scmp.ge.s32.totalorder %s1704_s16, 2 }
   0x9   : > { %s1756_s20 = scalar_select %p41_p0, %s1700_s15, %s43_s19  }
   0xa   : > { %p52_p3 = por %p51_p2, %p50_p1  ;;  %129 = sbr.rel (%p1294_p4) target bundleno = 83 (0x53), region = 24 }
   0xf   : > { %132 = sbr.rel (!%p52_p3) target bundleno = 83 (0x53), region = 28  ;;  %s134_s21 = sand.u32 (%p52_p3), 1, %s1700_s15  }
  0x10   : > { %s1591_s22 = sshll.u32 (%p52_p3), %s1704_s16, 7  ;;  %s1295_s23 = sshll.u32 (%p52_p3), %s134_s21, 9 }
  0x11   : > { %s1764_s26 = scalar_lea.vmem (%p52_p3), %s2182_s1, %s1591_s22  ;;  %s1769_s27 = scalar_lea.vmem (%p52_p3), [#allocation3], %s1295_s23 }
  0x12   : > { %v152_v1 = vld [vmem:[%s1764_s26] sm:$0xff] (%p52_p3)  ;;  %v154_v2 = vld [vmem:[%s1764_s26 + $0x8] sm:$0xff] (%p52_p3)  ;;  %v156_v3 = vld [vmem:[%s1764_s26 + $0x10] sm:$0xff] (%p52_p3) }
  0x13   : > { %153 = vst [vmem:[%s1769_s27] sm:$0xff] (%p52_p3), %v152_v1  ;;  %v158_v4 = vld [vmem:[%s1764_s26 + $0x18] sm:$0xff] (%p52_p3)  ;;  %v160_v5 = vld [vmem:[%s1764_s26 + $0x20] sm:$0xff] (%p52_p3)  ;;  %v162_v6 = vld [vmem:[%s1764_s26 + $0x28] sm:$0xff] (%p52_p3) }
  0x14   : > { %155 = vst [vmem:[%s1769_s27 + $0x8] sm:$0xff] %v154_v2  ;;  %v164_v7 = vld [vmem:[%s1764_s26 + $0x30] sm:$0xff]  ;;  %v166_v8 = vld [vmem:[%s1764_s26 + $0x38] sm:$0xff]  ;;  %v168_v9 = vld [vmem:[%s1764_s26 + $0x40] sm:$0xff] }
  0x15   : > { %157 = vst [vmem:[%s1769_s27 + $0x10] sm:$0xff] %v156_v3  ;;  %v170_v10 = vld [vmem:[%s1764_s26 + $0x48] sm:$0xff]  ;;  %v172_v11 = vld [vmem:[%s1764_s26 + $0x50] sm:$0xff]  ;;  %v174_v12 = vld [vmem:[%s1764_s26 + $0x58] sm:$0xff] }
  0x16   : > { %159 = vst [vmem:[%s1769_s27 + $0x18] sm:$0xff] %v158_v4  ;;  %v176_v13 = vld [vmem:[%s1764_s26 + $0x60] sm:$0xff]  ;;  %v178_v14 = vld [vmem:[%s1764_s26 + $0x68] sm:$0xff]  ;;  %v180_v15 = vld [vmem:[%s1764_s26 + $0x70] sm:$0xff] }
  0x17   : > { %161 = vst [vmem:[%s1769_s27 + $0x20] sm:$0xff] %v160_v5  ;;  %v182_v16 = vld [vmem:[%s1764_s26 + $0x78] sm:$0xff]  ;;  %v184_v17 = vld [vmem:[%s1764_s26 + $0x100] sm:$0xff]  ;;  %v186_v18 = vld [vmem:[%s1764_s26 + $0x108] sm:$0xff] }
  0x18   : > { %163 = vst [vmem:[%s1769_s27 + $0x28] sm:$0xff] %v162_v6  ;;  %v188_v19 = vld [vmem:[%s1764_s26 + $0x110] sm:$0xff]  ;;  %v190_v20 = vld [vmem:[%s1764_s26 + $0x118] sm:$0xff]  ;;  %v192_v21 = vld [vmem:[%s1764_s26 + $0x120] sm:$0xff] }
  0x19   : > { %165 = vst [vmem:[%s1769_s27 + $0x30] sm:$0xff] %v164_v7  ;;  %v194_v22 = vld [vmem:[%s1764_s26 + $0x128] sm:$0xff]  ;;  %v196_v23 = vld [vmem:[%s1764_s26 + $0x130] sm:$0xff]  ;;  %v198_v24 = vld [vmem:[%s1764_s26 + $0x138] sm:$0xff] }
  0x1a   : > { %167 = vst [vmem:[%s1769_s27 + $0x38] sm:$0xff] %v166_v8  ;;  %v200_v25 = vld [vmem:[%s1764_s26 + $0x140] sm:$0xff]  ;;  %v202_v26 = vld [vmem:[%s1764_s26 + $0x148] sm:$0xff]  ;;  %v204_v27 = vld [vmem:[%s1764_s26 + $0x150] sm:$0xff] }
  0x1b   : > { %169 = vst [vmem:[%s1769_s27 + $0x40] sm:$0xff] %v168_v9  ;;  %v206_v28 = vld [vmem:[%s1764_s26 + $0x158] sm:$0xff]  ;;  %v208_v29 = vld [vmem:[%s1764_s26 + $0x160] sm:$0xff]  ;;  %v210_v30 = vld [vmem:[%s1764_s26 + $0x168] sm:$0xff] }
  0x1c   : > { %171 = vst [vmem:[%s1769_s27 + $0x48] sm:$0xff] %v170_v10  ;;  %v212_v31 = vld [vmem:[%s1764_s26 + $0x170] sm:$0xff]  ;;  %v214_v32 = vld [vmem:[%s1764_s26 + $0x178] sm:$0xff]  ;;  %v216_v33 = vld [vmem:[%s1764_s26 + $0x200] sm:$0xff] }
  0x1d   : > { %173 = vst [vmem:[%s1769_s27 + $0x50] sm:$0xff] %v172_v11  ;;  %v218_v34 = vld [vmem:[%s1764_s26 + $0x208] sm:$0xff]  ;;  %v220_v35 = vld [vmem:[%s1764_s26 + $0x210] sm:$0xff]  ;;  %v222_v36 = vld [vmem:[%s1764_s26 + $0x218] sm:$0xff] }
  0x1e   : > { %175 = vst [vmem:[%s1769_s27 + $0x58] sm:$0xff] %v174_v12  ;;  %v224_v37 = vld [vmem:[%s1764_s26 + $0x220] sm:$0xff]  ;;  %v226_v38 = vld [vmem:[%s1764_s26 + $0x228] sm:$0xff]  ;;  %v228_v39 = vld [vmem:[%s1764_s26 + $0x230] sm:$0xff] }
  0x1f   : > { %177 = vst [vmem:[%s1769_s27 + $0x60] sm:$0xff] %v176_v13  ;;  %v230_v40 = vld [vmem:[%s1764_s26 + $0x238] sm:$0xff]  ;;  %v232_v41 = vld [vmem:[%s1764_s26 + $0x240] sm:$0xff]  ;;  %v234_v42 = vld [vmem:[%s1764_s26 + $0x248] sm:$0xff] }
  0x20   : > { %179 = vst [vmem:[%s1769_s27 + $0x68] sm:$0xff] %v178_v14  ;;  %v236_v43 = vld [vmem:[%s1764_s26 + $0x250] sm:$0xff]  ;;  %v238_v44 = vld [vmem:[%s1764_s26 + $0x258] sm:$0xff]  ;;  %v240_v45 = vld [vmem:[%s1764_s26 + $0x260] sm:$0xff] }
  0x21   : > { %181 = vst [vmem:[%s1769_s27 + $0x70] sm:$0xff] %v180_v15  ;;  %v242_v46 = vld [vmem:[%s1764_s26 + $0x268] sm:$0xff]  ;;  %v244_v47 = vld [vmem:[%s1764_s26 + $0x270] sm:$0xff]  ;;  %v246_v48 = vld [vmem:[%s1764_s26 + $0x278] sm:$0xff] }
  0x22   : > { %183 = vst [vmem:[%s1769_s27 + $0x78] sm:$0xff] %v182_v16  ;;  %v248_v49 = vld [vmem:[%s1764_s26 + $0x300] sm:$0xff]  ;;  %v250_v50 = vld [vmem:[%s1764_s26 + $0x308] sm:$0xff]  ;;  %v252_v51 = vld [vmem:[%s1764_s26 + $0x310] sm:$0xff] }
  0x23   : > { %185 = vst [vmem:[%s1769_s27 + $0x80] sm:$0xff] %v184_v17  ;;  %v254_v52 = vld [vmem:[%s1764_s26 + $0x318] sm:$0xff]  ;;  %v256_v53 = vld [vmem:[%s1764_s26 + $0x320] sm:$0xff]  ;;  %v258_v54 = vld [vmem:[%s1764_s26 + $0x328] sm:$0xff] }
  0x24   : > { %187 = vst [vmem:[%s1769_s27 + $0x88] sm:$0xff] %v186_v18  ;;  %v260_v55 = vld [vmem:[%s1764_s26 + $0x330] sm:$0xff]  ;;  %v262_v56 = vld [vmem:[%s1764_s26 + $0x338] sm:$0xff]  ;;  %v264_v57 = vld [vmem:[%s1764_s26 + $0x340] sm:$0xff] }
  0x25   : > { %189 = vst [vmem:[%s1769_s27 + $0x90] sm:$0xff] %v188_v19  ;;  %v266_v58 = vld [vmem:[%s1764_s26 + $0x348] sm:$0xff]  ;;  %v268_v59 = vld [vmem:[%s1764_s26 + $0x350] sm:$0xff]  ;;  %v270_v60 = vld [vmem:[%s1764_s26 + $0x358] sm:$0xff] }
  0x26   : > { %191 = vst [vmem:[%s1769_s27 + $0x98] sm:$0xff] %v190_v20  ;;  %v272_v61 = vld [vmem:[%s1764_s26 + $0x360] sm:$0xff]  ;;  %v274_v62 = vld [vmem:[%s1764_s26 + $0x368] sm:$0xff]  ;;  %v276_v63 = vld [vmem:[%s1764_s26 + $0x370] sm:$0xff] }
  0x27   : > { %193 = vst [vmem:[%s1769_s27 + $0xa0] sm:$0xff] %v192_v21  ;;  %v278_v0 = vld [vmem:[%s1764_s26 + $0x378] sm:$0xff] }
  0x28   : > { %195 = vst [vmem:[%s1769_s27 + $0xa8] sm:$0xff] %v194_v22 }
  0x29   : > { %197 = vst [vmem:[%s1769_s27 + $0xb0] sm:$0xff] %v196_v23 }
  0x2a   : > { %199 = vst [vmem:[%s1769_s27 + $0xb8] sm:$0xff] %v198_v24 }
  0x2b   : > { %201 = vst [vmem:[%s1769_s27 + $0xc0] sm:$0xff] %v200_v25 }
  0x2c   : > { %203 = vst [vmem:[%s1769_s27 + $0xc8] sm:$0xff] %v202_v26 }
  0x2d   : > { %205 = vst [vmem:[%s1769_s27 + $0xd0] sm:$0xff] %v204_v27 }
  0x2e   : > { %207 = vst [vmem:[%s1769_s27 + $0xd8] sm:$0xff] %v206_v28 }
  0x2f   : > { %209 = vst [vmem:[%s1769_s27 + $0xe0] sm:$0xff] %v208_v29 }
  0x30   : > { %211 = vst [vmem:[%s1769_s27 + $0xe8] sm:$0xff] %v210_v30 }
  0x31   : > { %213 = vst [vmem:[%s1769_s27 + $0xf0] sm:$0xff] %v212_v31 }
  0x32   : > { %215 = vst [vmem:[%s1769_s27 + $0xf8] sm:$0xff] %v214_v32 }
  0x33   : > { %217 = vst [vmem:[%s1769_s27 + $0x100] sm:$0xff] %v216_v33 }
  0x34   : > { %219 = vst [vmem:[%s1769_s27 + $0x108] sm:$0xff] %v218_v34 }
  0x35   : > { %221 = vst [vmem:[%s1769_s27 + $0x110] sm:$0xff] %v220_v35 }
  0x36   : > { %223 = vst [vmem:[%s1769_s27 + $0x118] sm:$0xff] %v222_v36 }
  0x37   : > { %225 = vst [vmem:[%s1769_s27 + $0x120] sm:$0xff] %v224_v37 }
  0x38   : > { %227 = vst [vmem:[%s1769_s27 + $0x128] sm:$0xff] %v226_v38 }
  0x39   : > { %229 = vst [vmem:[%s1769_s27 + $0x130] sm:$0xff] %v228_v39 }
  0x3a   : > { %231 = vst [vmem:[%s1769_s27 + $0x138] sm:$0xff] %v230_v40 }
  0x3b   : > { %233 = vst [vmem:[%s1769_s27 + $0x140] sm:$0xff] %v232_v41 }
  0x3c   : > { %235 = vst [vmem:[%s1769_s27 + $0x148] sm:$0xff] %v234_v42 }
  0x3d   : > { %237 = vst [vmem:[%s1769_s27 + $0x150] sm:$0xff] %v236_v43 }
  0x3e   : > { %239 = vst [vmem:[%s1769_s27 + $0x158] sm:$0xff] %v238_v44 }
  0x3f   : > { %241 = vst [vmem:[%s1769_s27 + $0x160] sm:$0xff] %v240_v45 }
  0x40   : > { %243 = vst [vmem:[%s1769_s27 + $0x168] sm:$0xff] %v242_v46 }
  0x41   : > { %245 = vst [vmem:[%s1769_s27 + $0x170] sm:$0xff] %v244_v47 }
  0x42   : > { %247 = vst [vmem:[%s1769_s27 + $0x178] sm:$0xff] %v246_v48 }
  0x43   : > { %249 = vst [vmem:[%s1769_s27 + $0x180] sm:$0xff] %v248_v49 }
  0x44   : > { %251 = vst [vmem:[%s1769_s27 + $0x188] sm:$0xff] %v250_v50 }
  0x45   : > { %253 = vst [vmem:[%s1769_s27 + $0x190] sm:$0xff] %v252_v51 }
  0x46   : > { %255 = vst [vmem:[%s1769_s27 + $0x198] sm:$0xff] %v254_v52 }
  0x47   : > { %257 = vst [vmem:[%s1769_s27 + $0x1a0] sm:$0xff] %v256_v53 }
  0x48   : > { %259 = vst [vmem:[%s1769_s27 + $0x1a8] sm:$0xff] %v258_v54 }
  0x49   : > { %261 = vst [vmem:[%s1769_s27 + $0x1b0] sm:$0xff] %v260_v55 }
  0x4a   : > { %263 = vst [vmem:[%s1769_s27 + $0x1b8] sm:$0xff] %v262_v56 }
  0x4b   : > { %265 = vst [vmem:[%s1769_s27 + $0x1c0] sm:$0xff] %v264_v57 }
  0x4c   : > { %267 = vst [vmem:[%s1769_s27 + $0x1c8] sm:$0xff] %v266_v58 }
  0x4d   : > { %269 = vst [vmem:[%s1769_s27 + $0x1d0] sm:$0xff] %v268_v59 }
  0x4e   : > { %271 = vst [vmem:[%s1769_s27 + $0x1d8] sm:$0xff] %v270_v60 }
  0x4f   : > { %273 = vst [vmem:[%s1769_s27 + $0x1e0] sm:$0xff] %v272_v61 }
  0x50   : > { %275 = vst [vmem:[%s1769_s27 + $0x1e8] sm:$0xff] %v274_v62 }
  0x51   : > { %277 = vst [vmem:[%s1769_s27 + $0x1f0] sm:$0xff] %v276_v63 }
  0x52   : > { %279 = vst [vmem:[%s1769_s27 + $0x1f8] sm:$0xff] %v278_v0 }
  0x53 PF: > { %p1298_p5 = scmp.ge.s32.totalorder %s1704_s16, 1  ;;  %p284_p6 = scmp.lt.s32.totalorder %s1704_s16, 3 }
  0x55   : > { %p285_p7 = pnand %p1298_p5, %p284_p6 }
  0x56   : > { %s291_s28 = sand.u32 (!%p285_p7), 1, %s1696_s14   ;;  %s1300_s6 = sshll.u32 (!%p285_p7), %s1291_s2, 5 }
  0x57   : > { %288 = sbr.rel (%p285_p7) target bundleno = 357 (0x165), region = 51  ;;  %s1299_s29 = sshll.u32 (!%p285_p7), %s291_s28, 9 }
  0x58   : > { %s1899_s30 = scalar_lea.vmem (!%p285_p7), [#allocation3], %s1299_s29  ;;  %p315_p8 = scmp.lt.s32.totalorder (!%p285_p7), %s1300_s6, 63 }
  0x5c   : > { %v1706_v1 = vmov 0   ;;  %v385_v2 = vld [vmem:[#allocation2] sm:$0x1]  ;;  %vm712_vm0 = vcmask 261120   ;;  %v1431_v3 = vld [vmem:[%s1899_s30 + $0x100] sm:$0xf] }
  0x5d   : > { %1681 = vset.pattern.permute.xlu0 %v1706_v1  ;;  %v1640_v4 = vld [vmem:[%s1899_s30 + $0x17c] sm:$0xf0]  ;;  %v1624_v5 = vld [vmem:[%s1899_s30 + $0x104] sm:$0xf]  ;;  %v1439_v8 = vld [vmem:[%s1899_s30 + $0x108] sm:$0xf] }
  0x5e   : > { %388 = vperm.xlu0 %1681, %v385_v2   ;;  %v1432_v6 = vor.u32 %v1640_v4, %v1431_v3  ;;  %v1433_v7 = vld [vmem:[%s1899_s30 + $0x180] sm:$0xf0]  ;;  %v1641_v9 = vld [vmem:[%s1899_s30 + $0x184] sm:$0xf0]  ;;  %v1625_v12 = vld [vmem:[%s1899_s30 + $0x10c] sm:$0xf] }
  0x5f   : > { %v1436_v10 = vor.u32 %v1624_v5, %v1433_v7  ;;  %v1440_v11 = vor.u32 %v1641_v9, %v1439_v8  ;;  %v1441_v13 = vld [vmem:[%s1899_s30 + $0x188] sm:$0xf0]  ;;  %v1303_v14 = vld [vmem:[%s1899_s30] sm:$0xf]  ;;  %v1592_v17 = vld [vmem:[%s1899_s30 + $0x4] sm:$0xf] }
  0x60   : > { %722 = vmatpush.bf16.msra.mxu0 %v1432_v6  ;;  %v1444_v15 = vor.u32 %v1625_v12, %v1441_v13  ;;  %v1608_v16 = vld [vmem:[%s1899_s30 + $0x7c] sm:$0xf0]  ;;  %v1305_v18 = vld [vmem:[%s1899_s30 + $0x80] sm:$0xf0]  ;;  %v1311_v21 = vld [vmem:[%s1899_s30 + $0x8] sm:$0xf] }
  0x61   : > { %735 = vmatpush.bf16.msra.mxu1 %v1436_v10  ;;  %748 = vmatpush.bf16.msra.mxu2 %v1440_v11  ;;  %v1304_v19 = vor.u32 %v1608_v16, %v1303_v14  ;;  %v1308_v20 = vor.u32 %v1592_v17, %v1305_v18  ;;  %v1609_v22 = vld [vmem:[%s1899_s30 + $0x84] sm:$0xf0]  ;;  %v1593_v23 = vld [vmem:[%s1899_s30 + $0xc] sm:$0xf]  ;;  %v1920_v26 = vld [vmem:[%s2181_s0] sm:$0x1] }
  0x62   : > { %761 = vmatpush.bf16.msra.mxu3 %v1444_v15  ;;  %v1312_v24 = vor.u32 %v1609_v22, %v1311_v21  ;;  %v1313_v25 = vld [vmem:[%s1899_s30 + $0x88] sm:$0xf0]  ;;  %v1455_v27 = vld [vmem:[%s1899_s30 + $0x118] sm:$0xf]  ;;  %v1627_v31 = vld [vmem:[%s1899_s30 + $0x11c] sm:$0xf] }
  0x63   : > { %v1643_v28 = vld [vmem:[%s1899_s30 + $0x194] sm:$0xf0]  ;;  %v1316_v29 = vor.u32 %v1593_v23, %v1313_v25  ;;  %v1457_v32 = vld [vmem:[%s1899_s30 + $0x198] sm:$0xf0]  ;;  %v1447_v33 = vld [vmem:[%s1899_s30 + $0x110] sm:$0xf] }
  0x64   : > { %v1456_v30 = vor.u32 %v1643_v28, %v1455_v27  ;;  %723 = vmatpush.bf16.msra.mxu0 %v1304_v19  ;;  %v1460_v34 = vor.u32 %v1627_v31, %v1457_v32  ;;  %v1642_v35 = vld [vmem:[%s1899_s30 + $0x18c] sm:$0xf0]  ;;  %v1626_v36 = vld [vmem:[%s1899_s30 + $0x114] sm:$0xf]  ;;  %v1327_v39 = vld [vmem:[%s1899_s30 + $0x18] sm:$0xf] }
  0x65   : > { %v1449_v37 = vld [vmem:[%s1899_s30 + $0x190] sm:$0xf0]  ;;  %736 = vmatpush.bf16.msra.mxu1 %v1308_v20  ;;  %749 = vmatpush.bf16.msra.mxu2 %v1312_v24  ;;  %v1448_v38 = vor.u32 %v1642_v35, %v1447_v33  ;;  %v1611_v40 = vld [vmem:[%s1899_s30 + $0x94] sm:$0xf0]  ;;  %v1595_v41 = vld [vmem:[%s1899_s30 + $0x1c] sm:$0xf] }
  0x66   : > { %762 = vmatpush.bf16.msra.mxu3 %v1316_v29  ;;  %v1452_v42 = vor.u32 %v1626_v36, %v1449_v37  ;;  %v1328_v43 = vor.u32 %v1611_v40, %v1327_v39  ;;  %v1329_v44 = vld [vmem:[%s1899_s30 + $0x98] sm:$0xf0]  ;;  %v1319_v45 = vld [vmem:[%s1899_s30 + $0x10] sm:$0xf]  ;;  %v1594_v48 = vld [vmem:[%s1899_s30 + $0x14] sm:$0xf] }
  0x67   : > { %v1610_v46 = vld [vmem:[%s1899_s30 + $0x8c] sm:$0xf0]  ;;  %1557 = vmatmul.msk.bf16.vlgmr.msra.gmra.mxu0 %vm712_vm0, %v1920_v26  ;;  %v1332_v47 = vor.u32 %v1595_v41, %v1329_v44  ;;  %v1321_v49 = vld [vmem:[%s1899_s30 + $0x90] sm:$0xf0]  ;;  %v1471_v50 = vld [vmem:[%s1899_s30 + $0x128] sm:$0xf] }
  0x68   : > { %1558 = vmatmul.msk.bf16.vlgmr.msra.gmra.mxu1 %vm712_vm0, %v1920_v26  ;;  %1559 = vmatmul.msk.bf16.vlgmr.msra.gmra.mxu2 %vm712_vm0, %v1920_v26  ;;  %v1645_v51 = vld [vmem:[%s1899_s30 + $0x1a4] sm:$0xf0]  ;;  %v1629_v52 = vld [vmem:[%s1899_s30 + $0x12c] sm:$0xf]  ;;  %v1320_v54 = vor.u32 %v1610_v46, %v1319_v45  ;;  %v1463_v57 = vld [vmem:[%s1899_s30 + $0x120] sm:$0xf]  ;;  %v1324_v60 = vor.u32 %v1594_v48, %v1321_v49 }
  0x69   : > { %800 = vmatpush.bf16.msrb.mxu2 %v1456_v30  ;;  %v1473_v53 = vld [vmem:[%s1899_s30 + $0x1a8] sm:$0xf0]  ;;  %1560 = vmatmul.msk.bf16.vlgmr.msra.gmra.mxu3 %vm712_vm0, %v1920_v26  ;;  %v1472_v55 = vor.u32 %v1645_v51, %v1471_v50  ;;  %v1644_v58 = vld [vmem:[%s1899_s30 + $0x19c] sm:$0xf0]  ;;  %v1628_v59 = vld [vmem:[%s1899_s30 + $0x124] sm:$0xf] }
  0x6a   : > { %813 = vmatpush.bf16.msrb.mxu3 %v1460_v34  ;;  %774 = vmatpush.bf16.msrb.mxu0 %v1448_v38  ;;  %v1476_v56 = vor.u32 %v1629_v52, %v1473_v53  ;;  %v1464_v61 = vor.u32 %v1644_v58, %v1463_v57  ;;  %v1465_v62 = vld [vmem:[%s1899_s30 + $0x1a0] sm:$0xf0]  ;;  %v1343_v63 = vld [vmem:[%s1899_s30 + $0x28] sm:$0xf]  ;;  %v1597_v3 = vld [vmem:[%s1899_s30 + $0x2c] sm:$0xf] }
  0x6b   : > { %787 = vmatpush.bf16.msrb.mxu1 %v1452_v42  ;;  %v1613_v0 = vld [vmem:[%s1899_s30 + $0xa4] sm:$0xf0]  ;;  %v1468_v1 = vor.u32 %v1628_v59, %v1465_v62  ;;  %v1345_v4 = vld [vmem:[%s1899_s30 + $0xa8] sm:$0xf0]  ;;  %v1335_v5 = vld [vmem:[%s1899_s30 + $0x20] sm:$0xf] }
  0x6c   : > { %v1344_v2 = vor.u32 %v1613_v0, %v1343_v63  ;;  %v1348_v6 = vor.u32 %v1597_v3, %v1345_v4  ;;  %v1612_v7 = vld [vmem:[%s1899_s30 + $0x9c] sm:$0xf0]  ;;  %v1596_v8 = vld [vmem:[%s1899_s30 + $0x24] sm:$0xf]  ;;  %v1487_v12 = vld [vmem:[%s1899_s30 + $0x138] sm:$0xf] }
  0x6d   : > { %801 = vmatpush.bf16.msrb.mxu2 %v1328_v43  ;;  %v1337_v9 = vld [vmem:[%s1899_s30 + $0xa0] sm:$0xf0]  ;;  %v1336_v10 = vor.u32 %v1612_v7, %v1335_v5  ;;  %v1647_v13 = vld [vmem:[%s1899_s30 + $0x1b4] sm:$0xf0]  ;;  %v1631_v14 = vld [vmem:[%s1899_s30 + $0x13c] sm:$0xf] }
  0x6e   : > { %814 = vmatpush.bf16.msrb.mxu3 %v1332_v47  ;;  %775 = vmatpush.bf16.msrb.mxu0 %v1320_v54  ;;  %v1340_v11 = vor.u32 %v1596_v8, %v1337_v9  ;;  %v1489_v15 = vld [vmem:[%s1899_s30 + $0x1b8] sm:$0xf0]  ;;  %v1479_v16 = vld [vmem:[%s1899_s30 + $0x130] sm:$0xf]  ;;  %v1630_v18 = vld [vmem:[%s1899_s30 + $0x134] sm:$0xf]  ;;  %v1488_v20 = vor.u32 %v1647_v13, %v1487_v12 }
  0x6f   : > { %788 = vmatpush.bf16.msrb.mxu1 %v1324_v60  ;;  %v1646_v17 = vld [vmem:[%s1899_s30 + $0x1ac] sm:$0xf0]  ;;  %v1481_v19 = vld [vmem:[%s1899_s30 + $0x1b0] sm:$0xf0]  ;;  %v1492_v21 = vor.u32 %v1631_v14, %v1489_v15  ;;  %v1359_v23 = vld [vmem:[%s1899_s30 + $0x38] sm:$0xf] }
  0x70   : > { %v1480_v22 = vor.u32 %v1646_v17, %v1479_v16  ;;  %v1615_v24 = vld [vmem:[%s1899_s30 + $0xb4] sm:$0xf0]  ;;  %v1599_v25 = vld [vmem:[%s1899_s30 + $0x3c] sm:$0xf]  ;;  %v1484_v27 = vor.u32 %v1630_v18, %v1481_v19  ;;  %v1351_v29 = vld [vmem:[%s1899_s30 + $0x30] sm:$0xf] }
  0x71   : > { %852 = vmatpush.bf16.msra.mxu2 %v1472_v55  ;;  %v1361_v28 = vld [vmem:[%s1899_s30 + $0xb8] sm:$0xf0]  ;;  %v1614_v30 = vld [vmem:[%s1899_s30 + $0xac] sm:$0xf0]  ;;  %v1598_v31 = vld [vmem:[%s1899_s30 + $0x34] sm:$0xf]  ;;  %v1360_v33 = vor.u32 %v1615_v24, %v1359_v23 }
  0x72   : > { %865 = vmatpush.bf16.msra.mxu3 %v1476_v56  ;;  %826 = vmatpush.bf16.msra.mxu0 %v1464_v61  ;;  %v1353_v32 = vld [vmem:[%s1899_s30 + $0xb0] sm:$0xf0]  ;;  %v1364_v34 = vor.u32 %v1599_v25, %v1361_v28  ;;  %v1352_v35 = vor.u32 %v1614_v30, %v1351_v29  ;;  %v1503_v37 = vld [vmem:[%s1899_s30 + $0x148] sm:$0xf]  ;;  %v1633_v39 = vld [vmem:[%s1899_s30 + $0x14c] sm:$0xf] }
  0x73   : > { %839 = vmatpush.bf16.msra.mxu1 %v1468_v1  ;;  %v1356_v36 = vor.u32 %v1598_v31, %v1353_v32  ;;  %v1649_v38 = vld [vmem:[%s1899_s30 + $0x1c4] sm:$0xf0]  ;;  %v1505_v40 = vld [vmem:[%s1899_s30 + $0x1c8] sm:$0xf0]  ;;  %v1495_v41 = vld [vmem:[%s1899_s30 + $0x140] sm:$0xf] }
  0x74   : > { %v1648_v42 = vld [vmem:[%s1899_s30 + $0x1bc] sm:$0xf0]  ;;  %v1632_v43 = vld [vmem:[%s1899_s30 + $0x144] sm:$0xf]  ;;  %v1504_v45 = vor.u32 %v1649_v38, %v1503_v37  ;;  %v1508_v46 = vor.u32 %v1633_v39, %v1505_v40  ;;  %v1375_v48 = vld [vmem:[%s1899_s30 + $0x48] sm:$0xf] }
  0x75   : > { %853 = vmatpush.bf16.msra.mxu2 %v1344_v2  ;;  %v1497_v44 = vld [vmem:[%s1899_s30 + $0x1c0] sm:$0xf0]  ;;  %v1496_v47 = vor.u32 %v1648_v42, %v1495_v41  ;;  %v1617_v49 = vld [vmem:[%s1899_s30 + $0xc4] sm:$0xf0]  ;;  %v1601_v50 = vld [vmem:[%s1899_s30 + $0x4c] sm:$0xf] }
  0x76   : > { %866 = vmatpush.bf16.msra.mxu3 %v1348_v6  ;;  %827 = vmatpush.bf16.msra.mxu0 %v1336_v10  ;;  %v1500_v51 = vor.u32 %v1632_v43, %v1497_v44  ;;  %v1377_v52 = vld [vmem:[%s1899_s30 + $0xc8] sm:$0xf0]  ;;  %v1367_v53 = vld [vmem:[%s1899_s30 + $0x40] sm:$0xf]  ;;  %v1600_v55 = vld [vmem:[%s1899_s30 + $0x44] sm:$0xf]  ;;  %v1376_v57 = vor.u32 %v1617_v49, %v1375_v48 }
  0x77   : > { %840 = vmatpush.bf16.msra.mxu1 %v1340_v11  ;;  %1561 = vmatmul.msk.bf16.vlgmr.msrb.gmra.mxu0 %vm712_vm0, %v1920_v26  ;;  %v1616_v54 = vld [vmem:[%s1899_s30 + $0xbc] sm:$0xf0]  ;;  %v1369_v56 = vld [vmem:[%s1899_s30 + $0xc0] sm:$0xf0]  ;;  %v1380_v58 = vor.u32 %v1601_v50, %v1377_v52  ;;  %v1519_v61 = vld [vmem:[%s1899_s30 + $0x158] sm:$0xf] }
  0x78   : > { %1562 = vmatmul.msk.bf16.vlgmr.msrb.gmra.mxu1 %vm712_vm0, %v1920_v26  ;;  %1563 = vmatmul.msk.bf16.vlgmr.msrb.gmra.mxu2 %vm712_vm0, %v1920_v26  ;;  %v1368_v59 = vor.u32 %v1616_v54, %v1367_v53  ;;  %v1372_v60 = vor.u32 %v1600_v55, %v1369_v56  ;;  %v1651_v62 = vld [vmem:[%s1899_s30 + $0x1d4] sm:$0xf0]  ;;  %v1635_v63 = vld [vmem:[%s1899_s30 + $0x15c] sm:$0xf]  ;;  %v1511_v1 = vld [vmem:[%s1899_s30 + $0x150] sm:$0xf] }
  0x79   : > { %1564 = vmatmul.msk.bf16.vlgmr.msrb.gmra.mxu3 %vm712_vm0, %v1920_v26  ;;  %904 = vmatpush.bf16.msrb.mxu2 %v1488_v20  ;;  %v1521_v0 = vld [vmem:[%s1899_s30 + $0x1d8] sm:$0xf0]  ;;  %v1650_v2 = vld [vmem:[%s1899_s30 + $0x1cc] sm:$0xf0]  ;;  %v1634_v3 = vld [vmem:[%s1899_s30 + $0x154] sm:$0xf]  ;;  %v1520_v5 = vor.u32 %v1651_v62, %v1519_v61 }
  0x7a   : > { %917 = vmatpush.bf16.msrb.mxu3 %v1492_v21  ;;  %878 = vmatpush.bf16.msrb.mxu0 %v1480_v22  ;;  %v1513_v4 = vld [vmem:[%s1899_s30 + $0x1d0] sm:$0xf0]  ;;  %v1524_v6 = vor.u32 %v1635_v63, %v1521_v0  ;;  %v1512_v7 = vor.u32 %v1650_v2, %v1511_v1  ;;  %v1391_v8 = vld [vmem:[%s1899_s30 + $0x58] sm:$0xf]  ;;  %v1603_v10 = vld [vmem:[%s1899_s30 + $0x5c] sm:$0xf] }
  0x7b   : > { %891 = vmatpush.bf16.msrb.mxu1 %v1484_v27  ;;  %v1619_v9 = vld [vmem:[%s1899_s30 + $0xd4] sm:$0xf0]  ;;  %v1516_v11 = vor.u32 %v1634_v3, %v1513_v4  ;;  %v1393_v12 = vld [vmem:[%s1899_s30 + $0xd8] sm:$0xf0]  ;;  %v1383_v13 = vld [vmem:[%s1899_s30 + $0x50] sm:$0xf] }
  0x7c   : > { %v1618_v14 = vld [vmem:[%s1899_s30 + $0xcc] sm:$0xf0]  ;;  %v1602_v15 = vld [vmem:[%s1899_s30 + $0x54] sm:$0xf]  ;;  %v1392_v17 = vor.u32 %v1619_v9, %v1391_v8  ;;  %v1396_v18 = vor.u32 %v1603_v10, %v1393_v12  ;;  %v1535_v21 = vld [vmem:[%s1899_s30 + $0x168] sm:$0xf] }
  0x7d   : > { %905 = vmatpush.bf16.msrb.mxu2 %v1360_v33  ;;  %v1385_v16 = vld [vmem:[%s1899_s30 + $0xd0] sm:$0xf0]  ;;  %v1384_v19 = vor.u32 %v1618_v14, %v1383_v13  ;;  %v1653_v22 = vld [vmem:[%s1899_s30 + $0x1e4] sm:$0xf0]  ;;  %v1637_v23 = vld [vmem:[%s1899_s30 + $0x16c] sm:$0xf] }
  0x7e   : > { %918 = vmatpush.bf16.msrb.mxu3 %v1364_v34  ;;  %879 = vmatpush.bf16.msrb.mxu0 %v1352_v35  ;;  %v1388_v20 = vor.u32 %v1602_v15, %v1385_v16  ;;  %v1537_v24 = vld [vmem:[%s1899_s30 + $0x1e8] sm:$0xf0]  ;;  %v1527_v25 = vld [vmem:[%s1899_s30 + $0x160] sm:$0xf]  ;;  %v1636_v28 = vld [vmem:[%s1899_s30 + $0x164] sm:$0xf]  ;;  %v1536_v30 = vor.u32 %v1653_v22, %v1535_v21 }
  0x7f   : > { %892 = vmatpush.bf16.msrb.mxu1 %v1356_v36  ;;  %v1652_v27 = vld [vmem:[%s1899_s30 + $0x1dc] sm:$0xf0]  ;;  %v1529_v29 = vld [vmem:[%s1899_s30 + $0x1e0] sm:$0xf0]  ;;  %v1540_v31 = vor.u32 %v1637_v23, %v1537_v24  ;;  %v1407_v33 = vld [vmem:[%s1899_s30 + $0x68] sm:$0xf] }
  0x80   : > { %v1528_v32 = vor.u32 %v1652_v27, %v1527_v25  ;;  %v1621_v34 = vld [vmem:[%s1899_s30 + $0xe4] sm:$0xf0]  ;;  %v1605_v35 = vld [vmem:[%s1899_s30 + $0x6c] sm:$0xf]  ;;  %v1532_v36 = vor.u32 %v1636_v28, %v1529_v29  ;;  %v1399_v38 = vld [vmem:[%s1899_s30 + $0x60] sm:$0xf] }
  0x81   : > { %v1409_v37 = vld [vmem:[%s1899_s30 + $0xe8] sm:$0xf0]  ;;  %v1620_v39 = vld [vmem:[%s1899_s30 + $0xdc] sm:$0xf0]  ;;  %v1604_v40 = vld [vmem:[%s1899_s30 + $0x64] sm:$0xf]  ;;  %v1408_v42 = vor.u32 %v1621_v34, %v1407_v33 }
  0x82   : > { %v1401_v41 = vld [vmem:[%s1899_s30 + $0xe0] sm:$0xf0]  ;;  %v1412_v43 = vor.u32 %v1605_v35, %v1409_v37  ;;  %v1400_v44 = vor.u32 %v1620_v39, %v1399_v38  ;;  %v1639_v48 = vld [vmem:[%s1899_s30 + $0x17c] sm:$0xf]  ;;  %v1543_v50 = vld [vmem:[%s1899_s30 + $0x170] sm:$0xf] }
  0x83   : > { %v1553_v49 = vld [vmem:[%s1899_s30 + $0x1f8] sm:$0xf0]  ;;  %v1638_v52 = vld [vmem:[%s1899_s30 + $0x174] sm:$0xf]  ;;  %v1415_v62 = vld [vmem:[%s1899_s30 + $0x70] sm:$0xf] }
  0x84   : > { %v1545_v53 = vld [vmem:[%s1899_s30 + $0x1f0] sm:$0xf0]  ;;  %v1556_v55 = vor.u32 %v1639_v48, %v1553_v49  ;;  %v1425_v61 = vld [vmem:[%s1899_s30 + $0xf8] sm:$0xf0]  ;;  %v1622_v63 = vld [vmem:[%s1899_s30 + $0xec] sm:$0xf0] }
  0x85   : > { %v1606_v0 = vld [vmem:[%s1899_s30 + $0x74] sm:$0xf]  ;;  %v1416_v4 = vor.u32 %v1622_v63, %v1415_v62  ;;  %vm1194_vm1 = vcmask 1042434   ;;  %vm1198_vm2 = vcmask 1044484   ;;  %s2189_s6 = smov (!%p315_p8, %s1300_s6), 63  ;;  %vm1192_vm3 = vcmask 1040384  }
  0x86   : > { %v1417_v1 = vld [vmem:[%s1899_s30 + $0xf0] sm:$0xf0]  ;;  %vm1196_vm4 = vcmask 1041408   ;;  %vm1200_vm5 = vcmask 1046534   ;;  %vm1202_vm6 = vcmask 1045508   ;;  %vm1204_vm7 = vcmask 1043456   ;;  %s2116_s9 = scalar_lea.vmem %s2184_s3, %s2189_s6 }
  0x87   : > { %1565 = vmatmul.msk.bf16.vlgmr.msra.gmra.mxu0 %vm712_vm0, %v1920_v26 }
  0x88   : > { %1566 = vmatmul.msk.bf16.vlgmr.msra.gmra.mxu1 %vm712_vm0, %v1920_v26  ;;  %1567 = vmatmul.msk.bf16.vlgmr.msra.gmra.mxu2 %vm712_vm0, %v1920_v26 }
  0x89   : > { %1568 = vmatmul.msk.bf16.vlgmr.msra.gmra.mxu3 %vm712_vm0, %v1920_v26  ;;  %956 = vmatpush.bf16.msra.mxu2 %v1504_v45  ;;  %v1404_v45 = vor.u32 %v1604_v40, %v1401_v41 }
  0x8a   : > { %969 = vmatpush.bf16.msra.mxu3 %v1508_v46  ;;  %930 = vmatpush.bf16.msra.mxu0 %v1496_v47  ;;  %v1551_v46 = vld [vmem:[%s1899_s30 + $0x178] sm:$0xf] }
  0x8b   : > { %943 = vmatpush.bf16.msra.mxu1 %v1500_v51  ;;  %v1655_v47 = vld [vmem:[%s1899_s30 + $0x1f4] sm:$0xf0]  ;;  %v1654_v51 = vld [vmem:[%s1899_s30 + $0x1ec] sm:$0xf0] }
  0x8c   : > { %v1552_v54 = vor.u32 %v1655_v47, %v1551_v46  ;;  %v1544_v56 = vor.u32 %v1654_v51, %v1543_v50 }
  0x8d   : > { %957 = vmatpush.bf16.msra.mxu2 %v1376_v57  ;;  %v1423_v57 = vld [vmem:[%s1899_s30 + $0x78] sm:$0xf] }
  0x8e   : > { %970 = vmatpush.bf16.msra.mxu3 %v1380_v58  ;;  %931 = vmatpush.bf16.msra.mxu0 %v1368_v59  ;;  %v1623_v58 = vld [vmem:[%s1899_s30 + $0xf4] sm:$0xf0]  ;;  %v1607_v59 = vld [vmem:[%s1899_s30 + $0x7c] sm:$0xf] }
  0x8f   : > { %944 = vmatpush.bf16.msra.mxu1 %v1372_v60  ;;  %v1548_v60 = vor.u32 %v1638_v52, %v1545_v53  ;;  %v1424_v2 = vor.u32 %v1623_v58, %v1423_v57  ;;  %v1428_v3 = vor.u32 %v1607_v59, %v1425_v61 }
  0x97   : > { %1569 = vmatmul.msk.bf16.vlgmr.msrb.gmra.mxu0 %vm712_vm0, %v1920_v26 }
  0x98   : > { %1570 = vmatmul.msk.bf16.vlgmr.msrb.gmra.mxu1 %vm712_vm0, %v1920_v26  ;;  %1571 = vmatmul.msk.bf16.vlgmr.msrb.gmra.mxu2 %vm712_vm0, %v1920_v26 }
  0x99   : > { %1572 = vmatmul.msk.bf16.vlgmr.msrb.gmra.mxu3 %vm712_vm0, %v1920_v26  ;;  %1008 = vmatpush.bf16.msrb.mxu2 %v1520_v5  ;;  %v1420_v5 = vor.u32 %v1606_v0, %v1417_v1 }
  0x9a   : > { %1021 = vmatpush.bf16.msrb.mxu3 %v1524_v6  ;;  %982 = vmatpush.bf16.msrb.mxu0 %v1512_v7 }
  0x9b   : > { %995 = vmatpush.bf16.msrb.mxu1 %v1516_v11 }
  0x9d   : > { %1009 = vmatpush.bf16.msrb.mxu2 %v1392_v17 }
  0x9e   : > { %1022 = vmatpush.bf16.msrb.mxu3 %v1396_v18  ;;  %983 = vmatpush.bf16.msrb.mxu0 %v1384_v19 }
  0x9f   : > { %996 = vmatpush.bf16.msrb.mxu1 %v1388_v20 }
  0xa7   : > { %1573 = vmatmul.msk.bf16.vlgmr.msra.gmra.mxu0 %vm712_vm0, %v1920_v26 }
  0xa8   : > { %1574 = vmatmul.msk.bf16.vlgmr.msra.gmra.mxu1 %vm712_vm0, %v1920_v26  ;;  %1575 = vmatmul.msk.bf16.vlgmr.msra.gmra.mxu2 %vm712_vm0, %v1920_v26 }
  0xa9   : > { %1576 = vmatmul.msk.bf16.vlgmr.msra.gmra.mxu3 %vm712_vm0, %v1920_v26  ;;  %1060 = vmatpush.bf16.msra.mxu2 %v1536_v30 }
  0xaa   : > { %1073 = vmatpush.bf16.msra.mxu3 %v1540_v31  ;;  %1034 = vmatpush.bf16.msra.mxu0 %v1528_v32 }
  0xab   : > { %1047 = vmatpush.bf16.msra.mxu1 %v1532_v36 }
  0xad   : > { %1061 = vmatpush.bf16.msra.mxu2 %v1408_v42 }
  0xae   : > { %1074 = vmatpush.bf16.msra.mxu3 %v1412_v43  ;;  %1035 = vmatpush.bf16.msra.mxu0 %v1400_v44 }
  0xaf   : > { %1048 = vmatpush.bf16.msra.mxu1 %v1404_v45 }
  0xb7   : > { %1577 = vmatmul.msk.bf16.vlgmr.msrb.gmra.mxu0 %vm712_vm0, %v1920_v26 }
  0xb8   : > { %1578 = vmatmul.msk.bf16.vlgmr.msrb.gmra.mxu1 %vm712_vm0, %v1920_v26  ;;  %1579 = vmatmul.msk.bf16.vlgmr.msrb.gmra.mxu2 %vm712_vm0, %v1920_v26 }
  0xb9   : > { %1580 = vmatmul.msk.bf16.vlgmr.msrb.gmra.mxu3 %vm712_vm0, %v1920_v26  ;;  %1112 = vmatpush.bf16.msrb.mxu2 %v1552_v54 }
  0xba   : > { %1125 = vmatpush.bf16.msrb.mxu3 %v1556_v55  ;;  %1086 = vmatpush.bf16.msrb.mxu0 %v1544_v56 }
  0xbb   : > { %1099 = vmatpush.bf16.msrb.mxu1 %v1548_v60 }
  0xbd   : > { %1113 = vmatpush.bf16.msrb.mxu2 %v1424_v2 }
  0xbe   : > { %1126 = vmatpush.bf16.msrb.mxu3 %v1428_v3  ;;  %1087 = vmatpush.bf16.msrb.mxu0 %v1416_v4 }
  0xbf   : > { %1100 = vmatpush.bf16.msrb.mxu1 %v1420_v5 }
  0xc7   : > { %1581 = vmatmul.msk.bf16.vlgmr.msra.gmra.mxu0 %vm712_vm0, %v1920_v26 }
  0xc8   : > { %1582 = vmatmul.msk.bf16.vlgmr.msra.gmra.mxu1 %vm712_vm0, %v1920_v26  ;;  %1583 = vmatmul.msk.bf16.vlgmr.msra.gmra.mxu2 %vm712_vm0, %v1920_v26 }
  0xc9   : > { %1584 = vmatmul.msk.bf16.vlgmr.msra.gmra.mxu3 %vm712_vm0, %v1920_v26 }
  0xd0   : > { %v389_v12 = vpop.permute.xlu0 %388 }
  0xd1   : > { %v2098_v16 = vperm.slane %v389_v12, 0 }
  0xd7   : > { %1585 = vmatmul.msk.bf16.vlgmr.msrb.gmra.mxu0 %vm712_vm0, %v1920_v26 }
  0xd8   : > { %1586 = vmatmul.msk.bf16.vlgmr.msrb.gmra.mxu1 %vm712_vm0, %v1920_v26  ;;  %1587 = vmatmul.msk.bf16.vlgmr.msrb.gmra.mxu2 %vm712_vm0, %v1920_v26 }
  0xd9   : > { %1588 = vmatmul.msk.bf16.vlgmr.msrb.gmra.mxu3 %vm712_vm0, %v1920_v26 }
  0xe4   : > { %v725_v6 = vpop.f32.mrf.mxu0 }
  0xe5   : > { %v738_v7 = vpop.f32.mrf.mxu1  ;;  %v726_v31 = vadd.f32 %v725_v6, %v2098_v16 }
  0xe6   : > { %v739_v21 = vadd.f32 %v738_v7, %v2098_v16 }
  0xe8   : > { %v1164_v32 = vrot.slane %v739_v21, 7 }
  0xea   : > { %v1193_v39 = vsel %vm1192_vm3, %v726_v31, %v1164_v32 }
  0xeb   : > { %v751_v8 = vpop.f32.mrf.mxu2 }
  0xec   : > { %v764_v9 = vpop.f32.mrf.mxu3  ;;  %v727_v10 = vpop.f32.mrf.mxu0  ;;  %v752_v18 = vadd.f32 %v751_v8, %v2098_v16 }
  0xed   : > { %v740_v11 = vpop.f32.mrf.mxu1  ;;  %v765_v19 = vadd.f32 %v764_v9, %v2098_v16 }
  0xee   : > { %v1165_v22 = vrot.slane %v752_v18, 6 }
  0xef   : > { %v1166_v23 = vrot.slane %v765_v19, 5 }
  0xf1   : > { %v1195_v36 = vsel %vm1194_vm1, %v1165_v22, %v1166_v23 }
  0xf2   : > { %v1197_v41 = vsel %vm1196_vm4, %v1193_v39, %v1195_v36 }
  0xf3   : > { %v753_v13 = vpop.f32.mrf.mxu2 }
  0xf4   : > { %v766_v14 = vpop.f32.mrf.mxu3  ;;  %v777_v15 = vpop.f32.mrf.mxu0 }
  0xf5   : > { %v790_v17 = vpop.f32.mrf.mxu1  ;;  %v778_v26 = vadd.f32 %v777_v15, %v2098_v16 }
  0xf6   : > { %v791_v20 = vadd.f32 %v790_v17, %v2098_v16 }
  0xf7   : > { %v1167_v24 = vrot.slane %v778_v26, 4 }
  0xf8   : > { %v1168_v25 = vrot.slane %v791_v20, 3 }
  0xfa   : > { %v1199_v37 = vsel %vm1198_vm2, %v1167_v24, %v1168_v25 }
  0xfb   : > { %v803_v27 = vpop.f32.mrf.mxu2 }
  0xfc   : > { %v804_v28 = vadd.f32 %v803_v27, %v2098_v16  ;;  %v816_v29 = vpop.f32.mrf.mxu3  ;;  %v779_v30 = vpop.f32.mrf.mxu0 }
  0xfd   : > { %v817_v33 = vadd.f32 %v816_v29, %v2098_v16  ;;  %v792_v34 = vpop.f32.mrf.mxu1 }
  0xfe   : > { %v1169_v35 = vrot.slane %v804_v28, 2 }
  0xff   : > { %v1170_v38 = vrot.slane %v817_v33, 1 }
 0x101   : > { %v1201_v40 = vsel %vm1200_vm5, %v1169_v35, %v1170_v38 }
 0x102   : > { %v1203_v42 = vsel %vm1202_vm6, %v1199_v37, %v1201_v40 }
 0x103   : > { %v1205_v43 = vsel %vm1204_vm7, %v1197_v41, %v1203_v42  ;;  %v805_v44 = vpop.f32.mrf.mxu2 }
 0x104   : > { %1231 = vst [vmem:[%s2116_s9] sm:$0xff] %v1205_v43  ;;  %v818_v45 = vpop.f32.mrf.mxu3  ;;  %v829_v46 = vpop.f32.mrf.mxu0 }
 0x105   : > { %v842_v47 = vpop.f32.mrf.mxu1  ;;  %v830_v5 = vadd.f32 %v829_v46, %v2098_v16 }
 0x106   : > { %v843_v60 = vadd.f32 %v842_v47, %v2098_v16 }
 0x108   : > { %v1171_v6 = vrot.slane %v843_v60, 7 }
 0x10a   : > { %v1206_v13 = vsel %vm1192_vm3, %v830_v5, %v1171_v6 }
 0x10b   : > { %v855_v48 = vpop.f32.mrf.mxu2 }
 0x10c   : > { %v868_v49 = vpop.f32.mrf.mxu3  ;;  %v831_v50 = vpop.f32.mrf.mxu0  ;;  %v856_v56 = vadd.f32 %v855_v48, %v2098_v16 }
 0x10d   : > { %v844_v51 = vpop.f32.mrf.mxu1  ;;  %v869_v57 = vadd.f32 %v868_v49, %v2098_v16 }
 0x10e   : > { %v1172_v61 = vrot.slane %v856_v56, 6 }
 0x10f   : > { %v1173_v62 = vrot.slane %v869_v57, 5 }
 0x111   : > { %v1207_v10 = vsel %vm1194_vm1, %v1172_v61, %v1173_v62 }
 0x112   : > { %v1208_v15 = vsel %vm1196_vm4, %v1206_v13, %v1207_v10 }
 0x113   : > { %v857_v52 = vpop.f32.mrf.mxu2 }
 0x114   : > { %v870_v53 = vpop.f32.mrf.mxu3  ;;  %v881_v54 = vpop.f32.mrf.mxu0 }
 0x115   : > { %v894_v55 = vpop.f32.mrf.mxu1  ;;  %v882_v58 = vadd.f32 %v881_v54, %v2098_v16 }
 0x116   : > { %v895_v59 = vadd.f32 %v894_v55, %v2098_v16 }
 0x117   : > { %v1174_v63 = vrot.slane %v882_v58, 4 }
 0x118   : > { %v1175_v0 = vrot.slane %v895_v59, 3 }
 0x11a   : > { %v1209_v11 = vsel %vm1198_vm2, %v1174_v63, %v1175_v0 }
 0x11b   : > { %v907_v1 = vpop.f32.mrf.mxu2 }
 0x11c   : > { %v908_v2 = vadd.f32 %v907_v1, %v2098_v16  ;;  %v920_v3 = vpop.f32.mrf.mxu3  ;;  %v883_v4 = vpop.f32.mrf.mxu0 }
 0x11d   : > { %v921_v7 = vadd.f32 %v920_v3, %v2098_v16  ;;  %v896_v8 = vpop.f32.mrf.mxu1 }
 0x11e   : > { %v1176_v9 = vrot.slane %v908_v2, 2 }
 0x11f   : > { %v1177_v12 = vrot.slane %v921_v7, 1 }
 0x121   : > { %v1210_v14 = vsel %vm1200_vm5, %v1176_v9, %v1177_v12 }
 0x122   : > { %v1211_v17 = vsel %vm1202_vm6, %v1209_v11, %v1210_v14 }
 0x123   : > { %v1212_v18 = vsel %vm1204_vm7, %v1208_v15, %v1211_v17  ;;  %v909_v19 = vpop.f32.mrf.mxu2 }
 0x124   : > { %1232 = vst [vmem:[%s2116_s9 + $0x8] sm:$0xff] %v1212_v18  ;;  %v922_v26 = vpop.f32.mrf.mxu3  ;;  %v933_v20 = vpop.f32.mrf.mxu0 }
 0x125   : > { %v946_v21 = vpop.f32.mrf.mxu1  ;;  %v934_v44 = vadd.f32 %v933_v20, %v2098_v16 }
 0x126   : > { %v947_v35 = vadd.f32 %v946_v21, %v2098_v16 }
 0x128   : > { %v1178_v45 = vrot.slane %v947_v35, 7 }
 0x12a   : > { %v1213_v52 = vsel %vm1192_vm3, %v934_v44, %v1178_v45 }
 0x12b   : > { %v959_v22 = vpop.f32.mrf.mxu2 }
 0x12c   : > { %v972_v23 = vpop.f32.mrf.mxu3  ;;  %v935_v24 = vpop.f32.mrf.mxu0  ;;  %v960_v31 = vadd.f32 %v959_v22, %v2098_v16 }
 0x12d   : > { %v948_v25 = vpop.f32.mrf.mxu1  ;;  %v973_v32 = vadd.f32 %v972_v23, %v2098_v16 }
 0x12e   : > { %v1179_v36 = vrot.slane %v960_v31, 6 }
 0x12f   : > { %v1180_v37 = vrot.slane %v973_v32, 5 }
 0x131   : > { %v1214_v49 = vsel %vm1194_vm1, %v1179_v36, %v1180_v37 }
 0x132   : > { %v1215_v54 = vsel %vm1196_vm4, %v1213_v52, %v1214_v49 }
 0x133   : > { %v961_v27 = vpop.f32.mrf.mxu2 }
 0x134   : > { %v974_v28 = vpop.f32.mrf.mxu3  ;;  %v985_v29 = vpop.f32.mrf.mxu0 }
 0x135   : > { %v998_v30 = vpop.f32.mrf.mxu1  ;;  %v986_v33 = vadd.f32 %v985_v29, %v2098_v16 }
 0x136   : > { %v999_v34 = vadd.f32 %v998_v30, %v2098_v16 }
 0x137   : > { %v1181_v38 = vrot.slane %v986_v33, 4 }
 0x138   : > { %v1182_v39 = vrot.slane %v999_v34, 3 }
 0x13a   : > { %v1216_v50 = vsel %vm1198_vm2, %v1181_v38, %v1182_v39 }
 0x13b   : > { %v1011_v40 = vpop.f32.mrf.mxu2 }
 0x13c   : > { %v1012_v41 = vadd.f32 %v1011_v40, %v2098_v16  ;;  %v1024_v42 = vpop.f32.mrf.mxu3  ;;  %v987_v43 = vpop.f32.mrf.mxu0 }
 0x13d   : > { %v1025_v46 = vadd.f32 %v1024_v42, %v2098_v16  ;;  %v1000_v47 = vpop.f32.mrf.mxu1 }
 0x13e   : > { %v1183_v48 = vrot.slane %v1012_v41, 2 }
 0x13f   : > { %v1184_v51 = vrot.slane %v1025_v46, 1 }
 0x141   : > { %v1217_v53 = vsel %vm1200_vm5, %v1183_v48, %v1184_v51 }
 0x142   : > { %v1218_v55 = vsel %vm1202_vm6, %v1216_v50, %v1217_v53 }
 0x143   : > { %v1219_v56 = vsel %vm1204_vm7, %v1215_v54, %v1218_v55  ;;  %v1013_v57 = vpop.f32.mrf.mxu2 }
 0x144   : > { %1233 = vst [vmem:[%s2116_s9 + $0x10] sm:$0xff] %v1219_v56  ;;  %v1026_v58 = vpop.f32.mrf.mxu3  ;;  %v1037_v59 = vpop.f32.mrf.mxu0 }
 0x145   : > { %v1050_v60 = vpop.f32.mrf.mxu1  ;;  %v1038_v19 = vadd.f32 %v1037_v59, %v2098_v16 }
 0x146   : > { %v1051_v9 = vadd.f32 %v1050_v60, %v2098_v16 }
 0x148   : > { %v1185_v26 = vrot.slane %v1051_v9, 7 }
 0x14a   : > { %v1220_v27 = vsel %vm1192_vm3, %v1038_v19, %v1185_v26 }
 0x14b   : > { %v1063_v61 = vpop.f32.mrf.mxu2 }
 0x14c   : > { %v1076_v62 = vpop.f32.mrf.mxu3  ;;  %v1039_v63 = vpop.f32.mrf.mxu0  ;;  %v1064_v5 = vadd.f32 %v1063_v61, %v2098_v16 }
 0x14d   : > { %v1052_v0 = vpop.f32.mrf.mxu1  ;;  %v1077_v6 = vadd.f32 %v1076_v62, %v2098_v16 }
 0x14e   : > { %v1186_v10 = vrot.slane %v1064_v5, 6 }
 0x14f   : > { %v1187_v11 = vrot.slane %v1077_v6, 5 }
 0x151   : > { %v1221_v23 = vsel %vm1194_vm1, %v1186_v10, %v1187_v11 }
 0x152   : > { %v1222_v29 = vsel %vm1196_vm4, %v1220_v27, %v1221_v23 }
 0x153   : > { %v1065_v1 = vpop.f32.mrf.mxu2 }
 0x154   : > { %v1078_v2 = vpop.f32.mrf.mxu3  ;;  %v1089_v3 = vpop.f32.mrf.mxu0 }
 0x155   : > { %v1102_v4 = vpop.f32.mrf.mxu1  ;;  %v1090_v7 = vadd.f32 %v1089_v3, %v2098_v16 }
 0x156   : > { %v1103_v8 = vadd.f32 %v1102_v4, %v2098_v16 }
 0x157   : > { %v1188_v12 = vrot.slane %v1090_v7, 4 }
 0x158   : > { %v1189_v13 = vrot.slane %v1103_v8, 3 }
 0x15a   : > { %v1223_v24 = vsel %vm1198_vm2, %v1188_v12, %v1189_v13 }
 0x15b   : > { %v1115_v14 = vpop.f32.mrf.mxu2 }
 0x15c   : > { %v1116_v15 = vadd.f32 %v1115_v14, %v2098_v16  ;;  %v1128_v17 = vpop.f32.mrf.mxu3  ;;  %v1091_v18 = vpop.f32.mrf.mxu0 }
 0x15d   : > { %v1129_v20 = vadd.f32 %v1128_v17, %v2098_v16  ;;  %v1104_v21 = vpop.f32.mrf.mxu1 }
 0x15e   : > { %v1190_v22 = vrot.slane %v1116_v15, 2 }
 0x15f   : > { %v1191_v25 = vrot.slane %v1129_v20, 1 }
 0x161   : > { %v1224_v28 = vsel %vm1200_vm5, %v1190_v22, %v1191_v25 }
 0x162   : > { %v1225_v30 = vsel %vm1202_vm6, %v1223_v24, %v1224_v28 }
 0x163   : > { %v1226_v31 = vsel %vm1204_vm7, %v1222_v29, %v1225_v30  ;;  %v1117_v32 = vpop.f32.mrf.mxu2 }
 0x164   : > { %1234 = vst [vmem:[%s2116_s9 + $0x18] sm:$0xff] %v1226_v31  ;;  %v1130_v16 = vpop.f32.mrf.mxu3 }
 0x165 PF: > { %p12_p9 = scmp.ge.s32.totalorder %s1747_s17, 4   ;;  %s2185_s14 = smov %s1700_s15 }
 0x166   : > { %s2186_s15 = smov %s1756_s20  ;;  %s2187_s16 = smov %s1747_s17 }
 0x167   :  { %14 = sbr.rel (!%p12_p9) target bundleno = 5 (0x5), region = 90 }

// kernel: vae_fd_forward.20
= control target key start
LH: loop header
LB: loop body
LE: loop exit
PB: predicated region body
PF: predicated region fallthrough
CT: control target
= control target key end

     0   :  { %s601_s12 = smov 0   ;;  %s603_s13 = smov 0   ;;  %s673_s0 = inlined_call_operand.vmem [shape: bf16[2,16], index: 0, kind: input, shape index: {}]   ;;  %s674_s1 = inlined_call_operand.vmem [shape: bf16[16,2048], index: 1, kind: input, shape index: {}]   ;;  %s675_s2 = inlined_call_operand.vmem [shape: f32[2,1], index: 2, kind: input, shape index: {}]   ;;  %s676_s3 = inlined_call_operand.vmem [shape: f32[2,2048], index: 3, kind: output, shape index: {}]  }
   0x1   :  { %s605_s14 = smov 0  }
   0x2 LB: > { %s468_s15 = sadd.s32 4294967295, %s578_s14   ;;  %s618_s16 = sadd.s32 1, %s578_s14   ;;  %s578_s14 = sphi %s605_s14, %s679_s14   ;;  %s574_s13 = sphi %s603_s13, %s678_s13   ;;  %s570_s12 = sphi %s601_s12, %s677_s12  }
   0x3   : > { %s38_s17 = ssub.s32 %s578_s14, %s618_s16  ;;  %s41_s18 = sadd.s32 1, %s574_s13 }
   0x4   : > { %p39_p0 = scmp.eq.s32.totalorder %s38_s17, 0  ;;  %p48_p1 = scmp.ne.s32.totalorder %s574_s13, %s570_s12 }
   0x5   : > { %p49_p2 = scmp.eq.s32.totalorder %s578_s14, 0  ;;  %p471_p4 = scmp.ge.s32.totalorder %s578_s14, 2 }
   0x6   : > { %s627_s19 = scalar_select %p39_p0, %s574_s13, %s41_s18  }
   0x7   : > { %p50_p3 = por %p49_p2, %p48_p1  ;;  %127 = sbr.rel (%p471_p4) target bundleno = 24 (0x18), region = 24 }
   0xc   : > { %130 = sbr.rel (!%p50_p3) target bundleno = 24 (0x18), region = 28  ;;  %s132_s20 = sand.u32 (%p50_p3), 1, %s574_s13  }
   0xd   : > { %s521_s21 = sshll.u32 (%p50_p3), %s578_s14, 5  ;;  %s472_s22 = sshll.u32 (%p50_p3), %s132_s20, 6 }
   0xe   : > { %s137_s25 = scalar_lea.vmem (%p50_p3), %s674_s1, %s521_s21  ;;  %s134_s26 = scalar_lea.vmem (%p50_p3), [#allocation2], %s472_s22 }
   0xf   : > { %v150_v0 = vld [vmem:[%s137_s25] sm:$0xff] (%p50_p3)  ;;  %v152_v1 = vld [vmem:[%s137_s25 + $0x8] sm:$0xff] (%p50_p3)  ;;  %v154_v2 = vld [vmem:[%s137_s25 + $0x10] sm:$0xff] (%p50_p3) }
  0x10   : > { %151 = vst [vmem:[%s134_s26] sm:$0xff] (%p50_p3), %v150_v0  ;;  %v156_v3 = vld [vmem:[%s137_s25 + $0x18] sm:$0xff] (%p50_p3)  ;;  %v158_v4 = vld [vmem:[%s137_s25 + $0x40] sm:$0xff] (%p50_p3)  ;;  %v160_v5 = vld [vmem:[%s137_s25 + $0x48] sm:$0xff] (%p50_p3) }
  0x11   : > { %153 = vst [vmem:[%s134_s26 + $0x8] sm:$0xff] %v152_v1  ;;  %v162_v6 = vld [vmem:[%s137_s25 + $0x50] sm:$0xff]  ;;  %v164_v7 = vld [vmem:[%s137_s25 + $0x58] sm:$0xff] }
  0x12   : > { %155 = vst [vmem:[%s134_s26 + $0x10] sm:$0xff] %v154_v2 }
  0x13   : > { %157 = vst [vmem:[%s134_s26 + $0x18] sm:$0xff] %v156_v3 }
  0x14   : > { %159 = vst [vmem:[%s134_s26 + $0x20] sm:$0xff] %v158_v4 }
  0x15   : > { %161 = vst [vmem:[%s134_s26 + $0x28] sm:$0xff] %v160_v5 }
  0x16   : > { %163 = vst [vmem:[%s134_s26 + $0x30] sm:$0xff] %v162_v6 }
  0x17   : > { %165 = vst [vmem:[%s134_s26 + $0x38] sm:$0xff] %v164_v7 }
  0x18 PF: > { %p475_p5 = scmp.ge.s32.totalorder %s578_s14, 1  ;;  %p170_p6 = scmp.lt.s32.totalorder %s578_s14, 3 }
  0x1a   : > { %p171_p7 = pnand %p475_p5, %p170_p6 }
  0x1b   : > { %s177_s27 = sand.u32 (!%p171_p7), 1, %s570_s12   ;;  %s477_s7 = sshll.u32 (!%p171_p7), %s468_s15, 3 }
  0x1c   : > { %174 = sbr.rel (%p171_p7) target bundleno = 199 (0xc7), region = 51  ;;  %s476_s28 = sshll.u32 (!%p171_p7), %s177_s27, 6 }
  0x1d   : > { %s179_s4 = scalar_lea.vmem (!%p171_p7), [#allocation2], %s476_s28  ;;  %p202_p8 = scmp.lt.s32.totalorder (!%p171_p7), %s477_s7, 15 }
  0x21   : > { %v580_v8 = vmov 0   ;;  %v217_v9 = vld [vmem:[%s675_s2] sm:$0x3]  ;;  %vm263_vm0 = vcmask 130048   ;;  %v522_v12 = vld [vmem:[%s179_s4 + $0x4] sm:$0xf] }
  0x22   : > { %555 = vset.pattern.permute.xlu0 %v580_v8  ;;  %v481_v10 = vld [vmem:[%s179_s4] sm:$0xf]  ;;  %v483_v14 = vld [vmem:[%s179_s4 + $0x20] sm:$0xf0]  ;;  %v489_v15 = vld [vmem:[%s179_s4 + $0x8] sm:$0xf] }
  0x23   : > { %220 = vperm.xlu0 %555, %v217_v9   ;;  %v526_v11 = vld [vmem:[%s179_s4 + $0x1c] sm:$0xf0]  ;;  %v527_v16 = vld [vmem:[%s179_s4 + $0x24] sm:$0xf0]  ;;  %v486_v18 = vor.u32 %v522_v12, %v483_v14  ;;  %v523_v20 = vld [vmem:[%s179_s4 + $0xc] sm:$0xf] }
  0x24   : > { %v482_v13 = vor.u32 %v526_v11, %v481_v10  ;;  %v208_v17 = vld [vmem:[%s673_s0] sm:$0x1]  ;;  %v490_v19 = vor.u32 %v527_v16, %v489_v15  ;;  %v491_v21 = vld [vmem:[%s179_s4 + $0x28] sm:$0xf0]  ;;  %v505_v22 = vld [vmem:[%s179_s4 + $0x18] sm:$0xf] }
  0x25   : > { %v494_v23 = vor.u32 %v523_v20, %v491_v21  ;;  %v529_v24 = vld [vmem:[%s179_s4 + $0x34] sm:$0xf0]  ;;  %v525_v25 = vld [vmem:[%s179_s4 + $0x1c] sm:$0xf]  ;;  %287 = vmatpush.bf16.msra.mxu1 %v486_v18  ;;  %v524_v28 = vld [vmem:[%s179_s4 + $0x14] sm:$0xf] }
  0x26   : > { %274 = vmatpush.bf16.msra.mxu0 %v482_v13  ;;  %v507_v26 = vld [vmem:[%s179_s4 + $0x38] sm:$0xf0]  ;;  %300 = vmatpush.bf16.msra.mxu2 %v490_v19  ;;  %v506_v27 = vor.u32 %v529_v24, %v505_v22  ;;  %v499_v29 = vld [vmem:[%s179_s4 + $0x30] sm:$0xf0]  ;;  %v497_v30 = vld [vmem:[%s179_s4 + $0x10] sm:$0xf] }
  0x27   : > { %313 = vmatpush.bf16.msra.mxu3 %v494_v23  ;;  %v510_v31 = vor.u32 %v525_v25, %v507_v26  ;;  %v502_v32 = vor.u32 %v524_v28, %v499_v29  ;;  %v528_v33 = vld [vmem:[%s179_s4 + $0x2c] sm:$0xf0]  ;;  %s681_s7 = smov (!%p202_p8, %s477_s7), 15  ;;  %vm393_vm1 = vcmask 1041408   ;;  %vm395_vm2 = vcmask 1045508  }
  0x28   : > { %v498_v34 = vor.u32 %v528_v33, %v497_v30  ;;  %512 = vmatmul.msk.bf16.vlgmr.msra.gmra.mxu1 %vm263_vm0, %v208_v17  ;;  %s478_s8 = sshll.u32 %s681_s7, 1  ;;  %vm397_vm3 = vcmask 1043456  }
  0x29   : > { %511 = vmatmul.msk.bf16.vlgmr.msra.gmra.mxu0 %vm263_vm0, %v208_v17  ;;  %513 = vmatmul.msk.bf16.vlgmr.msra.gmra.mxu2 %vm263_vm0, %v208_v17  ;;  %s205_s11 = scalar_lea.vmem %s676_s3, %s478_s8 }
  0x2a   : > { %352 = vmatpush.bf16.msrb.mxu2 %v506_v27  ;;  %514 = vmatmul.msk.bf16.vlgmr.msra.gmra.mxu3 %vm263_vm0, %v208_v17 }
  0x2b   : > { %339 = vmatpush.bf16.msrb.mxu1 %v502_v32  ;;  %365 = vmatpush.bf16.msrb.mxu3 %v510_v31 }
  0x2c   : > { %326 = vmatpush.bf16.msrb.mxu0 %v498_v34 }
  0x38   : > { %516 = vmatmul.msk.bf16.vlgmr.msrb.gmra.mxu1 %vm263_vm0, %v208_v17 }
  0x39   : > { %515 = vmatmul.msk.bf16.vlgmr.msrb.gmra.mxu0 %vm263_vm0, %v208_v17  ;;  %517 = vmatmul.msk.bf16.vlgmr.msrb.gmra.mxu2 %vm263_vm0, %v208_v17 }
  0x3a   : > { %518 = vmatmul.msk.bf16.vlgmr.msrb.gmra.mxu3 %vm263_vm0, %v208_v17 }
  0x95   : > { %v221_v35 = vpop.permute.xlu0 %220 }
  0xa5   : > { %v289_v37 = vpop.f32.mrf.mxu1 }
  0xa6   : > { %v276_v36 = vpop.f32.mrf.mxu0  ;;  %v290_v38 = vadd.f32 %v289_v37, %v221_v35 }
  0xa7   : > { %v277_v39 = vadd.f32 %v276_v36, %v221_v35 }
  0xa8   : > { %v372_v40 = vmax.f32 %v290_v38, 0.0 }
  0xa9   : > { %v371_v46 = vmax.f32 %v277_v39, 0.0 }
  0xaa   : > { %v387_v47 = vrot.slane %v372_v40, 6 }
  0xac   : > { %v302_v41 = vpop.f32.mrf.mxu2  ;;  %v394_v53 = vsel %vm393_vm1, %v371_v46, %v387_v47 }
  0xad   : > { %v303_v42 = vadd.f32 %v302_v41, %v221_v35  ;;  %v315_v43 = vpop.f32.mrf.mxu3  ;;  %v291_v48 = vpop.f32.mrf.mxu1 }
  0xae   : > { %v278_v44 = vpop.f32.mrf.mxu0  ;;  %v316_v45 = vadd.f32 %v315_v43, %v221_v35 }
  0xaf   : > { %v373_v49 = vmax.f32 %v303_v42, 0.0 }
  0xb0   : > { %v374_v50 = vmax.f32 %v316_v45, 0.0 }
  0xb1   : > { %v388_v51 = vrot.slane %v373_v49, 4 }
  0xb2   : > { %v389_v52 = vrot.slane %v374_v50, 2 }
  0xb4   : > { %v396_v54 = vsel %vm395_vm2, %v388_v51, %v389_v52  ;;  %v304_v55 = vpop.f32.mrf.mxu2 }
  0xb5   : > { %v398_v56 = vsel %vm397_vm3, %v394_v53, %v396_v54  ;;  %v317_v57 = vpop.f32.mrf.mxu3  ;;  %v341_v59 = vpop.f32.mrf.mxu1 }
  0xb6   : > { %v328_v58 = vpop.f32.mrf.mxu0  ;;  %404 = vst [vmem:[%s205_s11] sm:$0xff] %v398_v56  ;;  %v342_v60 = vadd.f32 %v341_v59, %v221_v35 }
  0xb7   : > { %v329_v61 = vadd.f32 %v328_v58, %v221_v35 }
  0xb8   : > { %v376_v62 = vmax.f32 %v342_v60, 0.0 }
  0xb9   : > { %v375_v6 = vmax.f32 %v329_v61, 0.0 }
  0xba   : > { %v390_v7 = vrot.slane %v376_v62, 6 }
  0xbc   : > { %v354_v63 = vpop.f32.mrf.mxu2  ;;  %v399_v11 = vsel %vm393_vm1, %v375_v6, %v390_v7 }
  0xbd   : > { %v355_v0 = vadd.f32 %v354_v63, %v221_v35  ;;  %v367_v1 = vpop.f32.mrf.mxu3  ;;  %v343_v4 = vpop.f32.mrf.mxu1 }
  0xbe   : > { %v330_v2 = vpop.f32.mrf.mxu0  ;;  %v368_v3 = vadd.f32 %v367_v1, %v221_v35 }
  0xbf   : > { %v377_v5 = vmax.f32 %v355_v0, 0.0 }
  0xc0   : > { %v378_v8 = vmax.f32 %v368_v3, 0.0 }
  0xc1   : > { %v391_v9 = vrot.slane %v377_v5, 4 }
  0xc2   : > { %v392_v10 = vrot.slane %v378_v8, 2 }
  0xc4   : > { %v400_v12 = vsel %vm395_vm2, %v391_v9, %v392_v10  ;;  %v356_v13 = vpop.f32.mrf.mxu2 }
  0xc5   : > { %v401_v14 = vsel %vm397_vm3, %v399_v11, %v400_v12  ;;  %v369_v15 = vpop.f32.mrf.mxu3 }
  0xc6   : > { %405 = vst [vmem:[%s205_s11 + $0x8] sm:$0xff] %v401_v14 }
  0xc7 PF: > { %p10_p9 = scmp.ge.s32.totalorder %s618_s16, 4   ;;  %s677_s12 = smov %s574_s13 }
  0xc8   : > { %s678_s13 = smov %s627_s19  ;;  %s679_s14 = smov %s618_s16 }
  0xc9   :  { %12 = sbr.rel (!%p10_p9) target bundleno = 2 (0x2), region = 90 }

// kernel: vae_fd_forward.21
= control target key start
LH: loop header
LB: loop body
LE: loop exit
PB: predicated region body
PF: predicated region fallthrough
CT: control target
= control target key end

     0   :  { %v193_v3 = vmov 0   ;;  %vm70_vm0 = vcmask 261120   ;;  %vm136_vm1 = vcmask 1043456   ;;  %s274_s1 = inlined_call_operand.vmem [shape: bf16[32,512], index: 1, kind: input, shape index: {}]   ;;  %s275_s2 = inlined_call_operand.vmem [shape: f32[4,1], index: 2, kind: input, shape index: {}]   ;;  %s276_s0 = inlined_call_operand.vmem [shape: bf16[4,32], index: 0, kind: input, shape index: {}]   ;;  %s277_s3 = inlined_call_operand.vmem [shape: f32[4,512], index: 3, kind: output, shape index: {}]  }
   0x1   :  { %v165_v0 = vld [vmem:[%s274_s1 + $0x20] sm:$0xf]  ;;  %v189_v1 = vld [vmem:[%s274_s1 + $0x2c] sm:$0xf0]  ;;  %v187_v2 = vld [vmem:[%s274_s1 + $0x24] sm:$0xf]  ;;  %192 = vset.pattern.permute.xlu0 %v193_v3 }
   0x2   :  { %v166_v4 = vor.u32 %v189_v1, %v165_v0  ;;  %v167_v5 = vld [vmem:[%s274_s1 + $0x30] sm:$0xf0]  ;;  %v173_v6 = vld [vmem:[%s274_s1 + $0x28] sm:$0xf]  ;;  %v190_v7 = vld [vmem:[%s274_s1 + $0x34] sm:$0xf0] }
   0x3   :  { %v170_v8 = vor.u32 %v187_v2, %v167_v5  ;;  %v174_v9 = vor.u32 %v190_v7, %v173_v6  ;;  %v188_v10 = vld [vmem:[%s274_s1 + $0x2c] sm:$0xf]  ;;  %v175_v11 = vld [vmem:[%s274_s1 + $0x38] sm:$0xf0]  ;;  %v149_v12 = vld [vmem:[%s274_s1] sm:$0xf] }
   0x4   :  { %80 = vmatpush.bf16.msra.mxu0 %v166_v4  ;;  %v178_v13 = vor.u32 %v188_v10, %v175_v11  ;;  %v185_v14 = vld [vmem:[%s274_s1 + $0xc] sm:$0xf0]  ;;  %v183_v15 = vld [vmem:[%s274_s1 + $0x4] sm:$0xf]  ;;  %v151_v16 = vld [vmem:[%s274_s1 + $0x10] sm:$0xf0] }
   0x5   :  { %93 = vmatpush.bf16.msra.mxu1 %v170_v8  ;;  %106 = vmatpush.bf16.msra.mxu2 %v174_v9  ;;  %v150_v17 = vor.u32 %v185_v14, %v149_v12  ;;  %v154_v18 = vor.u32 %v183_v15, %v151_v16  ;;  %v157_v19 = vld [vmem:[%s274_s1 + $0x8] sm:$0xf]  ;;  %v186_v20 = vld [vmem:[%s274_s1 + $0x14] sm:$0xf0]  ;;  %v184_v21 = vld [vmem:[%s274_s1 + $0xc] sm:$0xf] }
   0x6   :  { %119 = vmatpush.bf16.msra.mxu3 %v178_v13  ;;  %v158_v22 = vor.u32 %v186_v20, %v157_v19  ;;  %v159_v23 = vld [vmem:[%s274_s1 + $0x18] sm:$0xf0]  ;;  %v24_v24 = vld [vmem:[%s275_s2] sm:$0xf] }
   0x7   :  { %v162_v25 = vor.u32 %v184_v21, %v159_v23  ;;  %27 = vperm.xlu0 %192, %v24_v24   ;;  %v15_v26 = vld [vmem:[%s276_s0] sm:$0x3] }
   0x8   :  { %81 = vmatpush.bf16.msra.mxu0 %v150_v17 }
   0x9   :  { %94 = vmatpush.bf16.msra.mxu1 %v154_v18  ;;  %107 = vmatpush.bf16.msra.mxu2 %v158_v22 }
   0xa   :  { %120 = vmatpush.bf16.msra.mxu3 %v162_v25 }
   0xb   :  { %179 = vmatmul.msk.bf16.vlgmr.msra.gmra.mxu0 %vm70_vm0, %v15_v26 }
   0xc   :  { %180 = vmatmul.msk.bf16.vlgmr.msra.gmra.mxu1 %vm70_vm0, %v15_v26  ;;  %181 = vmatmul.msk.bf16.vlgmr.msra.gmra.mxu2 %vm70_vm0, %v15_v26 }
   0xd   :  { %182 = vmatmul.msk.bf16.vlgmr.msra.gmra.mxu3 %vm70_vm0, %v15_v26 }
  0x79   :  { %v28_v27 = vpop.permute.xlu0 %27 }
  0x88   :  { %v83_v28 = vpop.f32.mrf.mxu0 }
  0x89   :  { %v96_v29 = vpop.f32.mrf.mxu1  ;;  %v84_v30 = vadd.f32 %v83_v28, %v28_v27 }
  0x8a   :  { %v97_v31 = vadd.f32 %v96_v29, %v28_v27 }
  0x8b   :  { %v126_v32 = vmax.f32 %v84_v30, 0.0 }
  0x8c   :  { %v127_v33 = vmax.f32 %v97_v31, 0.0 }
  0x8e   :  { %v134_v34 = vrot.slane %v127_v33, 4 }
  0x8f   :  { %v109_v35 = vpop.f32.mrf.mxu2 }
  0x90   :  { %v122_v36 = vpop.f32.mrf.mxu3  ;;  %v137_v37 = vsel %vm136_vm1, %v126_v32, %v134_v34  ;;  %v85_v38 = vpop.f32.mrf.mxu0  ;;  %v110_v39 = vadd.f32 %v109_v35, %v28_v27 }
  0x91   :  { %v123_v40 = vadd.f32 %v122_v36, %v28_v27  ;;  %141 = vst [vmem:[%s277_s3] sm:$0xff] %v137_v37  ;;  %v98_v41 = vpop.f32.mrf.mxu1 }
  0x92   :  { %v128_v43 = vmax.f32 %v110_v39, 0.0 }
  0x93   :  { %v129_v42 = vmax.f32 %v123_v40, 0.0 }
  0x95   :  { %v135_v44 = vrot.slane %v129_v42, 4 }
  0x97   :  { %v138_v45 = vsel %vm136_vm1, %v128_v43, %v135_v44  ;;  %v111_v46 = vpop.f32.mrf.mxu2 }
  0x98   :  { %142 = vst [vmem:[%s277_s3 + $0x8] sm:$0xff] %v138_v45  ;;  %v124_v47 = vpop.f32.mrf.mxu3 }

// kernel: vae_fd_forward.22
= control target key start
LH: loop header
LB: loop body
LE: loop exit
PB: predicated region body
PF: predicated region fallthrough
CT: control target
= control target key end

     0   :  { %v214_v2 = vmov 0   ;;  %vm86_vm0 = vcmask 1041408   ;;  %vm82_vm1 = vcmask 293888   ;;  %vm157_vm2 = vcmask 1043456   ;;  %s305_s1 = inlined_call_operand.vmem [shape: bf16[36,512], index: 1, kind: input, shape index: {}]   ;;  %s306_s2 = inlined_call_operand.vmem [shape: f32[4,1], index: 2, kind: input, shape index: {}]   ;;  %s307_s0 = inlined_call_operand.vmem [shape: bf16[4,36], index: 0, kind: input, shape index: {}]   ;;  %s308_s3 = inlined_call_operand.vmem [shape: f32[4,512], index: 3, kind: output, shape index: {}]  }
   0x1   :  { %v24_v0 = vld [vmem:[%s305_s1 + $0x40] sm:$0x33]  ;;  %v25_v1 = vld [vmem:[%s305_s1 + $0x48] sm:$0x33]  ;;  %213 = vset.pattern.permute.xlu0 %v214_v2  ;;  %v210_v8 = vld [vmem:[%s305_s1 + $0x2c] sm:$0xf0] }
   0x2   :  { %v58_v3 = vunpack.c.l.b16 %v24_v0  ;;  %v59_v4 = vunpack.c.h.b16 %v24_v0  ;;  %v60_v5 = vunpack.c.l.b16 %v25_v1  ;;  %v61_v6 = vunpack.c.h.b16 %v25_v1  ;;  %v186_v7 = vld [vmem:[%s305_s1 + $0x20] sm:$0xf]  ;;  %v208_v13 = vld [vmem:[%s305_s1 + $0x24] sm:$0xf]  ;;  %v188_v14 = vld [vmem:[%s305_s1 + $0x30] sm:$0xf0] }
   0x3   :  { %v194_v15 = vld [vmem:[%s305_s1 + $0x28] sm:$0xf]  ;;  %v211_v16 = vld [vmem:[%s305_s1 + $0x34] sm:$0xf0]  ;;  %v209_v17 = vld [vmem:[%s305_s1 + $0x2c] sm:$0xf]  ;;  %v187_v23 = vor.u32 %v210_v8, %v186_v7  ;;  %v191_v24 = vor.u32 %v208_v13, %v188_v14 }
   0x4   :  { %v70_v9 = vpack.c.b16 %v58_v3, %v58_v3  ;;  %v71_v10 = vpack.c.b16 %v59_v4, %v59_v4  ;;  %v72_v11 = vpack.c.b16 %v60_v5, %v60_v5  ;;  %v73_v12 = vpack.c.b16 %v61_v6, %v61_v6  ;;  %v196_v18 = vld [vmem:[%s305_s1 + $0x38] sm:$0xf0]  ;;  %v170_v25 = vld [vmem:[%s305_s1] sm:$0xf]  ;;  %v206_v26 = vld [vmem:[%s305_s1 + $0xc] sm:$0xf0] }
   0x5   :  { %v204_v27 = vld [vmem:[%s305_s1 + $0x4] sm:$0xf]  ;;  %v195_v28 = vor.u32 %v211_v16, %v194_v15  ;;  %v199_v29 = vor.u32 %v209_v17, %v196_v18  ;;  %v172_v30 = vld [vmem:[%s305_s1 + $0x10] sm:$0xf0]  ;;  %v178_v31 = vld [vmem:[%s305_s1 + $0x8] sm:$0xf]  ;;  %v171_v36 = vor.u32 %v206_v26, %v170_v25 }
   0x6   :  { %v88_v19 = vsel %vm86_vm0, %v70_v9, 0  ;;  %v91_v20 = vsel %vm86_vm0, %v71_v10, 0  ;;  %v94_v21 = vsel %vm86_vm0, %v72_v11, 0  ;;  %v97_v22 = vsel %vm86_vm0, %v73_v12, 0  ;;  %v26_v32 = vld [vmem:[%s306_s2] sm:$0xf] }
   0x7   :  { %104 = vmatpush.bf16.msra.mxu0 %v88_v19  ;;  %117 = vmatpush.bf16.msra.mxu1 %v91_v20  ;;  %v207_v33 = vld [vmem:[%s305_s1 + $0x14] sm:$0xf0]  ;;  %v205_v34 = vld [vmem:[%s305_s1 + $0xc] sm:$0xf]  ;;  %v180_v35 = vld [vmem:[%s305_s1 + $0x18] sm:$0xf0]  ;;  %v175_v37 = vor.u32 %v204_v27, %v172_v30 }
   0x8   :  { %130 = vmatpush.bf16.msra.mxu2 %v94_v21  ;;  %143 = vmatpush.bf16.msra.mxu3 %v97_v22  ;;  %v179_v38 = vor.u32 %v207_v33, %v178_v31  ;;  %v183_v39 = vor.u32 %v205_v34, %v180_v35  ;;  %v15_v40 = vld [vmem:[%s307_s0] sm:$0x3] }
   0x9   :  { %29 = vperm.xlu0 %213, %v26_v32  }
   0xb   :  { %105 = vmatpush.bf16.msra.mxu0 %v187_v23  ;;  %118 = vmatpush.bf16.msra.mxu1 %v191_v24 }
   0xc   :  { %131 = vmatpush.bf16.msra.mxu2 %v195_v28  ;;  %144 = vmatpush.bf16.msra.mxu3 %v199_v29 }
   0xf   :  { %106 = vmatpush.bf16.msra.mxu0 %v171_v36  ;;  %119 = vmatpush.bf16.msra.mxu1 %v175_v37 }
  0x10   :  { %132 = vmatpush.bf16.msra.mxu2 %v179_v38  ;;  %145 = vmatpush.bf16.msra.mxu3 %v183_v39 }
  0x12   :  { %200 = vmatmul.msk.bf16.vlgmr.msra.gmra.mxu0 %vm82_vm1, %v15_v40  ;;  %201 = vmatmul.msk.bf16.vlgmr.msra.gmra.mxu1 %vm82_vm1, %v15_v40 }
  0x13   :  { %202 = vmatmul.msk.bf16.vlgmr.msra.gmra.mxu2 %vm82_vm1, %v15_v40  ;;  %203 = vmatmul.msk.bf16.vlgmr.msra.gmra.mxu3 %vm82_vm1, %v15_v40 }
  0x7b   :  { %v30_v41 = vpop.permute.xlu0 %29 }
  0x8f   :  { %v108_v42 = vpop.f32.mrf.mxu0  ;;  %v121_v43 = vpop.f32.mrf.mxu1 }
  0x90   :  { %v109_v44 = vadd.f32 %v108_v42, %v30_v41  ;;  %v122_v45 = vadd.f32 %v121_v43, %v30_v41 }
  0x92   :  { %v155_v46 = vrot.slane %v122_v45, 4 }
  0x94   :  { %v158_v47 = vsel %vm157_vm2, %v109_v44, %v155_v46 }
  0x95   :  { %162 = vst [vmem:[%s308_s3] sm:$0xff] %v158_v47 }
  0x96   :  { %v134_v48 = vpop.f32.mrf.mxu2  ;;  %v147_v49 = vpop.f32.mrf.mxu3 }
  0x97   :  { %v148_v50 = vadd.f32 %v147_v49, %v30_v41  ;;  %v110_v51 = vpop.f32.mrf.mxu0  ;;  %v123_v52 = vpop.f32.mrf.mxu1  ;;  %v135_v53 = vadd.f32 %v134_v48, %v30_v41 }
  0x99   :  { %v156_v54 = vrot.slane %v148_v50, 4 }
  0x9b   :  { %v159_v55 = vsel %vm157_vm2, %v135_v53, %v156_v54 }
  0x9c   :  { %163 = vst [vmem:[%s308_s3 + $0x8] sm:$0xff] %v159_v55 }
  0x9e   :  { %v136_v56 = vpop.f32.mrf.mxu2  ;;  %v149_v57 = vpop.f32.mrf.mxu3 }

// kernel: vae_fd_forward.25
= control target key start
LH: loop header
LB: loop body
LE: loop exit
PB: predicated region body
PF: predicated region fallthrough
CT: control target
= control target key end

     0   :  { %v118_v1 = vmov 0   ;;  %vm33_vm0 = vcmask 1041408   ;;  %vm29_vm1 = vcmask 31744   ;;  %vm102_vm2 = vcmask 1045508   ;;  %s156_s1 = inlined_call_operand.vmem [shape: bf16[4,512], index: 1, kind: input, shape index: {}]   ;;  %s157_s2 = inlined_call_operand.vmem [shape: f32[2,1], index: 2, kind: input, shape index: {}]   ;;  %s158_s0 = inlined_call_operand.vmem [shape: bf16[2,4], index: 0, kind: input, shape index: {}]   ;;  %s159_s3 = inlined_call_operand.vmem [shape: f32[2,512], index: 3, kind: output, shape index: {}]  }
   0x1   :  { %v16_v0 = vld [vmem:[%s156_s1] sm:$0xff]  ;;  %117 = vset.pattern.permute.xlu0 %v118_v1  ;;  %vm104_vm3 = vcmask 1043456  }
   0x2   :  { %v17_v2 = vld [vmem:[%s157_s2] sm:$0x3]  ;;  %24 = vst [vmem:[#allocation1] ss:$4 sm:$0xff] %v16_v0 }
   0x3   :  { %20 = vperm.xlu0 %117, %v17_v2   ;;  %v15_v10 = vld [vmem:[%s158_s0] sm:$0x1] }
   0x9   :  { %v25_v3 = vld.sshfl [vmem:[#allocation1] sm:$0xff pattern:$0x73625140]  ;;  %v26_v4 = vld.sshfl [vmem:[#allocation1 + $0x8] sm:$0xff pattern:$0x73625140] }
   0xa   :  { %v34_v5 = vsel %vm33_vm0, %v25_v3, 0  ;;  %v36_v6 = vsel %vm33_vm0, %v26_v4, 0  ;;  %v27_v7 = vld.sshfl [vmem:[#allocation1 + $0x10] sm:$0xff pattern:$0x73625140] }
   0xb   :  { %49 = vmatpush.bf16.msra.mxu0 %v34_v5  ;;  %62 = vmatpush.bf16.msra.mxu1 %v36_v6  ;;  %v38_v8 = vsel %vm33_vm0, %v27_v7, 0  ;;  %v28_v9 = vld.sshfl [vmem:[#allocation1 + $0x18] sm:$0xff pattern:$0x73625140] }
   0xc   :  { %75 = vmatpush.bf16.msra.mxu2 %v38_v8  ;;  %v40_v11 = vsel %vm33_vm0, %v28_v9, 0 }
   0xd   :  { %88 = vmatpush.bf16.msra.mxu3 %v40_v11 }
   0xe   :  { %112 = vmatmul.msk.bf16.vlgmr.msra.gmra.mxu0 %vm29_vm1, %v15_v10  ;;  %113 = vmatmul.msk.bf16.vlgmr.msra.gmra.mxu1 %vm29_vm1, %v15_v10 }
   0xf   :  { %114 = vmatmul.msk.bf16.vlgmr.msra.gmra.mxu2 %vm29_vm1, %v15_v10 }
  0x10   :  { %115 = vmatmul.msk.bf16.vlgmr.msra.gmra.mxu3 %vm29_vm1, %v15_v10 }
  0x75   :  { %v21_v14 = vpop.permute.xlu0 %20 }
  0x8b   :  { %v51_v12 = vpop.f32.mrf.mxu0  ;;  %v64_v13 = vpop.f32.mrf.mxu1 }
  0x8c   :  { %v65_v15 = vadd.f32 %v64_v13, %v21_v14  ;;  %v52_v20 = vadd.f32 %v51_v12, %v21_v14 }
  0x8e   :  { %v98_v21 = vrot.slane %v65_v15, 6 }
  0x90   :  { %v101_v26 = vsel %vm33_vm0, %v52_v20, %v98_v21 }
  0x92   :  { %v77_v16 = vpop.f32.mrf.mxu2 }
  0x93   :  { %v78_v17 = vadd.f32 %v77_v16, %v21_v14  ;;  %v90_v18 = vpop.f32.mrf.mxu3  ;;  %v53_v19 = vpop.f32.mrf.mxu0 }
  0x94   :  { %v91_v22 = vadd.f32 %v90_v18, %v21_v14  ;;  %v66_v23 = vpop.f32.mrf.mxu1 }
  0x95   :  { %v99_v24 = vrot.slane %v78_v17, 4 }
  0x96   :  { %v100_v25 = vrot.slane %v91_v22, 2 }
  0x98   :  { %v103_v27 = vsel %vm102_vm2, %v99_v24, %v100_v25 }
  0x99   :  { %v105_v28 = vsel %vm104_vm3, %v101_v26, %v103_v27 }
  0x9a   :  { %107 = vst [vmem:[%s159_s3] sm:$0xff] %v105_v28  ;;  %v79_v29 = vpop.f32.mrf.mxu2 }
  0x9b   :  { %v92_v30 = vpop.f32.mrf.mxu3 }

// kernel: vae_fd_forward.39
= control target key start
LH: loop header
LB: loop body
LE: loop exit
PB: predicated region body
PF: predicated region fallthrough
CT: control target
= control target key end

     0   :  { %s3624_s0 = inlined_call_operand.vmem [shape: bf16[2,512], index: 0, kind: input, shape index: {}]   ;;  %s3625_s1 = inlined_call_operand.vmem [shape: bf16[512,512], index: 1, kind: input, shape index: {}]   ;;  %s3626_s2 = inlined_call_operand.vmem [shape: f32[1,512], index: 2, kind: input, shape index: {}]   ;;  %s3627_s3 = inlined_call_operand.vmem [shape: f32[1,512], index: 3, kind: input, shape index: {}]   ;;  %s3628_s4 = inlined_call_operand.vmem [shape: f32[1,512], index: 4, kind: input, shape index: {}]   ;;  %s3629_s5 = inlined_call_operand.vmem [shape: bf16[512,128], index: 5, kind: input, shape index: {}]   ;;  %s3630_s6 = inlined_call_operand.vmem [shape: f32[1,128], index: 6, kind: input, shape index: {}]   ;;  %s3631_s7 = inlined_call_operand.vmem [shape: f32[1,128], index: 7, kind: input, shape index: {}]   ;;  %s3632_s8 = inlined_call_operand.vmem [shape: f32[1,128], index: 8, kind: input, shape index: {}]   ;;  %s3633_s9 = inlined_call_operand.vmem [shape: bf16[128,5], index: 9, kind: input, shape index: {}]   ;;  %s3634_s10 = inlined_call_operand.vmem [shape: f32[1,5], index: 10, kind: input, shape index: {}]   ;;  %s3635_s11 = inlined_call_operand.hbm [shape: f32[2,5], index: 11, kind: output, shape index: {}]  }
   0x1   :  { %v1791_v0 = vld [vmem:[%s3625_s1 + $0xe0] sm:$0xf]  ;;  %v2379_v1 = vld [vmem:[%s3625_s1 + $0xec] sm:$0xf0] }
   0x2   :  { %v1919_v2 = vld [vmem:[%s3625_s1 + $0x1e0] sm:$0xf]  ;;  %v1792_v3 = vor.u32 %v2379_v1, %v1791_v0  ;;  %v2411_v4 = vld [vmem:[%s3625_s1 + $0x1ec] sm:$0xf0] }
   0x3   :  { %v2047_v5 = vld [vmem:[%s3625_s1 + $0x2e0] sm:$0xf]  ;;  %v2443_v6 = vld [vmem:[%s3625_s1 + $0x2ec] sm:$0xf0]  ;;  %v1920_v7 = vor.u32 %v2411_v4, %v1919_v2 }
   0x4   :  { %v2048_v8 = vor.u32 %v2443_v6, %v2047_v5  ;;  %v2175_v9 = vld [vmem:[%s3625_s1 + $0x3e0] sm:$0xf]  ;;  %v2475_v10 = vld [vmem:[%s3625_s1 + $0x3ec] sm:$0xf0]  ;;  %828 = vmatpush.bf16.msra.mxu0 %v1792_v3 }
   0x5   :  { %v1775_v11 = vld [vmem:[%s3625_s1 + $0xc0] sm:$0xf]  ;;  %v2176_v12 = vor.u32 %v2475_v10, %v2175_v9  ;;  %v2375_v13 = vld [vmem:[%s3625_s1 + $0xcc] sm:$0xf0]  ;;  %841 = vmatpush.bf16.msra.mxu1 %v1920_v7 }
   0x6   :  { %v1903_v14 = vld [vmem:[%s3625_s1 + $0x1c0] sm:$0xf]  ;;  %v2407_v15 = vld [vmem:[%s3625_s1 + $0x1cc] sm:$0xf0]  ;;  %854 = vmatpush.bf16.msra.mxu2 %v2048_v8  ;;  %v1776_v16 = vor.u32 %v2375_v13, %v1775_v11 }
   0x7   :  { %v1904_v17 = vor.u32 %v2407_v15, %v1903_v14  ;;  %v2031_v18 = vld [vmem:[%s3625_s1 + $0x2c0] sm:$0xf]  ;;  %v2439_v19 = vld [vmem:[%s3625_s1 + $0x2cc] sm:$0xf0]  ;;  %867 = vmatpush.bf16.msra.mxu3 %v2176_v12 }
   0x8   :  { %v2159_v20 = vld [vmem:[%s3625_s1 + $0x3c0] sm:$0xf]  ;;  %v2032_v21 = vor.u32 %v2439_v19, %v2031_v18  ;;  %v2471_v22 = vld [vmem:[%s3625_s1 + $0x3cc] sm:$0xf0]  ;;  %829 = vmatpush.bf16.msra.mxu0 %v1776_v16 }
   0x9   :  { %v1759_v23 = vld [vmem:[%s3625_s1 + $0xa0] sm:$0xf]  ;;  %v2371_v24 = vld [vmem:[%s3625_s1 + $0xac] sm:$0xf0]  ;;  %v2160_v25 = vor.u32 %v2471_v22, %v2159_v20  ;;  %842 = vmatpush.bf16.msra.mxu1 %v1904_v17 }
   0xa   :  { %v1887_v26 = vld [vmem:[%s3625_s1 + $0x1a0] sm:$0xf]  ;;  %v2403_v27 = vld [vmem:[%s3625_s1 + $0x1ac] sm:$0xf0]  ;;  %v1760_v29 = vor.u32 %v2371_v24, %v1759_v23  ;;  %855 = vmatpush.bf16.msra.mxu2 %v2032_v21 }
   0xb   :  { %v2015_v28 = vld [vmem:[%s3625_s1 + $0x2a0] sm:$0xf]  ;;  %v2435_v30 = vld [vmem:[%s3625_s1 + $0x2ac] sm:$0xf0]  ;;  %v1888_v33 = vor.u32 %v2403_v27, %v1887_v26  ;;  %868 = vmatpush.bf16.msra.mxu3 %v2160_v25 }
   0xc   :  { %v2143_v31 = vld [vmem:[%s3625_s1 + $0x3a0] sm:$0xf]  ;;  %v2467_v32 = vld [vmem:[%s3625_s1 + $0x3ac] sm:$0xf0]  ;;  %v2016_v34 = vor.u32 %v2435_v30, %v2015_v28  ;;  %830 = vmatpush.bf16.msra.mxu0 %v1760_v29  ;;  %v2377_v29 = vld [vmem:[%s3625_s1 + $0xe4] sm:$0xf] }
   0xd   :  { %v1743_v35 = vld [vmem:[%s3625_s1 + $0x80] sm:$0xf]  ;;  %v2367_v36 = vld [vmem:[%s3625_s1 + $0x8c] sm:$0xf0]  ;;  %v2144_v38 = vor.u32 %v2467_v32, %v2143_v31  ;;  %843 = vmatpush.bf16.msra.mxu1 %v1888_v33  ;;  %v1793_v30 = vld [vmem:[%s3625_s1 + $0xf0] sm:$0xf0] }
   0xe   :  { %v1871_v37 = vld [vmem:[%s3625_s1 + $0x180] sm:$0xf]  ;;  %v2399_v39 = vld [vmem:[%s3625_s1 + $0x18c] sm:$0xf0]  ;;  %v1744_v44 = vor.u32 %v2367_v36, %v1743_v35  ;;  %856 = vmatpush.bf16.msra.mxu2 %v2016_v34  ;;  %v2409_v31 = vld [vmem:[%s3625_s1 + $0x1e4] sm:$0xf] }
   0xf   :  { %v1999_v40 = vld [vmem:[%s3625_s1 + $0x280] sm:$0xf]  ;;  %v2431_v41 = vld [vmem:[%s3625_s1 + $0x28c] sm:$0xf0]  ;;  %v1872_v45 = vor.u32 %v2399_v39, %v1871_v37  ;;  %869 = vmatpush.bf16.msra.mxu3 %v2144_v38  ;;  %v1921_v33 = vld [vmem:[%s3625_s1 + $0x1f0] sm:$0xf0] }
  0x10   :  { %v2127_v42 = vld [vmem:[%s3625_s1 + $0x380] sm:$0xf]  ;;  %v2463_v43 = vld [vmem:[%s3625_s1 + $0x38c] sm:$0xf0]  ;;  %v2000_v46 = vor.u32 %v2431_v41, %v1999_v40  ;;  %831 = vmatpush.bf16.msra.mxu0 %v1744_v44  ;;  %v2441_v34 = vld [vmem:[%s3625_s1 + $0x2e4] sm:$0xf]  ;;  %v1796_v41 = vor.u32 %v2377_v29, %v1793_v30 }
  0x11   :  { %v1727_v47 = vld [vmem:[%s3625_s1 + $0x60] sm:$0xf]  ;;  %v2363_v48 = vld [vmem:[%s3625_s1 + $0x6c] sm:$0xf0]  ;;  %v2128_v50 = vor.u32 %v2463_v43, %v2127_v42  ;;  %844 = vmatpush.bf16.msra.mxu1 %v1872_v45  ;;  %v2049_v35 = vld [vmem:[%s3625_s1 + $0x2f0] sm:$0xf0]  ;;  %v1924_v42 = vor.u32 %v2409_v31, %v1921_v33 }
  0x12   :  { %v1855_v49 = vld [vmem:[%s3625_s1 + $0x160] sm:$0xf]  ;;  %v2395_v51 = vld [vmem:[%s3625_s1 + $0x16c] sm:$0xf0]  ;;  %v1728_v56 = vor.u32 %v2363_v48, %v1727_v47  ;;  %857 = vmatpush.bf16.msra.mxu2 %v2000_v46  ;;  %v2473_v38 = vld [vmem:[%s3625_s1 + $0x3e4] sm:$0xf]  ;;  %v2052_v43 = vor.u32 %v2441_v34, %v2049_v35 }
  0x13   :  { %v1983_v52 = vld [vmem:[%s3625_s1 + $0x260] sm:$0xf]  ;;  %v2427_v53 = vld [vmem:[%s3625_s1 + $0x26c] sm:$0xf0]  ;;  %v1856_v57 = vor.u32 %v2395_v51, %v1855_v49  ;;  %870 = vmatpush.bf16.msra.mxu3 %v2128_v50  ;;  %v2177_v39 = vld [vmem:[%s3625_s1 + $0x3f0] sm:$0xf0] }
  0x14   :  { %v2111_v54 = vld [vmem:[%s3625_s1 + $0x360] sm:$0xf]  ;;  %v2459_v55 = vld [vmem:[%s3625_s1 + $0x36c] sm:$0xf0]  ;;  %v1984_v58 = vor.u32 %v2427_v53, %v1983_v52  ;;  %832 = vmatpush.bf16.msra.mxu0 %v1728_v56  ;;  %v2373_v44 = vld [vmem:[%s3625_s1 + $0xc4] sm:$0xf]  ;;  %v2180_v47 = vor.u32 %v2473_v38, %v2177_v39 }
  0x15   :  { %v1711_v59 = vld [vmem:[%s3625_s1 + $0x40] sm:$0xf]  ;;  %v2359_v60 = vld [vmem:[%s3625_s1 + $0x4c] sm:$0xf0]  ;;  %v2112_v62 = vor.u32 %v2459_v55, %v2111_v54  ;;  %845 = vmatpush.bf16.msra.mxu1 %v1856_v57  ;;  %v1777_v45 = vld [vmem:[%s3625_s1 + $0xd0] sm:$0xf0] }
  0x16   :  { %v1839_v61 = vld [vmem:[%s3625_s1 + $0x140] sm:$0xf]  ;;  %v2391_v63 = vld [vmem:[%s3625_s1 + $0x14c] sm:$0xf0]  ;;  %v1712_v4 = vor.u32 %v2359_v60, %v1711_v59  ;;  %858 = vmatpush.bf16.msra.mxu2 %v1984_v58  ;;  %v2405_v46 = vld [vmem:[%s3625_s1 + $0x1c4] sm:$0xf]  ;;  %v1780_v56 = vor.u32 %v2373_v44, %v1777_v45 }
  0x17   :  { %v1967_v0 = vld [vmem:[%s3625_s1 + $0x240] sm:$0xf]  ;;  %v2423_v1 = vld [vmem:[%s3625_s1 + $0x24c] sm:$0xf0]  ;;  %v1840_v5 = vor.u32 %v2391_v63, %v1839_v61  ;;  %871 = vmatpush.bf16.msra.mxu3 %v2112_v62  ;;  %v1905_v48 = vld [vmem:[%s3625_s1 + $0x1d0] sm:$0xf0] }
  0x18   :  { %v2095_v2 = vld [vmem:[%s3625_s1 + $0x340] sm:$0xf]  ;;  %v2455_v3 = vld [vmem:[%s3625_s1 + $0x34c] sm:$0xf0]  ;;  %v1968_v6 = vor.u32 %v2423_v1, %v1967_v0  ;;  %833 = vmatpush.bf16.msra.mxu0 %v1712_v4  ;;  %v2437_v49 = vld [vmem:[%s3625_s1 + $0x2c4] sm:$0xf]  ;;  %v1908_v58 = vor.u32 %v2405_v46, %v1905_v48 }
  0x19   :  { %v1695_v7 = vld [vmem:[%s3625_s1 + $0x20] sm:$0xf]  ;;  %v2355_v8 = vld [vmem:[%s3625_s1 + $0x2c] sm:$0xf0]  ;;  %v2096_v10 = vor.u32 %v2455_v3, %v2095_v2  ;;  %846 = vmatpush.bf16.msra.mxu1 %v1840_v5  ;;  %v2033_v50 = vld [vmem:[%s3625_s1 + $0x2d0] sm:$0xf0] }
  0x1a   :  { %v1823_v9 = vld [vmem:[%s3625_s1 + $0x120] sm:$0xf]  ;;  %v2387_v11 = vld [vmem:[%s3625_s1 + $0x12c] sm:$0xf0]  ;;  %v1696_v17 = vor.u32 %v2355_v8, %v1695_v7  ;;  %859 = vmatpush.bf16.msra.mxu2 %v1968_v6  ;;  %v2469_v52 = vld [vmem:[%s3625_s1 + $0x3c4] sm:$0xf]  ;;  %v2036_v59 = vor.u32 %v2437_v49, %v2033_v50 }
  0x1b   :  { %v1951_v12 = vld [vmem:[%s3625_s1 + $0x220] sm:$0xf]  ;;  %v2419_v13 = vld [vmem:[%s3625_s1 + $0x22c] sm:$0xf0]  ;;  %v1824_v21 = vor.u32 %v2387_v11, %v1823_v9  ;;  %872 = vmatpush.bf16.msra.mxu3 %v2096_v10  ;;  %v2161_v53 = vld [vmem:[%s3625_s1 + $0x3d0] sm:$0xf0] }
  0x1c   :  { %v2079_v14 = vld [vmem:[%s3625_s1 + $0x320] sm:$0xf]  ;;  %v2451_v15 = vld [vmem:[%s3625_s1 + $0x32c] sm:$0xf0]  ;;  %v1952_v22 = vor.u32 %v2419_v13, %v1951_v12  ;;  %834 = vmatpush.bf16.msra.mxu0 %v1696_v17  ;;  %v2369_v57 = vld [vmem:[%s3625_s1 + $0xa4] sm:$0xf]  ;;  %v2164_v63 = vor.u32 %v2469_v52, %v2161_v53 }
  0x1d   :  { %v1679_v16 = vld [vmem:[%s3625_s1] sm:$0xf]  ;;  %v2351_v18 = vld [vmem:[%s3625_s1 + $0xc] sm:$0xf0]  ;;  %v2080_v26 = vor.u32 %v2451_v15, %v2079_v14  ;;  %847 = vmatpush.bf16.msra.mxu1 %v1824_v21  ;;  %v1761_v61 = vld [vmem:[%s3625_s1 + $0xb0] sm:$0xf0] }
  0x1e   :  { %v1807_v19 = vld [vmem:[%s3625_s1 + $0x100] sm:$0xf]  ;;  %v2383_v20 = vld [vmem:[%s3625_s1 + $0x10c] sm:$0xf0]  ;;  %v1680_v32 = vor.u32 %v2351_v18, %v1679_v16  ;;  %860 = vmatpush.bf16.msra.mxu2 %v1952_v22  ;;  %v2401_v62 = vld [vmem:[%s3625_s1 + $0x1a4] sm:$0xf]  ;;  %v1764_v5 = vor.u32 %v2369_v57, %v1761_v61 }
  0x1f   :  { %v1935_v23 = vld [vmem:[%s3625_s1 + $0x200] sm:$0xf]  ;;  %v2415_v24 = vld [vmem:[%s3625_s1 + $0x20c] sm:$0xf0]  ;;  %v1808_v36 = vor.u32 %v2383_v20, %v1807_v19  ;;  %873 = vmatpush.bf16.msra.mxu3 %v2080_v26  ;;  %v1889_v0 = vld [vmem:[%s3625_s1 + $0x1b0] sm:$0xf0] }
  0x20   :  { %v39_v25 = vld [vmem:[%s3624_s0] sm:$0xf]  ;;  %v2447_v28 = vld [vmem:[%s3625_s1 + $0x30c] sm:$0xf0]  ;;  %v1936_v37 = vor.u32 %v2415_v24, %v1935_v23  ;;  %835 = vmatpush.bf16.msra.mxu0 %v1680_v32  ;;  %v2433_v1 = vld [vmem:[%s3625_s1 + $0x2a4] sm:$0xf]  ;;  %v1892_v6 = vor.u32 %v2401_v62, %v1889_v0 }
  0x21   :  { %v2063_v27 = vld [vmem:[%s3625_s1 + $0x300] sm:$0xf]  ;;  %179 = vst [vmem:[#allocation1] ss:$9 sm:$0xff] %v39_v25  ;;  %848 = vmatpush.bf16.msra.mxu1 %v1808_v36  ;;  %v2017_v2 = vld [vmem:[%s3625_s1 + $0x2b0] sm:$0xf0] }
  0x22   :  { %v2064_v40 = vor.u32 %v2447_v28, %v2063_v27  ;;  %861 = vmatpush.bf16.msra.mxu2 %v1936_v37  ;;  %v2465_v3 = vld [vmem:[%s3625_s1 + $0x3a4] sm:$0xf]  ;;  %v2145_v4 = vld [vmem:[%s3625_s1 + $0x3b0] sm:$0xf0]  ;;  %v2020_v7 = vor.u32 %v2433_v1, %v2017_v2 }
  0x23   :  { %v2365_v8 = vld [vmem:[%s3625_s1 + $0x84] sm:$0xf]  ;;  %v1745_v9 = vld [vmem:[%s3625_s1 + $0x90] sm:$0xf0]  ;;  %v2148_v11 = vor.u32 %v2465_v3, %v2145_v4 }
  0x24   :  { %874 = vmatpush.bf16.msra.mxu3 %v2064_v40  ;;  %880 = vmatpush.bf16.msrb.mxu0 %v1796_v41  ;;  %v2397_v10 = vld [vmem:[%s3625_s1 + $0x184] sm:$0xf]  ;;  %v1873_v12 = vld [vmem:[%s3625_s1 + $0x190] sm:$0xf0]  ;;  %v1748_v17 = vor.u32 %v2365_v8, %v1745_v9  ;;  %v2412_v9 = vld [vmem:[%s3625_s1 + $0x1f4] sm:$0xf0] }
  0x25   :  { %893 = vmatpush.bf16.msrb.mxu1 %v1924_v42  ;;  %v2429_v13 = vld [vmem:[%s3625_s1 + $0x284] sm:$0xf]  ;;  %v2001_v14 = vld [vmem:[%s3625_s1 + $0x290] sm:$0xf0]  ;;  %v1876_v18 = vor.u32 %v2397_v10, %v1873_v12  ;;  %v2055_v10 = vld [vmem:[%s3625_s1 + $0x2e8] sm:$0xf] }
  0x26   :  { %906 = vmatpush.bf16.msrb.mxu2 %v2052_v43  ;;  %v2461_v15 = vld [vmem:[%s3625_s1 + $0x384] sm:$0xf]  ;;  %v2129_v16 = vld [vmem:[%s3625_s1 + $0x390] sm:$0xf0]  ;;  %v2004_v19 = vor.u32 %v2429_v13, %v2001_v14  ;;  %v2183_v14 = vld [vmem:[%s3625_s1 + $0x3e8] sm:$0xf] }
  0x27   :  { %v2361_v20 = vld [vmem:[%s3625_s1 + $0x64] sm:$0xf]  ;;  %v1729_v21 = vld [vmem:[%s3625_s1 + $0x70] sm:$0xf0]  ;;  %v2132_v23 = vor.u32 %v2461_v15, %v2129_v16  ;;  %v2476_v15 = vld [vmem:[%s3625_s1 + $0x3f4] sm:$0xf0] }
  0x28   :  { %v2864_v51 = vld [vmem:[#allocation1 + $0x12] sm:$0xff]  ;;  %v2872_v54 = vld [vmem:[#allocation1] sm:$0xff]  ;;  %v2879_v60 = vld [vmem:[#allocation1 + $0x9] sm:$0xff]  ;;  %919 = vmatpush.bf16.msrb.mxu3 %v2180_v47  ;;  %881 = vmatpush.bf16.msrb.mxu0 %v1780_v56  ;;  %v1732_v29 = vor.u32 %v2361_v20, %v1729_v21 }
  0x29   :  { %v2874_v55 = vld [vmem:[#allocation1 + $0x1b] sm:$0xff]  ;;  %862 = vmatmul.bf16.vlgmr.msra.gmra.mxu2 %v2864_v51  ;;  %836 = vmatmul.bf16.vlgmr.msra.gmra.mxu0 %v2872_v54  ;;  %v2393_v22 = vld [vmem:[%s3625_s1 + $0x164] sm:$0xf]  ;;  %v1857_v24 = vld [vmem:[%s3625_s1 + $0x170] sm:$0xf0] }
  0x2a   :  { %875 = vmatmul.bf16.vlgmr.msra.gmra.mxu3 %v2874_v55  ;;  %849 = vmatmul.bf16.vlgmr.msra.gmra.mxu1 %v2879_v60  ;;  %v2425_v25 = vld [vmem:[%s3625_s1 + $0x264] sm:$0xf]  ;;  %v1985_v26 = vld [vmem:[%s3625_s1 + $0x270] sm:$0xf0]  ;;  %v1860_v30 = vor.u32 %v2393_v22, %v1857_v24  ;;  %v1783_v20 = vld [vmem:[%s3625_s1 + $0xc8] sm:$0xf] }
  0x2b   :  { %894 = vmatpush.bf16.msrb.mxu1 %v1908_v58  ;;  %907 = vmatpush.bf16.msrb.mxu2 %v2036_v59  ;;  %v2457_v27 = vld [vmem:[%s3625_s1 + $0x364] sm:$0xf]  ;;  %v2113_v28 = vld [vmem:[%s3625_s1 + $0x370] sm:$0xf0]  ;;  %v1988_v31 = vor.u32 %v2425_v25, %v1985_v26  ;;  %v2376_v21 = vld [vmem:[%s3625_s1 + $0xd4] sm:$0xf0] }
  0x2c   :  { %920 = vmatpush.bf16.msrb.mxu3 %v2164_v63  ;;  %882 = vmatpush.bf16.msrb.mxu0 %v1764_v5  ;;  %v2357_v32 = vld [vmem:[%s3625_s1 + $0x44] sm:$0xf]  ;;  %v1713_v33 = vld [vmem:[%s3625_s1 + $0x50] sm:$0xf0]  ;;  %v2116_v35 = vor.u32 %v2457_v27, %v2113_v28  ;;  %v1799_v5 = vld [vmem:[%s3625_s1 + $0xe8] sm:$0xf] }
  0x2d   :  { %v2389_v34 = vld [vmem:[%s3625_s1 + $0x144] sm:$0xf]  ;;  %v1841_v36 = vld [vmem:[%s3625_s1 + $0x150] sm:$0xf0]  ;;  %v1716_v41 = vor.u32 %v2357_v32, %v1713_v33  ;;  %v1911_v22 = vld [vmem:[%s3625_s1 + $0x1c8] sm:$0xf] }
  0x2e   :  { %v2421_v37 = vld [vmem:[%s3625_s1 + $0x244] sm:$0xf]  ;;  %v1969_v38 = vld [vmem:[%s3625_s1 + $0x250] sm:$0xf0]  ;;  %v1844_v42 = vor.u32 %v2389_v34, %v1841_v36  ;;  %v2408_v24 = vld [vmem:[%s3625_s1 + $0x1d4] sm:$0xf0] }
  0x2f   :  { %895 = vmatpush.bf16.msrb.mxu1 %v1892_v6  ;;  %908 = vmatpush.bf16.msrb.mxu2 %v2020_v7  ;;  %v2453_v39 = vld [vmem:[%s3625_s1 + $0x344] sm:$0xf]  ;;  %v2097_v40 = vld [vmem:[%s3625_s1 + $0x350] sm:$0xf0]  ;;  %v1972_v43 = vor.u32 %v2421_v37, %v1969_v38  ;;  %v2380_v6 = vld [vmem:[%s3625_s1 + $0xf4] sm:$0xf0] }
  0x30   :  { %921 = vmatpush.bf16.msrb.mxu3 %v2148_v11  ;;  %883 = vmatpush.bf16.msrb.mxu0 %v1748_v17  ;;  %v2353_v44 = vld [vmem:[%s3625_s1 + $0x24] sm:$0xf]  ;;  %v1697_v45 = vld [vmem:[%s3625_s1 + $0x30] sm:$0xf0]  ;;  %v2100_v47 = vor.u32 %v2453_v39, %v2097_v40  ;;  %v1927_v7 = vld [vmem:[%s3625_s1 + $0x1e8] sm:$0xf]  ;;  %v1800_v17 = vor.u32 %v2380_v6, %v1799_v5 }
  0x31   :  { %v2385_v46 = vld [vmem:[%s3625_s1 + $0x124] sm:$0xf]  ;;  %v1825_v48 = vld [vmem:[%s3625_s1 + $0x130] sm:$0xf0]  ;;  %v1700_v56 = vor.u32 %v2353_v44, %v1697_v45  ;;  %v2444_v11 = vld [vmem:[%s3625_s1 + $0x2f4] sm:$0xf0] }
  0x32   :  { %v2417_v49 = vld [vmem:[%s3625_s1 + $0x224] sm:$0xf]  ;;  %v1953_v50 = vld [vmem:[%s3625_s1 + $0x230] sm:$0xf0]  ;;  %v1828_v59 = vor.u32 %v2385_v46, %v1825_v48  ;;  %v2039_v25 = vld [vmem:[%s3625_s1 + $0x2c8] sm:$0xf] }
  0x33   :  { %896 = vmatpush.bf16.msrb.mxu1 %v1876_v18  ;;  %909 = vmatpush.bf16.msrb.mxu2 %v2004_v19  ;;  %v2449_v52 = vld [vmem:[%s3625_s1 + $0x324] sm:$0xf]  ;;  %v2081_v53 = vld [vmem:[%s3625_s1 + $0x330] sm:$0xf0]  ;;  %v1956_v61 = vor.u32 %v2417_v49, %v1953_v50  ;;  %v1928_v18 = vor.u32 %v2412_v9, %v1927_v7  ;;  %v2056_v19 = vor.u32 %v2444_v11, %v2055_v10  ;;  %v2440_v26 = vld [vmem:[%s3625_s1 + $0x2d4] sm:$0xf0] }
  0x34   :  { %922 = vmatpush.bf16.msrb.mxu3 %v2132_v23  ;;  %884 = vmatpush.bf16.msrb.mxu0 %v1732_v29  ;;  %v2349_v57 = vld [vmem:[%s3625_s1 + $0x4] sm:$0xf]  ;;  %v1681_v58 = vld [vmem:[%s3625_s1 + $0x10] sm:$0xf0]  ;;  %v2084_v1 = vor.u32 %v2449_v52, %v2081_v53  ;;  %v2184_v23 = vor.u32 %v2476_v15, %v2183_v14  ;;  %v2167_v27 = vld [vmem:[%s3625_s1 + $0x3c8] sm:$0xf]  ;;  %v1784_v29 = vor.u32 %v2376_v21, %v1783_v20 }
  0x35   :  { %v2381_v62 = vld [vmem:[%s3625_s1 + $0x104] sm:$0xf]  ;;  %v1809_v63 = vld [vmem:[%s3625_s1 + $0x110] sm:$0xf0]  ;;  %v1684_v8 = vor.u32 %v2349_v57, %v1681_v58  ;;  %v2472_v28 = vld [vmem:[%s3625_s1 + $0x3d4] sm:$0xf0] }
  0x36   :  { %v2413_v0 = vld [vmem:[%s3625_s1 + $0x204] sm:$0xf]  ;;  %v1937_v2 = vld [vmem:[%s3625_s1 + $0x210] sm:$0xf0]  ;;  %v1812_v12 = vor.u32 %v2381_v62, %v1809_v63  ;;  %v1767_v32 = vld [vmem:[%s3625_s1 + $0xa8] sm:$0xf] }
  0x37   :  { %897 = vmatpush.bf16.msrb.mxu1 %v1860_v30  ;;  %910 = vmatpush.bf16.msrb.mxu2 %v1988_v31  ;;  %v2445_v3 = vld [vmem:[%s3625_s1 + $0x304] sm:$0xf]  ;;  %v2065_v4 = vld [vmem:[%s3625_s1 + $0x310] sm:$0xf0]  ;;  %v1940_v13 = vor.u32 %v2413_v0, %v1937_v2  ;;  %v1912_v30 = vor.u32 %v2408_v24, %v1911_v22  ;;  %v2040_v31 = vor.u32 %v2440_v26, %v2039_v25  ;;  %v2372_v33 = vld [vmem:[%s3625_s1 + $0xb4] sm:$0xf0] }
  0x38   :  { %923 = vmatpush.bf16.msrb.mxu3 %v2116_v35  ;;  %885 = vmatpush.bf16.msrb.mxu0 %v1716_v41  ;;  %v2068_v16 = vor.u32 %v2445_v3, %v2065_v4  ;;  %v1895_v34 = vld [vmem:[%s3625_s1 + $0x1a8] sm:$0xf]  ;;  %v2168_v35 = vor.u32 %v2472_v28, %v2167_v27  ;;  %v2404_v36 = vld [vmem:[%s3625_s1 + $0x1b4] sm:$0xf0]  ;;  %v1768_v41 = vor.u32 %v2372_v33, %v1767_v32 }
  0x39   :  { %v2023_v37 = vld [vmem:[%s3625_s1 + $0x2a8] sm:$0xf]  ;;  %v2436_v38 = vld [vmem:[%s3625_s1 + $0x2b4] sm:$0xf0] }
  0x3a   :  { %v2151_v39 = vld [vmem:[%s3625_s1 + $0x3a8] sm:$0xf]  ;;  %v2468_v40 = vld [vmem:[%s3625_s1 + $0x3b4] sm:$0xf0] }
  0x3b   :  { %898 = vmatpush.bf16.msrb.mxu1 %v1844_v42  ;;  %911 = vmatpush.bf16.msrb.mxu2 %v1972_v43  ;;  %v1896_v42 = vor.u32 %v2404_v36, %v1895_v34  ;;  %v2024_v43 = vor.u32 %v2436_v38, %v2023_v37  ;;  %v1751_v44 = vld [vmem:[%s3625_s1 + $0x88] sm:$0xf]  ;;  %v2368_v45 = vld [vmem:[%s3625_s1 + $0x94] sm:$0xf0] }
  0x3c   :  { %924 = vmatpush.bf16.msrb.mxu3 %v2100_v47  ;;  %886 = vmatpush.bf16.msrb.mxu0 %v1700_v56  ;;  %v1879_v46 = vld [vmem:[%s3625_s1 + $0x188] sm:$0xf]  ;;  %v2152_v47 = vor.u32 %v2468_v40, %v2151_v39  ;;  %v2400_v48 = vld [vmem:[%s3625_s1 + $0x194] sm:$0xf0]  ;;  %v1752_v56 = vor.u32 %v2368_v45, %v1751_v44 }
  0x3d   :  { %v2007_v49 = vld [vmem:[%s3625_s1 + $0x288] sm:$0xf]  ;;  %v2432_v50 = vld [vmem:[%s3625_s1 + $0x294] sm:$0xf0]  ;;  %v1880_v57 = vor.u32 %v2400_v48, %v1879_v46 }
  0x3e   :  { %v2135_v52 = vld [vmem:[%s3625_s1 + $0x388] sm:$0xf]  ;;  %v2464_v53 = vld [vmem:[%s3625_s1 + $0x394] sm:$0xf0]  ;;  %v2008_v58 = vor.u32 %v2432_v50, %v2007_v49 }
  0x3f   :  { %899 = vmatpush.bf16.msrb.mxu1 %v1828_v59  ;;  %912 = vmatpush.bf16.msrb.mxu2 %v1956_v61  ;;  %v1735_v59 = vld [vmem:[%s3625_s1 + $0x68] sm:$0xf]  ;;  %v2364_v61 = vld [vmem:[%s3625_s1 + $0x74] sm:$0xf0]  ;;  %v2136_v63 = vor.u32 %v2464_v53, %v2135_v52 }
  0x40   :  { %925 = vmatpush.bf16.msrb.mxu3 %v2084_v1  ;;  %887 = vmatpush.bf16.msrb.mxu0 %v1684_v8  ;;  %v1863_v62 = vld [vmem:[%s3625_s1 + $0x168] sm:$0xf]  ;;  %v2396_v0 = vld [vmem:[%s3625_s1 + $0x174] sm:$0xf0]  ;;  %v1736_v5 = vor.u32 %v2364_v61, %v1735_v59 }
  0x41   :  { %v1991_v1 = vld [vmem:[%s3625_s1 + $0x268] sm:$0xf]  ;;  %v2428_v2 = vld [vmem:[%s3625_s1 + $0x274] sm:$0xf0]  ;;  %v1864_v6 = vor.u32 %v2396_v0, %v1863_v62 }
  0x42   :  { %v2119_v3 = vld [vmem:[%s3625_s1 + $0x368] sm:$0xf]  ;;  %v2460_v4 = vld [vmem:[%s3625_s1 + $0x374] sm:$0xf0]  ;;  %v1992_v7 = vor.u32 %v2428_v2, %v1991_v1 }
  0x43   :  { %900 = vmatpush.bf16.msrb.mxu1 %v1812_v12  ;;  %913 = vmatpush.bf16.msrb.mxu2 %v1940_v13  ;;  %v1719_v8 = vld [vmem:[%s3625_s1 + $0x48] sm:$0xf]  ;;  %v2360_v9 = vld [vmem:[%s3625_s1 + $0x54] sm:$0xf0]  ;;  %v2120_v11 = vor.u32 %v2460_v4, %v2119_v3 }
  0x44   :  { %926 = vmatpush.bf16.msrb.mxu3 %v2068_v16  ;;  %932 = vmatpush.bf16.msra.mxu0 %v1800_v17  ;;  %v1847_v10 = vld [vmem:[%s3625_s1 + $0x148] sm:$0xf]  ;;  %v2392_v12 = vld [vmem:[%s3625_s1 + $0x154] sm:$0xf0]  ;;  %v1720_v17 = vor.u32 %v2360_v9, %v1719_v8 }
  0x45   :  { %888 = vmatmul.bf16.vlgmr.msrb.gmra.mxu0 %v2872_v54  ;;  %v1975_v13 = vld [vmem:[%s3625_s1 + $0x248] sm:$0xf]  ;;  %v2424_v14 = vld [vmem:[%s3625_s1 + $0x254] sm:$0xf0]  ;;  %v1848_v20 = vor.u32 %v2392_v12, %v1847_v10 }
  0x46   :  { %914 = vmatmul.bf16.vlgmr.msrb.gmra.mxu2 %v2864_v51  ;;  %901 = vmatmul.bf16.vlgmr.msrb.gmra.mxu1 %v2879_v60  ;;  %v2103_v15 = vld [vmem:[%s3625_s1 + $0x348] sm:$0xf]  ;;  %v2456_v16 = vld [vmem:[%s3625_s1 + $0x354] sm:$0xf0]  ;;  %v1976_v21 = vor.u32 %v2424_v14, %v1975_v13 }
  0x47   :  { %945 = vmatpush.bf16.msra.mxu1 %v1928_v18  ;;  %958 = vmatpush.bf16.msra.mxu2 %v2056_v19  ;;  %v1703_v18 = vld [vmem:[%s3625_s1 + $0x28] sm:$0xf]  ;;  %v2356_v19 = vld [vmem:[%s3625_s1 + $0x34] sm:$0xf0]  ;;  %v2104_v25 = vor.u32 %v2456_v16, %v2103_v15 }
  0x48   :  { %971 = vmatpush.bf16.msra.mxu3 %v2184_v23  ;;  %933 = vmatpush.bf16.msra.mxu0 %v1784_v29  ;;  %v1831_v22 = vld [vmem:[%s3625_s1 + $0x128] sm:$0xf]  ;;  %v2388_v23 = vld [vmem:[%s3625_s1 + $0x134] sm:$0xf0] }
  0x49   :  { %927 = vmatmul.bf16.vlgmr.msrb.gmra.mxu3 %v2874_v55  ;;  %v1959_v24 = vld [vmem:[%s3625_s1 + $0x228] sm:$0xf]  ;;  %v2420_v26 = vld [vmem:[%s3625_s1 + $0x234] sm:$0xf0]  ;;  %v1832_v33 = vor.u32 %v2388_v23, %v1831_v22 }
  0x4a   :  { %v2087_v27 = vld [vmem:[%s3625_s1 + $0x328] sm:$0xf]  ;;  %v2452_v28 = vld [vmem:[%s3625_s1 + $0x334] sm:$0xf0]  ;;  %v1960_v34 = vor.u32 %v2420_v26, %v1959_v24 }
  0x4b   :  { %946 = vmatpush.bf16.msra.mxu1 %v1912_v30  ;;  %959 = vmatpush.bf16.msra.mxu2 %v2040_v31  ;;  %v1687_v29 = vld [vmem:[%s3625_s1 + $0x8] sm:$0xf]  ;;  %v1704_v30 = vor.u32 %v2356_v19, %v1703_v18  ;;  %v2352_v31 = vld [vmem:[%s3625_s1 + $0x14] sm:$0xf0]  ;;  %v2088_v38 = vor.u32 %v2452_v28, %v2087_v27 }
  0x4c   :  { %972 = vmatpush.bf16.msra.mxu3 %v2168_v35  ;;  %934 = vmatpush.bf16.msra.mxu0 %v1768_v41  ;;  %v1815_v32 = vld [vmem:[%s3625_s1 + $0x108] sm:$0xf]  ;;  %v2384_v35 = vld [vmem:[%s3625_s1 + $0x114] sm:$0xf0]  ;;  %v2378_v41 = vld [vmem:[%s3625_s1 + $0xec] sm:$0xf] }
  0x4d   :  { %v1943_v36 = vld [vmem:[%s3625_s1 + $0x208] sm:$0xf]  ;;  %v2416_v37 = vld [vmem:[%s3625_s1 + $0x214] sm:$0xf0] }
  0x4e   :  { %v2071_v39 = vld [vmem:[%s3625_s1 + $0x308] sm:$0xf]  ;;  %v2448_v40 = vld [vmem:[%s3625_s1 + $0x314] sm:$0xf0] }
  0x4f   :  { %947 = vmatpush.bf16.msra.mxu1 %v1896_v42  ;;  %960 = vmatpush.bf16.msra.mxu2 %v2024_v43  ;;  %v1801_v42 = vld [vmem:[%s3625_s1 + $0xf8] sm:$0xf0]  ;;  %v2410_v43 = vld [vmem:[%s3625_s1 + $0x1ec] sm:$0xf] }
  0x50   :  { %973 = vmatpush.bf16.msra.mxu3 %v2152_v47  ;;  %935 = vmatpush.bf16.msra.mxu0 %v1752_v56 }
  0x53   :  { %948 = vmatpush.bf16.msra.mxu1 %v1880_v57  ;;  %961 = vmatpush.bf16.msra.mxu2 %v2008_v58 }
  0x54   :  { %974 = vmatpush.bf16.msra.mxu3 %v2136_v63  ;;  %936 = vmatpush.bf16.msra.mxu0 %v1736_v5 }
  0x57   :  { %949 = vmatpush.bf16.msra.mxu1 %v1864_v6  ;;  %962 = vmatpush.bf16.msra.mxu2 %v1992_v7 }
  0x58   :  { %975 = vmatpush.bf16.msra.mxu3 %v2120_v11  ;;  %937 = vmatpush.bf16.msra.mxu0 %v1720_v17 }
  0x5b   :  { %950 = vmatpush.bf16.msra.mxu1 %v1848_v20  ;;  %963 = vmatpush.bf16.msra.mxu2 %v1976_v21 }
  0x5c   :  { %976 = vmatpush.bf16.msra.mxu3 %v2104_v25 }
  0x5d   :  { %16 = vsyncpa [#allocation3], 0  ;;  %938 = vmatpush.bf16.msra.mxu0 %v1704_v30  ;;  %v1688_v44 = vor.u32 %v2352_v31, %v1687_v29  ;;  %v1929_v45 = vld [vmem:[%s3625_s1 + $0x1f8] sm:$0xf0]  ;;  %v2442_v46 = vld [vmem:[%s3625_s1 + $0x2ec] sm:$0xf]  ;;  %v1816_v48 = vor.u32 %v2384_v35, %v1815_v32  ;;  %v1944_v49 = vor.u32 %v2416_v37, %v1943_v36  ;;  %v2072_v53 = vor.u32 %v2448_v40, %v2071_v39 }
  0x5e   :  { %v2057_v47 = vld [vmem:[%s3625_s1 + $0x2f8] sm:$0xf0]  ;;  %v2474_v50 = vld [vmem:[%s3625_s1 + $0x3ec] sm:$0xf]  ;;  %v1804_v56 = vor.u32 %v2378_v41, %v1801_v42  ;;  %v1932_v57 = vor.u32 %v2410_v43, %v1929_v45  ;;  %vm1038_vm0 = vcmask 1041408   ;;  %s1668_s16 = sshll.u32 %s3635_s11, 4  ;;  %s1669_s16 = int_to_ptr.hbm [resolvable:$true] %s1668_s16 }
  0x5f   :  { %951 = vmatpush.bf16.msra.mxu1 %v1832_v33  ;;  %964 = vmatpush.bf16.msra.mxu2 %v1960_v34  ;;  %v2185_v52 = vld [vmem:[%s3625_s1 + $0x3f8] sm:$0xf0]  ;;  %v2060_v58 = vor.u32 %v2442_v46, %v2057_v47  ;;  %v2374_v59 = vld [vmem:[%s3625_s1 + $0xcc] sm:$0xf] }
  0x60   :  { %977 = vmatpush.bf16.msra.mxu3 %v2088_v38  ;;  %v1785_v61 = vld [vmem:[%s3625_s1 + $0xd8] sm:$0xf0]  ;;  %v2406_v62 = vld [vmem:[%s3625_s1 + $0x1cc] sm:$0xf]  ;;  %v2188_v63 = vor.u32 %v2474_v50, %v2185_v52 }
  0x61   :  { %939 = vmatpush.bf16.msra.mxu0 %v1688_v44  ;;  %v1913_v0 = vld [vmem:[%s3625_s1 + $0x1d8] sm:$0xf0]  ;;  %v2438_v1 = vld [vmem:[%s3625_s1 + $0x2cc] sm:$0xf]  ;;  %v1788_v5 = vor.u32 %v2374_v59, %v1785_v61 }
  0x62   :  { %v2041_v2 = vld [vmem:[%s3625_s1 + $0x2d8] sm:$0xf0]  ;;  %v2470_v3 = vld [vmem:[%s3625_s1 + $0x3cc] sm:$0xf]  ;;  %v1916_v6 = vor.u32 %v2406_v62, %v1913_v0 }
  0x63   :  { %952 = vmatpush.bf16.msra.mxu1 %v1816_v48  ;;  %965 = vmatpush.bf16.msra.mxu2 %v1944_v49  ;;  %v2169_v4 = vld [vmem:[%s3625_s1 + $0x3d8] sm:$0xf0]  ;;  %v2044_v7 = vor.u32 %v2438_v1, %v2041_v2  ;;  %v2370_v8 = vld [vmem:[%s3625_s1 + $0xac] sm:$0xf] }
  0x64   :  { %978 = vmatpush.bf16.msra.mxu3 %v2072_v53  ;;  %v1769_v9 = vld [vmem:[%s3625_s1 + $0xb8] sm:$0xf0]  ;;  %v2402_v10 = vld [vmem:[%s3625_s1 + $0x1ac] sm:$0xf]  ;;  %v2172_v11 = vor.u32 %v2470_v3, %v2169_v4  ;;  %940 = vmatmul.bf16.vlgmr.msra.gmra.mxu0 %v2872_v54 }
  0x65   :  { %984 = vmatpush.bf16.msrb.mxu0 %v1804_v56  ;;  %v1897_v12 = vld [vmem:[%s3625_s1 + $0x1b8] sm:$0xf0]  ;;  %v2434_v13 = vld [vmem:[%s3625_s1 + $0x2ac] sm:$0xf]  ;;  %v1772_v17 = vor.u32 %v2370_v8, %v1769_v9 }
  0x66   :  { %966 = vmatmul.bf16.vlgmr.msra.gmra.mxu2 %v2864_v51  ;;  %v2025_v14 = vld [vmem:[%s3625_s1 + $0x2b8] sm:$0xf0]  ;;  %v2466_v15 = vld [vmem:[%s3625_s1 + $0x3ac] sm:$0xf]  ;;  %953 = vmatmul.bf16.vlgmr.msra.gmra.mxu1 %v2879_v60  ;;  %v1900_v18 = vor.u32 %v2402_v10, %v1897_v12 }
  0x67   :  { %997 = vmatpush.bf16.msrb.mxu1 %v1932_v57  ;;  %1010 = vmatpush.bf16.msrb.mxu2 %v2060_v58  ;;  %v2153_v16 = vld [vmem:[%s3625_s1 + $0x3b8] sm:$0xf0]  ;;  %v2028_v19 = vor.u32 %v2434_v13, %v2025_v14  ;;  %v2366_v20 = vld [vmem:[%s3625_s1 + $0x8c] sm:$0xf] }
  0x68   :  { %1023 = vmatpush.bf16.msrb.mxu3 %v2188_v63  ;;  %v1753_v21 = vld [vmem:[%s3625_s1 + $0x98] sm:$0xf0]  ;;  %v2398_v22 = vld [vmem:[%s3625_s1 + $0x18c] sm:$0xf]  ;;  %v2156_v23 = vor.u32 %v2466_v15, %v2153_v16 }
  0x69   :  { %979 = vmatmul.bf16.vlgmr.msra.gmra.mxu3 %v2874_v55  ;;  %985 = vmatpush.bf16.msrb.mxu0 %v1788_v5  ;;  %v1881_v24 = vld [vmem:[%s3625_s1 + $0x198] sm:$0xf0]  ;;  %v2430_v25 = vld [vmem:[%s3625_s1 + $0x28c] sm:$0xf]  ;;  %v1756_v29 = vor.u32 %v2366_v20, %v1753_v21  ;;  %v3425_v21 = vld [vmem:[%s3626_s2] sm:$0xf] }
  0x6a   :  { %v2009_v26 = vld [vmem:[%s3625_s1 + $0x298] sm:$0xf0]  ;;  %v2462_v27 = vld [vmem:[%s3625_s1 + $0x38c] sm:$0xf]  ;;  %v1884_v30 = vor.u32 %v2398_v22, %v1881_v24  ;;  %v2565_v22 = vmov 2.0  }
  0x6b   :  { %998 = vmatpush.bf16.msrb.mxu1 %v1916_v6  ;;  %1011 = vmatpush.bf16.msrb.mxu2 %v2044_v7  ;;  %v2137_v28 = vld [vmem:[%s3625_s1 + $0x398] sm:$0xf0]  ;;  %v2012_v31 = vor.u32 %v2430_v25, %v2009_v26  ;;  %v2362_v32 = vld [vmem:[%s3625_s1 + $0x6c] sm:$0xf]  ;;  %2523 = vrcp.f32 %v2565_v22 }
  0x6c   :  { %1024 = vmatpush.bf16.msrb.mxu3 %v2172_v11  ;;  %v1737_v33 = vld [vmem:[%s3625_s1 + $0x78] sm:$0xf0]  ;;  %v2394_v34 = vld [vmem:[%s3625_s1 + $0x16c] sm:$0xf]  ;;  %v2140_v35 = vor.u32 %v2462_v27, %v2137_v28 }
  0x6d   :  { %986 = vmatpush.bf16.msrb.mxu0 %v1772_v17  ;;  %v1865_v36 = vld [vmem:[%s3625_s1 + $0x178] sm:$0xf0]  ;;  %v2426_v37 = vld [vmem:[%s3625_s1 + $0x26c] sm:$0xf]  ;;  %v1740_v41 = vor.u32 %v2362_v32, %v1737_v33 }
  0x6e   :  { %v1993_v38 = vld [vmem:[%s3625_s1 + $0x278] sm:$0xf0]  ;;  %v2458_v39 = vld [vmem:[%s3625_s1 + $0x36c] sm:$0xf]  ;;  %v1868_v42 = vor.u32 %v2394_v34, %v1865_v36 }
  0x6f   :  { %999 = vmatpush.bf16.msrb.mxu1 %v1900_v18  ;;  %1012 = vmatpush.bf16.msrb.mxu2 %v2028_v19  ;;  %v2121_v40 = vld [vmem:[%s3625_s1 + $0x378] sm:$0xf0]  ;;  %v1996_v43 = vor.u32 %v2426_v37, %v1993_v38  ;;  %v2358_v44 = vld [vmem:[%s3625_s1 + $0x4c] sm:$0xf] }
  0x70   :  { %1025 = vmatpush.bf16.msrb.mxu3 %v2156_v23  ;;  %v1721_v45 = vld [vmem:[%s3625_s1 + $0x58] sm:$0xf0]  ;;  %v2390_v46 = vld [vmem:[%s3625_s1 + $0x14c] sm:$0xf]  ;;  %v2124_v47 = vor.u32 %v2458_v39, %v2121_v40  ;;  %v170_v23 = vperm.slane %v3425_v21, 0 }
  0x71   :  { %987 = vmatpush.bf16.msrb.mxu0 %v1756_v29  ;;  %v1849_v48 = vld [vmem:[%s3625_s1 + $0x158] sm:$0xf0]  ;;  %v2422_v49 = vld [vmem:[%s3625_s1 + $0x24c] sm:$0xf]  ;;  %v1724_v56 = vor.u32 %v2358_v44, %v1721_v45  ;;  %v2524_v25 = vpop.eup %2523 }
  0x72   :  { %v1977_v50 = vld [vmem:[%s3625_s1 + $0x258] sm:$0xf0]  ;;  %v2454_v52 = vld [vmem:[%s3625_s1 + $0x34c] sm:$0xf]  ;;  %v1852_v57 = vor.u32 %v2390_v46, %v1849_v48  ;;  %v1068_v28 = vmul.f32 2.0, %v2524_v25  ;;  %vm1072_vm1 = vweird.f32 %v2524_v25 }
  0x73   :  { %1000 = vmatpush.bf16.msrb.mxu1 %v1884_v30  ;;  %1013 = vmatpush.bf16.msrb.mxu2 %v2012_v31  ;;  %v2105_v53 = vld [vmem:[%s3625_s1 + $0x358] sm:$0xf0]  ;;  %v1980_v58 = vor.u32 %v2422_v49, %v1977_v50  ;;  %v2354_v59 = vld [vmem:[%s3625_s1 + $0x2c] sm:$0xf]  ;;  %v2481_v49 = vld [vmem:[%s3629_s5 + $0x20] sm:$0xff] }
  0x74   :  { %1026 = vmatpush.bf16.msrb.mxu3 %v2140_v35  ;;  %v1705_v61 = vld [vmem:[%s3625_s1 + $0x38] sm:$0xf0]  ;;  %v2386_v62 = vld [vmem:[%s3625_s1 + $0x12c] sm:$0xf]  ;;  %v2108_v63 = vor.u32 %v2454_v52, %v2105_v53  ;;  %v1069_v30 = vsub.f32 1.0, %v1068_v28  ;;  %v171_v53 = vperm.slane %v3425_v21, 1 }
  0x75   :  { %988 = vmatpush.bf16.msrb.mxu0 %v1740_v41  ;;  %v1833_v0 = vld [vmem:[%s3625_s1 + $0x138] sm:$0xf0]  ;;  %v2418_v1 = vld [vmem:[%s3625_s1 + $0x22c] sm:$0xf]  ;;  %v1708_v5 = vor.u32 %v2354_v59, %v1705_v61  ;;  %v2483_v41 = vld [vmem:[%s3629_s5 + $0x30] sm:$0xff] }
  0x76   :  { %v1961_v2 = vld [vmem:[%s3625_s1 + $0x238] sm:$0xf0]  ;;  %v2450_v3 = vld [vmem:[%s3625_s1 + $0x32c] sm:$0xf]  ;;  %v1836_v6 = vor.u32 %v2386_v62, %v1833_v0  ;;  %v1070_v36 = vmul.f32 %v2524_v25, %v1069_v30 }
  0x77   :  { %1001 = vmatpush.bf16.msrb.mxu1 %v1868_v42  ;;  %1014 = vmatpush.bf16.msrb.mxu2 %v1996_v43  ;;  %v2089_v4 = vld [vmem:[%s3625_s1 + $0x338] sm:$0xf0]  ;;  %v1964_v7 = vor.u32 %v2418_v1, %v1961_v2  ;;  %v2350_v8 = vld [vmem:[%s3625_s1 + $0xc] sm:$0xf] }
  0x78   :  { %1027 = vmatpush.bf16.msrb.mxu3 %v2124_v47  ;;  %v1689_v9 = vld [vmem:[%s3625_s1 + $0x18] sm:$0xf0]  ;;  %v2382_v10 = vld [vmem:[%s3625_s1 + $0x10c] sm:$0xf]  ;;  %v2092_v11 = vor.u32 %v2450_v3, %v2089_v4  ;;  %v1071_v42 = vadd.f32 %v2524_v25, %v1070_v36 }
  0x79   :  { %989 = vmatpush.bf16.msrb.mxu0 %v1724_v56  ;;  %v1817_v12 = vld [vmem:[%s3625_s1 + $0x118] sm:$0xf0]  ;;  %v2414_v13 = vld [vmem:[%s3625_s1 + $0x20c] sm:$0xf]  ;;  %v1692_v17 = vor.u32 %v2350_v8, %v1689_v9 }
  0x7a   :  { %v1945_v14 = vld [vmem:[%s3625_s1 + $0x218] sm:$0xf0]  ;;  %v2446_v15 = vld [vmem:[%s3625_s1 + $0x30c] sm:$0xf]  ;;  %v1820_v18 = vor.u32 %v2382_v10, %v1817_v12  ;;  %v3438_v46 = vsel %vm1072_vm1, %v2524_v25, %v1071_v42  ;;  %v2477_v12 = vld [vmem:[%s3629_s5] sm:$0xff]  ;;  %vm1635_vm1 = vcmask 33792  }
  0x7b   :  { %1002 = vmatpush.bf16.msrb.mxu1 %v1852_v57  ;;  %1015 = vmatpush.bf16.msrb.mxu2 %v1980_v58  ;;  %v2073_v16 = vld [vmem:[%s3625_s1 + $0x318] sm:$0xf0]  ;;  %v1948_v19 = vor.u32 %v2414_v13, %v1945_v14  ;;  %v2482_v45 = vld [vmem:[%s3629_s5 + $0x28] sm:$0xff]  ;;  %v2487_v42 = vld [vmem:[%s3629_s5 + $0x50] sm:$0xff] }
  0x7c   :  { %1028 = vmatpush.bf16.msrb.mxu3 %v2108_v63  ;;  %v2076_v20 = vor.u32 %v2446_v15, %v2073_v16  ;;  %v2484_v35 = vld [vmem:[%s3629_s5 + $0x38] sm:$0xff]  ;;  %v2479_v63 = vld [vmem:[%s3629_s5 + $0x10] sm:$0xff]  ;;  %v2478_v4 = vld [vmem:[%s3629_s5 + $0x8] sm:$0xff] }
  0x7d   :  { %990 = vmatpush.bf16.msrb.mxu0 %v1708_v5  ;;  %v2480_v56 = vld [vmem:[%s3629_s5 + $0x18] sm:$0xff] }
  0x7e   :  { %v2492_v15 = vld [vmem:[%s3629_s5 + $0x78] sm:$0xff] }
  0x7f   :  { %1003 = vmatpush.bf16.msrb.mxu1 %v1836_v6  ;;  %1016 = vmatpush.bf16.msrb.mxu2 %v1964_v7 }
  0x80   :  { %1029 = vmatpush.bf16.msrb.mxu3 %v2092_v11 }
  0x81   :  { %991 = vmatpush.bf16.msrb.mxu0 %v1692_v17 }
  0x83   :  { %1004 = vmatpush.bf16.msrb.mxu1 %v1820_v18  ;;  %1017 = vmatpush.bf16.msrb.mxu2 %v1948_v19 }
  0x84   :  { %1030 = vmatpush.bf16.msrb.mxu3 %v2076_v20  ;;  %992 = vmatmul.bf16.vlgmr.msrb.gmra.mxu0 %v2872_v54 }
  0x85   :  { %1460 = vmatpush.bf16.msra.mxu0 %v2484_v35  ;;  %v172_v35 = vperm.slane %v3425_v21, 2 }
  0x86   :  { %1005 = vmatmul.bf16.vlgmr.msrb.gmra.mxu1 %v2879_v60  ;;  %1018 = vmatmul.bf16.vlgmr.msrb.gmra.mxu2 %v2864_v51 }
  0x87   :  { %1031 = vmatmul.bf16.vlgmr.msrb.gmra.mxu3 %v2874_v55  ;;  %1473 = vmatpush.bf16.msra.mxu1 %v2492_v15 }
  0x89   :  { %1461 = vmatpush.bf16.msra.mxu0 %v2483_v41 }
  0x8d   :  { %1462 = vmatpush.bf16.msra.mxu0 %v2482_v45 }
  0x91   :  { %1463 = vmatpush.bf16.msra.mxu0 %v2481_v49 }
  0x95   :  { %1464 = vmatpush.bf16.msra.mxu0 %v2480_v56 }
  0x99   :  { %1465 = vmatpush.bf16.msra.mxu0 %v2479_v63 }
  0x9d   :  { %1466 = vmatpush.bf16.msra.mxu0 %v2478_v4  ;;  %v2485_v4 = vld [vmem:[%s3629_s5 + $0x40] sm:$0xff] }
  0xa1   :  { %1467 = vmatpush.bf16.msra.mxu0 %v2477_v12 }
  0xa6   :  { %v837_v24 = vpop.f32.mrf.mxu0 }
  0xa7   :  { %v838_v26 = vadd.f32 %v837_v24, %v170_v23  ;;  %v850_v27 = vpop.f32.mrf.mxu1  ;;  %v2491_v23 = vld [vmem:[%s3629_s5 + $0x70] sm:$0xff] }
  0xa8   :  { %1474 = vmatpush.bf16.msra.mxu1 %v2491_v23  ;;  %v2497_v23 = vld [vmem:[%s3629_s5 + $0xa0] sm:$0xff] }
  0xa9   :  { %v851_v54 = vadd.f32 %v850_v27, %v838_v26  ;;  %v2490_v26 = vld [vmem:[%s3629_s5 + $0x68] sm:$0xff] }
  0xac   :  { %v863_v60 = vpop.f32.mrf.mxu2  ;;  %1475 = vmatpush.bf16.msra.mxu1 %v2490_v26 }
  0xad   :  { %v864_v29 = vadd.f32 %v863_v60, %v851_v54  ;;  %v876_v51 = vpop.f32.mrf.mxu3  ;;  %v2489_v60 = vld [vmem:[%s3629_s5 + $0x60] sm:$0xff] }
  0xae   :  { %v839_v31 = vpop.f32.mrf.mxu0 }
  0xaf   :  { %v877_v55 = vadd.f32 %v876_v51, %v864_v29  ;;  %v852_v32 = vpop.f32.mrf.mxu1 }
  0xb0   :  { %1476 = vmatpush.bf16.msra.mxu1 %v2489_v60  ;;  %v2488_v32 = vld [vmem:[%s3629_s5 + $0x58] sm:$0xff] }
  0xb1   :  { %v1039_v33 = vsel %vm1038_vm0, %v877_v55, 0.0  ;;  %v2496_v60 = vld [vmem:[%s3629_s5 + $0x98] sm:$0xff] }
  0xb2   :  { %v1040_v34 = vrot.slane %v1039_v33, 4 }
  0xb4   :  { %v1041_v37 = vadd.f32 %v1040_v34, %v1039_v33  ;;  %v865_v38 = vpop.f32.mrf.mxu2  ;;  %1477 = vmatpush.bf16.msra.mxu1 %v2488_v32 }
  0xb5   :  { %v878_v39 = vpop.f32.mrf.mxu3 }
  0xb6   :  { %v1042_v40 = vrot.slane %v1041_v37, 2  ;;  %v3495_v39 = vld [vmem:[%s3628_s4] sm:$0xf] }
  0xb7   :  { %v1180_v49 = vperm.slane %v3495_v39, 0 }
  0xb8   :  { %v1043_v43 = vadd.f32 %v1042_v40, %v1041_v37  ;;  %1478 = vmatpush.bf16.msra.mxu1 %v2487_v42 }
  0xba   :  { %v1044_v44 = vrot.slane %v1043_v43, 1 }
  0xbc   :  { %v1045_v47 = vadd.f32 %v1044_v44, %v1043_v43 }
  0xbe   :  { %v1074_v48 = vmul.f32 %v3438_v46, %v1045_v47 }
  0xc0   :  { %v3444_v50 = vsub.f32 %v877_v55, %v1074_v48  ;;  %v3480_v55 = vld [vmem:[%s3627_s3] sm:$0xf] }
  0xc1   :  { %v1119_v36 = vperm.slane %v3480_v55, 0 }
  0xc2   :  { %v1082_v52 = vmul.f32 %v3444_v50, %v3444_v50  ;;  %v889_v59 = vpop.f32.mrf.mxu0 }
  0xc3   :  { %v890_v61 = vadd.f32 %v889_v59, %v171_v53  ;;  %v902_v62 = vpop.f32.mrf.mxu1  ;;  %v1127_v47 = vmul.f32 %v1119_v36, %v3444_v50 }
  0xc4   :  { %v1086_v57 = vsel %vm1038_vm0, %v1082_v52, 0.0 }
  0xc5   :  { %v1087_v58 = vrot.slane %v1086_v57, 4  ;;  %v903_v1 = vadd.f32 %v902_v62, %v890_v61 }
  0xc7   :  { %v1088_v0 = vadd.f32 %v1087_v58, %v1086_v57  ;;  %v2486_v58 = vld [vmem:[%s3629_s5 + $0x48] sm:$0xff] }
  0xc8   :  { %1479 = vmatpush.bf16.msra.mxu1 %v2486_v58 }
  0xc9   :  { %v1089_v2 = vrot.slane %v1088_v0, 2  ;;  %v915_v3 = vpop.f32.mrf.mxu2 }
  0xca   :  { %v916_v6 = vadd.f32 %v915_v3, %v903_v1  ;;  %v891_v10 = vpop.f32.mrf.mxu0 }
  0xcb   :  { %v1090_v5 = vadd.f32 %v1089_v2, %v1088_v0  ;;  %v904_v11 = vpop.f32.mrf.mxu1 }
  0xcc   :  { %v928_v7 = vpop.f32.mrf.mxu3  ;;  %1480 = vmatpush.bf16.msra.mxu1 %v2485_v4 }
  0xcd   :  { %v1091_v8 = vrot.slane %v1090_v5, 1  ;;  %v929_v9 = vadd.f32 %v928_v7, %v916_v6  ;;  %v2500_v6 = vld [vmem:[%s3629_s5 + $0xb8] sm:$0xff] }
  0xce   :  { %1486 = vmatpush.bf16.msra.mxu2 %v2500_v6 }
  0xcf   :  { %v1092_v13 = vadd.f32 %v1091_v8, %v1090_v5  ;;  %v1046_v14 = vsel %vm1038_vm0, %v929_v9, 0.0 }
  0xd0   :  { %v1047_v16 = vrot.slane %v1046_v14, 4 }
  0xd1   :  { %v1114_v17 = vmul.f32 %v1092_v13, %v3438_v46  ;;  %v917_v19 = vpop.f32.mrf.mxu2 }
  0xd2   :  { %v1048_v18 = vadd.f32 %v1047_v16, %v1046_v14  ;;  %v2499_v14 = vld [vmem:[%s3629_s5 + $0xb0] sm:$0xff]  ;;  %v2498_v19 = vld [vmem:[%s3629_s5 + $0xa8] sm:$0xff] }
  0xd3   :  { %v1131_v20 = vadd.f32 1e-05, %v1114_v17  ;;  %1487 = vmatpush.bf16.msra.mxu2 %v2499_v14  ;;  %v2505_v14 = vld [vmem:[%s3629_s5 + $0xe0] sm:$0xff] }
  0xd4   :  { %v930_v22 = vpop.f32.mrf.mxu3  ;;  %v1049_v24 = vrot.slane %v1048_v18, 2 }
  0xd5   :  { %2525 = vrsqrt.f32 %v1131_v20  ;;  %vm1141_vm2 = vweird.f32 %v1131_v20 }
  0xd6   :  { %v1050_v25 = vadd.f32 %v1049_v24, %v1048_v18 }
  0xd7   :  { %1488 = vmatpush.bf16.msra.mxu2 %v2498_v19  ;;  %v2504_v19 = vld [vmem:[%s3629_s5 + $0xd8] sm:$0xff] }
  0xd8   :  { %v1051_v27 = vrot.slane %v1050_v25, 1 }
  0xda   :  { %v1052_v54 = vadd.f32 %v1051_v27, %v1050_v25 }
  0xdb   :  { %v2526_v28 = vpop.eup %2525  ;;  %1489 = vmatpush.bf16.msra.mxu2 %v2497_v23 }
  0xdc   :  { %v1136_v29 = vmul.f32 %v2526_v28, %v1131_v20  ;;  %v1075_v51 = vmul.f32 %v3438_v46, %v1052_v54  ;;  %vm1142_vm3 = vweird.f32 %v2526_v28 }
  0xdd   :  { %vm1143_vm4 = vmor %vm1141_vm2, %vm1142_vm3 }
  0xde   :  { %v1137_v30 = vmul.f32 %v2526_v28, %v1136_v29  ;;  %v3482_v31 = vsub.f32 %v929_v9, %v1075_v51 }
  0xdf   :  { %1490 = vmatpush.bf16.msra.mxu2 %v2496_v60 }
  0xe0   :  { %v1138_v33 = vmul.f32 0.5, %v1137_v30  ;;  %v1083_v34 = vmul.f32 %v3482_v31, %v3482_v31  ;;  %v1120_v30 = vperm.slane %v3480_v55, 1 }
  0xe1   :  { %v941_v41 = vpop.f32.mrf.mxu0 }
  0xe2   :  { %v1139_v37 = vsub.f32 1.5, %v1138_v33  ;;  %v1093_v38 = vsel %vm1038_vm0, %v1083_v34, 0.0  ;;  %v942_v44 = vadd.f32 %v941_v41, %v172_v35 }
  0xe3   :  { %v1094_v40 = vrot.slane %v1093_v38, 4  ;;  %v954_v45 = vpop.f32.mrf.mxu1 }
  0xe4   :  { %v1140_v43 = vmul.f32 %v2526_v28, %v1139_v37  ;;  %v955_v53 = vadd.f32 %v954_v45, %v942_v44  ;;  %v2494_v45 = vld [vmem:[%s3629_s5 + $0x88] sm:$0xff] }
  0xe5   :  { %v1095_v48 = vadd.f32 %v1094_v40, %v1093_v38  ;;  %v1128_v40 = vmul.f32 %v1120_v30, %v3482_v31 }
  0xe6   :  { %v1144_v52 = vsel %vm1143_vm4, %v2526_v28, %v1140_v43  ;;  %v173_v28 = vperm.slane %v3425_v21, 3  ;;  %v2495_v21 = vld [vmem:[%s3629_s5 + $0x90] sm:$0xff]  ;;  %v1181_v43 = vperm.slane %v3495_v39, 1 }
  0xe7   :  { %v1175_v56 = vmul.f32 %v1144_v52, %v1127_v47  ;;  %v1096_v57 = vrot.slane %v1095_v48, 2  ;;  %1491 = vmatpush.bf16.msra.mxu2 %v2495_v21  ;;  %v2501_v21 = vld [vmem:[%s3629_s5 + $0xc0] sm:$0xff] }
  0xe9   :  { %v967_v59 = vpop.f32.mrf.mxu2  ;;  %v1097_v61 = vadd.f32 %v1096_v57, %v1095_v48  ;;  %v1188_v0 = vadd.f32 %v1180_v49, %v1175_v56  ;;  %v943_v2 = vpop.f32.mrf.mxu0 }
  0xea   :  { %v968_v62 = vadd.f32 %v967_v59, %v955_v53  ;;  %v2493_v59 = vld [vmem:[%s3629_s5 + $0x80] sm:$0xff] }
  0xeb   :  { %v1098_v50 = vrot.slane %v1097_v61, 1  ;;  %v1192_v3 = vmax.f32 %v1188_v0, 0.0  ;;  %v956_v5 = vpop.f32.mrf.mxu1  ;;  %1492 = vmatpush.bf16.msra.mxu2 %v2494_v45  ;;  %v2508_v0 = vld [vmem:[%s3629_s5 + $0xf8] sm:$0xff] }
  0xec   :  { %v980_v63 = vpop.f32.mrf.mxu3  ;;  %1499 = vmatpush.bf16.msra.mxu3 %v2508_v0  ;;  %v2507_v5 = vld [vmem:[%s3629_s5 + $0xf0] sm:$0xff] }
  0xed   :  { %v981_v1 = vadd.f32 %v980_v63, %v968_v62  ;;  %v1099_v7 = vadd.f32 %v1098_v50, %v1097_v61  ;;  %v1196_v9 = vpack.c.bf16 %v1192_v3, %v1192_v3 }
  0xef   :  { %v1053_v8 = vsel %vm1038_vm0, %v981_v1, 0.0  ;;  %v1115_v11 = vmul.f32 %v1099_v7, %v3438_v46  ;;  %1468 = vmatmul.bf16.vlgmr.msra.gmra.mxu0 %v1196_v9  ;;  %1493 = vmatpush.bf16.msra.mxu2 %v2493_v59 }
  0xf0   :  { %v1054_v10 = vrot.slane %v1053_v8, 4  ;;  %1500 = vmatpush.bf16.msra.mxu3 %v2507_v5 }
  0xf1   :  { %v969_v13 = vpop.f32.mrf.mxu2  ;;  %v1132_v15 = vadd.f32 1e-05, %v1115_v11  ;;  %v2506_v11 = vld [vmem:[%s3629_s5 + $0xe8] sm:$0xff] }
  0xf2   :  { %v1055_v12 = vadd.f32 %v1054_v10, %v1053_v8 }
  0xf3   :  { %2527 = vrsqrt.f32 %v1132_v15  ;;  %vm1151_vm6 = vweird.f32 %v1132_v15 }
  0xf4   :  { %v982_v16 = vpop.f32.mrf.mxu3  ;;  %v1056_v17 = vrot.slane %v1055_v12, 2  ;;  %1501 = vmatpush.bf16.msra.mxu3 %v2506_v11 }
  0xf6   :  { %v1057_v18 = vadd.f32 %v1056_v17, %v1055_v12 }
  0xf8   :  { %v1058_v20 = vrot.slane %v1057_v18, 1  ;;  %1502 = vmatpush.bf16.msra.mxu3 %v2505_v14 }
  0xf9   :  { %v2528_v24 = vpop.eup %2527 }
  0xfa   :  { %v1059_v22 = vadd.f32 %v1058_v20, %v1057_v18  ;;  %v1146_v25 = vmul.f32 %v2528_v24, %v1132_v15  ;;  %vm1152_vm5 = vweird.f32 %v2528_v24 }
  0xfb   :  { %vm1153_vm7 = vmor %vm1151_vm6, %vm1152_vm5 }
  0xfc   :  { %v1076_v26 = vmul.f32 %v3438_v46, %v1059_v22  ;;  %v1147_v27 = vmul.f32 %v2528_v24, %v1146_v25  ;;  %1503 = vmatpush.bf16.msra.mxu3 %v2504_v19  ;;  %v1121_v25 = vperm.slane %v3480_v55, 2  ;;  %v2513_v19 = vld [vmem:[%s3633_s9 + $0x20] sm:$0xff] }
  0xfe   :  { %v3523_v54 = vsub.f32 %v981_v1, %v1076_v26  ;;  %v1148_v29 = vmul.f32 0.5, %v1147_v27  ;;  %v2503_v26 = vld [vmem:[%s3629_s5 + $0xd0] sm:$0xff] }
 0x100   :  { %v1084_v51 = vmul.f32 %v3523_v54, %v3523_v54  ;;  %v1149_v33 = vsub.f32 1.5, %v1148_v29  ;;  %1504 = vmatpush.bf16.msra.mxu3 %v2503_v26  ;;  %v2511_v26 = vld [vmem:[%s3633_s9 + $0x10] sm:$0xff] }
 0x101   :  { %v993_v32 = vpop.f32.mrf.mxu0 }
 0x102   :  { %v1100_v34 = vsel %vm1038_vm0, %v1084_v51, 0.0  ;;  %v994_v35 = vadd.f32 %v993_v32, %v173_v28  ;;  %v1150_v38 = vmul.f32 %v2528_v24, %v1149_v33  ;;  %v1129_v51 = vmul.f32 %v1121_v25, %v3523_v54  ;;  %v2502_v33 = vld [vmem:[%s3629_s5 + $0xc8] sm:$0xff] }
 0x103   :  { %v1006_v36 = vpop.f32.mrf.mxu1  ;;  %v1101_v37 = vrot.slane %v1100_v34, 4  ;;  %v1182_v32 = vperm.slane %v3495_v39, 2 }
 0x104   :  { %v1007_v42 = vadd.f32 %v1006_v36, %v994_v35  ;;  %v1154_v44 = vsel %vm1153_vm7, %v2528_v24, %v1150_v38  ;;  %1505 = vmatpush.bf16.msra.mxu3 %v2502_v33 }
 0x105   :  { %v1102_v41 = vadd.f32 %v1101_v37, %v1100_v34  ;;  %v1176_v47 = vmul.f32 %v1154_v44, %v1128_v40 }
 0x107   :  { %v1103_v48 = vrot.slane %v1102_v41, 2  ;;  %v1189_v58 = vadd.f32 %v1181_v43, %v1176_v47 }
 0x108   :  { %1506 = vmatpush.bf16.msra.mxu3 %v2501_v21 }
 0x109   :  { %v1019_v49 = vpop.f32.mrf.mxu2  ;;  %v1104_v52 = vadd.f32 %v1103_v48, %v1102_v41  ;;  %v995_v57 = vpop.f32.mrf.mxu0  ;;  %v1193_v63 = vmax.f32 %v1189_v58, 0.0  ;;  %v1183_v58 = vperm.slane %v3495_v39, 3 }
 0x10a   :  { %v1020_v53 = vadd.f32 %v1019_v49, %v1007_v42  ;;  %v1032_v56 = vpop.f32.mrf.mxu3 }
 0x10b   :  { %v1008_v31 = vpop.f32.mrf.mxu1  ;;  %v1105_v61 = vrot.slane %v1104_v52, 1  ;;  %v1197_v2 = vpack.c.bf16 %v1193_v63, %v1193_v63 }
 0x10c   :  { %v1033_v62 = vadd.f32 %v1032_v56, %v1020_v53 }
 0x10d   :  { %v1106_v50 = vadd.f32 %v1105_v61, %v1104_v52  ;;  %1481 = vmatmul.bf16.vlgmr.msra.gmra.mxu1 %v1197_v2  ;;  %v1122_v52 = vperm.slane %v3480_v55, 3 }
 0x10e   :  { %v1060_v1 = vsel %vm1038_vm0, %v1033_v62, 0.0 }
 0x10f   :  { %v1061_v3 = vrot.slane %v1060_v1, 4  ;;  %v1116_v4 = vmul.f32 %v1106_v50, %v3438_v46 }
 0x111   :  { %v1062_v6 = vadd.f32 %v1061_v3, %v1060_v1  ;;  %v1021_v7 = vpop.f32.mrf.mxu2  ;;  %v1133_v8 = vadd.f32 1e-05, %v1116_v4  ;;  %v2519_v4 = vld [vmem:[%s3630_s6] ss:$0 sm:$0xff] }
 0x112   :  { %v1034_v9 = vpop.f32.mrf.mxu3 }
 0x113   :  { %v1063_v10 = vrot.slane %v1062_v6, 2  ;;  %2529 = vrsqrt.f32 %v1133_v8  ;;  %vm1161_vm9 = vweird.f32 %v1133_v8  ;;  %v2516_v9 = vld [vmem:[%s3633_s9 + $0x38] sm:$0xff] }
 0x114   :  { %1622 = vmatpush.bf16.msrb.mxu0 %v2516_v9 }
 0x115   :  { %v1064_v12 = vadd.f32 %v1063_v10, %v1062_v6 }
 0x117   :  { %v1065_v13 = vrot.slane %v1064_v12, 1 }
 0x119   :  { %v1066_v15 = vadd.f32 %v1065_v13, %v1064_v12  ;;  %v2530_v16 = vpop.eup %2529  ;;  %v2515_v12 = vld [vmem:[%s3633_s9 + $0x30] sm:$0xff] }
 0x11a   :  { %v1156_v17 = vmul.f32 %v2530_v16, %v1133_v8  ;;  %vm1162_vm8 = vweird.f32 %v2530_v16  ;;  %1623 = vmatpush.bf16.msrb.mxu0 %v2515_v12 }
 0x11b   :  { %v1077_v18 = vmul.f32 %v3438_v46, %v1066_v15  ;;  %vm1163_vm10 = vmor %vm1161_vm9, %vm1162_vm8 }
 0x11c   :  { %v1157_v20 = vmul.f32 %v2530_v16, %v1156_v17 }
 0x11d   :  { %v1081_v22 = vsub.f32 %v1033_v62, %v1077_v18 }
 0x11e   :  { %v1158_v23 = vmul.f32 0.5, %v1157_v20 }
 0x11f   :  { %v1085_v24 = vmul.f32 %v1081_v22, %v1081_v22  ;;  %v1130_v57 = vmul.f32 %v1122_v52, %v1081_v22  ;;  %v2522_v52 = vld [vmem:[%s3634_s10] ss:$0 sm:$0xff] }
 0x120   :  { %v1159_v27 = vsub.f32 1.5, %v1158_v23  ;;  %v2512_v23 = vld [vmem:[%s3633_s9 + $0x18] sm:$0xff] }
 0x121   :  { %v1107_v28 = vsel %vm1038_vm0, %v1085_v24, 0.0 }
 0x122   :  { %v1108_v60 = vrot.slane %v1107_v28, 4  ;;  %v1160_v29 = vmul.f32 %v2530_v16, %v1159_v27 }
 0x124   :  { %v1109_v30 = vadd.f32 %v1108_v60, %v1107_v28  ;;  %v1164_v34 = vsel %vm1163_vm10, %v2530_v16, %v1160_v29  ;;  %v2514_v16 = vld [vmem:[%s3633_s9 + $0x28] sm:$0xff] }
 0x125   :  { %v1177_v35 = vmul.f32 %v1164_v34, %v1129_v51  ;;  %1624 = vmatpush.bf16.msrb.mxu0 %v2514_v16  ;;  %v2510_v29 = vld [vmem:[%s3633_s9 + $0x8] sm:$0xff] }
 0x126   :  { %v1110_v36 = vrot.slane %v1109_v30, 2 }
 0x127   :  { %v1190_v38 = vadd.f32 %v1182_v32, %v1177_v35 }
 0x128   :  { %v1111_v37 = vadd.f32 %v1110_v36, %v1109_v30  ;;  %v2509_v30 = vld [vmem:[%s3633_s9] sm:$0xff] }
 0x129   :  { %v1194_v54 = vmax.f32 %v1190_v38, 0.0  ;;  %1625 = vmatpush.bf16.msrb.mxu0 %v2513_v19 }
 0x12a   :  { %v1112_v40 = vrot.slane %v1111_v37, 1 }
 0x12b   :  { %v1198_v42 = vpack.c.bf16 %v1194_v54, %v1194_v54  ;;  %v2520_v54 = vld [vmem:[%s3631_s7] ss:$0 sm:$0xff]  ;;  %s2566_s7 = smov [#allocation2]  }
 0x12c   :  { %v1113_v41 = vadd.f32 %v1112_v40, %v1111_v37 }
 0x12d   :  { %1494 = vmatmul.bf16.vlgmr.msra.gmra.mxu2 %v1198_v42  ;;  %1626 = vmatpush.bf16.msrb.mxu0 %v2512_v23 }
 0x12e   :  { %v1117_v43 = vmul.f32 %v1113_v41, %v3438_v46 }
 0x130   :  { %v1134_v44 = vadd.f32 1e-05, %v1117_v43 }
 0x131   :  { %1627 = vmatpush.bf16.msrb.mxu0 %v2511_v26 }
 0x132   :  { %2531 = vrsqrt.f32 %v1134_v44  ;;  %vm1171_vm12 = vweird.f32 %v1134_v44 }
 0x135   :  { %1628 = vmatpush.bf16.msrb.mxu0 %v2510_v29 }
 0x138   :  { %v2532_v45 = vpop.eup %2531 }
 0x139   :  { %v1166_v47 = vmul.f32 %v2532_v45, %v1134_v44  ;;  %vm1172_vm11 = vweird.f32 %v2532_v45  ;;  %1629 = vmatpush.bf16.msrb.mxu0 %v2509_v30 }
 0x13a   :  { %vm1173_vm13 = vmor %vm1171_vm12, %vm1172_vm11 }
 0x13b   :  { %v1167_v48 = vmul.f32 %v2532_v45, %v1166_v47 }
 0x13d   :  { %v1168_v49 = vmul.f32 0.5, %v1167_v48 }
 0x13f   :  { %v1169_v53 = vsub.f32 1.5, %v1168_v49 }
 0x141   :  { %v1170_v56 = vmul.f32 %v2532_v45, %v1169_v53 }
 0x143   :  { %v1174_v31 = vsel %vm1173_vm13, %v2532_v45, %v1170_v56 }
 0x144   :  { %v1178_v59 = vmul.f32 %v1174_v31, %v1130_v57 }
 0x146   :  { %v1191_v61 = vadd.f32 %v1183_v58, %v1178_v59 }
 0x148   :  { %v1195_v62 = vmax.f32 %v1191_v61, 0.0 }
 0x14a   :  { %v1199_v63 = vpack.c.bf16 %v1195_v62, %v1195_v62 }
 0x14c   :  { %1507 = vmatmul.bf16.vlgmr.msra.gmra.mxu3 %v1199_v63 }
 0x16c   :  { %v1469_v0 = vpop.f32.mrf.mxu0 }
 0x16d   :  { %v1470_v5 = vadd.f32 %v2519_v4, %v1469_v0 }
 0x174   :  { %v1471_v50 = vpop.f32.mrf.mxu0 }
 0x18a   :  { %v1482_v1 = vpop.f32.mrf.mxu1 }
 0x18b   :  { %v1483_v6 = vadd.f32 %v1482_v1, %v1470_v5 }
 0x192   :  { %v1484_v2 = vpop.f32.mrf.mxu1 }
 0x1b0   :  { %v1495_v3 = vpop.f32.mrf.mxu2 }
 0x1b1   :  { %v1496_v7 = vadd.f32 %v1495_v3, %v1483_v6 }
 0x1b8   :  { %v1497_v55 = vpop.f32.mrf.mxu2 }
 0x1cf   :  { %v1508_v39 = vpop.f32.mrf.mxu3 }
 0x1d0   :  { %v1509_v8 = vadd.f32 %v1508_v39, %v1496_v7 }
 0x1d2   :  { %v1514_v10 = vsel %vm1038_vm0, %v1509_v8, 0.0 }
 0x1d3   :  { %v1515_v11 = vrot.slane %v1514_v10, 4 }
 0x1d5   :  { %v1516_v13 = vadd.f32 %v1515_v11, %v1514_v10 }
 0x1d7   :  { %v1517_v14 = vrot.slane %v1516_v13, 2  ;;  %v1510_v15 = vpop.f32.mrf.mxu3 }
 0x1d9   :  { %v1518_v17 = vadd.f32 %v1517_v14, %v1516_v13 }
 0x1db   :  { %v1519_v18 = vrot.slane %v1518_v17, 1 }
 0x1dd   :  { %v1520_v20 = vadd.f32 %v1519_v18, %v1518_v17 }
 0x1df   :  { %v1521_v22 = vmul.f32 %v1520_v20, %v3438_v46 }
 0x1e1   :  { %v1522_v24 = vsub.f32 %v1509_v8, %v1521_v22 }
 0x1e3   :  { %v1523_v25 = vmul.f32 %v1522_v24, %v1522_v24  ;;  %v1535_v43 = vmul.f32 %v2520_v54, %v1522_v24 }
 0x1e5   :  { %v1524_v27 = vsel %vm1038_vm0, %v1523_v25, 0.0 }
 0x1e6   :  { %v1525_v28 = vrot.slane %v1524_v27, 4 }
 0x1e8   :  { %v1526_v60 = vadd.f32 %v1525_v28, %v1524_v27 }
 0x1ea   :  { %v1527_v51 = vrot.slane %v1526_v60, 2 }
 0x1ec   :  { %v1528_v32 = vadd.f32 %v1527_v51, %v1526_v60 }
 0x1ee   :  { %v1529_v33 = vrot.slane %v1528_v32, 1 }
 0x1f0   :  { %v1530_v34 = vadd.f32 %v1529_v33, %v1528_v32 }
 0x1f2   :  { %v1531_v35 = vmul.f32 %v1530_v34, %v3438_v46  ;;  %v2521_v46 = vld [vmem:[%s3632_s8] ss:$0 sm:$0xff]  ;;  %s1666_s8 = sshll.u32 %s2566_s7, 4  ;;  %s1667_s8 = int_to_ptr.vmem [resolvable:$true] %s1666_s8 }
 0x1f4   :  { %v1536_v36 = vadd.f32 1e-05, %v1531_v35 }
 0x1f6   :  { %2533 = vrsqrt.f32 %v1536_v36  ;;  %vm1543_vm15 = vweird.f32 %v1536_v36 }
 0x1fc   :  { %v2534_v21 = vpop.eup %2533 }
 0x1fd   :  { %v1538_v37 = vmul.f32 %v2534_v21, %v1536_v36  ;;  %vm1544_vm14 = vweird.f32 %v2534_v21 }
 0x1fe   :  { %vm1545_vm0 = vmor %vm1543_vm15, %vm1544_vm14 }
 0x1ff   :  { %v1539_v38 = vmul.f32 %v2534_v21, %v1538_v37 }
 0x201   :  { %v1540_v40 = vmul.f32 0.5, %v1539_v38 }
 0x203   :  { %v1541_v41 = vsub.f32 1.5, %v1540_v40 }
 0x205   :  { %v1542_v42 = vmul.f32 %v2534_v21, %v1541_v41 }
 0x207   :  { %v1546_v44 = vsel %vm1545_vm0, %v2534_v21, %v1542_v42 }
 0x208   :  { %v1547_v45 = vmul.f32 %v1546_v44, %v1535_v43 }
 0x20a   :  { %v1551_v47 = vadd.f32 %v2521_v46, %v1547_v45 }
 0x20c   :  { %v1552_v48 = vmax.f32 %v1551_v47, 0.0 }
 0x20e   :  { %v1553_v49 = vpack.c.bf16 %v1552_v48, %v1552_v48 }
 0x210   :  { %1630 = vmatmul.bf16.vlgmr.msrb.gmra.mxu0 %v1553_v49 }
 0x28d   :  { %v1631_v53 = vpop.f32.mrf.mxu0 }
 0x28e   :  { %v1632_v56 = vadd.f32 %v2522_v52, %v1631_v53 }
 0x290   :  { %v1636_v57 = vsel %vm1635_vm1, %v1632_v56, -inf }
 0x291   :  { %1637 = vmax.xlane.f32.xlu0 %v1636_v57 }
 0x295   :  { %v1633_v58 = vpop.f32.mrf.mxu0 }
 0x304   :  { %v1638_v31 = vpop.xlane.xlu0 %1637 }
 0x305   :  { %v1639_v59 = vsub.f32 %v1632_v56, %v1638_v31 }
 0x307   :  { %v1640_v61 = vmul.f32 1.442695, %v1639_v59 }
 0x309   :  { %2535 = vpow2.f32 %v1640_v61 }
 0x30f   :  { %v2536_v62 = vpop.eup %2535 }
 0x310   :  { %v1642_v63 = vsel %vm1635_vm1, %v2536_v62, 0.0 }
 0x311   :  { %1643 = vadd.xlane.f32.xlu0 %v1642_v63 }
 0x384   :  { %v1644_v0 = vpop.xlane.xlu0 %1643 }
 0x385   :  { %2537 = vrcp.f32 %v1644_v0  ;;  %v1656_v3 = vand.u32 2147483648, %v1644_v0  ;;  %v1654_v4 = vand.u32 2147483647, %v1644_v0  ;;  %vm1650_vm3 = vweird.f32 %v1644_v0 }
 0x387   :  { %v1657_v6 = vor.u32 1.1754944e-38, %v1656_v3  ;;  %vm1655_vm5 = vcmp.eq.f32.partialorder %v1654_v4, 8.507059e+37 }
 0x38b   :  { %v2538_v50 = vpop.eup %2537 }
 0x38c   :  { %v1646_v1 = vmul.f32 %v2538_v50, %v1644_v0  ;;  %vm1651_vm2 = vweird.f32 %v2538_v50 }
 0x38d   :  { %vm1652_vm4 = vmor %vm1650_vm3, %vm1651_vm2 }
 0x38e   :  { %v1647_v2 = vsub.f32 1.0, %v1646_v1 }
 0x390   :  { %v1648_v55 = vmul.f32 %v2538_v50, %v1647_v2 }
 0x392   :  { %v1649_v5 = vadd.f32 %v2538_v50, %v1648_v55 }
 0x394   :  { %v1653_v7 = vsel %vm1652_vm4, %v2538_v50, %v1649_v5 }
 0x395   :  { %v1658_v39 = vsel %vm1655_vm5, %v1657_v6, %v1653_v7 }
 0x396   :  { %v1659_v8 = vmul.f32 %v2536_v62, %v1658_v39 }
 0x398   :  { %1660 = vst.msk [vmem:[#allocation2] sm:$0x3] %vm1635_vm1, %v1659_v8 }
 0x399   :  { %1671 = dma.vmem_to_hbm [thread:$0]  %s1667_s8, 32, %s1669_s16, [#allocation3]  }
 0x39a   :  { %2563 = dma.done.wait [#allocation3], 32  }
 0x39b   :  { %2564 = vsyncadd [#allocation3], 4294967264 }
 0x39c   :  { %1676 = vsyncpa [#allocation3], 1 }

</bundles_post_ra>
